<compile_context>
chip_gen: v5e
topology: v5e:2x2
jax: 0.10.0
libtpu: 0.0.40
codegen_flags: <defaults>
</compile_context>

<pallas_src>
import numpy as np

import jax
import jax.numpy as jnp
from jax.experimental import pallas as pl
from jax.experimental.pallas import tpu as pltpu

LN_EPS = 1e-5          # torch_geometric.nn.norm.LayerNorm eps
COORS_EPS = 1e-8       # CoorsNorm eps
LANE = 128             # TPU lane width
EDGE_TILE = 1024       # max edges per grid step
NODE_TILE = 256        # max destination nodes per grid step


def _pad128(x):
    return ((int(x) + LANE - 1) // LANE) * LANE


def _round_up(a, b):
    return ((int(a) + int(b) - 1) // int(b)) * int(b)


def _cdiv(a, b):
    return -(-int(a) // int(b))


def _pick_edge_tile(num_edges):
    return int(min(EDGE_TILE, max(256, _round_up(max(num_edges, 1), 256))))


def _pick_node_tile(n_dst):
    nt = int(min(NODE_TILE, max(64, _round_up(n_dst, 8))))
    # Prefer >=2 node blocks so the "parallel" axis can shard over v7x's 2 TCs.
    if _cdiv(n_dst, nt) == 1 and nt >= 128 and n_dst > nt // 2:
        nt = _round_up(nt // 2, 8)
    return nt


# -----------------------------------------------------------------------------
# Fused per-layer kernel: message MLP -> attention -> pos-net -> fused one-hot
# scatter (sum features / mean coords) -> update MLP -> residual + coord update
# Grid: (node blocks ["parallel"], edge blocks of that node block ["arbitrary"])
# -----------------------------------------------------------------------------
def make_fused_kernel(use_attention, att_bias, Fp, Hp, Op, EFW, pad_blk,
                      node_tile, edge_tile):
    def kernel(tbl_ref,                                    # scalar prefetch (SMEM)
               ef_ref, dst_ref, node_ref,
               mw1, mb1, mw2, mb2,                         # message_net (LN folded)
               pw1, pb1, pw2,                              # pos_net
               uw1, ub1, uw2, ub2,                         # update_net (stacked)
               *rest):
        if use_attention:
            aw = rest[0]
            rest = rest[1:]
        out_ref, acc = rest

        n = pl.program_id(0)
        j = pl.program_id(1)

        @pl.when(j == 0)
        def _init():
            acc[...] = jnp.zeros_like(acc)

        # Skip pure-padding edge blocks (sentinel entries in the block table).
        @pl.when(tbl_ref[n, j] != pad_blk)
        def _compute():
            ef = ef_ref[...]                               # [TE, EFW] bf16 raw slab
            # message MLP (LayerNorm affine already folded into mw1 / mb1)
            h = jnp.dot(ef, mw1[...], preferred_element_type=jnp.float32) + mb1[...]
            h = jax.nn.silu(h)
            h = jnp.dot(h.astype(jnp.bfloat16), mw2[...],
                        preferred_element_type=jnp.float32) + mb2[...]
            h = jax.nn.silu(h)                             # [TE, Hp] f32

            if use_attention:
                att = jax.nn.sigmoid(
                    jnp.sum(h * aw[...], axis=-1, keepdims=True) + att_bias)
                h = h * att

            ph = jnp.dot(h.astype(jnp.bfloat16), pw1[...],
                         preferred_element_type=jnp.float32) + pb1[...]
            ph = jax.nn.silu(ph)
            p = jnp.sum(ph * pw2[...], axis=-1, keepdims=True)   # [TE, 1] f32

            # Fused scatter RHS: [node message (Hp) | ef * p (EFW)].  Only the 3
            # pos_dir lanes of (ef * p) are ever read back; they already carry
            # CoorsNorm and the 1/deg[dst] mean-aggregation factor.
            rhs = jnp.concatenate(
                [h.astype(jnp.bfloat16), ef * p.astype(jnp.bfloat16)], axis=-1)

            dst_row = dst_ref[0]                           # [1, TE] int32
            tgt = (jax.lax.broadcasted_iota(jnp.int32, (node_tile, edge_tile), 0)
                   + n * node_tile)
            onehot = (tgt == dst_row).astype(jnp.bfloat16)  # [TN, TE]; sentinel dst
            acc[...] += jnp.dot(onehot, rhs,                # rows never match -> 0
                                preferred_element_type=jnp.float32)

        @pl.when(j == pl.num_programs(1) - 1)
        def _finalize():
            node = node_ref[...]                           # [TN, Fp + EFW] f32
            x_dst = node[:, 0:Fp]
            # single K = Fp + Hp matmul against the wrapper-stacked update weight
            u_in = jnp.concatenate([x_dst, acc[:, 0:Hp]],
                                   axis=-1).astype(jnp.bfloat16)
            u = jax.nn.silu(jnp.dot(u_in, uw1[...],
                                    preferred_element_type=jnp.float32) + ub1[...])
            x_new = jnp.dot(u.astype(jnp.bfloat16), uw2[...],
                            preferred_element_type=jnp.float32) + ub2[...]
            out_ref[:, 0:Op] = x_new + x_dst[:, 0:Op]      # residual
            # pos residual lives at the same lanes as pos_dir in ef; acc pos
            # lanes are already the mean-aggregated coordinate message.
            out_ref[:, Op:Op + EFW] = node[:, Fp:Fp + EFW] + acc[:, Hp:Hp + EFW]

    return kernel


# -----------------------------------------------------------------------------
# Static graph preprocessing (run ONCE per edge type, outside jit)
# -----------------------------------------------------------------------------
def prepare_graph(edge_index, n_dst):
    ei = np.asarray(edge_index)
    src, dst = ei[0].astype(np.int64), ei[1].astype(np.int64)
    E = int(src.shape[0])
    node_tile = _pick_node_tile(n_dst)
    edge_tile = _pick_edge_tile(E)

    order = np.argsort(dst, kind="stable")                 # sort edges by destination
    src_s, dst_s = src[order], dst[order]

    num_nblk = max(1, _cdiv(n_dst, node_tile))
    N_pad = num_nblk * node_tile
    num_eblk_real = max(1, _cdiv(E, edge_tile))
    num_eblk = num_eblk_real + 1                           # last block = pure padding
    E_pad = num_eblk * edge_tile
    pad_blk = num_eblk - 1

    # edge blocks overlapping each destination-node block
    blk_lists = [[] for _ in range(num_nblk)]
    for b in range(num_eblk_real):
        lo, hi = b * edge_tile, min((b + 1) * edge_tile, E)
        if lo >= hi:
            continue
        for nb in range(int(dst_s[lo]) // node_tile,
                        int(dst_s[hi - 1]) // node_tile + 1):
            blk_lists[nb].append(b)
    max_eb = max(1, max(len(l) for l in blk_lists))
    tbl = np.full((num_nblk, max_eb), pad_blk, np.int32)
    for nb, l in enumerate(blk_lists):
        tbl[nb, :len(l)] = l

    deg = np.bincount(dst_s, minlength=N_pad).astype(np.float32)
    inv_deg = 1.0 / np.maximum(deg, 1.0)

    dst_pad = np.full((E_pad,), N_pad, np.int32)           # sentinel for padded edges
    dst_pad[:E] = dst_s
    dst_blocks = dst_pad.reshape(num_eblk, 1, edge_tile)

    return dict(
        E=E, E_pad=E_pad, N_dst=int(n_dst), N_pad=N_pad,
        node_tile=node_tile, edge_tile=edge_tile,
        num_nblk=num_nblk, max_eb=max_eb, pad_blk=pad_blk,
        src=jnp.asarray(src_s, jnp.int32), dst=jnp.asarray(dst_s, jnp.int32),
        inv_deg_edge=jnp.asarray(inv_deg[dst_s], jnp.float32),
        tbl=jnp.asarray(tbl), dst_blocks=jnp.asarray(dst_blocks),
    )


# -----------------------------------------------------------------------------
# One EGNN layer (XLA glue: gather, geometry, LN fold, slab assembly + kernel)
# -----------------------------------------------------------------------------
def run_egnn_layer(x_src, x_dst_nodes, pos_src, pos_dst_nodes, g, params, *,
                   use_attention, norm_feats, norm_coords):
    F = int(x_dst_nodes.shape[1])
    O = int(params["out_features"])
    assert F == O, "residual connection requires node_features == out_features"
    Fp, Op = _pad128(F), int(params["u_w2"].shape[1])
    Hp = int(params["m_w2"].shape[0])
    EFW = int(params["m_w1"].shape[0])
    POS0 = 2 * F + 1
    assert EFW == _pad128(2 * F + 4) and POS0 + 3 <= EFW
    assert int(params["u_w1"].shape[0]) == Fp + Hp

    edge_tile, node_tile = g["edge_tile"], g["node_tile"]
    E, E_pad, N_pad, N_dst = g["E"], g["E_pad"], g["N_pad"], g["N_dst"]

    # ---- gathers + geometry ---------------------------------------------------
    x_i = jnp.take(x_dst_nodes, g["dst"], axis=0)          # [E, F]
    x_j = jnp.take(x_src, g["src"], axis=0)
    pos_i = jnp.take(pos_dst_nodes, g["dst"], axis=0)      # [E, 3]
    pos_j = jnp.take(pos_src, g["src"], axis=0)

    pos_dir = pos_i - pos_j
    dist = jnp.sqrt(jnp.sum(pos_dir * pos_dir, axis=-1, keepdims=True))
    if norm_coords:                                        # CoorsNorm
        pos_dir_k = pos_dir / jnp.maximum(dist, COORS_EPS) * float(params["coors_scale"])
    else:
        pos_dir_k = pos_dir
    # fold MeanAggregation of the coordinate messages: pre-scale by 1/deg[dst]
    pos_dir_k = pos_dir_k * g["inv_deg_edge"][:, None]

    # ---- torch_geometric LayerNorm (mode='graph') over the gathered edge
    # tensors, folded into m_w1 / m_b1 so the edge slab ships un-normalized bf16.
    m_w1_f32 = params["m_w1"]                              # [EFW, Hp] f32
    if norm_feats:
        ln_w, ln_b = params["ln_w"], params["ln_b"]
        inv_i = 1.0 / (jnp.std(x_i) + LN_EPS)
        inv_j = 1.0 / (jnp.std(x_j) + LN_EPS)
        sc_i, sh_i = ln_w * inv_i, ln_b - jnp.mean(x_i) * ln_w * inv_i
        sc_j, sh_j = ln_w * inv_j, ln_b - jnp.mean(x_j) * ln_w * inv_j
        scale_vec = (jnp.zeros((EFW,), jnp.float32)
                     .at[0:F].set(sc_i).at[F:2 * F].set(sc_j).at[2 * F].set(1.0))
        shift_vec = (jnp.zeros((EFW,), jnp.float32)
                     .at[0:F].set(sh_i).at[F:2 * F].set(sh_j))
        m_w1_fold = (scale_vec[:, None] * m_w1_f32).astype(jnp.bfloat16)
        m_b1_fold = params["m_b1"] + jnp.dot(shift_vec[None, :], m_w1_f32)
    else:
        m_w1_fold = m_w1_f32.astype(jnp.bfloat16)
        m_b1_fold = params["m_b1"]

    # ---- edge slab (bf16): [x_i | x_j | dist | pos_dir*invdeg | 0...] ---------
    ef = jnp.concatenate(
        [x_i, x_j, dist, pos_dir_k,
         jnp.zeros((E, EFW - (2 * F + 4)), jnp.float32)], axis=1)
    ef = jnp.pad(ef, ((0, E_pad - E), (0, 0))).astype(jnp.bfloat16)

    # ---- node slab (f32): [x_dst | ... pos_dst at lanes Fp+POS0..Fp+POS0+2] ---
    node = jnp.zeros((N_pad, Fp + EFW), jnp.float32)
    node = node.at[:N_dst, 0:F].set(x_dst_nodes)
    node = node.at[:N_dst, Fp + POS0:Fp + POS0 + 3].set(pos_dst_nodes)

    # ---- Pallas call -----------------------------------------------------------
    c0 = lambda n, j, t: (0, 0)
    eb = lambda n, j, t: (t[n, j], 0)
    in_specs = [
        pl.BlockSpec((edge_tile, EFW), eb),                                  # ef
        pl.BlockSpec((1, 1, edge_tile), lambda n, j, t: (t[n, j], 0, 0)),    # dst ids
        pl.BlockSpec((node_tile, Fp + EFW), lambda n, j, t: (n, 0)),         # node slab
        pl.BlockSpec((EFW, Hp), c0), pl.BlockSpec((1, Hp), c0),              # m_w1, m_b1
        pl.BlockSpec((Hp, Hp), c0), pl.BlockSpec((1, Hp), c0),               # m_w2, m_b2
        pl.BlockSpec((Hp, Hp), c0), pl.BlockSpec((1, Hp), c0),               # p_w1, p_b1
        pl.BlockSpec((1, Hp), c0),                                           # p_w2 row
        pl.BlockSpec((Fp + Hp, Hp), c0), pl.BlockSpec((1, Hp), c0),          # u_w1, u_b1
        pl.BlockSpec((Hp, Op), c0), pl.BlockSpec((1, Op), c0),               # u_w2, u_b2
    ]
    inputs = [ef, g["dst_blocks"], node,
              m_w1_fold, m_b1_fold, params["m_w2"], params["m_b2"],
              params["p_w1"], params["p_b1"], params["p_w2"],
              params["u_w1"], params["u_b1"], params["u_w2"], params["u_b2"]]
    if use_attention:
        in_specs.append(pl.BlockSpec((1, Hp), c0))                           # a_w row
        inputs.append(params["a_w"])

    kernel = make_fused_kernel(use_attention, float(params["a_b"]),
                               Fp, Hp, Op, EFW, g["pad_blk"],
                               node_tile, edge_tile)

    out = pl.pallas_call(
        kernel,
        out_shape=jax.ShapeDtypeStruct((N_pad, Op + EFW), jnp.float32),
        grid_spec=pltpu.PrefetchScalarGridSpec(
            num_scalar_prefetch=1,
            grid=(g["num_nblk"], g["max_eb"]),
            in_specs=in_specs,
            out_specs=pl.BlockSpec((node_tile, Op + EFW), lambda n, j, t: (n, 0)),
            scratch_shapes=[pltpu.VMEM((node_tile, Hp + EFW), jnp.float32)],
        ),
        compiler_params=pltpu.CompilerParams(
            dimension_semantics=("parallel", "arbitrary"),
            # working set is ~5-8 MiB even at edge_tile=1024; 48 MiB stays
            # under v7x's 64 MiB physical VMEM (v5e/v6e have 128 MiB).
            vmem_limit_bytes=48 * 1024 * 1024),
    )(g["tbl"], *inputs)

    x_new = out[:N_dst, 0:O]
    pos_new = out[:N_dst, Op + POS0:Op + POS0 + 3]
    return x_new, pos_new


# -----------------------------------------------------------------------------
# Parameter construction (deterministic, synthetic, lane-padded, MXU-ready)
# -----------------------------------------------------------------------------
def make_egnn_layer_params(key, F, H, O):
    Fp, Hp, Op = _pad128(F), _pad128(H), _pad128(O)
    EFW = _pad128(2 * F + 4)
    ks = jax.random.split(key, 8)

    def dense(k, fin, fout, rows, cols):
        w = jax.random.normal(k, (fin, fout), jnp.float32) / np.sqrt(float(fin))
        return jnp.zeros((rows, cols), jnp.float32).at[:fin, :fout].set(w)

    def row_vec(k, fin, cols, gain=1.0):
        w = jax.random.normal(k, (fin,), jnp.float32) * (gain / np.sqrt(float(fin)))
        return jnp.zeros((1, cols), jnp.float32).at[0, :fin].set(w)

    # update_net first linear [F+H, H] stacked as one [Fp+Hp, Hp] weight
    u_w1_raw = jax.random.normal(ks[5], (F + H, H), jnp.float32) / np.sqrt(float(F + H))
    u_w1 = (jnp.zeros((Fp + Hp, Hp), jnp.float32)
            .at[:F, :H].set(u_w1_raw[:F])
            .at[Fp:Fp + H, :H].set(u_w1_raw[F:]))

    return {
        "out_features": O,
        "ln_w": jnp.ones((F,), jnp.float32),
        "ln_b": jnp.zeros((F,), jnp.float32),
        "m_w1": dense(ks[0], 2 * F + 1, H, EFW, Hp),        # f32; LN folded per call
        "m_b1": jnp.zeros((1, Hp), jnp.float32),
        "m_w2": dense(ks[1], H, H, Hp, Hp).astype(jnp.bfloat16),
        "m_b2": jnp.zeros((1, Hp), jnp.float32),
        "a_w": row_vec(ks[2], H, Hp),
        "a_b": 0.0,
        "p_w1": dense(ks[3], H, H, Hp, Hp).astype(jnp.bfloat16),
        "p_b1": jnp.zeros((1, Hp), jnp.float32),
        # xavier_uniform_(gain=0.001) analogue: very small final pos weight
        "p_w2": row_vec(ks[4], H, Hp, gain=1e-3),
        "u_w1": u_w1.astype(jnp.bfloat16),
        "u_b1": jnp.zeros((1, Hp), jnp.float32),
        "u_w2": dense(ks[6], H, O, Hp, Op).astype(jnp.bfloat16),
        "u_b2": jnp.zeros((1, Op), jnp.float32),
        "coors_scale": 0.01,                                # CoorsNorm(scale_init=0.01)
    }


def make_hetero_params(key, num_layers, F, H, O):
    layers = []
    for i in range(num_layers):
        k = jax.random.fold_in(key, i)
        k1, k2, k3, k4 = jax.random.split(k, 4)
        layers.append({
            "atom_to_atom": make_egnn_layer_params(k1, F, H, O),
            "atom_to_global_node": make_egnn_layer_params(k2, F, H, O),
            "global_node_to_global_node": make_egnn_layer_params(k3, F, H, O),
            "global_node_to_atom": make_egnn_layer_params(k4, F, H, O),
        })
    return layers


# -----------------------------------------------------------------------------
# EGNNGlobalNodeHetero.forward
# -----------------------------------------------------------------------------
def egnn_global_node_hetero_forward(layer_params, graphs,
                                    x_atom, pos_atom, x_gn, pos_gn):
    for lp in layer_params:
        x_atom, pos_atom = run_egnn_layer(
            x_atom, x_atom, pos_atom, pos_atom, graphs["atom_atom"],
            lp["atom_to_atom"], use_attention=True, norm_feats=False,
            norm_coords=False)
        x_gn, pos_gn = run_egnn_layer(
            x_atom, x_gn, pos_atom, pos_gn, graphs["atom_gn"],
            lp["atom_to_global_node"], use_attention=False, norm_feats=True,
            norm_coords=True)
        x_gn, pos_gn = run_egnn_layer(
            x_gn, x_gn, pos_gn, pos_gn, graphs["gn_gn"],
            lp["global_node_to_global_node"], use_attention=False,
            norm_feats=True, norm_coords=True)
        x_atom, pos_atom = run_egnn_layer(
            x_gn, x_atom, pos_gn, pos_atom, graphs["gn_atom"],
            lp["global_node_to_atom"], use_attention=False, norm_feats=True,
            norm_coords=True)
    return x_atom, x_gn, pos_atom, pos_gn


# -----------------------------------------------------------------------------
if __name__ == "__main__":
    key = jax.random.PRNGKey(0)
    N_ATOM, N_GN = 8, 2
    F = H = O = 32
    NUM_LAYERS = 2

    k_xa, k_pa, k_xg, k_pg, k_par = jax.random.split(key, 5)
    x_atom = jax.random.normal(k_xa, (N_ATOM, F), jnp.float32)
    pos_atom = jax.random.normal(k_pa, (N_ATOM, 3), jnp.float32)
    x_gn = jax.random.normal(k_xg, (N_GN, F), jnp.float32)
    pos_gn = jax.random.normal(k_pg, (N_GN, 3), jnp.float32)

    a = jnp.arange(N_ATOM, dtype=jnp.int32)
    # atom-atom: ring, both directions
    ei_aa = jnp.stack([jnp.concatenate([a, (a + 1) % N_ATOM]),
                       jnp.concatenate([(a + 1) % N_ATOM, a])])
    # atoms -> global nodes: every atom to both globals
    ei_agn = jnp.stack([jnp.concatenate([a, a]),
                        jnp.concatenate([jnp.zeros(N_ATOM, jnp.int32),
                                         jnp.ones(N_ATOM, jnp.int32)])])
    # global -> global
    ei_gngn = jnp.array([[0, 1], [1, 0]], dtype=jnp.int32)
    # globals -> atoms: both globals to every atom
    ei_gna = jnp.stack([jnp.concatenate([jnp.zeros(N_ATOM, jnp.int32),
                                         jnp.ones(N_ATOM, jnp.int32)]),
                        jnp.concatenate([a, a])])

    # Static graph preprocessing: once per edge type, outside jit.
    graphs = {
        "atom_atom": prepare_graph(ei_aa, N_ATOM),
        "atom_gn": prepare_graph(ei_agn, N_GN),
        "gn_gn": prepare_graph(ei_gngn, N_GN),
        "gn_atom": prepare_graph(ei_gna, N_ATOM),
    }
    params = make_hetero_params(k_par, NUM_LAYERS, F, H, O)

    fwd = jax.jit(lambda xa, pa, xg, pg: egnn_global_node_hetero_forward(
        params, graphs, xa, pa, xg, pg))

    outs = fwd(x_atom, pos_atom, x_gn, pos_gn)
    outs = jax.block_until_ready(outs)

    x_atom_o, x_gn_o, pos_atom_o, pos_gn_o = outs
    assert x_atom_o.shape == (N_ATOM, O) and x_gn_o.shape == (N_GN, O)
    assert pos_atom_o.shape == (N_ATOM, 3) and pos_gn_o.shape == (N_GN, 3)
    assert all(bool(jnp.all(jnp.isfinite(o))) for o in outs)
    print("KERNEL_OK")
</pallas_src>

<mosaic_0001>
module attributes {stable_mosaic.version = 11 : i64} {
  func.func @kernel(%arg0: i32, %arg1: i32, %arg2: memref<1x1xi32, #tpu.memory_space<smem>>, %arg3: memref<256x128xbf16, #tpu.memory_space<vmem>>, %arg4: memref<1x1x256xi32, #tpu.memory_space<vmem>>, %arg5: memref<64x256xf32, #tpu.memory_space<vmem>>, %arg6: memref<128x128xbf16, #tpu.memory_space<vmem>>, %arg7: memref<1x128xf32, #tpu.memory_space<vmem>>, %arg8: memref<128x128xbf16, #tpu.memory_space<vmem>>, %arg9: memref<1x128xf32, #tpu.memory_space<vmem>>, %arg10: memref<128x128xbf16, #tpu.memory_space<vmem>>, %arg11: memref<1x128xf32, #tpu.memory_space<vmem>>, %arg12: memref<1x128xf32, #tpu.memory_space<vmem>>, %arg13: memref<256x128xbf16, #tpu.memory_space<vmem>>, %arg14: memref<1x128xf32, #tpu.memory_space<vmem>>, %arg15: memref<128x128xbf16, #tpu.memory_space<vmem>>, %arg16: memref<1x128xf32, #tpu.memory_space<vmem>>, %arg17: memref<1x128xf32, #tpu.memory_space<vmem>>, %arg18: memref<64x256xf32, #tpu.memory_space<vmem>>, %arg19: memref<64x256xf32, #tpu.memory_space<vmem>>) attributes {dimension_semantics = [#tpu.dimension_semantics<parallel>, #tpu.dimension_semantics<arbitrary>], iteration_bounds = array<i64: 1, 1>, scalar_prefetch = 1 : i64, scratch_operands = 1 : i64, tpu.core_type = #tpu.core_type<tc>, window_params = [{transform_indices = @transform_0, window_bounds = array<i64: 256, 128>}, {transform_indices = @transform_1, window_bounds = array<i64: 1, 1, 256>}, {transform_indices = @transform_2, window_bounds = array<i64: 64, 256>}, {pipeline_mode = #tpu.pipeline_mode<synchronous>, transform_indices = @transform_3, window_bounds = array<i64: 128, 128>}, {pipeline_mode = #tpu.pipeline_mode<synchronous>, transform_indices = @transform_4, window_bounds = array<i64: 1, 128>}, {pipeline_mode = #tpu.pipeline_mode<synchronous>, transform_indices = @transform_5, window_bounds = array<i64: 128, 128>}, {pipeline_mode = #tpu.pipeline_mode<synchronous>, transform_indices = @transform_6, window_bounds = array<i64: 1, 128>}, {pipeline_mode = #tpu.pipeline_mode<synchronous>, transform_indices = @transform_7, window_bounds = array<i64: 128, 128>}, {pipeline_mode = #tpu.pipeline_mode<synchronous>, transform_indices = @transform_8, window_bounds = array<i64: 1, 128>}, {pipeline_mode = #tpu.pipeline_mode<synchronous>, transform_indices = @transform_9, window_bounds = array<i64: 1, 128>}, {pipeline_mode = #tpu.pipeline_mode<synchronous>, transform_indices = @transform_10, window_bounds = array<i64: 256, 128>}, {pipeline_mode = #tpu.pipeline_mode<synchronous>, transform_indices = @transform_11, window_bounds = array<i64: 1, 128>}, {pipeline_mode = #tpu.pipeline_mode<synchronous>, transform_indices = @transform_12, window_bounds = array<i64: 128, 128>}, {pipeline_mode = #tpu.pipeline_mode<synchronous>, transform_indices = @transform_13, window_bounds = array<i64: 1, 128>}, {pipeline_mode = #tpu.pipeline_mode<synchronous>, transform_indices = @transform_14, window_bounds = array<i64: 1, 128>}, {transform_indices = @transform_15, window_bounds = array<i64: 64, 256>}]} {
    %c0_i32 = arith.constant 0 : i32
    %0 = arith.cmpi eq, %arg1, %c0_i32 : i32
    %1 = arith.extui %0 : i1 to i32
    %c0_i32_0 = arith.constant 0 : i32
    %2 = arith.cmpi ne, %1, %c0_i32_0 : i32
    scf.if %2 {
      %cst = arith.constant 0.000000e+00 : f32
      %12 = vector.broadcast %cst : f32 to vector<64x256xf32>
      %c0 = arith.constant 0 : index
      %c0_4 = arith.constant 0 : index
      %13 = vector.load %arg19[%c0, %c0_4] : memref<64x256xf32, #tpu.memory_space<vmem>>, vector<64x256xf32>
      tpu.vector_store %arg19[%c0, %c0_4], %12 {strides = array<i32>} : memref<64x256xf32, #tpu.memory_space<vmem>>, vector<64x256xf32>,
    } else {
    }
    %3 = arith.index_cast %arg0 : i32 to index
    %4 = arith.index_cast %arg1 : i32 to index
    %5 = memref.load %arg2[%3, %4] : memref<1x1xi32, #tpu.memory_space<smem>>
    %c1_i32 = arith.constant 1 : i32
    %6 = arith.cmpi ne, %5, %c1_i32 : i32
    %7 = arith.extui %6 : i1 to i32
    %c0_i32_1 = arith.constant 0 : i32
    %8 = arith.cmpi ne, %7, %c0_i32_1 : i32
    scf.if %8 {
      %c0 = arith.constant 0 : index
      %c0_4 = arith.constant 0 : index
      %12 = vector.load %arg3[%c0, %c0_4] : memref<256x128xbf16, #tpu.memory_space<vmem>>, vector<256x128xbf16>
      %c0_5 = arith.constant 0 : index
      %c0_6 = arith.constant 0 : index
      %13 = vector.load %arg6[%c0_5, %c0_6] : memref<128x128xbf16, #tpu.memory_space<vmem>>, vector<128x128xbf16>
      %cst = arith.constant dense<0.000000e+00> : vector<256x128xf32>
      %14 = tpu.matmul %12, %13, %cst {dimension_numbers = #tpu.dot_dimension_numbers<[1], [0], [0], [1], [0, 0, 1, 1], [], []>} : vector<256x128xbf16>, vector<128x128xbf16>, vector<256x128xf32> -> vector<256x128xf32>
      %c0_7 = arith.constant 0 : index
      %c0_8 = arith.constant 0 : index
      %15 = vector.load %arg7[%c0_7, %c0_8] : memref<1x128xf32, #tpu.memory_space<vmem>>, vector<1x128xf32>
      %16 = vector.broadcast %15 : vector<1x128xf32> to vector<256x128xf32>
      %17 = arith.addf %14, %16 : vector<256x128xf32>
      %18 = arith.negf %17 : vector<256x128xf32>
      %19 = math.exp %18 : vector<256x128xf32>
      %cst_9 = arith.constant 1.000000e+00 : f32
      %20 = vector.broadcast %cst_9 : f32 to vector<256x128xf32>
      %21 = arith.addf %20, %19 : vector<256x128xf32>
      %22 = arith.divf %20, %21 : vector<256x128xf32>
      %23 = arith.mulf %17, %22 : vector<256x128xf32>
      %24 = arith.truncf %23 : vector<256x128xf32> to vector<256x128xbf16>
      %c0_10 = arith.constant 0 : index
      %c0_11 = arith.constant 0 : index
      %25 = vector.load %arg8[%c0_10, %c0_11] : memref<128x128xbf16, #tpu.memory_space<vmem>>, vector<128x128xbf16>
      %cst_12 = arith.constant dense<0.000000e+00> : vector<256x128xf32>
      %26 = tpu.matmul %24, %25, %cst_12 {dimension_numbers = #tpu.dot_dimension_numbers<[1], [0], [0], [1], [0, 0, 1, 1], [], []>} : vector<256x128xbf16>, vector<128x128xbf16>, vector<256x128xf32> -> vector<256x128xf32>
      %c0_13 = arith.constant 0 : index
      %c0_14 = arith.constant 0 : index
      %27 = vector.load %arg9[%c0_13, %c0_14] : memref<1x128xf32, #tpu.memory_space<vmem>>, vector<1x128xf32>
      %28 = vector.broadcast %27 : vector<1x128xf32> to vector<256x128xf32>
      %29 = arith.addf %26, %28 : vector<256x128xf32>
      %30 = arith.negf %29 : vector<256x128xf32>
      %31 = math.exp %30 : vector<256x128xf32>
      %cst_15 = arith.constant 1.000000e+00 : f32
      %32 = vector.broadcast %cst_15 : f32 to vector<256x128xf32>
      %33 = arith.addf %32, %31 : vector<256x128xf32>
      %34 = arith.divf %32, %33 : vector<256x128xf32>
      %35 = arith.mulf %29, %34 : vector<256x128xf32>
      %c0_16 = arith.constant 0 : index
      %c0_17 = arith.constant 0 : index
      %36 = vector.load %arg17[%c0_16, %c0_17] : memref<1x128xf32, #tpu.memory_space<vmem>>, vector<1x128xf32>
      %37 = vector.broadcast %36 : vector<1x128xf32> to vector<256x128xf32>
      %38 = arith.mulf %35, %37 : vector<256x128xf32>
      %cst_18 = arith.constant dense<0.000000e+00> : vector<256xf32>
      %39 = vector.multi_reduction <add>, %38, %cst_18 [1] : vector<256x128xf32> to vector<256xf32>
      %40 = vector.shape_cast %39 : vector<256xf32> to vector<256x1xf32>
      %cst_19 = arith.constant 0.000000e+00 : f32
      %41 = vector.broadcast %cst_19 : f32 to vector<256x1xf32>
      %42 = arith.addf %40, %41 : vector<256x1xf32>
      %43 = arith.negf %42 : vector<256x1xf32>
      %44 = math.exp %43 : vector<256x1xf32>
      %cst_20 = arith.constant 1.000000e+00 : f32
      %45 = vector.broadcast %cst_20 : f32 to vector<256x1xf32>
      %46 = arith.addf %45, %44 : vector<256x1xf32>
      %47 = arith.divf %45, %46 : vector<256x1xf32>
      %48 = vector.broadcast %47 : vector<256x1xf32> to vector<256x128xf32>
      %49 = arith.mulf %35, %48 : vector<256x128xf32>
      %50 = arith.truncf %49 : vector<256x128xf32> to vector<256x128xbf16>
      %c0_21 = arith.constant 0 : index
      %c0_22 = arith.constant 0 : index
      %51 = vector.load %arg10[%c0_21, %c0_22] : memref<128x128xbf16, #tpu.memory_space<vmem>>, vector<128x128xbf16>
      %cst_23 = arith.constant dense<0.000000e+00> : vector<256x128xf32>
      %52 = tpu.matmul %50, %51, %cst_23 {dimension_numbers = #tpu.dot_dimension_numbers<[1], [0], [0], [1], [0, 0, 1, 1], [], []>} : vector<256x128xbf16>, vector<128x128xbf16>, vector<256x128xf32> -> vector<256x128xf32>
      %c0_24 = arith.constant 0 : index
      %c0_25 = arith.constant 0 : index
      %53 = vector.load %arg11[%c0_24, %c0_25] : memref<1x128xf32, #tpu.memory_space<vmem>>, vector<1x128xf32>
      %54 = vector.broadcast %53 : vector<1x128xf32> to vector<256x128xf32>
      %55 = arith.addf %52, %54 : vector<256x128xf32>
      %56 = arith.negf %55 : vector<256x128xf32>
      %57 = math.exp %56 : vector<256x128xf32>
      %cst_26 = arith.constant 1.000000e+00 : f32
      %58 = vector.broadcast %cst_26 : f32 to vector<256x128xf32>
      %59 = arith.addf %58, %57 : vector<256x128xf32>
      %60 = arith.divf %58, %59 : vector<256x128xf32>
      %61 = arith.mulf %55, %60 : vector<256x128xf32>
      %c0_27 = arith.constant 0 : index
      %c0_28 = arith.constant 0 : index
      %62 = vector.load %arg12[%c0_27, %c0_28] : memref<1x128xf32, #tpu.memory_space<vmem>>, vector<1x128xf32>
      %63 = vector.broadcast %62 : vector<1x128xf32> to vector<256x128xf32>
      %64 = arith.mulf %61, %63 : vector<256x128xf32>
      %cst_29 = arith.constant dense<0.000000e+00> : vector<256xf32>
      %65 = vector.multi_reduction <add>, %64, %cst_29 [1] : vector<256x128xf32> to vector<256xf32>
      %66 = vector.shape_cast %65 : vector<256xf32> to vector<256x1xf32>
      %67 = arith.truncf %49 : vector<256x128xf32> to vector<256x128xbf16>
      %68 = arith.truncf %66 : vector<256x1xf32> to vector<256x1xbf16>
      %69 = vector.broadcast %68 : vector<256x1xbf16> to vector<256x128xbf16>
      %70 = arith.mulf %12, %69 : vector<256x128xbf16>
      %71 = tpu.concatenate %67, %70 in 1 : vector<256x128xbf16>, vector<256x128xbf16> -> vector<256x256xbf16>
      %c0_30 = arith.constant 0 : index
      %c0_31 = arith.constant 0 : index
      %c0_32 = arith.constant 0 : index
      %72 = vector.load %arg4[%c0_30, %c0_31, %c0_32] : memref<1x1x256xi32, #tpu.memory_space<vmem>>, vector<1x1x256xi32>
      %73 = vector.shape_cast %72 : vector<1x1x256xi32> to vector<1x256xi32>
      %74 = tpu.iota {dimensions = array<i32: 0>} : vector<64x256xi32>
      %c64_i32 = arith.constant 64 : i32
      %75 = arith.muli %arg0, %c64_i32 : i32
      %76 = vector.broadcast %75 : i32 to vector<64x256xi32>
      %77 = arith.addi %74, %76 : vector<64x256xi32>
      %78 = vector.broadcast %73 : vector<1x256xi32> to vector<64x256xi32>
      %79 = arith.cmpi eq, %77, %78 : vector<64x256xi32>
      %80 = arith.extui %79 : vector<64x256xi1> to vector<64x256xi32>
      %81 = arith.sitofp %80 : vector<64x256xi32> to vector<64x256xf32>
      %82 = arith.truncf %81 : vector<64x256xf32> to vector<64x256xbf16>
      %c0_33 = arith.constant 0 : index
      %c0_34 = arith.constant 0 : index
      %83 = vector.load %arg19[%c0_33, %c0_34] : memref<64x256xf32, #tpu.memory_space<vmem>>, vector<64x256xf32>
      %cst_35 = arith.constant dense<0.000000e+00> : vector<64x256xf32>
      %84 = tpu.matmul %82, %71, %cst_35 {dimension_numbers = #tpu.dot_dimension_numbers<[1], [0], [0], [1], [0, 0, 1, 1], [], []>} : vector<64x256xbf16>, vector<256x256xbf16>, vector<64x256xf32> -> vector<64x256xf32>
      %85 = arith.addf %83, %84 : vector<64x256xf32>
      %c0_36 = arith.constant 0 : index
      %c0_37 = arith.constant 0 : index
      %86 = vector.load %arg19[%c0_36, %c0_37] : memref<64x256xf32, #tpu.memory_space<vmem>>, vector<64x256xf32>
      tpu.vector_store %arg19[%c0_36, %c0_37], %85 {strides = array<i32>} : memref<64x256xf32, #tpu.memory_space<vmem>>, vector<64x256xf32>,
    } else {
    }
    %c0_i32_2 = arith.constant 0 : i32
    %9 = arith.cmpi eq, %arg1, %c0_i32_2 : i32
    %10 = arith.extui %9 : i1 to i32
    %c0_i32_3 = arith.constant 0 : i32
    %11 = arith.cmpi ne, %10, %c0_i32_3 : i32
    scf.if %11 {
      %c0 = arith.constant 0 : index
      %c0_4 = arith.constant 0 : index
      %12 = vector.load %arg5[%c0, %c0_4] : memref<64x256xf32, #tpu.memory_space<vmem>>, vector<64x256xf32>
      %13 = vector.extract_strided_slice %12 {offsets = [0, 0], sizes = [64, 128], strides = [1, 1]} : vector<64x256xf32> to vector<64x128xf32>
      %c0_5 = arith.constant 0 : index
      %c0_6 = arith.constant 0 : index
      %14 = vector.load %arg19[%c0_5, %c0_6] : memref<64x256xf32, #tpu.memory_space<vmem>>, vector<64x128xf32>
      %15 = tpu.concatenate %13, %14 in 1 : vector<64x128xf32>, vector<64x128xf32> -> vector<64x256xf32>
      %16 = arith.truncf %15 : vector<64x256xf32> to vector<64x256xbf16>
      %c0_7 = arith.constant 0 : index
      %c0_8 = arith.constant 0 : index
      %17 = vector.load %arg13[%c0_7, %c0_8] : memref<256x128xbf16, #tpu.memory_space<vmem>>, vector<256x128xbf16>
      %cst = arith.constant dense<0.000000e+00> : vector<64x128xf32>
      %18 = tpu.matmul %16, %17, %cst {dimension_numbers = #tpu.dot_dimension_numbers<[1], [0], [0], [1], [0, 0, 1, 1], [], []>} : vector<64x256xbf16>, vector<256x128xbf16>, vector<64x128xf32> -> vector<64x128xf32>
      %c0_9 = arith.constant 0 : index
      %c0_10 = arith.constant 0 : index
      %19 = vector.load %arg14[%c0_9, %c0_10] : memref<1x128xf32, #tpu.memory_space<vmem>>, vector<1x128xf32>
      %20 = vector.broadcast %19 : vector<1x128xf32> to vector<64x128xf32>
      %21 = arith.addf %18, %20 : vector<64x128xf32>
      %22 = arith.negf %21 : vector<64x128xf32>
      %23 = math.exp %22 : vector<64x128xf32>
      %cst_11 = arith.constant 1.000000e+00 : f32
      %24 = vector.broadcast %cst_11 : f32 to vector<64x128xf32>
      %25 = arith.addf %24, %23 : vector<64x128xf32>
      %26 = arith.divf %24, %25 : vector<64x128xf32>
      %27 = arith.mulf %21, %26 : vector<64x128xf32>
      %28 = arith.truncf %27 : vector<64x128xf32> to vector<64x128xbf16>
      %c0_12 = arith.constant 0 : index
      %c0_13 = arith.constant 0 : index
      %29 = vector.load %arg15[%c0_12, %c0_13] : memref<128x128xbf16, #tpu.memory_space<vmem>>, vector<128x128xbf16>
      %cst_14 = arith.constant dense<0.000000e+00> : vector<64x128xf32>
      %30 = tpu.matmul %28, %29, %cst_14 {dimension_numbers = #tpu.dot_dimension_numbers<[1], [0], [0], [1], [0, 0, 1, 1], [], []>} : vector<64x128xbf16>, vector<128x128xbf16>, vector<64x128xf32> -> vector<64x128xf32>
      %c0_15 = arith.constant 0 : index
      %c0_16 = arith.constant 0 : index
      %31 = vector.load %arg16[%c0_15, %c0_16] : memref<1x128xf32, #tpu.memory_space<vmem>>, vector<1x128xf32>
      %32 = vector.broadcast %31 : vector<1x128xf32> to vector<64x128xf32>
      %33 = arith.addf %30, %32 : vector<64x128xf32>
      %34 = arith.addf %33, %13 : vector<64x128xf32>
      %c0_17 = arith.constant 0 : index
      %c0_18 = arith.constant 0 : index
      %35 = vector.load %arg18[%c0_17, %c0_18] : memref<64x256xf32, #tpu.memory_space<vmem>>, vector<64x128xf32>
      tpu.vector_store %arg18[%c0_17, %c0_18], %34 {strides = array<i32>} : memref<64x256xf32, #tpu.memory_space<vmem>>, vector<64x128xf32>,
      %36 = vector.extract_strided_slice %12 {offsets = [0, 128], sizes = [64, 128], strides = [1, 1]} : vector<64x256xf32> to vector<64x128xf32>
      %c0_19 = arith.constant 0 : index
      %c128 = arith.constant 128 : index
      %37 = vector.load %arg19[%c0_19, %c128] : memref<64x256xf32, #tpu.memory_space<vmem>>, vector<64x128xf32>
      %38 = arith.addf %36, %37 : vector<64x128xf32>
      %c0_20 = arith.constant 0 : index
      %c128_21 = arith.constant 128 : index
      %39 = vector.load %arg18[%c0_20, %c128_21] : memref<64x256xf32, #tpu.memory_space<vmem>>, vector<64x128xf32>
      tpu.vector_store %arg18[%c0_20, %c128_21], %38 {strides = array<i32>} : memref<64x256xf32, #tpu.memory_space<vmem>>, vector<64x128xf32>,
    } else {
    }
    return
  }
  func.func @transform_0(%arg0: i32, %arg1: i32, %arg2: memref<1x1xi32, #tpu.memory_space<smem>>) -> (i32, i32) {
    %0 = arith.index_cast %arg0 : i32 to index
    %1 = arith.index_cast %arg1 : i32 to index
    %2 = memref.load %arg2[%0, %1] : memref<1x1xi32, #tpu.memory_space<smem>>
    %c0_i32 = arith.constant 0 : i32
    %c0_i32_0 = arith.constant 0 : i32
    return %2, %c0_i32 : i32, i32
  }
  func.func @transform_1(%arg0: i32, %arg1: i32, %arg2: memref<1x1xi32, #tpu.memory_space<smem>>) -> (i32, i32, i32) {
    %0 = arith.index_cast %arg0 : i32 to index
    %1 = arith.index_cast %arg1 : i32 to index
    %2 = memref.load %arg2[%0, %1] : memref<1x1xi32, #tpu.memory_space<smem>>
    %c0_i32 = arith.constant 0 : i32
    %c0_i32_0 = arith.constant 0 : i32
    %c0_i32_1 = arith.constant 0 : i32
    return %2, %c0_i32, %c0_i32_0 : i32, i32, i32
  }
  func.func @transform_2(%arg0: i32, %arg1: i32, %arg2: memref<1x1xi32, #tpu.memory_space<smem>>) -> (i32, i32) {
    %c0_i32 = arith.constant 0 : i32
    %c0_i32_0 = arith.constant 0 : i32
    return %arg0, %c0_i32 : i32, i32
  }
  func.func @transform_3(%arg0: i32, %arg1: i32, %arg2: memref<1x1xi32, #tpu.memory_space<smem>>) -> (i32, i32) {
    %c0_i32 = arith.constant 0 : i32
    %c0_i32_0 = arith.constant 0 : i32
    %c0_i32_1 = arith.constant 0 : i32
    return %c0_i32, %c0_i32_0 : i32, i32
  }
  func.func @transform_4(%arg0: i32, %arg1: i32, %arg2: memref<1x1xi32, #tpu.memory_space<smem>>) -> (i32, i32) {
    %c0_i32 = arith.constant 0 : i32
    %c0_i32_0 = arith.constant 0 : i32
    %c0_i32_1 = arith.constant 0 : i32
    return %c0_i32, %c0_i32_0 : i32, i32
  }
  func.func @transform_5(%arg0: i32, %arg1: i32, %arg2: memref<1x1xi32, #tpu.memory_space<smem>>) -> (i32, i32) {
    %c0_i32 = arith.constant 0 : i32
    %c0_i32_0 = arith.constant 0 : i32
    %c0_i32_1 = arith.constant 0 : i32
    return %c0_i32, %c0_i32_0 : i32, i32
  }
  func.func @transform_6(%arg0: i32, %arg1: i32, %arg2: memref<1x1xi32, #tpu.memory_space<smem>>) -> (i32, i32) {
    %c0_i32 = arith.constant 0 : i32
    %c0_i32_0 = arith.constant 0 : i32
    %c0_i32_1 = arith.constant 0 : i32
    return %c0_i32, %c0_i32_0 : i32, i32
  }
  func.func @transform_7(%arg0: i32, %arg1: i32, %arg2: memref<1x1xi32, #tpu.memory_space<smem>>) -> (i32, i32) {
    %c0_i32 = arith.constant 0 : i32
    %c0_i32_0 = arith.constant 0 : i32
    %c0_i32_1 = arith.constant 0 : i32
    return %c0_i32, %c0_i32_0 : i32, i32
  }
  func.func @transform_8(%arg0: i32, %arg1: i32, %arg2: memref<1x1xi32, #tpu.memory_space<smem>>) -> (i32, i32) {
    %c0_i32 = arith.constant 0 : i32
    %c0_i32_0 = arith.constant 0 : i32
    %c0_i32_1 = arith.constant 0 : i32
    return %c0_i32, %c0_i32_0 : i32, i32
  }
  func.func @transform_9(%arg0: i32, %arg1: i32, %arg2: memref<1x1xi32, #tpu.memory_space<smem>>) -> (i32, i32) {
    %c0_i32 = arith.constant 0 : i32
    %c0_i32_0 = arith.constant 0 : i32
    %c0_i32_1 = arith.constant 0 : i32
    return %c0_i32, %c0_i32_0 : i32, i32
  }
  func.func @transform_10(%arg0: i32, %arg1: i32, %arg2: memref<1x1xi32, #tpu.memory_space<smem>>) -> (i32, i32) {
    %c0_i32 = arith.constant 0 : i32
    %c0_i32_0 = arith.constant 0 : i32
    %c0_i32_1 = arith.constant 0 : i32
    return %c0_i32, %c0_i32_0 : i32, i32
  }
  func.func @transform_11(%arg0: i32, %arg1: i32, %arg2: memref<1x1xi32, #tpu.memory_space<smem>>) -> (i32, i32) {
    %c0_i32 = arith.constant 0 : i32
    %c0_i32_0 = arith.constant 0 : i32
    %c0_i32_1 = arith.constant 0 : i32
    return %c0_i32, %c0_i32_0 : i32, i32
  }
  func.func @transform_12(%arg0: i32, %arg1: i32, %arg2: memref<1x1xi32, #tpu.memory_space<smem>>) -> (i32, i32) {
    %c0_i32 = arith.constant 0 : i32
    %c0_i32_0 = arith.constant 0 : i32
    %c0_i32_1 = arith.constant 0 : i32
    return %c0_i32, %c0_i32_0 : i32, i32
  }
  func.func @transform_13(%arg0: i32, %arg1: i32, %arg2: memref<1x1xi32, #tpu.memory_space<smem>>) -> (i32, i32) {
    %c0_i32 = arith.constant 0 : i32
    %c0_i32_0 = arith.constant 0 : i32
    %c0_i32_1 = arith.constant 0 : i32
    return %c0_i32, %c0_i32_0 : i32, i32
  }
  func.func @transform_14(%arg0: i32, %arg1: i32, %arg2: memref<1x1xi32, #tpu.memory_space<smem>>) -> (i32, i32) {
    %c0_i32 = arith.constant 0 : i32
    %c0_i32_0 = arith.constant 0 : i32
    %c0_i32_1 = arith.constant 0 : i32
    return %c0_i32, %c0_i32_0 : i32, i32
  }
  func.func @transform_15(%arg0: i32, %arg1: i32, %arg2: memref<1x1xi32, #tpu.memory_space<smem>>) -> (i32, i32) {
    %c0_i32 = arith.constant 0 : i32
    %c0_i32_0 = arith.constant 0 : i32
    return %arg0, %c0_i32 : i32, i32
  }
}

module attributes {stable_mosaic.version = 11 : i64} {
  func.func @kernel(%arg0: i32, %arg1: i32, %arg2: memref<1x1xi32, #tpu.memory_space<smem>>, %arg3: memref<256x128xbf16, #tpu.memory_space<vmem>>, %arg4: memref<1x1x256xi32, #tpu.memory_space<vmem>>, %arg5: memref<64x256xf32, #tpu.memory_space<vmem>>, %arg6: memref<128x128xbf16, #tpu.memory_space<vmem>>, %arg7: memref<1x128xf32, #tpu.memory_space<vmem>>, %arg8: memref<128x128xbf16, #tpu.memory_space<vmem>>, %arg9: memref<1x128xf32, #tpu.memory_space<vmem>>, %arg10: memref<128x128xbf16, #tpu.memory_space<vmem>>, %arg11: memref<1x128xf32, #tpu.memory_space<vmem>>, %arg12: memref<1x128xf32, #tpu.memory_space<vmem>>, %arg13: memref<256x128xbf16, #tpu.memory_space<vmem>>, %arg14: memref<1x128xf32, #tpu.memory_space<vmem>>, %arg15: memref<128x128xbf16, #tpu.memory_space<vmem>>, %arg16: memref<1x128xf32, #tpu.memory_space<vmem>>, %arg17: memref<64x256xf32, #tpu.memory_space<vmem>>, %arg18: memref<64x256xf32, #tpu.memory_space<vmem>>) attributes {dimension_semantics = [#tpu.dimension_semantics<parallel>, #tpu.dimension_semantics<arbitrary>], iteration_bounds = array<i64: 1, 1>, scalar_prefetch = 1 : i64, scratch_operands = 1 : i64, tpu.core_type = #tpu.core_type<tc>, window_params = [{transform_indices = @transform_0, window_bounds = array<i64: 256, 128>}, {transform_indices = @transform_1, window_bounds = array<i64: 1, 1, 256>}, {transform_indices = @transform_2, window_bounds = array<i64: 64, 256>}, {pipeline_mode = #tpu.pipeline_mode<synchronous>, transform_indices = @transform_3, window_bounds = array<i64: 128, 128>}, {pipeline_mode = #tpu.pipeline_mode<synchronous>, transform_indices = @transform_4, window_bounds = array<i64: 1, 128>}, {pipeline_mode = #tpu.pipeline_mode<synchronous>, transform_indices = @transform_5, window_bounds = array<i64: 128, 128>}, {pipeline_mode = #tpu.pipeline_mode<synchronous>, transform_indices = @transform_6, window_bounds = array<i64: 1, 128>}, {pipeline_mode = #tpu.pipeline_mode<synchronous>, transform_indices = @transform_7, window_bounds = array<i64: 128, 128>}, {pipeline_mode = #tpu.pipeline_mode<synchronous>, transform_indices = @transform_8, window_bounds = array<i64: 1, 128>}, {pipeline_mode = #tpu.pipeline_mode<synchronous>, transform_indices = @transform_9, window_bounds = array<i64: 1, 128>}, {pipeline_mode = #tpu.pipeline_mode<synchronous>, transform_indices = @transform_10, window_bounds = array<i64: 256, 128>}, {pipeline_mode = #tpu.pipeline_mode<synchronous>, transform_indices = @transform_11, window_bounds = array<i64: 1, 128>}, {pipeline_mode = #tpu.pipeline_mode<synchronous>, transform_indices = @transform_12, window_bounds = array<i64: 128, 128>}, {pipeline_mode = #tpu.pipeline_mode<synchronous>, transform_indices = @transform_13, window_bounds = array<i64: 1, 128>}, {transform_indices = @transform_14, window_bounds = array<i64: 64, 256>}]} {
    %c0_i32 = arith.constant 0 : i32
    %0 = arith.cmpi eq, %arg1, %c0_i32 : i32
    %1 = arith.extui %0 : i1 to i32
    %c0_i32_0 = arith.constant 0 : i32
    %2 = arith.cmpi ne, %1, %c0_i32_0 : i32
    scf.if %2 {
      %cst = arith.constant 0.000000e+00 : f32
      %12 = vector.broadcast %cst : f32 to vector<64x256xf32>
      %c0 = arith.constant 0 : index
      %c0_4 = arith.constant 0 : index
      %13 = vector.load %arg18[%c0, %c0_4] : memref<64x256xf32, #tpu.memory_space<vmem>>, vector<64x256xf32>
      tpu.vector_store %arg18[%c0, %c0_4], %12 {strides = array<i32>} : memref<64x256xf32, #tpu.memory_space<vmem>>, vector<64x256xf32>,
    } else {
    }
    %3 = arith.index_cast %arg0 : i32 to index
    %4 = arith.index_cast %arg1 : i32 to index
    %5 = memref.load %arg2[%3, %4] : memref<1x1xi32, #tpu.memory_space<smem>>
    %c1_i32 = arith.constant 1 : i32
    %6 = arith.cmpi ne, %5, %c1_i32 : i32
    %7 = arith.extui %6 : i1 to i32
    %c0_i32_1 = arith.constant 0 : i32
    %8 = arith.cmpi ne, %7, %c0_i32_1 : i32
    scf.if %8 {
      %c0 = arith.constant 0 : index
      %c0_4 = arith.constant 0 : index
      %12 = vector.load %arg3[%c0, %c0_4] : memref<256x128xbf16, #tpu.memory_space<vmem>>, vector<256x128xbf16>
      %c0_5 = arith.constant 0 : index
      %c0_6 = arith.constant 0 : index
      %13 = vector.load %arg6[%c0_5, %c0_6] : memref<128x128xbf16, #tpu.memory_space<vmem>>, vector<128x128xbf16>
      %cst = arith.constant dense<0.000000e+00> : vector<256x128xf32>
      %14 = tpu.matmul %12, %13, %cst {dimension_numbers = #tpu.dot_dimension_numbers<[1], [0], [0], [1], [0, 0, 1, 1], [], []>} : vector<256x128xbf16>, vector<128x128xbf16>, vector<256x128xf32> -> vector<256x128xf32>
      %c0_7 = arith.constant 0 : index
      %c0_8 = arith.constant 0 : index
      %15 = vector.load %arg7[%c0_7, %c0_8] : memref<1x128xf32, #tpu.memory_space<vmem>>, vector<1x128xf32>
      %16 = vector.broadcast %15 : vector<1x128xf32> to vector<256x128xf32>
      %17 = arith.addf %14, %16 : vector<256x128xf32>
      %18 = arith.negf %17 : vector<256x128xf32>
      %19 = math.exp %18 : vector<256x128xf32>
      %cst_9 = arith.constant 1.000000e+00 : f32
      %20 = vector.broadcast %cst_9 : f32 to vector<256x128xf32>
      %21 = arith.addf %20, %19 : vector<256x128xf32>
      %22 = arith.divf %20, %21 : vector<256x128xf32>
      %23 = arith.mulf %17, %22 : vector<256x128xf32>
      %24 = arith.truncf %23 : vector<256x128xf32> to vector<256x128xbf16>
      %c0_10 = arith.constant 0 : index
      %c0_11 = arith.constant 0 : index
      %25 = vector.load %arg8[%c0_10, %c0_11] : memref<128x128xbf16, #tpu.memory_space<vmem>>, vector<128x128xbf16>
      %cst_12 = arith.constant dense<0.000000e+00> : vector<256x128xf32>
      %26 = tpu.matmul %24, %25, %cst_12 {dimension_numbers = #tpu.dot_dimension_numbers<[1], [0], [0], [1], [0, 0, 1, 1], [], []>} : vector<256x128xbf16>, vector<128x128xbf16>, vector<256x128xf32> -> vector<256x128xf32>
      %c0_13 = arith.constant 0 : index
      %c0_14 = arith.constant 0 : index
      %27 = vector.load %arg9[%c0_13, %c0_14] : memref<1x128xf32, #tpu.memory_space<vmem>>, vector<1x128xf32>
      %28 = vector.broadcast %27 : vector<1x128xf32> to vector<256x128xf32>
      %29 = arith.addf %26, %28 : vector<256x128xf32>
      %30 = arith.negf %29 : vector<256x128xf32>
      %31 = math.exp %30 : vector<256x128xf32>
      %cst_15 = arith.constant 1.000000e+00 : f32
      %32 = vector.broadcast %cst_15 : f32 to vector<256x128xf32>
      %33 = arith.addf %32, %31 : vector<256x128xf32>
      %34 = arith.divf %32, %33 : vector<256x128xf32>
      %35 = arith.mulf %29, %34 : vector<256x128xf32>
      %36 = arith.truncf %35 : vector<256x128xf32> to vector<256x128xbf16>
      %c0_16 = arith.constant 0 : index
      %c0_17 = arith.constant 0 : index
      %37 = vector.load %arg10[%c0_16, %c0_17] : memref<128x128xbf16, #tpu.memory_space<vmem>>, vector<128x128xbf16>
      %cst_18 = arith.constant dense<0.000000e+00> : vector<256x128xf32>
      %38 = tpu.matmul %36, %37, %cst_18 {dimension_numbers = #tpu.dot_dimension_numbers<[1], [0], [0], [1], [0, 0, 1, 1], [], []>} : vector<256x128xbf16>, vector<128x128xbf16>, vector<256x128xf32> -> vector<256x128xf32>
      %c0_19 = arith.constant 0 : index
      %c0_20 = arith.constant 0 : index
      %39 = vector.load %arg11[%c0_19, %c0_20] : memref<1x128xf32, #tpu.memory_space<vmem>>, vector<1x128xf32>
      %40 = vector.broadcast %39 : vector<1x128xf32> to vector<256x128xf32>
      %41 = arith.addf %38, %40 : vector<256x128xf32>
      %42 = arith.negf %41 : vector<256x128xf32>
      %43 = math.exp %42 : vector<256x128xf32>
      %cst_21 = arith.constant 1.000000e+00 : f32
      %44 = vector.broadcast %cst_21 : f32 to vector<256x128xf32>
      %45 = arith.addf %44, %43 : vector<256x128xf32>
      %46 = arith.divf %44, %45 : vector<256x128xf32>
      %47 = arith.mulf %41, %46 : vector<256x128xf32>
      %c0_22 = arith.constant 0 : index
      %c0_23 = arith.constant 0 : index
      %48 = vector.load %arg12[%c0_22, %c0_23] : memref<1x128xf32, #tpu.memory_space<vmem>>, vector<1x128xf32>
      %49 = vector.broadcast %48 : vector<1x128xf32> to vector<256x128xf32>
      %50 = arith.mulf %47, %49 : vector<256x128xf32>
      %cst_24 = arith.constant dense<0.000000e+00> : vector<256xf32>
      %51 = vector.multi_reduction <add>, %50, %cst_24 [1] : vector<256x128xf32> to vector<256xf32>
      %52 = vector.shape_cast %51 : vector<256xf32> to vector<256x1xf32>
      %53 = arith.truncf %35 : vector<256x128xf32> to vector<256x128xbf16>
      %54 = arith.truncf %52 : vector<256x1xf32> to vector<256x1xbf16>
      %55 = vector.broadcast %54 : vector<256x1xbf16> to vector<256x128xbf16>
      %56 = arith.mulf %12, %55 : vector<256x128xbf16>
      %57 = tpu.concatenate %53, %56 in 1 : vector<256x128xbf16>, vector<256x128xbf16> -> vector<256x256xbf16>
      %c0_25 = arith.constant 0 : index
      %c0_26 = arith.constant 0 : index
      %c0_27 = arith.constant 0 : index
      %58 = vector.load %arg4[%c0_25, %c0_26, %c0_27] : memref<1x1x256xi32, #tpu.memory_space<vmem>>, vector<1x1x256xi32>
      %59 = vector.shape_cast %58 : vector<1x1x256xi32> to vector<1x256xi32>
      %60 = tpu.iota {dimensions = array<i32: 0>} : vector<64x256xi32>
      %c64_i32 = arith.constant 64 : i32
      %61 = arith.muli %arg0, %c64_i32 : i32
      %62 = vector.broadcast %61 : i32 to vector<64x256xi32>
      %63 = arith.addi %60, %62 : vector<64x256xi32>
      %64 = vector.broadcast %59 : vector<1x256xi32> to vector<64x256xi32>
      %65 = arith.cmpi eq, %63, %64 : vector<64x256xi32>
      %66 = arith.extui %65 : vector<64x256xi1> to vector<64x256xi32>
      %67 = arith.sitofp %66 : vector<64x256xi32> to vector<64x256xf32>
      %68 = arith.truncf %67 : vector<64x256xf32> to vector<64x256xbf16>
      %c0_28 = arith.constant 0 : index
      %c0_29 = arith.constant 0 : index
      %69 = vector.load %arg18[%c0_28, %c0_29] : memref<64x256xf32, #tpu.memory_space<vmem>>, vector<64x256xf32>
      %cst_30 = arith.constant dense<0.000000e+00> : vector<64x256xf32>
      %70 = tpu.matmul %68, %57, %cst_30 {dimension_numbers = #tpu.dot_dimension_numbers<[1], [0], [0], [1], [0, 0, 1, 1], [], []>} : vector<64x256xbf16>, vector<256x256xbf16>, vector<64x256xf32> -> vector<64x256xf32>
      %71 = arith.addf %69, %70 : vector<64x256xf32>
      %c0_31 = arith.constant 0 : index
      %c0_32 = arith.constant 0 : index
      %72 = vector.load %arg18[%c0_31, %c0_32] : memref<64x256xf32, #tpu.memory_space<vmem>>, vector<64x256xf32>
      tpu.vector_store %arg18[%c0_31, %c0_32], %71 {strides = array<i32>} : memref<64x256xf32, #tpu.memory_space<vmem>>, vector<64x256xf32>,
    } else {
    }
    %c0_i32_2 = arith.constant 0 : i32
    %9 = arith.cmpi eq, %arg1, %c0_i32_2 : i32
    %10 = arith.extui %9 : i1 to i32
    %c0_i32_3 = arith.constant 0 : i32
    %11 = arith.cmpi ne, %10, %c0_i32_3 : i32
    scf.if %11 {
      %c0 = arith.constant 0 : index
      %c0_4 = arith.constant 0 : index
      %12 = vector.load %arg5[%c0, %c0_4] : memref<64x256xf32, #tpu.memory_space<vmem>>, vector<64x256xf32>
      %13 = vector.extract_strided_slice %12 {offsets = [0, 0], sizes = [64, 128], strides = [1, 1]} : vector<64x256xf32> to vector<64x128xf32>
      %c0_5 = arith.constant 0 : index
      %c0_6 = arith.constant 0 : index
      %14 = vector.load %arg18[%c0_5, %c0_6] : memref<64x256xf32, #tpu.memory_space<vmem>>, vector<64x128xf32>
      %15 = tpu.concatenate %13, %14 in 1 : vector<64x128xf32>, vector<64x128xf32> -> vector<64x256xf32>
      %16 = arith.truncf %15 : vector<64x256xf32> to vector<64x256xbf16>
      %c0_7 = arith.constant 0 : index
      %c0_8 = arith.constant 0 : index
      %17 = vector.load %arg13[%c0_7, %c0_8] : memref<256x128xbf16, #tpu.memory_space<vmem>>, vector<256x128xbf16>
      %cst = arith.constant dense<0.000000e+00> : vector<64x128xf32>
      %18 = tpu.matmul %16, %17, %cst {dimension_numbers = #tpu.dot_dimension_numbers<[1], [0], [0], [1], [0, 0, 1, 1], [], []>} : vector<64x256xbf16>, vector<256x128xbf16>, vector<64x128xf32> -> vector<64x128xf32>
      %c0_9 = arith.constant 0 : index
      %c0_10 = arith.constant 0 : index
      %19 = vector.load %arg14[%c0_9, %c0_10] : memref<1x128xf32, #tpu.memory_space<vmem>>, vector<1x128xf32>
      %20 = vector.broadcast %19 : vector<1x128xf32> to vector<64x128xf32>
      %21 = arith.addf %18, %20 : vector<64x128xf32>
      %22 = arith.negf %21 : vector<64x128xf32>
      %23 = math.exp %22 : vector<64x128xf32>
      %cst_11 = arith.constant 1.000000e+00 : f32
      %24 = vector.broadcast %cst_11 : f32 to vector<64x128xf32>
      %25 = arith.addf %24, %23 : vector<64x128xf32>
      %26 = arith.divf %24, %25 : vector<64x128xf32>
      %27 = arith.mulf %21, %26 : vector<64x128xf32>
      %28 = arith.truncf %27 : vector<64x128xf32> to vector<64x128xbf16>
      %c0_12 = arith.constant 0 : index
      %c0_13 = arith.constant 0 : index
      %29 = vector.load %arg15[%c0_12, %c0_13] : memref<128x128xbf16, #tpu.memory_space<vmem>>, vector<128x128xbf16>
      %cst_14 = arith.constant dense<0.000000e+00> : vector<64x128xf32>
      %30 = tpu.matmul %28, %29, %cst_14 {dimension_numbers = #tpu.dot_dimension_numbers<[1], [0], [0], [1], [0, 0, 1, 1], [], []>} : vector<64x128xbf16>, vector<128x128xbf16>, vector<64x128xf32> -> vector<64x128xf32>
      %c0_15 = arith.constant 0 : index
      %c0_16 = arith.constant 0 : index
      %31 = vector.load %arg16[%c0_15, %c0_16] : memref<1x128xf32, #tpu.memory_space<vmem>>, vector<1x128xf32>
      %32 = vector.broadcast %31 : vector<1x128xf32> to vector<64x128xf32>
      %33 = arith.addf %30, %32 : vector<64x128xf32>
      %34 = arith.addf %33, %13 : vector<64x128xf32>
      %c0_17 = arith.constant 0 : index
      %c0_18 = arith.constant 0 : index
      %35 = vector.load %arg17[%c0_17, %c0_18] : memref<64x256xf32, #tpu.memory_space<vmem>>, vector<64x128xf32>
      tpu.vector_store %arg17[%c0_17, %c0_18], %34 {strides = array<i32>} : memref<64x256xf32, #tpu.memory_space<vmem>>, vector<64x128xf32>,
      %36 = vector.extract_strided_slice %12 {offsets = [0, 128], sizes = [64, 128], strides = [1, 1]} : vector<64x256xf32> to vector<64x128xf32>
      %c0_19 = arith.constant 0 : index
      %c128 = arith.constant 128 : index
      %37 = vector.load %arg18[%c0_19, %c128] : memref<64x256xf32, #tpu.memory_space<vmem>>, vector<64x128xf32>
      %38 = arith.addf %36, %37 : vector<64x128xf32>
      %c0_20 = arith.constant 0 : index
      %c128_21 = arith.constant 128 : index
      %39 = vector.load %arg17[%c0_20, %c128_21] : memref<64x256xf32, #tpu.memory_space<vmem>>, vector<64x128xf32>
      tpu.vector_store %arg17[%c0_20, %c128_21], %38 {strides = array<i32>} : memref<64x256xf32, #tpu.memory_space<vmem>>, vector<64x128xf32>,
    } else {
    }
    return
  }
  func.func @transform_0(%arg0: i32, %arg1: i32, %arg2: memref<1x1xi32, #tpu.memory_space<smem>>) -> (i32, i32) {
    %0 = arith.index_cast %arg0 : i32 to index
    %1 = arith.index_cast %arg1 : i32 to index
    %2 = memref.load %arg2[%0, %1] : memref<1x1xi32, #tpu.memory_space<smem>>
    %c0_i32 = arith.constant 0 : i32
    %c0_i32_0 = arith.constant 0 : i32
    return %2, %c0_i32 : i32, i32
  }
  func.func @transform_1(%arg0: i32, %arg1: i32, %arg2: memref<1x1xi32, #tpu.memory_space<smem>>) -> (i32, i32, i32) {
    %0 = arith.index_cast %arg0 : i32 to index
    %1 = arith.index_cast %arg1 : i32 to index
    %2 = memref.load %arg2[%0, %1] : memref<1x1xi32, #tpu.memory_space<smem>>
    %c0_i32 = arith.constant 0 : i32
    %c0_i32_0 = arith.constant 0 : i32
    %c0_i32_1 = arith.constant 0 : i32
    return %2, %c0_i32, %c0_i32_0 : i32, i32, i32
  }
  func.func @transform_2(%arg0: i32, %arg1: i32, %arg2: memref<1x1xi32, #tpu.memory_space<smem>>) -> (i32, i32) {
    %c0_i32 = arith.constant 0 : i32
    %c0_i32_0 = arith.constant 0 : i32
    return %arg0, %c0_i32 : i32, i32
  }
  func.func @transform_3(%arg0: i32, %arg1: i32, %arg2: memref<1x1xi32, #tpu.memory_space<smem>>) -> (i32, i32) {
    %c0_i32 = arith.constant 0 : i32
    %c0_i32_0 = arith.constant 0 : i32
    %c0_i32_1 = arith.constant 0 : i32
    return %c0_i32, %c0_i32_0 : i32, i32
  }
  func.func @transform_4(%arg0: i32, %arg1: i32, %arg2: memref<1x1xi32, #tpu.memory_space<smem>>) -> (i32, i32) {
    %c0_i32 = arith.constant 0 : i32
    %c0_i32_0 = arith.constant 0 : i32
    %c0_i32_1 = arith.constant 0 : i32
    return %c0_i32, %c0_i32_0 : i32, i32
  }
  func.func @transform_5(%arg0: i32, %arg1: i32, %arg2: memref<1x1xi32, #tpu.memory_space<smem>>) -> (i32, i32) {
    %c0_i32 = arith.constant 0 : i32
    %c0_i32_0 = arith.constant 0 : i32
    %c0_i32_1 = arith.constant 0 : i32
    return %c0_i32, %c0_i32_0 : i32, i32
  }
  func.func @transform_6(%arg0: i32, %arg1: i32, %arg2: memref<1x1xi32, #tpu.memory_space<smem>>) -> (i32, i32) {
    %c0_i32 = arith.constant 0 : i32
    %c0_i32_0 = arith.constant 0 : i32
    %c0_i32_1 = arith.constant 0 : i32
    return %c0_i32, %c0_i32_0 : i32, i32
  }
  func.func @transform_7(%arg0: i32, %arg1: i32, %arg2: memref<1x1xi32, #tpu.memory_space<smem>>) -> (i32, i32) {
    %c0_i32 = arith.constant 0 : i32
    %c0_i32_0 = arith.constant 0 : i32
    %c0_i32_1 = arith.constant 0 : i32
    return %c0_i32, %c0_i32_0 : i32, i32
  }
  func.func @transform_8(%arg0: i32, %arg1: i32, %arg2: memref<1x1xi32, #tpu.memory_space<smem>>) -> (i32, i32) {
    %c0_i32 = arith.constant 0 : i32
    %c0_i32_0 = arith.constant 0 : i32
    %c0_i32_1 = arith.constant 0 : i32
    return %c0_i32, %c0_i32_0 : i32, i32
  }
  func.func @transform_9(%arg0: i32, %arg1: i32, %arg2: memref<1x1xi32, #tpu.memory_space<smem>>) -> (i32, i32) {
    %c0_i32 = arith.constant 0 : i32
    %c0_i32_0 = arith.constant 0 : i32
    %c0_i32_1 = arith.constant 0 : i32
    return %c0_i32, %c0_i32_0 : i32, i32
  }
  func.func @transform_10(%arg0: i32, %arg1: i32, %arg2: memref<1x1xi32, #tpu.memory_space<smem>>) -> (i32, i32) {
    %c0_i32 = arith.constant 0 : i32
    %c0_i32_0 = arith.constant 0 : i32
    %c0_i32_1 = arith.constant 0 : i32
    return %c0_i32, %c0_i32_0 : i32, i32
  }
  func.func @transform_11(%arg0: i32, %arg1: i32, %arg2: memref<1x1xi32, #tpu.memory_space<smem>>) -> (i32, i32) {
    %c0_i32 = arith.constant 0 : i32
    %c0_i32_0 = arith.constant 0 : i32
    %c0_i32_1 = arith.constant 0 : i32
    return %c0_i32, %c0_i32_0 : i32, i32
  }
  func.func @transform_12(%arg0: i32, %arg1: i32, %arg2: memref<1x1xi32, #tpu.memory_space<smem>>) -> (i32, i32) {
    %c0_i32 = arith.constant 0 : i32
    %c0_i32_0 = arith.constant 0 : i32
    %c0_i32_1 = arith.constant 0 : i32
    return %c0_i32, %c0_i32_0 : i32, i32
  }
  func.func @transform_13(%arg0: i32, %arg1: i32, %arg2: memref<1x1xi32, #tpu.memory_space<smem>>) -> (i32, i32) {
    %c0_i32 = arith.constant 0 : i32
    %c0_i32_0 = arith.constant 0 : i32
    %c0_i32_1 = arith.constant 0 : i32
    return %c0_i32, %c0_i32_0 : i32, i32
  }
  func.func @transform_14(%arg0: i32, %arg1: i32, %arg2: memref<1x1xi32, #tpu.memory_space<smem>>) -> (i32, i32) {
    %c0_i32 = arith.constant 0 : i32
    %c0_i32_0 = arith.constant 0 : i32
    return %arg0, %c0_i32 : i32, i32
  }
}

</mosaic_0001>

<bundles_post_ra>
// kernel: _lambda_.8
= control target key start
LH: loop header
LB: loop body
LE: loop exit
PB: predicated region body
PF: predicated region fallthrough
CT: control target
= control target key end

     0   :  { %v5800_v0 = vmov 0.0   ;;  %s9448_s0 = inlined_call_operand.<no memory space> [shape: s32[1,1], index: 0, kind: input, shape index: {}]   ;;  %s9449_s3 = inlined_call_operand.vmem [shape: f32[64,256], index: 3, kind: input, shape index: {}]   ;;  %s9450_s4 = inlined_call_operand.vmem [shape: bf16[128,128], index: 4, kind: input, shape index: {}]   ;;  %s9451_s5 = inlined_call_operand.vmem [shape: f32[1,128], index: 5, kind: input, shape index: {}, may-alias: {5,7,9,12,14}]   ;;  %s9452_s6 = inlined_call_operand.vmem [shape: bf16[128,128], index: 6, kind: input, shape index: {}]   ;;  %s9453_s7 = inlined_call_operand.vmem [shape: f32[1,128], index: 7, kind: input, shape index: {}, may-alias: {5,7,9,12,14}]   ;;  %s9454_s8 = inlined_call_operand.vmem [shape: bf16[128,128], index: 8, kind: input, shape index: {}]   ;;  %s9455_s9 = inlined_call_operand.vmem [shape: f32[1,128], index: 9, kind: input, shape index: {}, may-alias: {5,7,9,12,14}]   ;;  %s9456_s10 = inlined_call_operand.vmem [shape: f32[1,128], index: 10, kind: input, shape index: {}]   ;;  %s9457_s11 = inlined_call_operand.vmem [shape: bf16[256,128], index: 11, kind: input, shape index: {}]   ;;  %s9458_s12 = inlined_call_operand.vmem [shape: f32[1,128], index: 12, kind: input, shape index: {}, may-alias: {5,7,9,12,14}]   ;;  %s9459_s13 = inlined_call_operand.vmem [shape: bf16[128,128], index: 13, kind: input, shape index: {}]   ;;  %s9460_s14 = inlined_call_operand.vmem [shape: f32[1,128], index: 14, kind: input, shape index: {}, may-alias: {5,7,9,12,14}]   ;;  %s9461_s15 = inlined_call_operand.vmem [shape: f32[1,128], index: 15, kind: input, shape index: {}]   ;;  %s9462_s16 = inlined_call_operand.vmem [shape: f32[64,256], index: 16, kind: output, shape index: {}]   ;;  %s9463_s2 = inlined_call_operand.vmem [shape: s32[2,1,256], index: 2, kind: input, shape index: {}]   ;;  %s9464_s1 = inlined_call_operand.vmem [shape: bf16[512,128], index: 1, kind: input, shape index: {}]  }
   0x1   :  { %9482 = sst [smem:[#allocation20_spill]] %s9448_s0  ;;  %125 = vst [vmem:[#allocation2 + $0x30] sm:$0xff] %v5800_v0 }
   0x2   :  { %9483 = sst [smem:[#allocation21_spill]] %s9458_s12  ;;  %126 = vst [vmem:[#allocation2] sm:$0xff] %v5800_v0 }
   0x3   :  { %s9484_s23 = sld [smem:[#allocation20_spill]]  ;;  %127 = vst [vmem:[#allocation2 + $0x58] sm:$0xff] %v5800_v0 }
   0x4   :  { %128 = vst [vmem:[#allocation2 + $0x18] sm:$0xff] %v5800_v0 }
   0x5   :  { %129 = vst [vmem:[#allocation2 + $0x50] sm:$0xff] %v5800_v0 }
   0x6   :  { %130 = vst [vmem:[#allocation2 + $0x68] sm:$0xff] %v5800_v0 }
   0x7   :  { %131 = vst [vmem:[#allocation2 + $0x8] sm:$0xff] %v5800_v0 }
   0x8   :  { %132 = vst [vmem:[#allocation2 + $0x48] sm:$0xff] %v5800_v0 }
   0x9   :  { %s4724_s12 = sshll.u32 %s9484_s23, 5  ;;  %p113_p0 = scmp.lt.s32.totalorder %s9484_s23, 1  ;;  %133 = vst [vmem:[#allocation2 + $0x40] sm:$0xff] %v5800_v0 }
   0xa   :  { %p100_p1 = scmp.lt.s32.totalorder %s4724_s12, 63  ;;  %134 = vst [vmem:[#allocation2 + $0x20] sm:$0xff] %v5800_v0  ;;  %p4727_p2 = scmp.eq.s32.totalorder %s9484_s23, 1 }
   0xb   :  { %s114_s28 = scalar_select %p113_p0, %s9484_s23, 1  ;;  %135 = vst [vmem:[#allocation2 + $0x10] sm:$0xff] %v5800_v0 }
   0xc   :  { %s9749_s12 = smov (!%p100_p1, %s4724_s12), 63  ;;  %136 = vst [vmem:[#allocation2 + $0x38] sm:$0xff] %v5800_v0  ;;  %148 = sbr.rel (%p4727_p2) target bundleno = 1341 (0x53d), region = 69 }
   0xd   :  { %s4726_s29 = sshll.u32 %s114_s28, 1  ;;  %s4725_s30 = sshll.u32 %s9749_s12, 2  ;;  %137 = vst [vmem:[#allocation2 + $0x60] sm:$0xff] %v5800_v0 }
   0xe   :  { %s5899_s18 = scalar_lea.vmem %s9463_s2, %s4726_s29  ;;  %s5904_s21 = scalar_lea.vmem %s9464_s1, %s4725_s30  ;;  %138 = vst [vmem:[#allocation2 + $0x70] sm:$0xff] %v5800_v0 }
   0xf   :  { %139 = vst [vmem:[#allocation2 + $0x78] sm:$0xff] %v5800_v0 }
  0x10   :  { %140 = vst [vmem:[#allocation2 + $0x28] sm:$0xff] %v5800_v0 }
  0x11   :  { %v5191_v1 = vld [vmem:[%s9450_s4 + $0x38] sm:$0xff]  ;;  %v5190_v2 = vld [vmem:[%s9450_s4 + $0x30] sm:$0xff]  ;;  %v5189_v3 = vld [vmem:[%s9450_s4 + $0x28] sm:$0xff] }
  0x12   :  { %345 = vmatpush.bf16.msra.mxu0 %v5191_v1  ;;  %v5188_v4 = vld [vmem:[%s9450_s4 + $0x20] sm:$0xff]  ;;  %v5187_v5 = vld [vmem:[%s9450_s4 + $0x18] sm:$0xff]  ;;  %v5186_v6 = vld [vmem:[%s9450_s4 + $0x10] sm:$0xff] }
  0x13   :  { %v5185_v7 = vld [vmem:[%s9450_s4 + $0x8] sm:$0xff]  ;;  %v5184_v8 = vld [vmem:[%s9450_s4] sm:$0xff]  ;;  %v5170_v11 = vld [vmem:[%s5904_s21 + $0x10] sm:$0xff] }
  0x14   :  { %v5168_v9 = vld [vmem:[%s5904_s21] sm:$0xff]  ;;  %v5169_v10 = vld [vmem:[%s5904_s21 + $0x8] sm:$0xff]  ;;  %v5171_v12 = vld [vmem:[%s5904_s21 + $0x18] sm:$0xff] }
  0x15   :  { %v5172_v13 = vld [vmem:[%s5904_s21 + $0x20] sm:$0xff]  ;;  %v5173_v14 = vld [vmem:[%s5904_s21 + $0x28] sm:$0xff]  ;;  %v5174_v15 = vld [vmem:[%s5904_s21 + $0x30] sm:$0xff] }
  0x16   :  { %346 = vmatpush.bf16.msra.mxu0 %v5190_v2  ;;  %v5199_v16 = vld [vmem:[%s9452_s6 + $0x38] sm:$0xff]  ;;  %v5198_v18 = vld [vmem:[%s9452_s6 + $0x30] sm:$0xff]  ;;  %v5197_v19 = vld [vmem:[%s9452_s6 + $0x28] sm:$0xff] }
  0x17   :  { %1158 = vmatpush.bf16.msra.mxu1 %v5199_v16  ;;  %v5175_v17 = vld [vmem:[%s5904_s21 + $0x38] sm:$0xff]  ;;  %v5196_v20 = vld [vmem:[%s9452_s6 + $0x20] sm:$0xff]  ;;  %v5194_v24 = vld [vmem:[%s9452_s6 + $0x10] sm:$0xff] }
  0x18   :  { %v5195_v21 = vld [vmem:[%s9452_s6 + $0x18] sm:$0xff]  ;;  %v5959_v22 = vld [vmem:[%s9451_s5] ss:$0 sm:$0xff]  ;;  %v5193_v28 = vld [vmem:[%s9452_s6 + $0x8] sm:$0xff] }
  0x19   :  { %v5176_v23 = vld [vmem:[%s5904_s21 + $0x40] sm:$0xff]  ;;  %v5177_v35 = vld [vmem:[%s5904_s21 + $0x48] sm:$0xff]  ;;  %v5178_v55 = vld [vmem:[%s5904_s21 + $0x50] sm:$0xff] }
  0x1a   :  { %347 = vmatpush.bf16.msra.mxu0 %v5189_v3  ;;  %v5192_v29 = vld [vmem:[%s9452_s6] sm:$0xff] }
  0x1b   :  { %1159 = vmatpush.bf16.msra.mxu1 %v5198_v18 }
  0x1e   :  { %348 = vmatpush.bf16.msra.mxu0 %v5188_v4 }
  0x1f   :  { %1160 = vmatpush.bf16.msra.mxu1 %v5197_v19 }
  0x22   :  { %349 = vmatpush.bf16.msra.mxu0 %v5187_v5 }
  0x23   :  { %1161 = vmatpush.bf16.msra.mxu1 %v5196_v20 }
  0x26   :  { %350 = vmatpush.bf16.msra.mxu0 %v5186_v6 }
  0x27   :  { %1162 = vmatpush.bf16.msra.mxu1 %v5195_v21 }
  0x2a   :  { %351 = vmatpush.bf16.msra.mxu0 %v5185_v7 }
  0x2b   :  { %1163 = vmatpush.bf16.msra.mxu1 %v5194_v24 }
  0x2e   :  { %352 = vmatpush.bf16.msra.mxu0 %v5184_v8 }
  0x2f   :  { %1164 = vmatpush.bf16.msra.mxu1 %v5193_v28 }
  0x31   :  { %353 = vmatmul.bf16.vlgmr.msra.gmra.mxu0 %v5168_v9 }
  0x33   :  { %1165 = vmatpush.bf16.msra.mxu1 %v5192_v29 }
  0x41   :  { %358 = vmatmul.bf16.gmra.mxu0 %v5169_v10 }
  0x51   :  { %363 = vmatmul.bf16.gmra.mxu0 %v5170_v11 }
  0x61   :  { %368 = vmatmul.bf16.gmra.mxu0 %v5171_v12 }
  0x71   :  { %373 = vmatmul.bf16.gmra.mxu0 %v5172_v13 }
  0x81   :  { %378 = vmatmul.bf16.gmra.mxu0 %v5173_v14 }
  0x91   :  { %383 = vmatmul.bf16.gmra.mxu0 %v5174_v15 }
  0xa1   :  { %388 = vmatmul.bf16.gmra.mxu0 %v5175_v17 }
  0xae   :  { %v354_v25 = vpop.f32.mrf.mxu0 }
  0xaf   :  { %v5966_v26 = vadd.f32 %v5959_v22, %v354_v25 }
  0xb1   :  { %v4824_v27 = vmul.f32 -1.442695, %v5966_v26  ;;  %393 = vmatmul.bf16.gmra.mxu0 %v5176_v23 }
  0xb3   :  { %5247 = vpow2.f32 %v4824_v27  ;;  %v5179_v27 = vld [vmem:[%s5904_s21 + $0x58] sm:$0xff] }
  0xb6   :  { %v356_v30 = vpop.f32.mrf.mxu0 }
  0xb7   :  { %v5976_v31 = vadd.f32 %v5959_v22, %v356_v30 }
  0xb9   :  { %v5248_v32 = vpop.eup %5247  ;;  %v4825_v33 = vmul.f32 -1.442695, %v5976_v31 }
  0xba   :  { %v530_v34 = vadd.f32 1.0, %v5248_v32 }
  0xbb   :  { %5249 = vpow2.f32 %v4825_v33 }
  0xbc   :  { %5251 = vrcp.f32 %v530_v34  ;;  %v573_v53 = vand.u32 2147483648, %v530_v34  ;;  %vm567_vm1 = vweird.f32 %v530_v34  ;;  %v571_v54 = vand.u32 2147483647, %v530_v34 }
  0xbe   :  { %v359_v36 = vpop.f32.mrf.mxu0  ;;  %v574_v0 = vor.u32 1.1754944e-38, %v573_v53  ;;  %vm572_vm4 = vcmp.eq.f32.partialorder %v571_v54, 8.507059e+37 }
  0xbf   :  { %v5981_v37 = vadd.f32 %v5959_v22, %v359_v36 }
  0xc1   :  { %v5250_v38 = vpop.eup %5249  ;;  %v4826_v39 = vmul.f32 -1.442695, %v5981_v37  ;;  %398 = vmatmul.bf16.gmra.mxu0 %v5177_v35 }
  0xc2   :  { %v5252_v40 = vpop.eup %5251  ;;  %v531_v41 = vadd.f32 1.0, %v5250_v38 }
  0xc3   :  { %v563_v42 = vmul.f32 %v5252_v40, %v530_v34  ;;  %5253 = vpow2.f32 %v4826_v39  ;;  %vm568_vm0 = vweird.f32 %v5252_v40 }
  0xc4   :  { %5255 = vrcp.f32 %v531_v41  ;;  %vm5992_vm2 = vmor %vm567_vm1, %vm568_vm0  ;;  %v586_v59 = vand.u32 2147483647, %v531_v41  ;;  %v588_v60 = vand.u32 2147483648, %v531_v41  ;;  %vm582_vm5 = vweird.f32 %v531_v41 }
  0xc5   :  { %v564_v43 = vsub.f32 1.0, %v563_v42 }
  0xc6   :  { %v361_v44 = vpop.f32.mrf.mxu0  ;;  %v589_v7 = vor.u32 1.1754944e-38, %v588_v60  ;;  %vm587_vm7 = vcmp.eq.f32.partialorder %v586_v59, 8.507059e+37 }
  0xc7   :  { %v565_v45 = vmul.f32 %v5252_v40, %v564_v43  ;;  %v5985_v46 = vadd.f32 %v5959_v22, %v361_v44 }
  0xc9   :  { %v5254_v47 = vpop.eup %5253  ;;  %v4827_v48 = vmul.f32 -1.442695, %v5985_v46  ;;  %v566_v51 = vadd.f32 %v5252_v40, %v565_v45 }
  0xca   :  { %v5256_v49 = vpop.eup %5255  ;;  %v5988_v50 = vadd.f32 1.0, %v5254_v47 }
  0xcb   :  { %5257 = vpow2.f32 %v4827_v48  ;;  %v578_v52 = vmul.f32 %v5256_v49, %v531_v41  ;;  %v570_v61 = vsel %vm5992_vm2, %v5252_v40, %v566_v51  ;;  %vm583_vm3 = vweird.f32 %v5256_v49 }
  0xcc   :  { %5259 = vrcp.f32 %v5988_v50  ;;  %v575_v5 = vsel %vm572_vm4, %v574_v0, %v570_v61  ;;  %vm584_vm6 = vmor %vm582_vm5, %vm583_vm3  ;;  %v603_v25 = vand.u32 2147483648, %v5988_v50  ;;  %vm597_vm9 = vweird.f32 %v5988_v50 }
  0xcd   :  { %v579_v56 = vsub.f32 1.0, %v578_v52  ;;  %v1042_v11 = vmul.f32 %v575_v5, %v5966_v26  ;;  %v601_v26 = vand.u32 2147483647, %v5988_v50 }
  0xce   :  { %v364_v58 = vpop.f32.mrf.mxu0  ;;  %v604_v36 = vor.u32 1.1754944e-38, %v603_v25 }
  0xcf   :  { %v5999_v62 = vadd.f32 %v5959_v22, %v364_v58  ;;  %v580_v63 = vmul.f32 %v5256_v49, %v579_v56  ;;  %vm602_vm12 = vcmp.eq.f32.partialorder %v601_v26, 8.507059e+37 }
  0xd1   :  { %v5258_v1 = vpop.eup %5257  ;;  %v4828_v2 = vmul.f32 -1.442695, %v5999_v62  ;;  %403 = vmatmul.bf16.gmra.mxu0 %v5178_v55  ;;  %v581_v3 = vadd.f32 %v5256_v49, %v580_v63  ;;  %v5180_v63 = vld [vmem:[%s5904_s21 + $0x60] sm:$0xff] }
  0xd2   :  { %v5260_v4 = vpop.eup %5259  ;;  %v533_v6 = vadd.f32 1.0, %v5258_v1 }
  0xd3   :  { %v593_v8 = vmul.f32 %v5260_v4, %v5988_v50  ;;  %5261 = vpow2.f32 %v4828_v2  ;;  %v585_v9 = vsel %vm584_vm6, %v5256_v49, %v581_v3  ;;  %vm598_vm8 = vweird.f32 %v5260_v4 }
  0xd4   :  { %5263 = vrcp.f32 %v533_v6  ;;  %v590_v10 = vsel %vm587_vm7, %v589_v7, %v585_v9  ;;  %vm6016_vm10 = vmor %vm597_vm9, %vm598_vm8  ;;  %v618_v32 = vand.u32 2147483648, %v533_v6  ;;  %vm612_vm13 = vweird.f32 %v533_v6 }
  0xd5   :  { %v594_v12 = vsub.f32 1.0, %v593_v8  ;;  %v1043_v13 = vmul.f32 %v590_v10, %v5976_v31  ;;  %v616_v31 = vand.u32 2147483647, %v533_v6 }
  0xd6   :  { %v366_v14 = vpop.f32.mrf.mxu0  ;;  %v619_v44 = vor.u32 1.1754944e-38, %v618_v32 }
  0xd7   :  { %v595_v15 = vmul.f32 %v5260_v4, %v594_v12  ;;  %v6006_v16 = vadd.f32 %v5959_v22, %v366_v14  ;;  %v1074_v17 = vpack.c.bf16 %v1043_v13, %v1042_v11  ;;  %vm617_vm15 = vcmp.eq.f32.partialorder %v616_v31, 8.507059e+37 }
  0xd9   :  { %v5262_v18 = vpop.eup %5261  ;;  %v4829_v19 = vmul.f32 -1.442695, %v6006_v16  ;;  %1166 = vmatmul.bf16.vlgmr.msra.gmra.mxu1 %v1074_v17  ;;  %v596_v23 = vadd.f32 %v5260_v4, %v595_v15 }
  0xda   :  { %v5264_v20 = vpop.eup %5263  ;;  %v6009_v21 = vadd.f32 1.0, %v5262_v18 }
  0xdb   :  { %5265 = vpow2.f32 %v4829_v19  ;;  %v608_v24 = vmul.f32 %v5264_v20, %v533_v6  ;;  %v600_v33 = vsel %vm6016_vm10, %v5260_v4, %v596_v23  ;;  %vm613_vm11 = vweird.f32 %v5264_v20 }
  0xdc   :  { %5267 = vrcp.f32 %v6009_v21  ;;  %v605_v42 = vsel %vm602_vm12, %v604_v36, %v600_v33  ;;  %vm614_vm14 = vmor %vm612_vm13, %vm613_vm11  ;;  %vm627_vm1 = vweird.f32 %v6009_v21  ;;  %v631_v61 = vand.u32 2147483647, %v6009_v21  ;;  %v5181_v33 = vld [vmem:[%s5904_s21 + $0x68] sm:$0xff] }
  0xdd   :  { %v609_v28 = vsub.f32 1.0, %v608_v24  ;;  %v1044_v49 = vmul.f32 %v605_v42, %v5981_v37 }
  0xde   :  { %v369_v30 = vpop.f32.mrf.mxu0  ;;  %vm632_vm4 = vcmp.eq.f32.partialorder %v631_v61, 8.507059e+37 }
  0xdf   :  { %v6023_v34 = vadd.f32 %v5959_v22, %v369_v30  ;;  %v610_v35 = vmul.f32 %v5264_v20, %v609_v28 }
  0xe1   :  { %v5266_v38 = vpop.eup %5265  ;;  %v4830_v39 = vmul.f32 -1.442695, %v6023_v34  ;;  %408 = vmatmul.bf16.gmra.mxu0 %v5179_v27  ;;  %v611_v40 = vadd.f32 %v5264_v20, %v610_v35 }
  0xe2   :  { %v5268_v41 = vpop.eup %5267  ;;  %v535_v43 = vadd.f32 1.0, %v5266_v38 }
  0xe3   :  { %v623_v45 = vmul.f32 %v5268_v41, %v6009_v21  ;;  %5269 = vpow2.f32 %v4830_v39  ;;  %v615_v47 = vsel %vm614_vm14, %v5264_v20, %v611_v40  ;;  %vm628_vm0 = vweird.f32 %v5268_v41 }
  0xe4   :  { %5271 = vrcp.f32 %v535_v43  ;;  %v620_v48 = vsel %vm617_vm15, %v619_v44, %v615_v47  ;;  %vm6040_vm2 = vmor %vm627_vm1, %vm628_vm0  ;;  %v646_v3 = vand.u32 2147483647, %v535_v43  ;;  %v648_v4 = vand.u32 2147483648, %v535_v43 }
  0xe5   :  { %v624_v50 = vsub.f32 1.0, %v623_v45  ;;  %v1045_v51 = vmul.f32 %v620_v48, %v5985_v46  ;;  %v633_v46 = vand.u32 2147483648, %v6009_v21  ;;  %vm642_vm5 = vweird.f32 %v535_v43 }
  0xe6   :  { %v371_v52 = vpop.f32.mrf.mxu0  ;;  %v649_v15 = vor.u32 1.1754944e-38, %v648_v4  ;;  %vm647_vm7 = vcmp.eq.f32.partialorder %v646_v3, 8.507059e+37 }
  0xe7   :  { %v625_v53 = vmul.f32 %v5268_v41, %v624_v50  ;;  %v6030_v54 = vadd.f32 %v5959_v22, %v371_v52  ;;  %v1075_v55 = vpack.c.bf16 %v1045_v51, %v1044_v49  ;;  %v634_v8 = vor.u32 1.1754944e-38, %v633_v46 }
  0xe9   :  { %v5270_v56 = vpop.eup %5269  ;;  %v4831_v57 = vmul.f32 -1.442695, %v6030_v54  ;;  %1171 = vmatmul.bf16.gmra.mxu1 %v1075_v55  ;;  %v626_v60 = vadd.f32 %v5268_v41, %v625_v53 }
  0xea   :  { %v5272_v58 = vpop.eup %5271  ;;  %v6033_v59 = vadd.f32 1.0, %v5270_v56 }
  0xeb   :  { %5273 = vpow2.f32 %v4831_v57  ;;  %v638_v37 = vmul.f32 %v5272_v58, %v535_v43  ;;  %v630_v5 = vsel %vm6040_vm2, %v5268_v41, %v626_v60  ;;  %vm643_vm3 = vweird.f32 %v5272_v58 }
  0xec   :  { %5275 = vrcp.f32 %v6033_v59  ;;  %v635_v13 = vsel %vm632_vm4, %v634_v8, %v630_v5  ;;  %vm644_vm6 = vmor %vm642_vm5, %vm643_vm3  ;;  %vm657_vm9 = vweird.f32 %v6033_v59  ;;  %v661_v36 = vand.u32 2147483647, %v6033_v59  ;;  %v5182_v8 = vld [vmem:[%s5904_s21 + $0x70] sm:$0xff] }
  0xed   :  { %v639_v0 = vsub.f32 1.0, %v638_v37  ;;  %v1046_v20 = vmul.f32 %v635_v13, %v5999_v62 }
  0xee   :  { %v374_v2 = vpop.f32.mrf.mxu0  ;;  %vm662_vm13 = vcmp.eq.f32.partialorder %v661_v36, 8.507059e+37 }
  0xef   :  { %v6047_v6 = vadd.f32 %v5959_v22, %v374_v2  ;;  %v640_v7 = vmul.f32 %v5272_v58, %v639_v0 }
  0xf1   :  { %v5274_v9 = vpop.eup %5273  ;;  %v4832_v10 = vmul.f32 -1.442695, %v6047_v6  ;;  %413 = vmatmul.bf16.gmra.mxu0 %v5180_v63  ;;  %v641_v11 = vadd.f32 %v5272_v58, %v640_v7 }
  0xf2   :  { %v5276_v12 = vpop.eup %5275  ;;  %v537_v14 = vadd.f32 1.0, %v5274_v9 }
  0xf3   :  { %v653_v17 = vmul.f32 %v5276_v12, %v6033_v59  ;;  %5277 = vpow2.f32 %v4832_v10  ;;  %v645_v18 = vsel %vm644_vm6, %v5272_v58, %v641_v11  ;;  %vm658_vm8 = vweird.f32 %v5276_v12 }
  0xf4   :  { %5279 = vrcp.f32 %v537_v14  ;;  %v650_v19 = vsel %vm647_vm7, %v649_v15, %v645_v18  ;;  %v678_v39 = vand.u32 2147483648, %v537_v14  ;;  %vm6064_vm10 = vmor %vm657_vm9, %vm658_vm8  ;;  %v676_v44 = vand.u32 2147483647, %v537_v14 }
  0xf5   :  { %v654_v21 = vsub.f32 1.0, %v653_v17  ;;  %v1047_v23 = vmul.f32 %v650_v19, %v6006_v16  ;;  %v663_v16 = vand.u32 2147483648, %v6033_v59  ;;  %vm672_vm12 = vweird.f32 %v537_v14 }
  0xf6   :  { %v376_v24 = vpop.f32.mrf.mxu0  ;;  %v679_v52 = vor.u32 1.1754944e-38, %v678_v39  ;;  %vm677_vm15 = vcmp.eq.f32.partialorder %v676_v44, 8.507059e+37 }
  0xf7   :  { %v6054_v25 = vadd.f32 %v5959_v22, %v376_v24  ;;  %v1076_v26 = vpack.c.bf16 %v1047_v23, %v1046_v20  ;;  %v655_v27 = vmul.f32 %v5276_v12, %v654_v21  ;;  %v664_v47 = vor.u32 1.1754944e-38, %v663_v16 }
  0xf9   :  { %v5278_v28 = vpop.eup %5277  ;;  %v4833_v29 = vmul.f32 -1.442695, %v6054_v25  ;;  %1176 = vmatmul.bf16.gmra.mxu1 %v1076_v26  ;;  %v656_v62 = vadd.f32 %v5276_v12, %v655_v27 }
  0xfa   :  { %v5280_v30 = vpop.eup %5279  ;;  %v6057_v31 = vadd.f32 1.0, %v5278_v28 }
  0xfb   :  { %5281 = vpow2.f32 %v4833_v29  ;;  %v668_v32 = vmul.f32 %v5280_v30, %v537_v14  ;;  %vm673_vm11 = vweird.f32 %v5280_v30  ;;  %v660_v43 = vsel %vm6064_vm10, %v5276_v12, %v656_v62 }
  0xfc   :  { %5283 = vrcp.f32 %v6057_v31  ;;  %vm674_vm14 = vmor %vm672_vm12, %vm673_vm11  ;;  %v665_v53 = vsel %vm662_vm13, %v664_v47, %v660_v43  ;;  %vm687_vm1 = vweird.f32 %v6057_v31 }
  0xfd   :  { %v669_v35 = vsub.f32 1.0, %v668_v32  ;;  %v1048_v59 = vmul.f32 %v665_v53, %v6023_v34  ;;  %v693_v34 = vand.u32 2147483648, %v6057_v31 }
  0xfe   :  { %v379_v38 = vpop.f32.mrf.mxu0 }
  0xff   :  { %v6069_v41 = vadd.f32 %v5959_v22, %v379_v38  ;;  %v670_v42 = vmul.f32 %v5280_v30, %v669_v35  ;;  %v694_v17 = vor.u32 1.1754944e-38, %v693_v34 }
 0x101   :  { %v5282_v45 = vpop.eup %5281  ;;  %v4834_v48 = vmul.f32 -1.442695, %v6069_v41  ;;  %418 = vmatmul.bf16.gmra.mxu0 %v5181_v33  ;;  %v671_v49 = vadd.f32 %v5280_v30, %v670_v42 }
 0x102   :  { %v5284_v50 = vpop.eup %5283  ;;  %v539_v51 = vadd.f32 1.0, %v5282_v45  ;;  %v5183_v45 = vld [vmem:[%s5904_s21 + $0x78] sm:$0xff] }
 0x103   :  { %v683_v55 = vmul.f32 %v5284_v50, %v6057_v31  ;;  %5285 = vpow2.f32 %v4834_v48  ;;  %v675_v56 = vsel %vm674_vm14, %v5280_v30, %v671_v49  ;;  %vm688_vm0 = vweird.f32 %v5284_v50 }
 0x104   :  { %5287 = vrcp.f32 %v539_v51  ;;  %v680_v58 = vsel %vm677_vm15, %v679_v52, %v675_v56  ;;  %vm6088_vm2 = vmor %vm687_vm1, %vm688_vm0  ;;  %v706_v10 = vand.u32 2147483647, %v539_v51  ;;  %v708_v11 = vand.u32 2147483648, %v539_v51 }
 0x105   :  { %v684_v57 = vsub.f32 1.0, %v683_v55  ;;  %v1049_v37 = vmul.f32 %v680_v58, %v6030_v54  ;;  %v691_v54 = vand.u32 2147483647, %v6057_v31  ;;  %vm702_vm5 = vweird.f32 %v539_v51 }
 0x106   :  { %v381_v60 = vpop.f32.mrf.mxu0  ;;  %v709_v24 = vor.u32 1.1754944e-38, %v708_v11  ;;  %vm707_vm7 = vcmp.eq.f32.partialorder %v706_v10, 8.507059e+37 }
 0x107   :  { %v685_v46 = vmul.f32 %v5284_v50, %v684_v57  ;;  %v6078_v61 = vadd.f32 %v5959_v22, %v381_v60  ;;  %v1077_v63 = vpack.c.bf16 %v1049_v37, %v1048_v59  ;;  %vm692_vm4 = vcmp.eq.f32.partialorder %v691_v54, 8.507059e+37 }
 0x109   :  { %v5286_v0 = vpop.eup %5285  ;;  %v4835_v1 = vmul.f32 -1.442695, %v6078_v61  ;;  %1181 = vmatmul.bf16.gmra.mxu1 %v1077_v63  ;;  %v686_v4 = vadd.f32 %v5284_v50, %v685_v46 }
 0x10a   :  { %v5288_v2 = vpop.eup %5287  ;;  %v6081_v3 = vadd.f32 1.0, %v5286_v0 }
 0x10b   :  { %v698_v5 = vmul.f32 %v5288_v2, %v539_v51  ;;  %5289 = vpow2.f32 %v4835_v1  ;;  %v690_v13 = vsel %vm6088_vm2, %v5284_v50, %v686_v4  ;;  %vm703_vm3 = vweird.f32 %v5288_v2 }
 0x10c   :  { %5291 = vrcp.f32 %v6081_v3  ;;  %v695_v23 = vsel %vm692_vm4, %v694_v17, %v690_v13  ;;  %vm704_vm6 = vmor %vm702_vm5, %vm703_vm3  ;;  %vm717_vm9 = vweird.f32 %v6081_v3  ;;  %v721_v43 = vand.u32 2147483647, %v6081_v3 }
 0x10d   :  { %v699_v7 = vsub.f32 1.0, %v698_v5  ;;  %v1050_v30 = vmul.f32 %v695_v23, %v6047_v6 }
 0x10e   :  { %v384_v12 = vpop.f32.mrf.mxu0  ;;  %vm722_vm12 = vcmp.eq.f32.partialorder %v721_v43, 8.507059e+37 }
 0x10f   :  { %v700_v14 = vmul.f32 %v5288_v2, %v699_v7  ;;  %v6095_v15 = vadd.f32 %v5959_v22, %v384_v12 }
 0x111   :  { %v5290_v18 = vpop.eup %5289  ;;  %v701_v19 = vadd.f32 %v5288_v2, %v700_v14  ;;  %v4836_v20 = vmul.f32 -1.442695, %v6095_v15  ;;  %423 = vmatmul.bf16.gmra.mxu0 %v5182_v8 }
 0x112   :  { %v5292_v21 = vpop.eup %5291  ;;  %v541_v26 = vadd.f32 1.0, %v5290_v18 }
 0x113   :  { %v705_v27 = vsel %vm704_vm6, %v5288_v2, %v701_v19  ;;  %v713_v28 = vmul.f32 %v5292_v21, %v6081_v3  ;;  %5293 = vpow2.f32 %v4836_v20  ;;  %vm718_vm8 = vweird.f32 %v5292_v21 }
 0x114   :  { %v710_v29 = vsel %vm707_vm7, %v709_v24, %v705_v27  ;;  %5295 = vrcp.f32 %v541_v26  ;;  %vm6112_vm10 = vmor %vm717_vm9, %vm718_vm8  ;;  %v736_v48 = vand.u32 2147483647, %v541_v26  ;;  %v738_v49 = vand.u32 2147483648, %v541_v26 }
 0x115   :  { %v1051_v31 = vmul.f32 %v710_v29, %v6054_v25  ;;  %v714_v32 = vsub.f32 1.0, %v713_v28  ;;  %v723_v25 = vand.u32 2147483648, %v6081_v3  ;;  %vm732_vm13 = vweird.f32 %v541_v26 }
 0x116   :  { %v386_v62 = vpop.f32.mrf.mxu0  ;;  %v739_v37 = vor.u32 1.1754944e-38, %v738_v49  ;;  %vm737_vm15 = vcmp.eq.f32.partialorder %v736_v48, 8.507059e+37 }
 0x117   :  { %v715_v16 = vmul.f32 %v5292_v21, %v714_v32  ;;  %v6102_v33 = vadd.f32 %v5959_v22, %v386_v62  ;;  %v1078_v35 = vpack.c.bf16 %v1051_v31, %v1050_v30  ;;  %v724_v55 = vor.u32 1.1754944e-38, %v723_v25 }
 0x119   :  { %v5294_v36 = vpop.eup %5293  ;;  %v4837_v38 = vmul.f32 -1.442695, %v6102_v33  ;;  %1186 = vmatmul.bf16.gmra.mxu1 %v1078_v35  ;;  %v716_v42 = vadd.f32 %v5292_v21, %v715_v16 }
 0x11a   :  { %v5296_v39 = vpop.eup %5295  ;;  %v6105_v40 = vadd.f32 1.0, %v5294_v36 }
 0x11b   :  { %v728_v6 = vmul.f32 %v5296_v39, %v541_v26  ;;  %5297 = vpow2.f32 %v4837_v38  ;;  %v720_v51 = vsel %vm6112_vm10, %v5292_v21, %v716_v42  ;;  %vm733_vm11 = vweird.f32 %v5296_v39 }
 0x11c   :  { %5299 = vrcp.f32 %v6105_v40  ;;  %v725_v60 = vsel %vm722_vm12, %v724_v55, %v720_v51  ;;  %vm734_vm14 = vmor %vm732_vm13, %vm733_vm11  ;;  %vm747_vm1 = vweird.f32 %v6105_v40 }
 0x11d   :  { %v729_v44 = vsub.f32 1.0, %v728_v6  ;;  %v1052_v2 = vmul.f32 %v725_v60, %v6069_v41  ;;  %v753_v41 = vand.u32 2147483648, %v6105_v40 }
 0x11e   :  { %v389_v50 = vpop.f32.mrf.mxu0 }
 0x11f   :  { %v730_v52 = vmul.f32 %v5296_v39, %v729_v44  ;;  %v6119_v53 = vadd.f32 %v5959_v22, %v389_v50  ;;  %v754_v26 = vor.u32 1.1754944e-38, %v753_v41 }
 0x121   :  { %v5298_v56 = vpop.eup %5297  ;;  %v731_v57 = vadd.f32 %v5296_v39, %v730_v52  ;;  %v4838_v58 = vmul.f32 -1.442695, %v6119_v53  ;;  %428 = vmatmul.bf16.gmra.mxu0 %v5183_v45 }
 0x122   :  { %v5300_v59 = vpop.eup %5299  ;;  %v543_v46 = vadd.f32 1.0, %v5298_v56 }
 0x123   :  { %v735_v63 = vsel %vm734_vm14, %v5296_v39, %v731_v57  ;;  %v743_v0 = vmul.f32 %v5300_v59, %v6105_v40  ;;  %5301 = vpow2.f32 %v4838_v58  ;;  %vm748_vm0 = vweird.f32 %v5300_v59 }
 0x124   :  { %v740_v1 = vsel %vm737_vm15, %v739_v37, %v735_v63  ;;  %5303 = vrcp.f32 %v543_v46  ;;  %vm6135_vm2 = vmor %vm747_vm1, %vm748_vm0  ;;  %v766_v18 = vand.u32 2147483647, %v543_v46  ;;  %v768_v19 = vand.u32 2147483648, %v543_v46 }
 0x125   :  { %v1053_v3 = vmul.f32 %v740_v1, %v6078_v61  ;;  %v744_v4 = vsub.f32 1.0, %v743_v0  ;;  %v751_v61 = vand.u32 2147483647, %v6105_v40  ;;  %vm762_vm5 = vweird.f32 %v543_v46 }
 0x126   :  { %v391_v5 = vpop.f32.mrf.mxu0  ;;  %v769_v32 = vor.u32 1.1754944e-38, %v768_v19  ;;  %vm767_vm7 = vcmp.eq.f32.partialorder %v766_v18, 8.507059e+37 }
 0x127   :  { %v745_v34 = vmul.f32 %v5300_v59, %v744_v4  ;;  %v6126_v54 = vadd.f32 %v5959_v22, %v391_v5  ;;  %v1079_v7 = vpack.c.bf16 %v1053_v3, %v1052_v2  ;;  %vm752_vm4 = vcmp.eq.f32.partialorder %v751_v61, 8.507059e+37 }
 0x129   :  { %v5302_v8 = vpop.eup %5301  ;;  %v4839_v9 = vmul.f32 -1.442695, %v6126_v54  ;;  %1191 = vmatmul.bf16.gmra.mxu1 %v1079_v7  ;;  %v746_v12 = vadd.f32 %v5300_v59, %v745_v34 }
 0x12a   :  { %v5304_v10 = vpop.eup %5303  ;;  %v6129_v11 = vadd.f32 1.0, %v5302_v8 }
 0x12b   :  { %v758_v13 = vmul.f32 %v5304_v10, %v543_v46  ;;  %5305 = vpow2.f32 %v4839_v9  ;;  %v750_v21 = vsel %vm6135_vm2, %v5300_v59, %v746_v12  ;;  %vm763_vm3 = vweird.f32 %v5304_v10 }
 0x12c   :  { %5307 = vrcp.f32 %v6129_v11  ;;  %v755_v31 = vsel %vm752_vm4, %v754_v26, %v750_v21  ;;  %vm764_vm6 = vmor %vm762_vm5, %vm763_vm3  ;;  %vm777_vm9 = vweird.f32 %v6129_v11 }
 0x12d   :  { %v759_v14 = vsub.f32 1.0, %v758_v13  ;;  %v1054_v38 = vmul.f32 %v755_v31, %v6095_v15  ;;  %v783_v15 = vand.u32 2147483648, %v6129_v11 }
 0x12e   :  { %v394_v20 = vpop.f32.mrf.mxu0 }
 0x12f   :  { %v760_v23 = vmul.f32 %v5304_v10, %v759_v14  ;;  %v6142_v24 = vadd.f32 %v5959_v22, %v394_v20  ;;  %v784_v37 = vor.u32 1.1754944e-38, %v783_v15 }
 0x131   :  { %v5306_v27 = vpop.eup %5305  ;;  %v761_v28 = vadd.f32 %v5304_v10, %v760_v23  ;;  %v4840_v29 = vmul.f32 -1.442695, %v6142_v24 }
 0x132   :  { %v5308_v30 = vpop.eup %5307  ;;  %v545_v62 = vadd.f32 1.0, %v5306_v27 }
 0x133   :  { %v765_v16 = vsel %vm764_vm6, %v5304_v10, %v761_v28  ;;  %v773_v35 = vmul.f32 %v5308_v30, %v6129_v11  ;;  %5309 = vpow2.f32 %v4840_v29  ;;  %vm778_vm8 = vweird.f32 %v5308_v30 }
 0x134   :  { %v770_v36 = vsel %vm767_vm7, %v769_v32, %v765_v16  ;;  %5311 = vrcp.f32 %v545_v62  ;;  %vm6158_vm10 = vmor %vm777_vm9, %vm778_vm8  ;;  %v796_v55 = vand.u32 2147483647, %v545_v62  ;;  %v798_v56 = vand.u32 2147483648, %v545_v62 }
 0x135   :  { %v1055_v39 = vmul.f32 %v770_v36, %v6102_v33  ;;  %v774_v40 = vsub.f32 1.0, %v773_v35  ;;  %v781_v33 = vand.u32 2147483647, %v6129_v11  ;;  %vm792_vm13 = vweird.f32 %v545_v62 }
 0x136   :  { %v396_v42 = vpop.f32.mrf.mxu0  ;;  %v799_v3 = vor.u32 1.1754944e-38, %v798_v56  ;;  %vm797_vm15 = vcmp.eq.f32.partialorder %v796_v55, 8.507059e+37 }
 0x137   :  { %v775_v6 = vmul.f32 %v5308_v30, %v774_v40  ;;  %v6149_v25 = vadd.f32 %v5959_v22, %v396_v42  ;;  %v1080_v43 = vpack.c.bf16 %v1055_v39, %v1054_v38  ;;  %vm782_vm12 = vcmp.eq.f32.partialorder %v781_v33, 8.507059e+37 }
 0x139   :  { %v5310_v44 = vpop.eup %5309  ;;  %v4841_v45 = vmul.f32 -1.442695, %v6149_v25  ;;  %1196 = vmatmul.bf16.gmra.mxu1 %v1080_v43  ;;  %v776_v49 = vadd.f32 %v5308_v30, %v775_v6  ;;  %v6198_v43 = vld [vmem:[%s9453_s7] ss:$0 sm:$0xff] }
 0x13a   :  { %v5312_v47 = vpop.eup %5311  ;;  %v6152_v48 = vadd.f32 1.0, %v5310_v44 }
 0x13b   :  { %v788_v50 = vmul.f32 %v5312_v47, %v545_v62  ;;  %5313 = vpow2.f32 %v4841_v45  ;;  %v780_v58 = vsel %vm6158_vm10, %v5308_v30, %v776_v49  ;;  %vm793_vm11 = vweird.f32 %v5312_v47 }
 0x13c   :  { %5315 = vrcp.f32 %v6152_v48  ;;  %v785_v2 = vsel %vm782_vm12, %v784_v37, %v780_v58  ;;  %vm794_vm14 = vmor %vm792_vm13, %vm793_vm11  ;;  %vm807_vm1 = vweird.f32 %v6152_v48  ;;  %v811_v21 = vand.u32 2147483647, %v6152_v48 }
 0x13d   :  { %v789_v51 = vsub.f32 1.0, %v788_v50  ;;  %v1056_v8 = vmul.f32 %v785_v2, %v6119_v53  ;;  %v813_v53 = vand.u32 2147483648, %v6152_v48 }
 0x13e   :  { %v399_v57 = vpop.f32.mrf.mxu0  ;;  %vm812_vm5 = vcmp.eq.f32.partialorder %v811_v21, 8.507059e+37 }
 0x13f   :  { %v790_v59 = vmul.f32 %v5312_v47, %v789_v51  ;;  %v6165_v60 = vadd.f32 %v5959_v22, %v399_v57  ;;  %v814_v62 = vor.u32 1.1754944e-38, %v813_v53 }
 0x141   :  { %v5314_v46 = vpop.eup %5313  ;;  %v791_v63 = vadd.f32 %v5312_v47, %v790_v59  ;;  %v4842_v0 = vmul.f32 -1.442695, %v6165_v60 }
 0x142   :  { %v5316_v1 = vpop.eup %5315  ;;  %v547_v4 = vadd.f32 1.0, %v5314_v46 }
 0x143   :  { %v795_v5 = vsel %vm794_vm14, %v5312_v47, %v791_v63  ;;  %v803_v34 = vmul.f32 %v5316_v1, %v6152_v48  ;;  %5317 = vpow2.f32 %v4842_v0  ;;  %vm808_vm0 = vweird.f32 %v5316_v1 }
 0x144   :  { %v800_v7 = vsel %vm797_vm15, %v799_v3, %v795_v5  ;;  %5319 = vrcp.f32 %v547_v4  ;;  %v826_v23 = vand.u32 2147483647, %v547_v4  ;;  %v828_v26 = vand.u32 2147483648, %v547_v4  ;;  %vm6181_vm2 = vmor %vm807_vm1, %vm808_vm0 }
 0x145   :  { %v1057_v9 = vmul.f32 %v800_v7, %v6126_v54  ;;  %v804_v10 = vsub.f32 1.0, %v803_v34  ;;  %vm822_vm4 = vweird.f32 %v547_v4 }
 0x146   :  { %v401_v11 = vpop.f32.mrf.mxu0  ;;  %vm827_vm7 = vcmp.eq.f32.partialorder %v826_v23, 8.507059e+37  ;;  %v829_v38 = vor.u32 1.1754944e-38, %v828_v26 }
 0x147   :  { %v6172_v12 = vadd.f32 %v5959_v22, %v401_v11  ;;  %v1081_v13 = vpack.c.bf16 %v1057_v9, %v1056_v8  ;;  %v805_v41 = vmul.f32 %v5316_v1, %v804_v10 }
 0x149   :  { %v5318_v61 = vpop.eup %5317  ;;  %v4843_v14 = vmul.f32 -1.442695, %v6172_v12  ;;  %1201 = vmatmul.bf16.gmra.mxu1 %v1081_v13  ;;  %v806_v20 = vadd.f32 %v5316_v1, %v805_v41 }
 0x14a   :  { %v5320_v17 = vpop.eup %5319  ;;  %v6175_v18 = vadd.f32 1.0, %v5318_v61 }
 0x14b   :  { %v818_v19 = vmul.f32 %v5320_v17, %v547_v4  ;;  %5321 = vpow2.f32 %v4843_v14  ;;  %vm823_vm3 = vweird.f32 %v5320_v17  ;;  %v810_v31 = vsel %vm6181_vm2, %v5316_v1, %v806_v20 }
 0x14c   :  { %5323 = vrcp.f32 %v6175_v18  ;;  %vm824_vm6 = vmor %vm822_vm4, %vm823_vm3  ;;  %v815_v40 = vsel %vm812_vm5, %v814_v62, %v810_v31  ;;  %v841_v37 = vand.u32 2147483647, %v6175_v18  ;;  %v843_v46 = vand.u32 2147483648, %v6175_v18  ;;  %v6250_v31 = vld [vmem:[%s9451_s5] ss:$0 sm:$0xff] }
 0x14d   :  { %v819_v54 = vsub.f32 1.0, %v818_v19  ;;  %v1058_v48 = vmul.f32 %v815_v40, %v6142_v24  ;;  %vm837_vm9 = vweird.f32 %v6175_v18 }
 0x14e   :  { %v404_v27 = vpop.f32.mrf.mxu0  ;;  %vm842_vm12 = vcmp.eq.f32.partialorder %v841_v37, 8.507059e+37  ;;  %v844_v10 = vor.u32 1.1754944e-38, %v843_v46 }
 0x14f   :  { %v820_v29 = vmul.f32 %v5320_v17, %v819_v54  ;;  %v6186_v30 = vadd.f32 %v5959_v22, %v404_v27 }
 0x151   :  { %v5322_v32 = vpop.eup %5321  ;;  %v821_v16 = vadd.f32 %v5320_v17, %v820_v29  ;;  %v4844_v35 = vmul.f32 -1.442695, %v6186_v30 }
 0x152   :  { %v6191_v36 = vpop.eup %5323  ;;  %v549_v39 = vadd.f32 1.0, %v5322_v32 }
 0x153   :  { %v825_v42 = vsel %vm824_vm6, %v5320_v17, %v821_v16  ;;  %v833_v6 = vmul.f32 %v6191_v36, %v6175_v18  ;;  %5325 = vpow2.f32 %v4844_v35  ;;  %vm838_vm8 = vweird.f32 %v6191_v36 }
 0x154   :  { %v830_v44 = vsel %vm827_vm7, %v829_v38, %v825_v42  ;;  %5327 = vrcp.f32 %v549_v39  ;;  %v856_v0 = vand.u32 2147483647, %v549_v39  ;;  %v858_v1 = vand.u32 2147483648, %v549_v39  ;;  %vm6219_vm10 = vmor %vm837_vm9, %vm838_vm8 }
 0x155   :  { %v1059_v45 = vmul.f32 %v830_v44, %v6149_v25  ;;  %v834_v47 = vsub.f32 1.0, %v833_v6  ;;  %vm852_vm13 = vweird.f32 %v549_v39 }
 0x156   :  { %v406_v49 = vpop.f32.mrf.mxu0  ;;  %v1167_v50 = vpop.f32.mrf.mxu1  ;;  %vm857_vm15 = vcmp.eq.f32.partialorder %v856_v0, 8.507059e+37 }
 0x157   :  { %v6203_v15 = vadd.f32 %v5959_v22, %v406_v49  ;;  %v6206_v33 = vadd.f32 %v6198_v43, %v1167_v50  ;;  %v835_v51 = vmul.f32 %v6191_v36, %v834_v47  ;;  %v1082_v52 = vpack.c.bf16 %v1059_v45, %v1058_v48 }
 0x159   :  { %v5326_v55 = vpop.eup %5325  ;;  %v4845_v56 = vmul.f32 -1.442695, %v6203_v15  ;;  %v4888_v57 = vmul.f32 -1.442695, %v6206_v33  ;;  %1206 = vmatmul.bf16.gmra.mxu1 %v1082_v52  ;;  %v836_v59 = vadd.f32 %v6191_v36, %v835_v51 }
 0x15a   :  { %v5328_v25 = vpop.eup %5327  ;;  %v6211_v58 = vadd.f32 1.0, %v5326_v55 }
 0x15b   :  { %v848_v24 = vmul.f32 %v5328_v25, %v549_v39  ;;  %5329 = vpow2.f32 %v4845_v56  ;;  %vm853_vm11 = vweird.f32 %v5328_v25  ;;  %v840_v8 = vsel %vm6219_vm10, %v6191_v36, %v836_v59 }
 0x15c   :  { %5331 = vrcp.f32 %v6211_v58  ;;  %vm854_vm14 = vmor %vm852_vm13, %vm853_vm11  ;;  %v845_v18 = vsel %vm842_vm12, %v844_v10, %v840_v8  ;;  %v873_v62 = vand.u32 2147483648, %v6211_v58  ;;  %vm867_vm1 = vweird.f32 %v6211_v58 }
 0x15d   :  { %v849_v63 = vsub.f32 1.0, %v848_v24  ;;  %5333 = vpow2.f32 %v4888_v57  ;;  %v1060_v26 = vmul.f32 %v845_v18, %v6165_v60 }
 0x15e   :  { %v409_v2 = vpop.f32.mrf.mxu0  ;;  %v1169_v3 = vpop.f32.mrf.mxu1  ;;  %v874_v48 = vor.u32 1.1754944e-38, %v873_v62 }
 0x15f   :  { %v850_v5 = vmul.f32 %v5328_v25, %v849_v63  ;;  %v6224_v34 = vadd.f32 %v5959_v22, %v409_v2  ;;  %v6227_v7 = vadd.f32 %v6198_v43, %v1169_v3  ;;  %v859_v22 = vor.u32 1.1754944e-38, %v858_v1 }
 0x161   :  { %v5330_v9 = vpop.eup %5329  ;;  %v851_v11 = vadd.f32 %v5328_v25, %v850_v5  ;;  %v4846_v13 = vmul.f32 -1.442695, %v6224_v34  ;;  %v4889_v14 = vmul.f32 -1.442695, %v6227_v7 }
 0x162   :  { %v6233_v41 = vpop.eup %5331  ;;  %v6235_v61 = vadd.f32 1.0, %v5330_v9 }
 0x163   :  { %v5334_v17 = vpop.eup %5333  ;;  %v855_v19 = vsel %vm854_vm14, %v5328_v25, %v851_v11  ;;  %v863_v20 = vmul.f32 %v6233_v41, %v6211_v58  ;;  %5335 = vpow2.f32 %v4846_v13  ;;  %vm868_vm0 = vweird.f32 %v6233_v41 }
 0x164   :  { %v860_v53 = vsel %vm857_vm15, %v859_v22, %v855_v19  ;;  %5337 = vrcp.f32 %v6235_v61  ;;  %v6242_v23 = vadd.f32 1.0, %v5334_v17  ;;  %v886_v40 = vand.u32 2147483647, %v6235_v61  ;;  %vm6279_vm3 = vmor %vm867_vm1, %vm868_vm0 }
 0x165   :  { %v1061_v54 = vmul.f32 %v860_v53, %v6172_v12  ;;  %v864_v21 = vsub.f32 1.0, %v863_v20  ;;  %5339 = vpow2.f32 %v4889_v14  ;;  %v871_v12 = vand.u32 2147483647, %v6211_v58 }
 0x166   :  { %v411_v27 = vpop.f32.mrf.mxu0  ;;  %v1172_v28 = vpop.f32.mrf.mxu1  ;;  %5341 = vrcp.f32 %v6242_v23  ;;  %v888_v49 = vand.u32 2147483648, %v6235_v61  ;;  %vm882_vm4 = vweird.f32 %v6235_v61  ;;  %v1384_v56 = vand.u32 2147483647, %v6242_v23 }
 0x167   :  { %v865_v29 = vmul.f32 %v6233_v41, %v864_v21  ;;  %v6253_v32 = vadd.f32 %v6250_v31, %v411_v27  ;;  %v6258_v60 = vadd.f32 %v6198_v43, %v1172_v28  ;;  %v1083_v16 = vpack.c.bf16 %v1061_v54, %v1060_v26 }
 0x168   :  { %vm6269_vm2 = vcmp.eq.f32.partialorder %v871_v12, 8.507059e+37  ;;  %vm6290_vm5 = vcmp.eq.f32.partialorder %v886_v40, 8.507059e+37  ;;  %v889_v63 = vor.u32 1.1754944e-38, %v888_v49  ;;  %vm1380_vm7 = vweird.f32 %v6242_v23  ;;  %v6365_v49 = vld [vmem:[%s9461_s15] ss:$0 sm:$0xff] }
 0x169   :  { %v5336_v35 = vpop.eup %5335  ;;  %v4847_v36 = vmul.f32 -1.442695, %v6253_v32  ;;  %v866_v39 = vadd.f32 %v6233_v41, %v865_v29  ;;  %v4890_v6 = vmul.f32 -1.442695, %v6258_v60  ;;  %1211 = vmatmul.bf16.gmra.mxu1 %v1083_v16  ;;  %vm6305_vm8 = vcmp.eq.f32.partialorder %v1384_v56, 8.507059e+37 }
 0x16a   :  { %v5338_v38 = vpop.eup %5337  ;;  %v6264_v42 = vadd.f32 1.0, %v5336_v35  ;;  %v1386_v8 = vand.u32 2147483648, %v6242_v23 }
 0x16b   :  { %v878_v44 = vmul.f32 %v5338_v38, %v6235_v61  ;;  %5343 = vpow2.f32 %v4847_v36  ;;  %v5340_v45 = vpop.eup %5339  ;;  %v870_v57 = vsel %vm6279_vm3, %v6233_v41, %v866_v39  ;;  %vm883_vm6 = vweird.f32 %v5338_v38 }
 0x16c   :  { %5345 = vrcp.f32 %v6264_v42  ;;  %v6275_v50 = vpop.eup %5341  ;;  %v6284_v55 = vadd.f32 1.0, %v5340_v45  ;;  %v875_v10 = vsel %vm6269_vm2, %v874_v48, %v870_v57  ;;  %vm884_vm9 = vmor %vm882_vm4, %vm883_vm6  ;;  %v901_v17 = vand.u32 2147483647, %v6264_v42 }
 0x16d   :  { %v879_v52 = vsub.f32 1.0, %v878_v44  ;;  %5347 = vpow2.f32 %v4890_v6  ;;  %v1376_v59 = vmul.f32 %v6275_v50, %v6242_v23  ;;  %vm897_vm10 = vweird.f32 %v6264_v42 }
 0x16e   :  { %v414_v58 = vpop.f32.mrf.mxu0  ;;  %v1174_v24 = vpop.f32.mrf.mxu1  ;;  %5349 = vrcp.f32 %v6284_v55  ;;  %vm1381_vm11 = vweird.f32 %v6275_v50  ;;  %v1062_v20 = vmul.f32 %v875_v10, %v6186_v30  ;;  %v903_v26 = vand.u32 2147483648, %v6264_v42 }
 0x16f   :  { %v880_v37 = vmul.f32 %v5338_v38, %v879_v52  ;;  %v6298_v46 = vadd.f32 %v6250_v31, %v414_v58  ;;  %v6301_v0 = vadd.f32 %v6198_v43, %v1174_v24  ;;  %v1377_v1 = vsub.f32 1.0, %v1376_v59  ;;  %vm1382_vm13 = vmor %vm1380_vm7, %vm1381_vm11 }
 0x170   :  { %vm6339_vm12 = vcmp.eq.f32.partialorder %v901_v17, 8.507059e+37  ;;  %v904_v23 = vor.u32 1.1754944e-38, %v903_v26  ;;  %vm1395_vm15 = vweird.f32 %v6284_v55 }
 0x171   :  { %v5344_v2 = vpop.eup %5343  ;;  %v881_v3 = vadd.f32 %v5338_v38, %v880_v37  ;;  %v4848_v4 = vmul.f32 -1.442695, %v6298_v46  ;;  %v4891_v13 = vmul.f32 -1.442695, %v6301_v0  ;;  %v1378_v41 = vmul.f32 %v6275_v50, %v1377_v1 }
 0x172   :  { %v6310_v9 = vpop.eup %5345  ;;  %v6316_v11 = vadd.f32 1.0, %v5344_v2 }
 0x173   :  { %v885_v22 = vsel %vm884_vm9, %v5338_v38, %v881_v3  ;;  %v893_v14 = vmul.f32 %v6310_v9, %v6264_v42  ;;  %5351 = vpow2.f32 %v4848_v4  ;;  %v5348_v18 = vpop.eup %5347  ;;  %v1379_v29 = vadd.f32 %v6275_v50, %v1378_v41 }
 0x174   :  { %v890_v19 = vsel %vm6290_vm5, %v889_v63, %v885_v22  ;;  %5353 = vrcp.f32 %v6316_v11  ;;  %v6328_v61 = vpop.eup %5349  ;;  %v6332_v21 = vadd.f32 1.0, %v5348_v18  ;;  %vm898_vm14 = vweird.f32 %v6310_v9 }
 0x175   :  { %v1063_v53 = vmul.f32 %v890_v19, %v6203_v15  ;;  %v894_v54 = vsub.f32 1.0, %v893_v14  ;;  %5355 = vpow2.f32 %v4891_v13  ;;  %v1391_v12 = vmul.f32 %v6328_v61, %v6284_v55  ;;  %vm6375_vm0 = vmor %vm897_vm10, %vm898_vm14 }
 0x176   :  { %v416_v27 = vpop.f32.mrf.mxu0  ;;  %v1177_v28 = vpop.f32.mrf.mxu1  ;;  %v1387_v15 = vor.u32 1.1754944e-38, %v1386_v8  ;;  %v1383_v36 = vsel %vm1382_vm13, %v6275_v50, %v1379_v29  ;;  %5357 = vrcp.f32 %v6332_v21  ;;  %v916_v52 = vand.u32 2147483647, %v6316_v11 }
 0x177   :  { %v895_v62 = vmul.f32 %v6310_v9, %v894_v54  ;;  %v6344_v30 = vadd.f32 %v6250_v31, %v416_v27  ;;  %v1084_v35 = vpack.c.bf16 %v1063_v53, %v1062_v20  ;;  %v1392_v38 = vsub.f32 1.0, %v1391_v12 }
 0x178   :  { %v1388_v44 = vsel %vm6305_vm8, %v1387_v15, %v1383_v36  ;;  %v918_v57 = vand.u32 2147483648, %v6316_v11  ;;  %v6382_v25 = vadd.f32 %v6198_v43, %v1177_v28  ;;  %vm1396_vm1 = vweird.f32 %v6328_v61 }
 0x179   :  { %v5352_v39 = vpop.eup %5351  ;;  %v896_v40 = vadd.f32 %v6310_v9, %v895_v62  ;;  %v4849_v6 = vmul.f32 -1.442695, %v6344_v30  ;;  %1216 = vmatmul.bf16.gmra.mxu1 %v1084_v35  ;;  %v6360_v48 = vmul.f32 %v1388_v44, %v6206_v33  ;;  %v1393_v50 = vmul.f32 %v6328_v61, %v1392_v38  ;;  %vm6409_vm5 = vmor %vm1395_vm15, %vm1396_vm1 }
 0x17a   :  { %v5354_v45 = vpop.eup %5353  ;;  %v6357_v47 = vadd.f32 1.0, %v5352_v39  ;;  %v1401_v42 = vand.u32 2147483648, %v6284_v55  ;;  %vm912_vm2 = vweird.f32 %v6316_v11  ;;  %v1399_v3 = vand.u32 2147483647, %v6284_v55 }
 0x17b   :  { %v908_v51 = vmul.f32 %v5354_v45, %v6316_v11  ;;  %5359 = vpow2.f32 %v4849_v6  ;;  %v5356_v56 = vpop.eup %5355  ;;  %v900_v58 = vsel %vm6375_vm0, %v6310_v9, %v896_v40  ;;  %v1891_v37 = vmul.f32 %v6365_v49, %v6360_v48 }
 0x17c   :  { %5361 = vrcp.f32 %v6357_v47  ;;  %v6388_v59 = vadd.f32 1.0, %v5356_v56  ;;  %v1394_v2 = vadd.f32 %v6328_v61, %v1393_v50  ;;  %v6396_v4 = vpop.eup %5357  ;;  %vm913_vm3 = vweird.f32 %v5354_v45 }
 0x17d   :  { %v909_v24 = vsub.f32 1.0, %v908_v51  ;;  %vm6398_vm4 = vcmp.eq.f32.partialorder %v916_v52, 8.507059e+37  ;;  %v905_v13 = vsel %vm6339_vm12, %v904_v23, %v900_v58  ;;  %v919_v41 = vor.u32 1.1754944e-38, %v918_v57  ;;  %1923 = vadd.xlane.f32.xlu0 %v1891_v37  ;;  %vm914_vm6 = vmor %vm912_vm2, %vm913_vm3 }
 0x17e   :  { %v419_v63 = vpop.f32.mrf.mxu0  ;;  %v1179_v1 = vpop.f32.mrf.mxu1  ;;  %v4892_v22 = vmul.f32 -1.442695, %v6382_v25  ;;  %v1398_v14 = vsel %vm6409_vm5, %v6328_v61, %v1394_v2  ;;  %5363 = vrcp.f32 %v6388_v59  ;;  %v1402_v19 = vor.u32 1.1754944e-38, %v1401_v42 }
 0x17f   :  { %v910_v5 = vmul.f32 %v5354_v45, %v909_v24  ;;  %v6403_v9 = vadd.f32 %v6250_v31, %v419_v63  ;;  %v6429_v54 = vadd.f32 %v6198_v43, %v1179_v1  ;;  %vm1400_vm7 = vcmp.eq.f32.partialorder %v1399_v3, 8.507059e+37 }
 0x180   :  { %v1406_v61 = vmul.f32 %v6396_v4, %v6332_v21  ;;  %v1403_v28 = vsel %vm1400_vm7, %v1402_v19, %v1398_v14  ;;  %v1064_v62 = vmul.f32 %v905_v13, %v6224_v34  ;;  %vm927_vm8 = vweird.f32 %v6357_v47 }
 0x181   :  { %v5360_v17 = vpop.eup %5359  ;;  %v911_v18 = vadd.f32 %v5354_v45, %v910_v5  ;;  %v4850_v55 = vmul.f32 -1.442695, %v6403_v9  ;;  %v4893_v16 = vmul.f32 -1.442695, %v6429_v54  ;;  %v6442_v15 = vmul.f32 %v1403_v28, %v6227_v7 }
 0x182   :  { %v6421_v20 = vpop.eup %5361  ;;  %v6426_v53 = vadd.f32 1.0, %v5360_v17  ;;  %v1407_v36 = vsub.f32 1.0, %v1406_v61  ;;  %v931_v39 = vand.u32 2147483647, %v6357_v47  ;;  %v933_v50 = vand.u32 2147483648, %v6357_v47 }
 0x183   :  { %v915_v26 = vsel %vm914_vm6, %v5354_v45, %v911_v18  ;;  %v923_v27 = vmul.f32 %v6421_v20, %v6357_v47  ;;  %5365 = vpow2.f32 %v4850_v55  ;;  %v1892_v34 = vmul.f32 %v6365_v49, %v6442_v15 }
 0x184   :  { %v920_v29 = vsel %vm6398_vm4, %v919_v41, %v915_v26  ;;  %5367 = vrcp.f32 %v6426_v53  ;;  %v6444_v38 = vpop.eup %5363  ;;  %v1408_v44 = vmul.f32 %v6396_v4, %v1407_v36  ;;  %vm1411_vm9 = vweird.f32 %v6396_v4 }
 0x185   :  { %v1065_v11 = vmul.f32 %v920_v29, %v6253_v32  ;;  %v924_v12 = vsub.f32 1.0, %v923_v27  ;;  %5369 = vpow2.f32 %v4892_v22  ;;  %1925 = vadd.xlane.f32.xlu0 %v1892_v34  ;;  %vm6465_vm10 = vcmp.eq.f32.partialorder %v931_v39, 8.507059e+37 }
 0x186   :  { %v421_v35 = vpop.f32.mrf.mxu0  ;;  %v1182_v32 = vpop.f32.mrf.mxu1  ;;  %5371 = vpow2.f32 %v4893_v16  ;;  %v1409_v57 = vadd.f32 %v6396_v4, %v1408_v44  ;;  %vm1410_vm11 = vweird.f32 %v6332_v21  ;;  %v1416_v37 = vand.u32 2147483648, %v6332_v21 }
 0x187   :  { %v6449_v40 = vadd.f32 %v6250_v31, %v421_v35  ;;  %v6454_v6 = vadd.f32 %v6198_v43, %v1182_v32  ;;  %v1085_v7 = vpack.c.bf16 %v1065_v11, %v1064_v62  ;;  %v925_v23 = vmul.f32 %v6421_v20, %v924_v12  ;;  %vm6482_vm13 = vmor %vm1410_vm11, %vm1411_vm9 }
 0x188   :  { %v946_v63 = vand.u32 2147483647, %v6426_v53  ;;  %v1414_v1 = vand.u32 2147483647, %v6332_v21  ;;  %v1421_v2 = vmul.f32 %v6444_v38, %v6388_v59  ;;  %vm928_vm12 = vweird.f32 %v6421_v20 }
 0x189   :  { %v5366_v45 = vpop.eup %5365  ;;  %v4851_v51 = vmul.f32 -1.442695, %v6449_v40  ;;  %v4894_v33 = vmul.f32 -1.442695, %v6454_v6  ;;  %1221 = vmatmul.bf16.gmra.mxu1 %v1085_v7  ;;  %v926_v3 = vadd.f32 %v6421_v20, %v925_v23  ;;  %v948_v8 = vand.u32 2147483648, %v6426_v53  ;;  %vm6496_vm0 = vmor %vm927_vm8, %vm928_vm12 }
 0x18a   :  { %v5368_v52 = vpop.eup %5367  ;;  %v6461_v56 = vadd.f32 1.0, %v5366_v45  ;;  %v934_v13 = vor.u32 1.1754944e-38, %v933_v50  ;;  %v1413_v21 = vsel %vm6482_vm13, %v6396_v4, %v1409_v57  ;;  %vm942_vm14 = vweird.f32 %v6426_v53 }
 0x18b   :  { %v5370_v58 = vpop.eup %5369  ;;  %v938_v42 = vmul.f32 %v5368_v52, %v6426_v53  ;;  %5373 = vpow2.f32 %v4851_v51  ;;  %vm943_vm15 = vweird.f32 %v5368_v52  ;;  %v1417_v17 = vor.u32 1.1754944e-38, %v1416_v37 }
 0x18c   :  { %5375 = vrcp.f32 %v6461_v56  ;;  %v6486_v41 = vadd.f32 1.0, %v5370_v58  ;;  %v5372_v55 = vpop.eup %5371  ;;  %vm6500_vm1 = vcmp.eq.f32.partialorder %v946_v63, 8.507059e+37  ;;  %vm1415_vm2 = vcmp.eq.f32.partialorder %v1414_v1, 8.507059e+37  ;;  %vm944_vm3 = vmor %vm942_vm14, %vm943_vm15 }
 0x18d   :  { %v939_v5 = vsub.f32 1.0, %v938_v42  ;;  %5377 = vpow2.f32 %v4894_v33  ;;  %v1422_v26 = vsub.f32 1.0, %v1421_v2  ;;  %v930_v28 = vsel %vm6496_vm0, %v6421_v20, %v926_v3 }
 0x18e   :  { %v424_v22 = vpop.f32.mrf.mxu0  ;;  %v1184_v18 = vpop.f32.mrf.mxu1  ;;  %v949_v47 = vor.u32 1.1754944e-38, %v948_v8  ;;  %v1418_v11 = vsel %vm1415_vm2, %v1417_v17, %v1413_v21  ;;  %5379 = vrcp.f32 %v6486_v41  ;;  %v935_v34 = vsel %vm6465_vm10, %v934_v13, %v930_v28 }
 0x18f   :  { %v940_v14 = vmul.f32 %v5368_v52, %v939_v5  ;;  %v6505_v4 = vadd.f32 %v6250_v31, %v424_v22  ;;  %v6519_v16 = vmul.f32 %v1418_v11, %v6258_v60  ;;  %v6525_v39 = vadd.f32 %v6198_v43, %v1184_v18 }
 0x190   :  { %v1423_v32 = vmul.f32 %v6444_v38, %v1422_v26  ;;  %v6533_v44 = vadd.f32 1.0, %v5372_v55  ;;  %vm1426_vm4 = vweird.f32 %v6444_v38  ;;  %v961_v33 = vand.u32 2147483647, %v6461_v56 }
 0x191   :  { %v5374_v27 = vpop.eup %5373  ;;  %v941_v29 = vadd.f32 %v5368_v52, %v940_v14  ;;  %v4852_v35 = vmul.f32 -1.442695, %v6505_v4  ;;  %v1893_v50 = vmul.f32 %v6365_v49, %v6519_v16  ;;  %v4895_v57 = vmul.f32 -1.442695, %v6525_v39 }
 0x192   :  { %v6510_v12 = vpop.eup %5375  ;;  %v6516_v62 = vadd.f32 1.0, %v5374_v27  ;;  %v1424_v51 = vadd.f32 %v6444_v38, %v1423_v32  ;;  %v1066_v42 = vmul.f32 %v935_v34, %v6298_v46  ;;  %vm1425_vm5 = vweird.f32 %v6388_v59 }
 0x193   :  { %v945_v36 = vsel %vm944_vm3, %v5368_v52, %v941_v29  ;;  %v953_v20 = vmul.f32 %v6510_v12, %v6461_v56  ;;  %v5378_v53 = vpop.eup %5377  ;;  %1927 = vadd.xlane.f32.xlu1 %v1893_v50  ;;  %v1429_v37 = vand.u32 2147483647, %v6388_v59  ;;  %v963_v63 = vand.u32 2147483648, %v6461_v56  ;;  %vm6555_vm6 = vmor %vm1425_vm5, %vm1426_vm4 }
 0x194   :  { %v950_v7 = vsel %vm6500_vm1, %v949_v47, %v945_v36  ;;  %5381 = vrcp.f32 %v6516_v62  ;;  %v6535_v45 = vadd.f32 1.0, %v5378_v53  ;;  %v6545_v24 = vpop.eup %5379  ;;  %v1431_v2 = vand.u32 2147483648, %v6388_v59 }
 0x195   :  { %v954_v60 = vsub.f32 1.0, %v953_v20  ;;  %v1067_v23 = vmul.f32 %v950_v7, %v6344_v30  ;;  %5383 = vpow2.f32 %v4852_v35  ;;  %vm958_vm7 = vweird.f32 %v6510_v12 }
 0x196   :  { %v426_v52 = vpop.f32.mrf.mxu0  ;;  %5385 = vrcp.f32 %v6535_v45  ;;  %v1187_v58 = vpop.f32.mrf.mxu1  ;;  %v1428_v5 = vsel %vm6555_vm6, %v6444_v38, %v1424_v51  ;;  %v976_v59 = vand.u32 2147483647, %v6516_v62  ;;  %v1432_v21 = vor.u32 1.1754944e-38, %v1431_v2 }
 0x197   :  { %v955_v30 = vmul.f32 %v6510_v12, %v954_v60  ;;  %5387 = vrcp.f32 %v6533_v44  ;;  %v6561_v46 = vadd.f32 %v6250_v31, %v426_v52  ;;  %v6570_v8 = vadd.f32 %v6198_v43, %v1187_v58 }
 0x198   :  { %v1086_v10 = vpack.c.bf16 %v1067_v23, %v1066_v42  ;;  %5389 = vpow2.f32 %v4895_v57  ;;  %vm1430_vm8 = vcmp.eq.f32.partialorder %v1429_v37, 8.507059e+37  ;;  %v1436_v26 = vmul.f32 %v6545_v24, %v6486_v41 }
 0x199   :  { %v956_v14 = vadd.f32 %v6510_v12, %v955_v30  ;;  %v4853_v17 = vmul.f32 -1.442695, %v6561_v46  ;;  %v4896_v18 = vmul.f32 -1.442695, %v6570_v8  ;;  %v1433_v61 = vsel %vm1430_vm8, %v1432_v21, %v1428_v5 }
 0x19a   :  { %v6563_v3 = vpop.eup %5381  ;;  %1226 = vmatmul.bf16.gmra.mxu1 %v1086_v10  ;;  %v978_v27 = vand.u32 2147483648, %v6516_v62  ;;  %v6588_v29 = vmul.f32 %v1433_v61, %v6301_v0  ;;  %vm957_vm9 = vweird.f32 %v6461_v56  ;;  %vm6593_vm10 = vcmp.eq.f32.partialorder %v961_v33, 8.507059e+37 }
 0x19b   :  { %v968_v13 = vmul.f32 %v6563_v3, %v6516_v62  ;;  %v5384_v22 = vpop.eup %5383  ;;  %5391 = vpow2.f32 %v4853_v17  ;;  %vm6601_vm11 = vmor %vm957_vm9, %vm958_vm7  ;;  %v1474_v20 = vand.u32 2147483647, %v6535_v45  ;;  %v1476_v32 = vand.u32 2147483648, %v6535_v45 }
 0x19c   :  { %v6578_v38 = vpop.eup %5385  ;;  %v6580_v19 = vadd.f32 1.0, %v5384_v22  ;;  %v1894_v56 = vmul.f32 %v6365_v49, %v6588_v29  ;;  %v960_v7 = vsel %vm6601_vm11, %v6510_v12, %v956_v14  ;;  %v964_v60 = vor.u32 1.1754944e-38, %v963_v63 }
 0x19d   :  { %v969_v55 = vsub.f32 1.0, %v968_v13  ;;  %v1466_v28 = vmul.f32 %v6578_v38, %v6535_v45  ;;  %v6590_v47 = vpop.eup %5387  ;;  %v1437_v23 = vsub.f32 1.0, %v1436_v26  ;;  %vm972_vm12 = vweird.f32 %v6516_v62 }
 0x19e   :  { %5393 = vrcp.f32 %v6580_v19  ;;  %v1189_v53 = vpop.f32.mrf.mxu1  ;;  %v5390_v34 = vpop.eup %5389  ;;  %vm6613_vm13 = vcmp.eq.f32.partialorder %v976_v59, 8.507059e+37  ;;  %v979_v51 = vor.u32 1.1754944e-38, %v978_v27  ;;  %1929 = vadd.xlane.f32.xlu1 %v1894_v56  ;;  %vm973_vm14 = vweird.f32 %v6563_v3 }
 0x19f   :  { %v970_v35 = vmul.f32 %v6563_v3, %v969_v55  ;;  %v1467_v0 = vsub.f32 1.0, %v1466_v28  ;;  %5395 = vpow2.f32 %v4896_v18  ;;  %v429_v33 = vpop.f32.mrf.mxu0  ;;  %vm1470_vm15 = vweird.f32 %v6535_v45  ;;  %vm6640_vm2 = vmor %vm972_vm12, %vm973_vm14 }
 0x1a0   :  { %v1438_v12 = vmul.f32 %v6545_v24, %v1437_v23  ;;  %v965_v42 = vsel %vm6593_vm10, %v964_v60, %v960_v7  ;;  %vm6624_vm0 = vcmp.eq.f32.partialorder %v1474_v20, 8.507059e+37  ;;  %v1477_v37 = vor.u32 1.1754944e-38, %v1476_v32 }
 0x1a1   :  { %v1468_v52 = vmul.f32 %v6578_v38, %v1467_v0  ;;  %v971_v57 = vadd.f32 %v6563_v3, %v970_v35  ;;  %v5392_v58 = vpop.eup %5391  ;;  %vm1441_vm1 = vweird.f32 %v6545_v24  ;;  %v1446_v5 = vand.u32 2147483648, %v6486_v41 }
 0x1a2   :  { %v6631_v1 = vadd.f32 1.0, %v5392_v58  ;;  %v1439_v2 = vadd.f32 %v6545_v24, %v1438_v12  ;;  %v6636_v10 = vadd.f32 %v6250_v31, %v429_v33  ;;  %vm1471_vm3 = vweird.f32 %v6578_v38 }
 0x1a3   :  { %v1469_v59 = vadd.f32 %v6578_v38, %v1468_v52  ;;  %v1444_v22 = vand.u32 2147483647, %v6486_v41  ;;  %v6650_v17 = vmul.f32 %v965_v42, %v6403_v9  ;;  %v975_v62 = vsel %vm6640_vm2, %v6563_v3, %v971_v57  ;;  %vm6666_vm6 = vmor %vm1470_vm15, %vm1471_vm3 }
 0x1a4   :  { %v6629_v63 = vpop.eup %5393  ;;  %5397 = vrcp.f32 %v6631_v1  ;;  %vm1440_vm4 = vweird.f32 %v6486_v41  ;;  %v993_v55 = vand.u32 2147483648, %v6580_v19  ;;  %v6658_v61 = vadd.f32 1.0, %v5390_v34 }
 0x1a5   :  { %v983_v21 = vmul.f32 %v6629_v63, %v6580_v19  ;;  %v5396_v14 = vpop.eup %5395  ;;  %vm1442_vm5 = vmor %vm1440_vm4, %vm1441_vm1  ;;  %v1447_v27 = vor.u32 1.1754944e-38, %v1446_v5  ;;  %v4854_v41 = vmul.f32 -1.442695, %v6636_v10  ;;  %v6673_v28 = vadd.f32 %v6198_v43, %v1189_v53 }
 0x1a6   :  { %v6660_v26 = vadd.f32 1.0, %v5396_v14  ;;  %v1443_v3 = vsel %vm1442_vm5, %v6545_v24, %v1439_v2  ;;  %v980_v11 = vsel %vm6613_vm13, %v979_v51, %v975_v62  ;;  %v1473_v35 = vsel %vm6666_vm6, %v6578_v38, %v1469_v59  ;;  %v1192_v45 = vpop.f32.mrf.mxu1 }
 0x1a7   :  { %v984_v18 = vsub.f32 1.0, %v983_v21  ;;  %vm1445_vm7 = vcmp.eq.f32.partialorder %v1444_v22, 8.507059e+37  ;;  %v991_v24 = vand.u32 2147483647, %v6580_v19  ;;  %v6683_v20 = vor.u32 1.1754944e-38, %v993_v55 }
 0x1a8   :  { %5399 = vrcp.f32 %v6660_v26  ;;  %v1448_v0 = vsel %vm1445_vm7, %v1447_v27, %v1443_v3  ;;  %v4897_v56 = vmul.f32 -1.442695, %v6673_v28  ;;  %v1451_v38 = vmul.f32 %v6590_v47, %v6533_v44 }
 0x1a9   :  { %v985_v36 = vmul.f32 %v6629_v63, %v984_v18  ;;  %5401 = vpow2.f32 %v4854_v41  ;;  %v6686_v32 = vmul.f32 %v1448_v0, %v6382_v25  ;;  %v1069_v34 = vmul.f32 %v980_v11, %v6449_v40  ;;  %v431_v25 = vpop.f32.mrf.mxu0 }
 0x1aa   :  { %v6691_v53 = vpop.eup %5397  ;;  %v1478_v7 = vsel %vm6624_vm0, %v1477_v37, %v1473_v35  ;;  %vm987_vm8 = vweird.f32 %v6580_v19  ;;  %vm988_vm9 = vweird.f32 %v6629_v63  ;;  %5403 = vrcp.f32 %v6658_v61 }
 0x1ab   :  { %v998_v60 = vmul.f32 %v6691_v53, %v6631_v1  ;;  %vm1002_vm10 = vweird.f32 %v6631_v1  ;;  %v1006_v23 = vand.u32 2147483647, %v6631_v1  ;;  %v1008_v50 = vand.u32 2147483648, %v6631_v1  ;;  %vm6743_vm2 = vmor %vm987_vm8, %vm988_vm9 }
 0x1ac   :  { %v1895_v40 = vmul.f32 %v6365_v49, %v6686_v32  ;;  %v986_v51 = vadd.f32 %v6629_v63, %v985_v36  ;;  %v1506_v52 = vand.u32 2147483648, %v6660_v26  ;;  %5405 = vpow2.f32 %v4897_v56 }
 0x1ad   :  { %v1452_v33 = vsub.f32 1.0, %v1451_v38  ;;  %v999_v12 = vsub.f32 1.0, %v998_v60  ;;  %v1459_v58 = vand.u32 2147483647, %v6533_v44  ;;  %v1461_v42 = vand.u32 2147483648, %v6533_v44 }
 0x1ae   :  { %v5400_v57 = vpop.eup %5399  ;;  %1931 = vadd.xlane.f32.xlu2 %v1895_v40  ;;  %v6711_v30 = vadd.f32 %v6250_v31, %v431_v25  ;;  %vm6713_vm11 = vcmp.eq.f32.partialorder %v991_v24, 8.507059e+37  ;;  %vm1455_vm12 = vweird.f32 %v6533_v44  ;;  %vm1456_vm13 = vweird.f32 %v6590_v47  ;;  %v1194_v22 = vpop.f32.mrf.mxu1 }
 0x1af   :  { %v5402_v37 = vpop.eup %5401  ;;  %v1496_v5 = vmul.f32 %v5400_v57, %v6660_v26  ;;  %v1453_v13 = vmul.f32 %v6590_v47, %v1452_v33  ;;  %v1000_v59 = vmul.f32 %v6691_v53, %v999_v12  ;;  %vm1003_vm14 = vweird.f32 %v6691_v53  ;;  %vm1457_vm0 = vmor %vm1455_vm12, %vm1456_vm13 }
 0x1b0   :  { %v6723_v21 = vadd.f32 1.0, %v5402_v37  ;;  %v4855_v31 = vmul.f32 -1.442695, %v6711_v30  ;;  %v6726_v14 = vpop.eup %5403  ;;  %vm1501_vm15 = vweird.f32 %v5400_v57  ;;  %v1087_v55 = vpack.c.bf16 %v1069_v34, %v6650_v17  ;;  %vm6757_vm3 = vmor %vm1002_vm10, %vm1003_vm14 }
 0x1b1   :  { %v1497_v62 = vsub.f32 1.0, %v1496_v5  ;;  %v1454_v18 = vadd.f32 %v6590_v47, %v1453_v13  ;;  %v1001_v44 = vadd.f32 %v6691_v53, %v1000_v59  ;;  %vm1460_vm1 = vcmp.eq.f32.partialorder %v1459_v58, 8.507059e+37 }
 0x1b2   :  { %5407 = vrcp.f32 %v6723_v21  ;;  %v1462_v9 = vor.u32 1.1754944e-38, %v1461_v42  ;;  %v5406_v3 = vpop.eup %5405  ;;  %v6734_v11 = vadd.f32 %v6198_v43, %v1192_v45  ;;  %1231 = vmatmul.bf16.gmra.mxu1 %v1087_v55  ;;  %v6737_v35 = vmul.f32 %v1478_v7, %v6454_v6 }
 0x1b3   :  { %v1498_v27 = vmul.f32 %v5400_v57, %v1497_v62  ;;  %v1458_v41 = vsel %vm1457_vm0, %v6590_v47, %v1454_v18  ;;  %5409 = vpow2.f32 %v4855_v31  ;;  %v1504_v36 = vand.u32 2147483647, %v6660_v26 }
 0x1b4   :  { %v6748_v24 = vadd.f32 1.0, %v5406_v3  ;;  %v1463_v47 = vsel %vm1460_vm1, %v1462_v9, %v1458_v41  ;;  %v990_v45 = vsel %vm6743_vm2, %v6629_v63, %v986_v51  ;;  %vm1500_vm4 = vweird.f32 %v6660_v26 }
 0x1b5   :  { %v1499_v19 = vadd.f32 %v5400_v57, %v1498_v27  ;;  %v6763_v0 = vmul.f32 %v1463_v47, %v6429_v54  ;;  %v1005_v56 = vsel %vm6757_vm3, %v6691_v53, %v1001_v44  ;;  %vm1007_vm5 = vcmp.eq.f32.partialorder %v1006_v23, 8.507059e+37  ;;  %vm1502_vm6 = vmor %vm1500_vm4, %vm1501_vm15 }
 0x1b6   :  { %v1009_v63 = vor.u32 1.1754944e-38, %v1008_v50  ;;  %5411 = vrcp.f32 %v6748_v24  ;;  %v1507_v38 = vor.u32 1.1754944e-38, %v1506_v52  ;;  %v4898_v26 = vmul.f32 -1.442695, %v6734_v11  ;;  %v1197_v60 = vpop.f32.mrf.mxu1 }
 0x1b7   :  { %v1503_v1 = vsel %vm1502_vm6, %v5400_v57, %v1499_v19  ;;  %v1896_v34 = vmul.f32 %v6365_v49, %v6763_v0  ;;  %v995_v54 = vsel %vm6713_vm11, %v6683_v20, %v990_v45  ;;  %vm1505_vm7 = vcmp.eq.f32.partialorder %v1504_v36, 8.507059e+37 }
 0x1b8   :  { %v6773_v7 = vpop.eup %5407  ;;  %v1897_v53 = vmul.f32 %v6365_v49, %v6737_v35  ;;  %v6781_v25 = vadd.f32 %v6198_v43, %v1194_v22  ;;  %v1010_v50 = vsel %vm1007_vm5, %v1009_v63, %v1005_v56  ;;  %v1508_v40 = vsel %vm1505_vm7, %v1507_v38, %v1503_v1 }
 0x1b9   :  { %v5410_v23 = vpop.eup %5409  ;;  %v1013_v51 = vmul.f32 %v6773_v7, %v6723_v21  ;;  %v1519_v52 = vand.u32 2147483647, %v6748_v24  ;;  %1933 = vadd.xlane.f32.xlu2 %v1896_v34  ;;  %5413 = vpow2.f32 %v4898_v26  ;;  %v1481_v57 = vmul.f32 %v6726_v14, %v6658_v61 }
 0x1ba   :  { %v6786_v33 = vadd.f32 1.0, %v5410_v23  ;;  %1935 = vadd.xlane.f32.xlu0 %v1897_v53  ;;  %v4899_v20 = vmul.f32 -1.442695, %v6781_v25  ;;  %v1070_v12 = vmul.f32 %v995_v54, %v6505_v4  ;;  %v1071_v37 = vmul.f32 %v1010_v50, %v6561_v46  ;;  %v6843_v54 = vld [vmem:[%s9453_s7] ss:$0 sm:$0xff] }
 0x1bb   :  { %v1014_v58 = vsub.f32 1.0, %v1013_v51  ;;  %v6794_v2 = vmul.f32 %v1508_v40, %v6570_v8  ;;  %vm1017_vm8 = vweird.f32 %v6723_v21  ;;  %v1021_v5 = vand.u32 2147483647, %v6723_v21 }
 0x1bc   :  { %v5412_v42 = vpop.eup %5411  ;;  %5415 = vrcp.f32 %v6786_v33  ;;  %v1023_v13 = vand.u32 2147483648, %v6723_v21  ;;  %vm1515_vm9 = vweird.f32 %v6748_v24  ;;  %vm6803_vm10 = vcmp.eq.f32.partialorder %v1519_v52, 8.507059e+37 }
 0x1bd   :  { %v1511_v59 = vmul.f32 %v5412_v42, %v6748_v24  ;;  %5417 = vpow2.f32 %v4899_v20  ;;  %v1015_v4 = vmul.f32 %v6773_v7, %v1014_v58  ;;  %v1521_v8 = vand.u32 2147483648, %v6748_v24 }
 0x1be   :  { %v1482_v31 = vsub.f32 1.0, %v1481_v57  ;;  %vm1486_vm11 = vweird.f32 %v6726_v14  ;;  %v1489_v62 = vand.u32 2147483647, %v6658_v61  ;;  %v1491_v18 = vand.u32 2147483648, %v6658_v61  ;;  %v1199_v36 = vpop.f32.mrf.mxu1 }
 0x1bf   :  { %v1512_v22 = vsub.f32 1.0, %v1511_v59  ;;  %v5414_v55 = vpop.eup %5413  ;;  %v6813_v9 = vadd.f32 %v6198_v43, %v1197_v60  ;;  %v1088_v3 = vpack.c.bf16 %v1071_v37, %v1070_v12  ;;  %v1899_v27 = vmul.f32 %v6365_v49, %v6794_v2 }
 0x1c0   :  { %v1483_v44 = vmul.f32 %v6726_v14, %v1482_v31  ;;  %vm1018_vm12 = vweird.f32 %v6773_v7  ;;  %vm1516_vm13 = vweird.f32 %v5412_v42  ;;  %v6818_v17 = vadd.f32 1.0, %v5414_v55 }
 0x1c1   :  { %v1513_v41 = vmul.f32 %v5412_v42, %v1512_v22  ;;  %v1016_v45 = vadd.f32 %v6773_v7, %v1015_v4  ;;  %v1522_v6 = vor.u32 1.1754944e-38, %v1521_v8  ;;  %vm1485_vm14 = vweird.f32 %v6658_v61  ;;  %1939 = vadd.xlane.f32.xlu2 %v1899_v27  ;;  %vm1517_vm1 = vmor %vm1515_vm9, %vm1516_vm13 }
 0x1c2   :  { %v5416_v47 = vpop.eup %5415  ;;  %v1484_v19 = vadd.f32 %v6726_v14, %v1483_v44  ;;  %v1036_v1 = vand.u32 2147483647, %v6786_v33  ;;  %vm6827_vm15 = vmor %vm1485_vm14, %vm1486_vm11  ;;  %vm6831_vm0 = vcmp.eq.f32.partialorder %v1489_v62, 8.507059e+37  ;;  %1236 = vmatmul.bf16.gmra.mxu1 %v1088_v3  ;;  %5419 = vrcp.f32 %v6818_v17 }
 0x1c3   :  { %v5418_v43 = vpop.eup %5417  ;;  %v1514_v56 = vadd.f32 %v5412_v42, %v1513_v41  ;;  %v1028_v63 = vmul.f32 %v5416_v47, %v6786_v33  ;;  %v1492_v61 = vor.u32 1.1754944e-38, %v1491_v18  ;;  %v4900_v26 = vmul.f32 -1.442695, %v6813_v9  ;;  %vm6852_vm2 = vmor %vm1017_vm8, %vm1018_vm12 }
 0x1c4   :  { %v6846_v53 = vadd.f32 %v6843_v54, %v1199_v36  ;;  %v6856_v50 = vadd.f32 1.0, %v5418_v43  ;;  %v1488_v40 = vsel %vm6827_vm15, %v6726_v14, %v1484_v19  ;;  %v1020_v51 = vsel %vm6852_vm2, %v6773_v7, %v1016_v45 }
 0x1c5   :  { %v1518_v60 = vsel %vm1517_vm1, %v5412_v42, %v1514_v56  ;;  %v1029_v23 = vsub.f32 1.0, %v1028_v63  ;;  %v1038_v21 = vand.u32 2147483648, %v6786_v33  ;;  %v1493_v20 = vsel %vm6831_vm0, %v1492_v61, %v1488_v40 }
 0x1c6   :  { %v1523_v52 = vsel %vm6803_vm10, %v1522_v6, %v1518_v60  ;;  %vm1033_vm3 = vweird.f32 %v5416_v47  ;;  %5421 = vrcp.f32 %v6856_v50  ;;  %vm1022_vm4 = vcmp.eq.f32.partialorder %v1021_v5, 8.507059e+37 }
 0x1c7   :  { %v6870_v57 = vmul.f32 %v1523_v52, %v6673_v28  ;;  %v1030_v12 = vmul.f32 %v5416_v47, %v1029_v23  ;;  %v1024_v14 = vor.u32 1.1754944e-38, %v1023_v13  ;;  %v6874_v58 = vmul.f32 %v1493_v20, %v6525_v39  ;;  %v1202_v28 = vpop.f32.mrf.mxu1 }
 0x1c8   :  { %5423 = vpow2.f32 %v4900_v26  ;;  %vm1032_vm5 = vweird.f32 %v6786_v33  ;;  %v4901_v42 = vmul.f32 -1.442695, %v6846_v53  ;;  %v5420_v59 = vpop.eup %5419  ;;  %v1039_v46 = vor.u32 1.1754944e-38, %v1038_v21 }
 0x1c9   :  { %v1031_v7 = vadd.f32 %v5416_v47, %v1030_v12  ;;  %v1900_v37 = vmul.f32 %v6365_v49, %v6870_v57  ;;  %v1025_v4 = vsel %vm1022_vm4, %v1024_v14, %v1020_v51  ;;  %vm1034_vm6 = vmor %vm1032_vm5, %vm1033_vm3  ;;  %v1898_v5 = vmul.f32 %v6365_v49, %v6874_v58 }
 0x1ca   :  { %v6883_v39 = vadd.f32 %v6843_v54, %v1202_v28  ;;  %vm1037_vm7 = vcmp.eq.f32.partialorder %v1036_v1, 8.507059e+37  ;;  %v1526_v33 = vmul.f32 %v5420_v59, %v6818_v17  ;;  %5425 = vpow2.f32 %v4901_v42 }
 0x1cb   :  { %v1035_v13 = vsel %vm1034_vm6, %v5416_v47, %v1031_v7  ;;  %1941 = vadd.xlane.f32.xlu0 %v1900_v37  ;;  %v1536_v31 = vand.u32 2147483648, %v6818_v17  ;;  %1937 = vadd.xlane.f32.xlu1 %v1898_v5  ;;  %v1072_v18 = vmul.f32 %v1025_v4, %v6636_v10  ;;  %v1534_v27 = vand.u32 2147483647, %v6818_v17 }
 0x1cc   :  { %v1040_v8 = vsel %vm1037_vm7, %v1039_v46, %v1035_v13  ;;  %v4902_v22 = vmul.f32 -1.442695, %v6883_v39  ;;  %v5422_v62 = vpop.eup %5421  ;;  %v1527_v44 = vsub.f32 1.0, %v1526_v33  ;;  %vm1531_vm8 = vweird.f32 %v5420_v59 }
 0x1cd   :  { %v1073_v55 = vmul.f32 %v1040_v8, %v6711_v30  ;;  %v1541_v41 = vmul.f32 %v5422_v62, %v6856_v50  ;;  %vm1530_vm9 = vweird.f32 %v6818_v17  ;;  %v1537_v6 = vor.u32 1.1754944e-38, %v1536_v31 }
 0x1ce   :  { %v5424_v3 = vpop.eup %5423  ;;  %5427 = vpow2.f32 %v4902_v22  ;;  %v1528_v36 = vmul.f32 %v5420_v59, %v1527_v44  ;;  %v1549_v10 = vand.u32 2147483647, %v6856_v50  ;;  %v1551_v30 = vand.u32 2147483648, %v6856_v50  ;;  %vm1532_vm10 = vmor %vm1530_vm9, %vm1531_vm8 }
 0x1cf   :  { %v1355_v47 = vadd.f32 1.0, %v5424_v3  ;;  %v1089_v45 = vpack.c.bf16 %v1073_v55, %v1072_v18  ;;  %v1542_v19 = vsub.f32 1.0, %v1541_v41  ;;  %v1204_v63 = vpop.f32.mrf.mxu1  ;;  %vm1546_vm11 = vweird.f32 %v5422_v62 }
 0x1d0   :  { %v5426_v43 = vpop.eup %5425  ;;  %v1529_v56 = vadd.f32 %v5420_v59, %v1528_v36  ;;  %v6896_v34 = vadd.f32 %v6843_v54, %v1204_v63  ;;  %vm1535_vm12 = vcmp.eq.f32.partialorder %v1534_v27, 8.507059e+37  ;;  %vm1545_vm13 = vweird.f32 %v6856_v50 }
 0x1d1   :  { %5429 = vrcp.f32 %v1355_v47  ;;  %v1543_v1 = vmul.f32 %v5422_v62, %v1542_v19  ;;  %v1356_v38 = vadd.f32 1.0, %v5426_v43  ;;  %vm1547_vm14 = vmor %vm1545_vm13, %vm1546_vm11  ;;  %v1552_v23 = vor.u32 1.1754944e-38, %v1551_v30 }
 0x1d2   :  { %v1533_v61 = vsel %vm1532_vm10, %v5420_v59, %v1529_v56  ;;  %1241 = vmatmul.bf16.gmra.mxu1 %v1089_v45  ;;  %vm1550_vm15 = vcmp.eq.f32.partialorder %v1549_v10, 8.507059e+37  ;;  %v4903_v52 = vmul.f32 -1.442695, %v6896_v34  ;;  %v1564_v37 = vand.u32 2147483647, %v1355_v47 }
 0x1d3   :  { %v1538_v26 = vsel %vm1535_vm12, %v1537_v6, %v1533_v61  ;;  %v1544_v24 = vadd.f32 %v5422_v62, %v1543_v1  ;;  %5431 = vrcp.f32 %v1356_v38  ;;  %v1566_v4 = vand.u32 2147483648, %v1355_v47 }
 0x1d4   :  { %v5428_v17 = vpop.eup %5427  ;;  %v6900_v60 = vmul.f32 %v1538_v26, %v6734_v11  ;;  %v1581_v8 = vand.u32 2147483648, %v1356_v38  ;;  %vm1560_vm1 = vweird.f32 %v1355_v47  ;;  %vm1565_vm2 = vcmp.eq.f32.partialorder %v1564_v37, 8.507059e+37 }
 0x1d5   :  { %v1548_v40 = vsel %vm1547_vm14, %v5422_v62, %v1544_v24  ;;  %v6902_v51 = vadd.f32 1.0, %v5428_v17  ;;  %v1567_v18 = vor.u32 1.1754944e-38, %v1566_v4  ;;  %vm1575_vm5 = vweird.f32 %v1356_v38 }
 0x1d6   :  { %v1553_v20 = vsel %vm1550_vm15, %v1552_v23, %v1548_v40  ;;  %v1901_v12 = vmul.f32 %v6365_v49, %v6900_v60  ;;  %v1582_v6 = vor.u32 1.1754944e-38, %v1581_v8 }
 0x1d7   :  { %v5430_v21 = vpop.eup %5429  ;;  %v6908_v14 = vmul.f32 %v1553_v20, %v6781_v25  ;;  %5433 = vrcp.f32 %v6902_v51  ;;  %v1207_v11 = vpop.f32.mrf.mxu1  ;;  %v1579_v25 = vand.u32 2147483647, %v1356_v38  ;;  %v1594_v56 = vand.u32 2147483647, %v6902_v51 }
 0x1d8   :  { %v1556_v50 = vmul.f32 %v5430_v21, %v1355_v47  ;;  %1943 = vadd.xlane.f32.xlu1 %v1901_v12  ;;  %5435 = vpow2.f32 %v4903_v52  ;;  %v6914_v59 = vadd.f32 %v6843_v54, %v1207_v11  ;;  %vm1561_vm0 = vweird.f32 %v5430_v21 }
 0x1d9   :  { %v5432_v7 = vpop.eup %5431  ;;  %v1902_v28 = vmul.f32 %v6365_v49, %v6908_v14  ;;  %vm1562_vm3 = vmor %vm1560_vm1, %vm1561_vm0  ;;  %vm6918_vm6 = vcmp.eq.f32.partialorder %v1579_v25, 8.507059e+37  ;;  %v1596_v10 = vand.u32 2147483648, %v6902_v51  ;;  %vm1590_vm9 = vweird.f32 %v6902_v51 }
 0x1da   :  { %v1557_v42 = vsub.f32 1.0, %v1556_v50  ;;  %v1571_v46 = vmul.f32 %v5432_v7, %v1356_v38  ;;  %v4904_v13 = vmul.f32 -1.442695, %v6914_v59  ;;  %vm1576_vm4 = vweird.f32 %v5432_v7 }
 0x1db   :  { %1945 = vadd.xlane.f32.xlu2 %v1902_v28  ;;  %vm1577_vm7 = vmor %vm1575_vm5, %vm1576_vm4  ;;  %v1597_v23 = vor.u32 1.1754944e-38, %v1596_v10  ;;  %vm1595_vm11 = vcmp.eq.f32.partialorder %v1594_v56, 8.507059e+37 }
 0x1dc   :  { %v1558_v5 = vmul.f32 %v5430_v21, %v1557_v42  ;;  %v1572_v33 = vsub.f32 1.0, %v1571_v46  ;;  %5437 = vpow2.f32 %v4904_v13 }
 0x1dd   :  { %v5434_v31 = vpop.eup %5433 }
 0x1de   :  { %v1559_v22 = vadd.f32 %v5430_v21, %v1558_v5  ;;  %v5436_v62 = vpop.eup %5435  ;;  %v1573_v55 = vmul.f32 %v5432_v7, %v1572_v33  ;;  %v1586_v44 = vmul.f32 %v5434_v31, %v6902_v51  ;;  %vm1591_vm8 = vweird.f32 %v5434_v31 }
 0x1df   :  { %v1358_v41 = vadd.f32 1.0, %v5436_v62  ;;  %v1209_v19 = vpop.f32.mrf.mxu1  ;;  %vm1592_vm10 = vmor %vm1590_vm9, %vm1591_vm8 }
 0x1e0   :  { %v1563_v3 = vsel %vm1562_vm3, %v5430_v21, %v1559_v22  ;;  %v1574_v45 = vadd.f32 %v5432_v7, %v1573_v55  ;;  %v1587_v47 = vsub.f32 1.0, %v1586_v44  ;;  %v6928_v1 = vadd.f32 %v6843_v54, %v1209_v19 }
 0x1e1   :  { %v1568_v36 = vsel %vm1565_vm2, %v1567_v18, %v1563_v3  ;;  %5439 = vrcp.f32 %v1358_v41  ;;  %v1609_v37 = vand.u32 2147483647, %v1358_v41  ;;  %v1611_v28 = vand.u32 2147483648, %v1358_v41 }
 0x1e2   :  { %v6923_v43 = vmul.f32 %v1568_v36, %v6813_v9  ;;  %v1578_v30 = vsel %vm1577_vm7, %v5432_v7, %v1574_v45  ;;  %v1588_v63 = vmul.f32 %v5434_v31, %v1587_v47  ;;  %v5438_v38 = vpop.eup %5437  ;;  %v4905_v40 = vmul.f32 -1.442695, %v6928_v1 }
 0x1e3   :  { %v1583_v61 = vsel %vm6918_vm6, %v1582_v6, %v1578_v30  ;;  %v1359_v24 = vadd.f32 1.0, %v5438_v38  ;;  %vm1605_vm13 = vweird.f32 %v1358_v41  ;;  %vm1610_vm15 = vcmp.eq.f32.partialorder %v1609_v37, 8.507059e+37 }
 0x1e4   :  { %v1903_v9 = vmul.f32 %v6365_v49, %v6923_v43  ;;  %v6935_v17 = vmul.f32 %v1583_v61, %v6846_v53  ;;  %v1589_v26 = vadd.f32 %v5434_v31, %v1588_v63  ;;  %v6942_v49 = vld [vmem:[%s9461_s15] ss:$0 sm:$0xff]  ;;  %v1612_v8 = vor.u32 1.1754944e-38, %v1611_v28 }
 0x1e5   :  { %5441 = vrcp.f32 %v1359_v24  ;;  %v1624_v62 = vand.u32 2147483647, %v1359_v24  ;;  %v1626_v18 = vand.u32 2147483648, %v1359_v24  ;;  %vm1620_vm1 = vweird.f32 %v1359_v24 }
 0x1e6   :  { %1947 = vadd.xlane.f32.xlu0 %v1903_v9  ;;  %v1593_v52 = vsel %vm1592_vm10, %v5434_v31, %v1589_v26  ;;  %5443 = vpow2.f32 %v4905_v40  ;;  %v1904_v53 = vmul.f32 %v6942_v49, %v6935_v17 }
 0x1e7   :  { %v5440_v21 = vpop.eup %5439  ;;  %v1598_v20 = vsel %vm1595_vm11, %v1597_v23, %v1593_v52  ;;  %v1212_v50 = vpop.f32.mrf.mxu1  ;;  %v1627_v19 = vor.u32 1.1754944e-38, %v1626_v18  ;;  %vm1625_vm3 = vcmp.eq.f32.partialorder %v1624_v62, 8.507059e+37 }
 0x1e8   :  { %v6947_v51 = vmul.f32 %v1598_v20, %v6883_v39  ;;  %v1601_v12 = vmul.f32 %v5440_v21, %v1358_v41  ;;  %1949 = vadd.xlane.f32.xlu1 %v1904_v53  ;;  %v6950_v11 = vadd.f32 %v6843_v54, %v1212_v50  ;;  %vm1606_vm12 = vweird.f32 %v5440_v21 }
 0x1e9   :  { %vm1607_vm14 = vmor %vm1605_vm13, %vm1606_vm12 }
 0x1ea   :  { %v1602_v7 = vsub.f32 1.0, %v1601_v12  ;;  %v1905_v42 = vmul.f32 %v6942_v49, %v6947_v51  ;;  %v4906_v4 = vmul.f32 -1.442695, %v6950_v11 }
 0x1eb   :  { %v5442_v46 = vpop.eup %5441 }
 0x1ec   :  { %v1603_v5 = vmul.f32 %v5440_v21, %v1602_v7  ;;  %1951 = vadd.xlane.f32.xlu2 %v1905_v42  ;;  %v5444_v39 = vpop.eup %5443  ;;  %v1616_v25 = vmul.f32 %v5442_v46, %v1359_v24  ;;  %5445 = vpow2.f32 %v4906_v4  ;;  %vm1621_vm0 = vweird.f32 %v5442_v46  ;;  %v5207_v24 = vld [vmem:[%s9454_s8 + $0x38] sm:$0xff] }
 0x1ed   :  { %v6955_v33 = vadd.f32 1.0, %v5444_v39  ;;  %vm1622_vm2 = vmor %vm1620_vm1, %vm1621_vm0  ;;  %2855 = vmatpush.bf16.msra.mxu2 %v5207_v24  ;;  %v5206_v39 = vld [vmem:[%s9454_s8 + $0x30] sm:$0xff]  ;;  %v5204_v24 = vld [vmem:[%s9454_s8 + $0x20] sm:$0xff] }
 0x1ee   :  { %v1604_v13 = vadd.f32 %v5440_v21, %v1603_v5  ;;  %v1617_v31 = vsub.f32 1.0, %v1616_v25 }
 0x1ef   :  { %5447 = vrcp.f32 %v6955_v33  ;;  %v1214_v44 = vpop.f32.mrf.mxu1  ;;  %v1639_v20 = vand.u32 2147483647, %v6955_v33  ;;  %vm1635_vm5 = vweird.f32 %v6955_v33 }
 0x1f0   :  { %v1608_v22 = vsel %vm1607_vm14, %v5440_v21, %v1604_v13  ;;  %v1924_v55 = vpop.xlane.xlu0 %1923  ;;  %v1618_v27 = vmul.f32 %v5442_v46, %v1617_v31  ;;  %v6962_v41 = vadd.f32 %v6843_v54, %v1214_v44 }
 0x1f1   :  { %v1613_v3 = vsel %vm1610_vm15, %v1612_v8, %v1608_v22  ;;  %v4920_v36 = vmul.f32 -1.442695, %v1924_v55  ;;  %vm1640_vm7 = vcmp.eq.f32.partialorder %v1639_v20, 8.507059e+37  ;;  %2856 = vmatpush.bf16.msra.mxu2 %v5206_v39 }
 0x1f2   :  { %v6959_v45 = vmul.f32 %v1613_v3, %v6896_v34  ;;  %v5446_v6 = vpop.eup %5445  ;;  %v1619_v47 = vadd.f32 %v5442_v46, %v1618_v27  ;;  %v4907_v10 = vmul.f32 -1.442695, %v6962_v41  ;;  %v5205_v27 = vld [vmem:[%s9454_s8 + $0x28] sm:$0xff] }
 0x1f3   :  { %5449 = vpow2.f32 %v4920_v36  ;;  %v6964_v56 = vadd.f32 1.0, %v5446_v6 }
 0x1f4   :  { %v1906_v30 = vmul.f32 %v6942_v49, %v6959_v45  ;;  %v1623_v63 = vsel %vm1622_vm2, %v5442_v46, %v1619_v47 }
 0x1f5   :  { %v5448_v34 = vpop.eup %5447  ;;  %v1628_v38 = vsel %vm1625_vm3, %v1627_v19, %v1623_v63  ;;  %5451 = vrcp.f32 %v6964_v56  ;;  %v1654_v22 = vand.u32 2147483647, %v6964_v56  ;;  %vm1650_vm9 = vweird.f32 %v6964_v56  ;;  %2857 = vmatpush.bf16.msra.mxu2 %v5205_v27 }
 0x1f6   :  { %1953 = vadd.xlane.f32.xlu0 %v1906_v30  ;;  %v6971_v61 = vmul.f32 %v1628_v38, %v6914_v59  ;;  %v1631_v9 = vmul.f32 %v5448_v34, %v6955_v33  ;;  %5453 = vpow2.f32 %v4907_v10  ;;  %v1641_v59 = vand.u32 2147483648, %v6955_v33 }
 0x1f7   :  { %v1217_v26 = vpop.f32.mrf.mxu1  ;;  %vm1636_vm4 = vweird.f32 %v5448_v34  ;;  %v1656_v33 = vand.u32 2147483648, %v6964_v56  ;;  %vm1655_vm11 = vcmp.eq.f32.partialorder %v1654_v22, 8.507059e+37 }
 0x1f8   :  { %v1632_v40 = vsub.f32 1.0, %v1631_v9  ;;  %v6978_v52 = vadd.f32 %v6843_v54, %v1217_v26  ;;  %v1907_v21 = vmul.f32 %v6942_v49, %v6971_v61  ;;  %v1926_v12 = vpop.xlane.xlu0 %1925  ;;  %vm1637_vm6 = vmor %vm1635_vm5, %vm1636_vm4  ;;  %v1642_v5 = vor.u32 1.1754944e-38, %v1641_v59 }
 0x1f9   :  { %v5450_v23 = vpop.eup %5449  ;;  %v4921_v7 = vmul.f32 -1.442695, %v1926_v12  ;;  %v1657_v10 = vor.u32 1.1754944e-38, %v1656_v33  ;;  %2858 = vmatpush.bf16.msra.mxu2 %v5204_v24 }
 0x1fa   :  { %v6984_v53 = vadd.f32 1.0, %v5450_v23  ;;  %v1633_v50 = vmul.f32 %v5448_v34, %v1632_v40  ;;  %v4908_v42 = vmul.f32 -1.442695, %v6978_v52  ;;  %1955 = vadd.xlane.f32.xlu1 %v1907_v21 }
 0x1fb   :  { %v5452_v37 = vpop.eup %5451 }
 0x1fc   :  { %5455 = vrcp.f32 %v6984_v53  ;;  %v1634_v28 = vadd.f32 %v5448_v34, %v1633_v50  ;;  %v1646_v4 = vmul.f32 %v5452_v37, %v6964_v56  ;;  %v5454_v46 = vpop.eup %5453  ;;  %vm1651_vm8 = vweird.f32 %v5452_v37 }
 0x1fd   :  { %5457 = vpow2.f32 %v4921_v7  ;;  %v6993_v8 = vadd.f32 1.0, %v5454_v46  ;;  %vm1652_vm10 = vmor %vm1650_vm9, %vm1651_vm8  ;;  %v2156_v56 = vand.u32 2147483647, %v6984_v53  ;;  %v2158_v23 = vand.u32 2147483648, %v6984_v53  ;;  %v5203_v7 = vld [vmem:[%s9454_s8 + $0x18] sm:$0xff] }
 0x1fe   :  { %5459 = vpow2.f32 %v4908_v42  ;;  %v1638_v25 = vsel %vm1637_vm6, %v5448_v34, %v1634_v28  ;;  %v1647_v13 = vsub.f32 1.0, %v1646_v4  ;;  %vm2152_vm12 = vweird.f32 %v6984_v53  ;;  %2859 = vmatpush.bf16.msra.mxu2 %v5203_v7 }
 0x1ff   :  { %v1643_v31 = vsel %vm1640_vm7, %v1642_v5, %v1638_v25  ;;  %v1219_v62 = vpop.f32.mrf.mxu1  ;;  %5461 = vrcp.f32 %v6993_v8  ;;  %v1669_v59 = vand.u32 2147483647, %v6993_v8  ;;  %v1671_v42 = vand.u32 2147483648, %v6993_v8 }
 0x200   :  { %v6998_v18 = vmul.f32 %v1643_v31, %v6928_v1  ;;  %v1648_v55 = vmul.f32 %v5452_v37, %v1647_v13  ;;  %v7004_v3 = vadd.f32 %v6843_v54, %v1219_v62  ;;  %vm1665_vm13 = vweird.f32 %v6993_v8 }
 0x201   :  { %vm7043_vm14 = vcmp.eq.f32.partialorder %v2156_v56, 8.507059e+37  ;;  %v2159_v39 = vor.u32 1.1754944e-38, %v2158_v23  ;;  %vm7054_vm1 = vcmp.eq.f32.partialorder %v1669_v59, 8.507059e+37 }
 0x202   :  { %v7001_v44 = vpop.eup %5455  ;;  %v1649_v6 = vadd.f32 %v5452_v37, %v1648_v55  ;;  %v1908_v47 = vmul.f32 %v6942_v49, %v6998_v18  ;;  %v4909_v63 = vmul.f32 -1.442695, %v7004_v3 }
 0x203   :  { %v5458_v36 = vpop.eup %5457  ;;  %v2148_v1 = vmul.f32 %v7001_v44, %v6984_v53  ;;  %vm2153_vm15 = vweird.f32 %v7001_v44 }
 0x204   :  { %v5460_v19 = vpop.eup %5459  ;;  %v7014_v30 = vadd.f32 1.0, %v5458_v36  ;;  %v1653_v34 = vsel %vm1652_vm10, %v5452_v37, %v1649_v6  ;;  %1957 = vadd.xlane.f32.xlu2 %v1908_v47  ;;  %v1672_v36 = vor.u32 1.1754944e-38, %v1671_v42  ;;  %vm7068_vm2 = vmor %vm2152_vm12, %vm2153_vm15 }
 0x205   :  { %v7017_v38 = vadd.f32 1.0, %v5460_v19  ;;  %v1658_v9 = vsel %vm1655_vm11, %v1657_v10, %v1653_v34  ;;  %v2149_v26 = vsub.f32 1.0, %v2148_v1  ;;  %v5462_v40 = vpop.eup %5461  ;;  %v5202_v10 = vld [vmem:[%s9454_s8 + $0x10] sm:$0xff] }
 0x206   :  { %5463 = vrcp.f32 %v7014_v30  ;;  %v7026_v21 = vmul.f32 %v1658_v9, %v6950_v11  ;;  %v1661_v20 = vmul.f32 %v5462_v40, %v6993_v8  ;;  %v1928_v12 = vpop.xlane.xlu1 %1927  ;;  %vm1666_vm0 = vweird.f32 %v5462_v40  ;;  %2860 = vmatpush.bf16.msra.mxu2 %v5202_v10 }
 0x207   :  { %5465 = vrcp.f32 %v7017_v38  ;;  %v1222_v50 = vpop.f32.mrf.mxu1  ;;  %v4922_v11 = vmul.f32 -1.442695, %v1928_v12  ;;  %v2150_v46 = vmul.f32 %v7001_v44, %v2149_v26  ;;  %v1684_v25 = vand.u32 2147483647, %v7017_v38  ;;  %vm1667_vm4 = vmor %vm1665_vm13, %vm1666_vm0 }
 0x208   :  { %5467 = vpow2.f32 %v4909_v63  ;;  %v7037_v37 = vadd.f32 %v6843_v54, %v1222_v50  ;;  %v1909_v28 = vmul.f32 %v6942_v49, %v7026_v21  ;;  %v1662_v4 = vsub.f32 1.0, %v1661_v20 }
 0x209   :  { %5469 = vpow2.f32 %v4922_v11  ;;  %v1686_v33 = vand.u32 2147483648, %v7017_v38  ;;  %v2151_v62 = vadd.f32 %v7001_v44, %v2150_v46  ;;  %vm2167_vm3 = vweird.f32 %v7014_v30 }
 0x20a   :  { %v4910_v13 = vmul.f32 -1.442695, %v7037_v37  ;;  %1959 = vadd.xlane.f32.xlu0 %v1909_v28  ;;  %v1663_v22 = vmul.f32 %v5462_v40, %v1662_v4  ;;  %v2171_v34 = vand.u32 2147483647, %v7014_v30  ;;  %vm1680_vm5 = vweird.f32 %v7017_v38 }
 0x20b   :  { %vm7078_vm6 = vcmp.eq.f32.partialorder %v1684_v25, 8.507059e+37  ;;  %v1687_v23 = vor.u32 1.1754944e-38, %v1686_v33  ;;  %v2155_v59 = vsel %vm7068_vm2, %v7001_v44, %v2151_v62  ;;  %v2173_v50 = vand.u32 2147483648, %v7014_v30  ;;  %v5201_v44 = vld [vmem:[%s9454_s8 + $0x8] sm:$0xff] }
 0x20c   :  { %v7050_v31 = vpop.eup %5463  ;;  %5471 = vpow2.f32 %v4910_v13  ;;  %v1664_v47 = vadd.f32 %v5462_v40, %v1663_v22  ;;  %v2160_v25 = vsel %vm7043_vm14, %v2159_v39, %v2155_v59  ;;  %2861 = vmatpush.bf16.msra.mxu2 %v5201_v44  ;;  %vm2172_vm12 = vcmp.eq.f32.partialorder %v2171_v34, 8.507059e+37 }
 0x20d   :  { %v5466_v55 = vpop.eup %5465  ;;  %v2163_v6 = vmul.f32 %v7050_v31, %v7014_v30  ;;  %vm2168_vm7 = vweird.f32 %v7050_v31  ;;  %v2627_v10 = vmul.f32 %v2160_v25, %v6360_v48 }
 0x20e   :  { %v5468_v1 = vpop.eup %5467  ;;  %v1676_v19 = vmul.f32 %v5466_v55, %v7017_v38  ;;  %v1668_v26 = vsel %vm1667_vm4, %v5462_v40, %v1664_v47  ;;  %vm1681_vm8 = vweird.f32 %v5466_v55  ;;  %vm7125_vm10 = vmor %vm2167_vm3, %vm2168_vm7 }
 0x20f   :  { %v2164_v56 = vsub.f32 1.0, %v2163_v6  ;;  %v7082_v53 = vadd.f32 1.0, %v5468_v1  ;;  %v1224_v20 = vpop.f32.mrf.mxu1  ;;  %v5470_v8 = vpop.eup %5469  ;;  %v1673_v12 = vsel %vm7054_vm1, %v1672_v36, %v1668_v26  ;;  %vm1682_vm9 = vmor %vm1680_vm5, %vm1681_vm8  ;;  %v5200_v6 = vld [vmem:[%s9454_s8] sm:$0xff]  ;;  %v2174_v1 = vor.u32 1.1754944e-38, %v2173_v50 }
 0x210   :  { %v1677_v24 = vsub.f32 1.0, %v1676_v19  ;;  %v7093_v40 = vmul.f32 %v1673_v12, %v6962_v41  ;;  %v7095_v42 = vadd.f32 1.0, %v5470_v8  ;;  %v7101_v46 = vadd.f32 %v6843_v54, %v1224_v20  ;;  %2862 = vmatpush.bf16.msra.mxu2 %v5200_v6 }
 0x211   :  { %5473 = vrcp.f32 %v7082_v53  ;;  %v1930_v11 = vpop.xlane.xlu1 %1929  ;;  %v2165_v41 = vmul.f32 %v7050_v31, %v2164_v56  ;;  %v1699_v22 = vand.u32 2147483647, %v7082_v53  ;;  %v1701_v36 = vand.u32 2147483648, %v7082_v53 }
 0x212   :  { %v1678_v7 = vmul.f32 %v5466_v55, %v1677_v24  ;;  %v5472_v28 = vpop.eup %5471  ;;  %v4923_v4 = vmul.f32 -1.442695, %v1930_v11  ;;  %5475 = vrcp.f32 %v7095_v42  ;;  %v4911_v62 = vmul.f32 -1.442695, %v7101_v46 }
 0x213   :  { %v7108_v33 = vadd.f32 1.0, %v5472_v28  ;;  %v1910_v5 = vmul.f32 %v6942_v49, %v7093_v40  ;;  %v2166_v39 = vadd.f32 %v7050_v31, %v2165_v41  ;;  %vm1695_vm11 = vweird.f32 %v7082_v53 }
 0x214   :  { %v1679_v13 = vadd.f32 %v5466_v55, %v1678_v7  ;;  %5477 = vpow2.f32 %v4923_v4  ;;  %vm7140_vm13 = vcmp.eq.f32.partialorder %v1699_v22, 8.507059e+37  ;;  %v2659_v7 = vpack.c.bf16 %v2627_v10, %v2627_v10 }
 0x215   :  { %5479 = vrcp.f32 %v7108_v33  ;;  %1961 = vadd.xlane.f32.xlu1 %v1910_v5  ;;  %v2170_v19 = vsel %vm7125_vm10, %v7050_v31, %v2166_v39  ;;  %v1716_v26 = vand.u32 2147483648, %v7108_v33  ;;  %vm1710_vm14 = vweird.f32 %v7108_v33 }
 0x216   :  { %v1683_v27 = vsel %vm1682_vm9, %v5466_v55, %v1679_v13  ;;  %5481 = vpow2.f32 %v4911_v62  ;;  %v2175_v48 = vsel %vm2172_vm12, %v2174_v1, %v2170_v19  ;;  %v1714_v12 = vand.u32 2147483647, %v7108_v33 }
 0x217   :  { %v5474_v47 = vpop.eup %5473  ;;  %v1688_v55 = vsel %vm7078_vm6, %v1687_v23, %v1683_v27  ;;  %v1227_v56 = vpop.f32.mrf.mxu1  ;;  %v1702_v23 = vor.u32 1.1754944e-38, %v1701_v36  ;;  %v2628_v59 = vmul.f32 %v2175_v48, %v6442_v15  ;;  %v1717_v13 = vor.u32 1.1754944e-38, %v1716_v26 }
 0x218   :  { %v7136_v63 = vmul.f32 %v1688_v55, %v6978_v52  ;;  %v1691_v30 = vmul.f32 %v5474_v47, %v7082_v53  ;;  %v7146_v31 = vadd.f32 %v6843_v54, %v1227_v56  ;;  %v7148_v24 = vpop.eup %5475  ;;  %vm1696_vm15 = vweird.f32 %v5474_v47 }
 0x219   :  { %v2178_v8 = vmul.f32 %v7148_v24, %v7095_v42  ;;  %v2660_v4 = vpack.c.bf16 %v2628_v59, %v2628_v59  ;;  %vm1697_vm0 = vmor %vm1695_vm11, %vm1696_vm15  ;;  %v2743_v27 = vunpack.c.l.b16 %v2659_v7  ;;  %vm2182_vm1 = vweird.f32 %v7095_v42 }
 0x21a   :  { %v1692_v52 = vsub.f32 1.0, %v1691_v30  ;;  %v1911_v20 = vmul.f32 %v6942_v49, %v7136_v63  ;;  %v5478_v34 = vpop.eup %5477  ;;  %v4912_v50 = vmul.f32 -1.442695, %v7146_v31  ;;  %vm2183_vm2 = vweird.f32 %v7148_v24 }
 0x21b   :  { %v5480_v11 = vpop.eup %5479  ;;  %v7158_v28 = vadd.f32 1.0, %v5478_v34  ;;  %v2179_v15 = vsub.f32 1.0, %v2178_v8  ;;  %v2744_v5 = vunpack.c.l.b16 %v2660_v4  ;;  %v2186_v55 = vand.u32 2147483647, %v7095_v42  ;;  %vm7188_vm4 = vmor %vm2182_vm1, %vm2183_vm2 }
 0x21c   :  { %v1693_v44 = vmul.f32 %v5474_v47, %v1692_v52  ;;  %1963 = vadd.xlane.f32.xlu2 %v1911_v20  ;;  %v5482_v25 = vpop.eup %5481  ;;  %v1706_v41 = vmul.f32 %v5480_v11, %v7108_v33  ;;  %5483 = vpow2.f32 %v4912_v50  ;;  %vm1711_vm3 = vweird.f32 %v5480_v11 }
 0x21d   :  { %5485 = vrcp.f32 %v7158_v28  ;;  %v7162_v62 = vadd.f32 1.0, %v5482_v25  ;;  %v2180_v36 = vmul.f32 %v7148_v24, %v2179_v15  ;;  %v7176_v56 = vpack.c.b16 %v2744_v5, %v2743_v27  ;;  %vm1712_vm5 = vmor %vm1710_vm14, %vm1711_vm3 }
 0x21e   :  { %v1694_v22 = vadd.f32 %v5474_v47, %v1693_v44  ;;  %v1707_v39 = vsub.f32 1.0, %v1706_v41  ;;  %v2188_v26 = vand.u32 2147483648, %v7095_v42  ;;  %vm1715_vm6 = vcmp.eq.f32.partialorder %v1714_v12, 8.507059e+37 }
 0x21f   :  { %5487 = vrcp.f32 %v7162_v62  ;;  %v1229_v1 = vpop.f32.mrf.mxu1  ;;  %v1729_v20 = vand.u32 2147483647, %v7162_v62  ;;  %v2181_v9 = vadd.f32 %v7148_v24, %v2180_v36  ;;  %v1731_v59 = vand.u32 2147483648, %v7162_v62  ;;  %2863 = vmatmul.bf16.vlgmr.msra.gmra.mxu2 %v7176_v56 }
 0x220   :  { %v1698_v6 = vsel %vm1697_vm0, %v5474_v47, %v1694_v22  ;;  %v1708_v53 = vmul.f32 %v5480_v11, %v1707_v39  ;;  %v7179_v47 = vadd.f32 %v6843_v54, %v1229_v1  ;;  %vm2187_vm7 = vcmp.eq.f32.partialorder %v2186_v55, 8.507059e+37 }
 0x221   :  { %v1932_v38 = vpop.xlane.xlu2 %1931  ;;  %v1703_v19 = vsel %vm7140_vm13, %v1702_v23, %v1698_v6  ;;  %v2185_v33 = vsel %vm7188_vm4, %v7148_v24, %v2181_v9  ;;  %v2189_v25 = vor.u32 1.1754944e-38, %v2188_v26  ;;  %vm1725_vm8 = vweird.f32 %v7162_v62 }
 0x222   :  { %v4924_v10 = vmul.f32 -1.442695, %v1932_v38  ;;  %v7174_v30 = vmul.f32 %v1703_v19, %v7004_v3  ;;  %v5484_v48 = vpop.eup %5483  ;;  %v1709_v52 = vadd.f32 %v5480_v11, %v1708_v53  ;;  %v4913_v8 = vmul.f32 -1.442695, %v7179_v47 }
 0x223   :  { %v7192_v23 = vpop.eup %5485  ;;  %v7197_v34 = vadd.f32 1.0, %v5484_v48  ;;  %vm7214_vm9 = vcmp.eq.f32.partialorder %v1729_v20, 8.507059e+37  ;;  %v1732_v24 = vor.u32 1.1754944e-38, %v1731_v59  ;;  %vm2197_vm10 = vweird.f32 %v7158_v28 }
 0x224   :  { %5489 = vpow2.f32 %v4924_v10  ;;  %v1912_v42 = vmul.f32 %v6942_v49, %v7174_v30  ;;  %v2193_v50 = vmul.f32 %v7192_v23, %v7158_v28  ;;  %v1713_v7 = vsel %vm1712_vm5, %v5480_v11, %v1709_v52 }
 0x225   :  { %v5488_v44 = vpop.eup %5487  ;;  %v1718_v4 = vsel %vm1715_vm6, %v1717_v13, %v1713_v7  ;;  %5491 = vrcp.f32 %v7197_v34  ;;  %v2190_v11 = vsel %vm2187_vm7, %v2189_v25, %v2185_v33  ;;  %vm2198_vm11 = vweird.f32 %v7192_v23 }
 0x226   :  { %1965 = vadd.xlane.f32.xlu0 %v1912_v42  ;;  %v2194_v15 = vsub.f32 1.0, %v2193_v50  ;;  %v7210_v41 = vmul.f32 %v1718_v4, %v7037_v37  ;;  %v1721_v22 = vmul.f32 %v5488_v44, %v7162_v62  ;;  %5493 = vpow2.f32 %v4913_v8  ;;  %vm7237_vm13 = vmor %vm2197_vm10, %vm2198_vm11 }
 0x227   :  { %v2201_v36 = vand.u32 2147483647, %v7158_v28  ;;  %v2203_v6 = vand.u32 2147483648, %v7158_v28  ;;  %vm1726_vm12 = vweird.f32 %v5488_v44  ;;  %v2629_v19 = vmul.f32 %v2190_v11, %v6519_v16 }
 0x228   :  { %v1722_v5 = vsub.f32 1.0, %v1721_v22  ;;  %v1913_v39 = vmul.f32 %v6942_v49, %v7210_v41  ;;  %v2195_v27 = vmul.f32 %v7192_v23, %v2194_v15  ;;  %v1744_v26 = vand.u32 2147483647, %v7197_v34  ;;  %vm1727_vm15 = vmor %vm1725_vm8, %vm1726_vm12 }
 0x229   :  { %v1746_v48 = vand.u32 2147483648, %v7197_v34  ;;  %vm2202_vm14 = vcmp.eq.f32.partialorder %v2201_v36, 8.507059e+37  ;;  %v2204_v42 = vor.u32 1.1754944e-38, %v2203_v6  ;;  %v2661_v50 = vpack.c.bf16 %v2629_v19, %v2629_v19 }
 0x22a   :  { %v5490_v13 = vpop.eup %5489  ;;  %v1723_v38 = vmul.f32 %v5488_v44, %v1722_v5  ;;  %1967 = vadd.xlane.f32.xlu1 %v1913_v39  ;;  %v2196_v55 = vadd.f32 %v7192_v23, %v2195_v27  ;;  %vm1740_vm0 = vweird.f32 %v7197_v34  ;;  %vm7261_vm2 = vcmp.eq.f32.partialorder %v1744_v26, 8.507059e+37 }
 0x22b   :  { %v7222_v37 = vadd.f32 1.0, %v5490_v13  ;;  %v5492_v53 = vpop.eup %5491  ;;  %v1747_v12 = vor.u32 1.1754944e-38, %v1746_v48  ;;  %v2745_v5 = vunpack.c.l.b16 %v2661_v50  ;;  %v7296_v50 = vld [vmem:[%s9453_s7] ss:$0 sm:$0xff] }
 0x22c   :  { %v1934_v1 = vpop.xlane.xlu2 %1933  ;;  %v1724_v20 = vadd.f32 %v5488_v44, %v1723_v38  ;;  %v1736_v9 = vmul.f32 %v5492_v53, %v7197_v34  ;;  %v5494_v16 = vpop.eup %5493  ;;  %v2200_v8 = vsel %vm7237_vm13, %v7192_v23, %v2196_v55  ;;  %vm1741_vm1 = vweird.f32 %v5492_v53 }
 0x22d   :  { %5495 = vrcp.f32 %v7222_v37  ;;  %v4925_v10 = vmul.f32 -1.442695, %v1934_v1  ;;  %v1936_v52 = vpop.xlane.xlu0 %1935  ;;  %v7247_v28 = vadd.f32 1.0, %v5494_v16  ;;  %v2205_v15 = vsel %vm2202_vm14, %v2204_v42, %v2200_v8  ;;  %vm1742_vm3 = vmor %vm1740_vm0, %vm1741_vm1 }
 0x22e   :  { %v4926_v3 = vmul.f32 -1.442695, %v1936_v52  ;;  %v1728_v7 = vsel %vm1727_vm15, %v5488_v44, %v1724_v20  ;;  %v1737_v33 = vsub.f32 1.0, %v1736_v9  ;;  %v2218_v42 = vand.u32 2147483648, %v7222_v37 }
 0x22f   :  { %5497 = vpow2.f32 %v4925_v10  ;;  %v1232_v4 = vpop.f32.mrf.mxu1  ;;  %v1733_v25 = vsel %vm7214_vm9, %v1732_v24, %v1728_v7  ;;  %v1759_v36 = vand.u32 2147483647, %v7247_v28  ;;  %v1761_v6 = vand.u32 2147483648, %v7247_v28 }
 0x230   :  { %5499 = vpow2.f32 %v4926_v3  ;;  %v7253_v62 = vadd.f32 %v6843_v54, %v1232_v4  ;;  %v7256_v22 = vmul.f32 %v1733_v25, %v7101_v46  ;;  %v1738_v23 = vmul.f32 %v5492_v53, %v1737_v33 }
 0x231   :  { %5501 = vrcp.f32 %v7247_v28  ;;  %v2630_v54 = vmul.f32 %v2205_v15, %v6588_v29  ;;  %vm2212_vm5 = vweird.f32 %v7222_v37  ;;  %vm1755_vm6 = vweird.f32 %v7247_v28 }
 0x232   :  { %v4914_v24 = vmul.f32 -1.442695, %v7253_v62  ;;  %v1739_v46 = vadd.f32 %v5492_v53, %v1738_v23  ;;  %v1914_v39 = vmul.f32 %v6942_v49, %v7256_v22  ;;  %vm7316_vm9 = vcmp.eq.f32.partialorder %v1759_v36, 8.507059e+37 }
 0x233   :  { %v7259_v44 = vpop.eup %5495  ;;  %v2662_v38 = vpack.c.bf16 %v2630_v54, %v2630_v54 }
 0x234   :  { %v2208_v13 = vmul.f32 %v7259_v44, %v7222_v37  ;;  %5503 = vpow2.f32 %v4914_v24  ;;  %v1940_v1 = vpop.xlane.xlu2 %1939  ;;  %v1743_v10 = vsel %vm1742_vm3, %v5492_v53, %v1739_v46  ;;  %1969 = vadd.xlane.f32.xlu2 %v1914_v39  ;;  %vm2213_vm4 = vweird.f32 %v7259_v44 }
 0x235   :  { %v5498_v27 = vpop.eup %5497  ;;  %v4928_v26 = vmul.f32 -1.442695, %v1940_v1  ;;  %v1748_v48 = vsel %vm7261_vm2, %v1747_v12, %v1743_v10  ;;  %v2746_v34 = vunpack.c.l.b16 %v2662_v38  ;;  %v2216_v53 = vand.u32 2147483647, %v7222_v37  ;;  %vm7312_vm7 = vmor %vm2212_vm5, %vm2213_vm4 }
 0x236   :  { %v5500_v29 = vpop.eup %5499  ;;  %v2209_v55 = vsub.f32 1.0, %v2208_v13  ;;  %v7275_v19 = vadd.f32 1.0, %v5498_v27  ;;  %v7284_v9 = vmul.f32 %v1748_v48, %v7146_v31  ;;  %v1762_v13 = vor.u32 1.1754944e-38, %v1761_v6 }
 0x237   :  { %v7279_v52 = vadd.f32 1.0, %v5500_v29  ;;  %v5502_v20 = vpop.eup %5501  ;;  %v1234_v3 = vpop.f32.mrf.mxu1  ;;  %v7290_v8 = vpack.c.b16 %v2746_v34, %v2745_v5  ;;  %vm2217_vm10 = vcmp.eq.f32.partialorder %v2216_v53, 8.507059e+37  ;;  %v2219_v5 = vor.u32 1.1754944e-38, %v2218_v42 }
 0x238   :  { %5505 = vrcp.f32 %v7275_v19  ;;  %v2210_v59 = vmul.f32 %v7259_v44, %v2209_v55  ;;  %v1751_v16 = vmul.f32 %v5502_v20, %v7247_v28  ;;  %v7299_v31 = vadd.f32 %v7296_v50, %v1234_v3 }
 0x239   :  { %5507 = vrcp.f32 %v7279_v52  ;;  %v1915_v7 = vmul.f32 %v6942_v49, %v7284_v9  ;;  %2868 = vmatmul.bf16.gmra.mxu2 %v7290_v8  ;;  %vm1756_vm8 = vweird.f32 %v5502_v20  ;;  %vm2227_vm13 = vweird.f32 %v7275_v19 }
 0x23a   :  { %5509 = vpow2.f32 %v4928_v26  ;;  %v2211_v33 = vadd.f32 %v7259_v44, %v2210_v59  ;;  %v5504_v4 = vpop.eup %5503  ;;  %v1752_v25 = vsub.f32 1.0, %v1751_v16  ;;  %v4915_v23 = vmul.f32 -1.442695, %v7299_v31  ;;  %vm1757_vm11 = vmor %vm1755_vm6, %vm1756_vm8 }
 0x23b   :  { %v7307_v15 = vadd.f32 1.0, %v5504_v4  ;;  %1971 = vadd.xlane.f32.xlu0 %v1915_v7  ;;  %v2233_v26 = vand.u32 2147483648, %v7275_v19  ;;  %v2231_v4 = vand.u32 2147483647, %v7275_v19  ;;  %vm2242_vm3 = vweird.f32 %v7279_v52 }
 0x23c   :  { %v1753_v12 = vmul.f32 %v5502_v20, %v1752_v25  ;;  %v2215_v37 = vsel %vm7312_vm7, %v7259_v44, %v2211_v33 }
 0x23d   :  { %5511 = vrcp.f32 %v7307_v15  ;;  %v1774_v6 = vand.u32 2147483647, %v7307_v15  ;;  %v2220_v10 = vsel %vm2217_vm10, %v2219_v5, %v2215_v37  ;;  %v1776_v7 = vand.u32 2147483648, %v7307_v15 }
 0x23e   :  { %v7323_v54 = vpop.eup %5505  ;;  %v1942_v46 = vpop.xlane.xlu0 %1941  ;;  %v1754_v36 = vadd.f32 %v5502_v20, %v1753_v12  ;;  %5513 = vpow2.f32 %v4915_v23  ;;  %v2631_v11 = vmul.f32 %v2220_v10, %v6686_v32  ;;  %vm1770_vm14 = vweird.f32 %v7307_v15 }
 0x23f   :  { %v7326_v39 = vpop.eup %5507  ;;  %v2223_v27 = vmul.f32 %v7323_v54, %v7275_v19  ;;  %v1938_v38 = vpop.xlane.xlu1 %1937  ;;  %v4929_v1 = vmul.f32 -1.442695, %v1942_v46  ;;  %vm2228_vm12 = vweird.f32 %v7323_v54  ;;  %vm7368_vm0 = vcmp.eq.f32.partialorder %v1774_v6, 8.507059e+37 }
 0x240   :  { %v5510_v29 = vpop.eup %5509  ;;  %v4927_v44 = vmul.f32 -1.442695, %v1938_v38  ;;  %v1237_v55 = vpop.f32.mrf.mxu1  ;;  %v1758_v34 = vsel %vm1757_vm11, %v5502_v20, %v1754_v36  ;;  %v2238_v59 = vmul.f32 %v7326_v39, %v7279_v52  ;;  %vm7364_vm15 = vmor %vm2227_vm13, %vm2228_vm12  ;;  %v1777_v36 = vor.u32 1.1754944e-38, %v1776_v7 }
 0x241   :  { %v2224_v48 = vsub.f32 1.0, %v2223_v27  ;;  %v7335_v3 = vadd.f32 1.0, %v5510_v29  ;;  %5515 = vpow2.f32 %v4929_v1  ;;  %v1763_v53 = vsel %vm7316_vm9, %v1762_v13, %v1758_v34 }
 0x242   :  { %5517 = vpow2.f32 %v4927_v44  ;;  %v7342_v28 = vadd.f32 %v7296_v50, %v1237_v55  ;;  %v7345_v16 = vmul.f32 %v1763_v53, %v7179_v47  ;;  %v2239_v24 = vsub.f32 1.0, %v2238_v59 }
 0x243   :  { %5519 = vrcp.f32 %v7335_v3  ;;  %v2225_v20 = vmul.f32 %v7323_v54, %v2224_v48  ;;  %v5512_v42 = vpop.eup %5511  ;;  %vm2232_vm2 = vcmp.eq.f32.partialorder %v2231_v4, 8.507059e+37  ;;  %v2663_v55 = vpack.c.bf16 %v2631_v11, %v2631_v11 }
 0x244   :  { %v4916_v33 = vmul.f32 -1.442695, %v7342_v28  ;;  %v5514_v25 = vpop.eup %5513  ;;  %v1766_v23 = vmul.f32 %v5512_v42, %v7307_v15  ;;  %v1916_v12 = vmul.f32 %v6942_v49, %v7345_v16  ;;  %v2234_v49 = vor.u32 1.1754944e-38, %v2233_v26 }
 0x245   :  { %v2226_v47 = vadd.f32 %v7323_v54, %v2225_v20  ;;  %v7360_v37 = vadd.f32 1.0, %v5514_v25  ;;  %vm1771_vm1 = vweird.f32 %v5512_v42  ;;  %v2240_v26 = vmul.f32 %v7326_v39, %v2239_v24 }
 0x246   :  { %5521 = vpow2.f32 %v4916_v33  ;;  %v1767_v46 = vsub.f32 1.0, %v1766_v23  ;;  %1973 = vadd.xlane.f32.xlu1 %v1916_v12  ;;  %vm2243_vm4 = vweird.f32 %v7326_v39  ;;  %v2246_v59 = vand.u32 2147483647, %v7279_v52  ;;  %vm1772_vm5 = vmor %vm1770_vm14, %vm1771_vm1 }
 0x247   :  { %v5516_v13 = vpop.eup %5515  ;;  %v2230_v32 = vsel %vm7364_vm15, %v7323_v54, %v2226_v47  ;;  %5523 = vrcp.f32 %v7360_v37  ;;  %v1789_v20 = vand.u32 2147483647, %v7360_v37  ;;  %v1791_v7 = vand.u32 2147483648, %v7360_v37  ;;  %vm7437_vm8 = vmor %vm2242_vm3, %vm2243_vm4 }
 0x248   :  { %v5518_v27 = vpop.eup %5517  ;;  %v1239_v38 = vpop.f32.mrf.mxu1  ;;  %v1768_v44 = vmul.f32 %v5512_v42, %v1767_v46  ;;  %v2235_v6 = vsel %vm2232_vm2, %v2234_v49, %v2230_v32  ;;  %v7381_v10 = vadd.f32 1.0, %v5516_v13  ;;  %v2747_v47 = vunpack.c.l.b16 %v2663_v55 }
 0x249   :  { %v7376_v1 = vpop.eup %5519  ;;  %v7378_v29 = vadd.f32 1.0, %v5518_v27  ;;  %v2632_v54 = vmul.f32 %v2235_v6, %v6763_v0  ;;  %v7388_v34 = vadd.f32 %v7296_v50, %v1239_v38  ;;  %vm1785_vm6 = vweird.f32 %v7360_v37 }
 0x24a   :  { %v1769_v48 = vadd.f32 %v5512_v42, %v1768_v44  ;;  %v7396_v0 = vmul.f32 %v7376_v1, %v7335_v3  ;;  %v2241_v46 = vadd.f32 %v7326_v39, %v2240_v26  ;;  %v1792_v49 = vor.u32 1.1754944e-38, %v1791_v7 }
 0x24b   :  { %5525 = vrcp.f32 %v7378_v29  ;;  %v2664_v33 = vpack.c.bf16 %v2632_v54, %v2632_v54  ;;  %v1944_v4 = vpop.xlane.xlu1 %1943  ;;  %v4917_v19 = vmul.f32 -1.442695, %v7388_v34  ;;  %vm7426_vm7 = vcmp.eq.f32.partialorder %v1789_v20, 8.507059e+37 }
 0x24c   :  { %v5522_v53 = vpop.eup %5521  ;;  %v1773_v25 = vsel %vm1772_vm5, %v5512_v42, %v1769_v48  ;;  %v4930_v11 = vmul.f32 -1.442695, %v1944_v4  ;;  %5527 = vrcp.f32 %v7381_v10  ;;  %vm7459_vm11 = vcmp.eq.f32.partialorder %v2246_v59, 8.507059e+37 }
 0x24d   :  { %v7400_v23 = vadd.f32 1.0, %v5522_v53  ;;  %v7402_v12 = vpop.eup %5523  ;;  %v1778_v15 = vsel %vm7368_vm0, %v1777_v36, %v1773_v25  ;;  %v2748_v24 = vunpack.c.l.b16 %v2664_v33  ;;  %v2245_v33 = vsel %vm7437_vm8, %v7326_v39, %v2241_v46 }
 0x24e   :  { %v1781_v13 = vmul.f32 %v7402_v12, %v7360_v37  ;;  %v1946_v42 = vpop.xlane.xlu2 %1945  ;;  %v7414_v32 = vmul.f32 %v1778_v15, %v7253_v62  ;;  %vm1786_vm9 = vweird.f32 %v7402_v12  ;;  %v2248_v15 = vand.u32 2147483648, %v7279_v52 }
 0x24f   :  { %5529 = vrcp.f32 %v7400_v23  ;;  %v7417_v27 = vpack.c.b16 %v2748_v24, %v2747_v47  ;;  %v4931_v6 = vmul.f32 -1.442695, %v1946_v42  ;;  %v1804_v26 = vand.u32 2147483647, %v7400_v23  ;;  %v7452_v47 = vld [vmem:[%s9461_s15] ss:$0 sm:$0xff]  ;;  %vm7473_vm13 = vmor %vm1785_vm6, %vm1786_vm9 }
 0x250   :  { %9587 = vst [vmem:[#allocation5_spill] sm:$0xff] %v7414_v32  ;;  %v1242_v36 = vpop.f32.mrf.mxu1  ;;  %v1782_v44 = vsub.f32 1.0, %v1781_v13  ;;  %5531 = vpow2.f32 %v4930_v11  ;;  %v1806_v48 = vand.u32 2147483648, %v7400_v23  ;;  %v1917_v11 = vmul.f32 %v7452_v47, %v7414_v32 }
 0x251   :  { %v7419_v38 = vpop.eup %5525  ;;  %v7422_v55 = vadd.f32 %v7296_v50, %v1242_v36  ;;  %2873 = vmatmul.bf16.gmra.mxu2 %v7417_v27  ;;  %5533 = vpow2.f32 %v4917_v19  ;;  %vm1800_vm10 = vweird.f32 %v7400_v23  ;;  %vm7464_vm12 = vcmp.eq.f32.partialorder %v1804_v26, 8.507059e+37 }
 0x252   :  { %v2253_v54 = vmul.f32 %v7419_v38, %v7378_v29  ;;  %v1783_v20 = vmul.f32 %v7402_v12, %v1782_v44  ;;  %5535 = vpow2.f32 %v4931_v6  ;;  %v7446_v4 = vpop.eup %5527  ;;  %v1807_v46 = vor.u32 1.1754944e-38, %v1806_v48  ;;  %1975 = vadd.xlane.f32.xlu2 %v1917_v11 }
 0x253   :  { %v4918_v7 = vmul.f32 -1.442695, %v7422_v55  ;;  %v7479_v44 = vmul.f32 %v7446_v4, %v7381_v10  ;;  %vm2258_vm14 = vweird.f32 %v7419_v38  ;;  %v2261_v6 = vand.u32 2147483647, %v7378_v29 }
 0x254   :  { %v2254_v25 = vsub.f32 1.0, %v2253_v54  ;;  %v1784_v19 = vadd.f32 %v7402_v12, %v1783_v20  ;;  %v2263_v54 = vand.u32 2147483648, %v7378_v29  ;;  %v2249_v20 = vor.u32 1.1754944e-38, %v2248_v15 }
 0x255   :  { %v5530_v24 = vpop.eup %5529  ;;  %5537 = vpow2.f32 %v4918_v7  ;;  %vm2257_vm0 = vweird.f32 %v7378_v29  ;;  %vm2262_vm2 = vcmp.eq.f32.partialorder %v2261_v6, 8.507059e+37 }
 0x256   :  { %v1796_v13 = vmul.f32 %v5530_v24, %v7400_v23  ;;  %v2255_v52 = vmul.f32 %v7419_v38, %v2254_v25  ;;  %v5532_v36 = vpop.eup %5531  ;;  %v1788_v48 = vsel %vm7473_vm13, %v7402_v12, %v1784_v19  ;;  %vm1801_vm15 = vweird.f32 %v5530_v24  ;;  %vm2259_vm1 = vmor %vm2257_vm0, %vm2258_vm14 }
 0x257   :  { %v5534_v26 = vpop.eup %5533  ;;  %v7487_v53 = vadd.f32 1.0, %v5532_v36  ;;  %v2250_v12 = vsel %vm7459_vm11, %v2249_v20, %v2245_v33  ;;  %v1793_v15 = vsel %vm7426_vm7, %v1792_v49, %v1788_v48  ;;  %v2284_v33 = vsub.f32 1.0, %v7479_v44  ;;  %vm1802_vm3 = vmor %vm1800_vm10, %vm1801_vm15 }
 0x258   :  { %v1797_v37 = vsub.f32 1.0, %v1796_v13  ;;  %v5536_v7 = vpop.eup %5535  ;;  %v7489_v25 = vadd.f32 1.0, %v5534_v26  ;;  %v2256_v11 = vadd.f32 %v7419_v38, %v2255_v52  ;;  %v2264_v13 = vor.u32 1.1754944e-38, %v2263_v54  ;;  %v1244_v6 = vpop.f32.mrf.mxu1 }
 0x259   :  { %5539 = vrcp.f32 %v7487_v53  ;;  %v7494_v32 = vadd.f32 1.0, %v5536_v7  ;;  %v2633_v39 = vmul.f32 %v2250_v12, %v6737_v35  ;;  %v1948_v59 = vpop.xlane.xlu0 %1947  ;;  %v7519_v26 = vmul.f32 %v1793_v15, %v7299_v31 }
 0x25a   :  { %v1798_v5 = vmul.f32 %v5530_v24, %v1797_v37  ;;  %5541 = vrcp.f32 %v7489_v25  ;;  %v2260_v36 = vsel %vm2259_vm1, %v7419_v38, %v2256_v11  ;;  %v1821_v49 = vand.u32 2147483648, %v7489_v25 }
 0x25b   :  { %v5538_v19 = vpop.eup %5537  ;;  %5543 = vrcp.f32 %v7494_v32  ;;  %v2265_v62 = vsel %vm2262_vm2, %v2264_v13, %v2260_v36  ;;  %v1819_v54 = vand.u32 2147483647, %v7489_v25  ;;  %v9598_v38 = vsub.f32 1.0, %v7396_v0 }
 0x25c   :  { %v1799_v29 = vadd.f32 %v5530_v24, %v1798_v5  ;;  %v7504_v52 = vadd.f32 1.0, %v5538_v19  ;;  %v2634_v48 = vmul.f32 %v2265_v62, %v6874_v58  ;;  %v2665_v35 = vpack.c.bf16 %v2633_v39, %v2633_v39  ;;  %v1950_v58 = vpop.xlane.xlu1 %1949 }
 0x25d   :  { %v2270_v44 = vmul.f32 %v7376_v1, %v9598_v38  ;;  %vm1815_vm4 = vweird.f32 %v7489_v25  ;;  %v4932_v20 = vmul.f32 -1.442695, %v1948_v59  ;;  %v7531_v0 = vadd.f32 %v7296_v50, %v1244_v6 }
 0x25e   :  { %v1803_v5 = vsel %vm1802_vm3, %v5530_v24, %v1799_v29  ;;  %5545 = vrcp.f32 %v7504_v52  ;;  %v1822_v31 = vor.u32 1.1754944e-38, %v1821_v49  ;;  %v1834_v11 = vand.u32 2147483647, %v7504_v52 }
 0x25f   :  { %v1808_v23 = vsel %vm7464_vm12, %v1807_v46, %v1803_v5  ;;  %v7524_v37 = vpop.eup %5539  ;;  %v1836_v42 = vand.u32 2147483648, %v7504_v52  ;;  %v2666_v46 = vpack.c.bf16 %v2634_v48, %v2634_v48  ;;  %vm7542_vm5 = vcmp.eq.f32.partialorder %v1819_v54, 8.507059e+37 }
 0x260   :  { %v7527_v24 = vmul.f32 %v1808_v23, %v7342_v28  ;;  %v5542_v7 = vpop.eup %5541  ;;  %v7539_v28 = vmul.f32 %v7524_v37, %v7487_v53  ;;  %vm1830_vm6 = vweird.f32 %v7504_v52  ;;  %5547 = vpow2.f32 %v4932_v20 }
 0x261   :  { %v7535_v12 = vpop.eup %5543  ;;  %v1811_v19 = vmul.f32 %v5542_v7, %v7489_v25  ;;  %v4919_v50 = vmul.f32 -1.442695, %v7531_v0  ;;  %vm1816_vm7 = vweird.f32 %v5542_v7  ;;  %v2749_v13 = vunpack.c.l.b16 %v2665_v35 }
 0x262   :  { %v2750_v29 = vunpack.c.l.b16 %v2666_v46  ;;  %v1918_v36 = vmul.f32 %v7452_v47, %v7519_v26  ;;  %v4933_v39 = vmul.f32 -1.442695, %v1950_v58  ;;  %v1919_v59 = vmul.f32 %v7452_v47, %v7527_v24  ;;  %vm1817_vm15 = vmor %vm1815_vm4, %vm1816_vm7 }
 0x263   :  { %v1812_v62 = vsub.f32 1.0, %v1811_v19  ;;  %5549 = vpow2.f32 %v4919_v50  ;;  %v7554_v6 = vmul.f32 %v7535_v12, %v7494_v32  ;;  %vm7557_vm9 = vcmp.eq.f32.partialorder %v1834_v11, 8.507059e+37 }
 0x264   :  { %v5546_v49 = vpop.eup %5545  ;;  %v7561_v38 = vpack.c.b16 %v2750_v29, %v2749_v13  ;;  %1977 = vadd.xlane.f32.xlu0 %v1918_v36  ;;  %5551 = vpow2.f32 %v4933_v39  ;;  %1979 = vadd.xlane.f32.xlu1 %v1919_v59  ;;  %v2271_v48 = vadd.f32 %v7376_v1, %v2270_v44  ;;  %vm2272_vm10 = vweird.f32 %v7335_v3 }
 0x265   :  { %v1826_v5 = vmul.f32 %v5546_v49, %v7504_v52  ;;  %vm1831_vm8 = vweird.f32 %v5546_v49  ;;  %v1813_v23 = vmul.f32 %v5542_v7, %v1812_v62  ;;  %vm2273_vm11 = vweird.f32 %v7376_v1  ;;  %v1952_v52 = vpop.xlane.xlu2 %1951 }
 0x266   :  { %2878 = vmatmul.bf16.gmra.mxu2 %v7561_v38  ;;  %v2276_v20 = vand.u32 2147483647, %v7335_v3  ;;  %v2278_v11 = vand.u32 2147483648, %v7335_v3  ;;  %v5548_v46 = vpop.eup %5547  ;;  %vm7569_vm12 = vmor %vm2272_vm10, %vm2273_vm11  ;;  %v2285_v50 = vmul.f32 %v7446_v4, %v2284_v33  ;;  %vm2287_vm13 = vweird.f32 %v7381_v10 }
 0x267   :  { %v1827_v35 = vsub.f32 1.0, %v1826_v5  ;;  %v1814_v58 = vadd.f32 %v5542_v7, %v1813_v23  ;;  %vm2288_vm14 = vweird.f32 %v7446_v4  ;;  %v7579_v13 = vadd.f32 1.0, %v5548_v46  ;;  %vm1832_vm1 = vmor %vm1830_vm6, %vm1831_vm8 }
 0x268   :  { %v2275_v3 = vsel %vm7569_vm12, %v7376_v1, %v2271_v48  ;;  %vm2277_vm0 = vcmp.eq.f32.partialorder %v2276_v20, 8.507059e+37  ;;  %v2279_v62 = vor.u32 1.1754944e-38, %v2278_v11  ;;  %v2286_v33 = vadd.f32 %v7446_v4, %v2285_v50  ;;  %vm7602_vm2 = vmor %vm2287_vm13, %vm2288_vm14 }
 0x269   :  { %v1828_v44 = vmul.f32 %v5546_v49, %v1827_v35  ;;  %v5550_v29 = vpop.eup %5549  ;;  %v1818_v36 = vsel %vm1817_vm15, %v5542_v7, %v1814_v58  ;;  %v2291_v39 = vand.u32 2147483647, %v7381_v10  ;;  %5553 = vrcp.f32 %v7579_v13  ;;  %v1954_v58 = vpop.xlane.xlu0 %1953 }
 0x26a   :  { %v1823_v59 = vsel %vm7542_vm5, %v1822_v31, %v1818_v36  ;;  %v7592_v5 = vadd.f32 1.0, %v5550_v29  ;;  %v5552_v1 = vpop.eup %5551  ;;  %v2299_v7 = vsub.f32 1.0, %v7539_v28  ;;  %v1837_v48 = vor.u32 1.1754944e-38, %v1836_v42 }
 0x26b   :  { %v1829_v25 = vadd.f32 %v5546_v49, %v1828_v44  ;;  %v7596_v23 = vmul.f32 %v1823_v59, %v7388_v34  ;;  %v2280_v35 = vsel %vm2277_vm0, %v2279_v62, %v2275_v3  ;;  %v2314_v15 = vsub.f32 1.0, %v7554_v6 }
 0x26c   :  { %5555 = vrcp.f32 %v7592_v5  ;;  %v2290_v34 = vsel %vm7602_vm2, %v7446_v4, %v2286_v33  ;;  %v1851_v28 = vand.u32 2147483648, %v7592_v5  ;;  %v7614_v11 = vadd.f32 1.0, %v5552_v1 }
 0x26d   :  { %v1833_v20 = vsel %vm1832_vm1, %v5546_v49, %v1829_v25  ;;  %v2293_v46 = vand.u32 2147483648, %v7381_v10  ;;  %vm2292_vm3 = vcmp.eq.f32.partialorder %v2291_v39, 8.507059e+37  ;;  %v2635_v49 = vmul.f32 %v2280_v35, %v6794_v2 }
 0x26e   :  { %v1838_v42 = vsel %vm7557_vm9, %v1837_v48, %v1833_v20  ;;  %v4934_v6 = vmul.f32 -1.442695, %v1952_v52  ;;  %v1849_v50 = vand.u32 2147483647, %v7592_v5  ;;  %5557 = vrcp.f32 %v7614_v11 }
 0x26f   :  { %v7618_v19 = vmul.f32 %v1838_v42, %v7422_v55  ;;  %v2294_v4 = vor.u32 1.1754944e-38, %v2293_v46  ;;  %v1920_v54 = vmul.f32 %v7452_v47, %v7596_v23  ;;  %v7625_v44 = vpop.eup %5553  ;;  %v2667_v3 = vpack.c.bf16 %v2635_v49, %v2635_v49 }
 0x270   :  { %5559 = vpow2.f32 %v4934_v6  ;;  %v4935_v10 = vmul.f32 -1.442695, %v1954_v58  ;;  %v2328_v2 = vmul.f32 %v7625_v44, %v7579_v13  ;;  %vm1845_vm4 = vweird.f32 %v7592_v5 }
 0x271   :  { %v1921_v55 = vmul.f32 %v7452_v47, %v7618_v19  ;;  %v1852_v29 = vor.u32 1.1754944e-38, %v1851_v28  ;;  %v2295_v36 = vsel %vm2292_vm3, %v2294_v4, %v2290_v34  ;;  %1981 = vadd.xlane.f32.xlu2 %v1920_v54  ;;  %v2300_v62 = vmul.f32 %v7524_v37, %v2299_v7  ;;  %v1956_v4 = vpop.xlane.xlu1 %1955 }
 0x272   :  { %v5556_v33 = vpop.eup %5555  ;;  %v2636_v39 = vmul.f32 %v2295_v36, %v6870_v57  ;;  %5561 = vpow2.f32 %v4935_v10  ;;  %vm2302_vm5 = vweird.f32 %v7487_v53  ;;  %vm2303_vm6 = vweird.f32 %v7524_v37 }
 0x273   :  { %1983 = vadd.xlane.f32.xlu0 %v1921_v55  ;;  %v1841_v59 = vmul.f32 %v5556_v33, %v7592_v5  ;;  %vm1846_vm7 = vweird.f32 %v5556_v33  ;;  %vm7637_vm8 = vcmp.eq.f32.partialorder %v1849_v50, 8.507059e+37  ;;  %v2751_v1 = vunpack.c.l.b16 %v2667_v3  ;;  %vm7642_vm9 = vmor %vm2302_vm5, %vm2303_vm6 }
 0x274   :  { %v2301_v48 = vadd.f32 %v7524_v37, %v2300_v62  ;;  %v2668_v7 = vpack.c.bf16 %v2636_v39, %v2636_v39  ;;  %v2306_v57 = vand.u32 2147483647, %v7487_v53  ;;  %v2308_v31 = vand.u32 2147483648, %v7487_v53  ;;  %v7649_v20 = vpop.eup %5557  ;;  %vm1847_vm14 = vmor %vm1845_vm4, %vm1846_vm7 }
 0x275   :  { %v2315_v52 = vmul.f32 %v7535_v12, %v2314_v15  ;;  %v1842_v34 = vsub.f32 1.0, %v1841_v59  ;;  %vm2317_vm10 = vweird.f32 %v7494_v32  ;;  %vm2318_vm11 = vweird.f32 %v7535_v12 }
 0x276   :  { %v2305_v42 = vsel %vm7642_vm9, %v7524_v37, %v2301_v48  ;;  %v5560_v28 = vpop.eup %5559  ;;  %v2343_v46 = vmul.f32 %v7649_v20, %v7614_v11  ;;  %v2752_v58 = vunpack.c.l.b16 %v2668_v7  ;;  %vm2307_vm12 = vcmp.eq.f32.partialorder %v2306_v57, 8.507059e+37  ;;  %vm7668_vm13 = vmor %vm2317_vm10, %vm2318_vm11 }
 0x277   :  { %v2309_v53 = vor.u32 1.1754944e-38, %v2308_v31  ;;  %v1843_v49 = vmul.f32 %v5556_v33, %v1842_v34  ;;  %v7658_v15 = vadd.f32 1.0, %v5560_v28  ;;  %v2316_v6 = vadd.f32 %v7535_v12, %v2315_v52  ;;  %v1958_v62 = vpop.xlane.xlu2 %1957 }
 0x278   :  { %v2321_v50 = vand.u32 2147483647, %v7494_v32  ;;  %v5562_v37 = vpop.eup %5561  ;;  %v2329_v54 = vsub.f32 1.0, %v2328_v2  ;;  %v7662_v3 = vpack.c.b16 %v2752_v58, %v2751_v1  ;;  %v2323_v36 = vand.u32 2147483648, %v7494_v32 }
 0x279   :  { %v2310_v10 = vsel %vm2307_vm12, %v2309_v53, %v2305_v42  ;;  %v1844_v39 = vadd.f32 %v5556_v33, %v1843_v49  ;;  %5563 = vrcp.f32 %v7658_v15  ;;  %v7674_v59 = vadd.f32 1.0, %v5562_v37 }
 0x27a   :  { %v2320_v2 = vsel %vm7668_vm13, %v7535_v12, %v2316_v6  ;;  %v2344_v1 = vsub.f32 1.0, %v2343_v46  ;;  %2883 = vmatmul.bf16.gmra.mxu2 %v7662_v3  ;;  %vm2322_vm15 = vcmp.eq.f32.partialorder %v2321_v50, 8.507059e+37  ;;  %v2324_v48 = vor.u32 1.1754944e-38, %v2323_v36 }
 0x27b   :  { %v4936_v32 = vmul.f32 -1.442695, %v1956_v4  ;;  %v1848_v7 = vsel %vm1847_vm14, %v5556_v33, %v1844_v39  ;;  %5565 = vrcp.f32 %v7674_v59  ;;  %v2637_v35 = vmul.f32 %v2310_v10, %v6900_v60 }
 0x27c   :  { %v4937_v57 = vmul.f32 -1.442695, %v1958_v62  ;;  %v1853_v31 = vsel %vm7637_vm8, %v1852_v29, %v1848_v7  ;;  %v2325_v12 = vsel %vm2322_vm15, %v2324_v48, %v2320_v2  ;;  %v2330_v52 = vmul.f32 %v7625_v44, %v2329_v54 }
 0x27d   :  { %v7689_v5 = vmul.f32 %v1853_v31, %v7531_v0  ;;  %v2638_v34 = vmul.f32 %v2325_v12, %v6908_v14  ;;  %v2669_v33 = vpack.c.bf16 %v2637_v35, %v2637_v35  ;;  %v2345_v25 = vmul.f32 %v7649_v20, %v2344_v1 }
 0x27e   :  { %5567 = vpow2.f32 %v4937_v57  ;;  %v2331_v46 = vadd.f32 %v7625_v44, %v2330_v52  ;;  %vm2333_vm0 = vweird.f32 %v7625_v44  ;;  %v2338_v14 = vand.u32 2147483648, %v7579_v13 }
 0x27f   :  { %5569 = vpow2.f32 %v4936_v32  ;;  %v7692_v42 = vpop.eup %5563  ;;  %v2670_v28 = vpack.c.bf16 %v2638_v34, %v2638_v34  ;;  %v1922_v60 = vmul.f32 %v7452_v47, %v7689_v5  ;;  %v2346_v53 = vadd.f32 %v7649_v20, %v2345_v25  ;;  %v1960_v34 = vpop.xlane.xlu0 %1959 }
 0x280   :  { %v2358_v29 = vmul.f32 %v7692_v42, %v7658_v15  ;;  %vm2347_vm1 = vweird.f32 %v7614_v11  ;;  %vm2348_vm2 = vweird.f32 %v7649_v20  ;;  %v2351_v50 = vand.u32 2147483647, %v7614_v11 }
 0x281   :  { %v7702_v0 = vpop.eup %5565  ;;  %v2754_v58 = vunpack.c.l.b16 %v2670_v28  ;;  %1985 = vadd.xlane.f32.xlu1 %v1922_v60  ;;  %vm7709_vm3 = vmor %vm2347_vm1, %vm2348_vm2  ;;  %v2353_v4 = vand.u32 2147483648, %v7614_v11  ;;  %vm2332_vm4 = vweird.f32 %v7579_v13  ;;  %v2336_v54 = vand.u32 2147483647, %v7579_v13 }
 0x282   :  { %v2359_v47 = vsub.f32 1.0, %v2358_v29  ;;  %v2373_v49 = vmul.f32 %v7702_v0, %v7674_v59  ;;  %v2350_v10 = vsel %vm7709_vm3, %v7649_v20, %v2346_v53  ;;  %v2753_v62 = vunpack.c.l.b16 %v2669_v33  ;;  %vm2334_vm5 = vmor %vm2332_vm4, %vm2333_vm0 }
 0x283   :  { %v2354_v39 = vor.u32 1.1754944e-38, %v2353_v4  ;;  %v2335_v11 = vsel %vm2334_vm5, %v7625_v44, %v2331_v46  ;;  %vm2352_vm6 = vcmp.eq.f32.partialorder %v2351_v50, 8.507059e+37  ;;  %v2339_v13 = vor.u32 1.1754944e-38, %v2338_v14 }
 0x284   :  { %v5568_v37 = vpop.eup %5567  ;;  %v2374_v36 = vsub.f32 1.0, %v2373_v49  ;;  %v2360_v1 = vmul.f32 %v7692_v42, %v2359_v47  ;;  %v7726_v48 = vpack.c.b16 %v2754_v58, %v2753_v62  ;;  %vm2363_vm7 = vweird.f32 %v7692_v42 }
 0x285   :  { %v5570_v55 = vpop.eup %5569  ;;  %v7722_v2 = vadd.f32 1.0, %v5568_v37  ;;  %v2355_v32 = vsel %vm2352_vm6, %v2354_v39, %v2350_v10  ;;  %vm2337_vm8 = vcmp.eq.f32.partialorder %v2336_v54, 8.507059e+37  ;;  %vm2362_vm9 = vweird.f32 %v7658_v15 }
 0x286   :  { %v7729_v20 = vadd.f32 1.0, %v5570_v55  ;;  %v2361_v7 = vadd.f32 %v7692_v42, %v2360_v1  ;;  %v2340_v35 = vsel %vm2337_vm8, %v2339_v13, %v2335_v11  ;;  %vm7733_vm10 = vmor %vm2362_vm9, %vm2363_vm7  ;;  %v2366_v44 = vand.u32 2147483647, %v7658_v15 }
 0x287   :  { %v2368_v31 = vand.u32 2147483648, %v7658_v15  ;;  %v2375_v12 = vmul.f32 %v7702_v0, %v2374_v36  ;;  %5571 = vrcp.f32 %v7722_v2  ;;  %v2640_v52 = vmul.f32 %v2355_v32, %v6935_v17 }
 0x288   :  { %v2365_v33 = vsel %vm7733_vm10, %v7692_v42, %v2361_v7  ;;  %vm2378_vm11 = vweird.f32 %v7702_v0  ;;  %v1962_v28 = vpop.xlane.xlu1 %1961  ;;  %vm2377_vm12 = vweird.f32 %v7674_v59  ;;  %v2381_v15 = vand.u32 2147483647, %v7674_v59 }
 0x289   :  { %v2369_v60 = vor.u32 1.1754944e-38, %v2368_v31  ;;  %v2376_v25 = vadd.f32 %v7702_v0, %v2375_v12  ;;  %v4939_v29 = vmul.f32 -1.442695, %v1962_v28  ;;  %vm2367_vm13 = vcmp.eq.f32.partialorder %v2366_v44, 8.507059e+37  ;;  %vm2379_vm14 = vmor %vm2377_vm12, %vm2378_vm11 }
 0x28a   :  { %2888 = vmatmul.bf16.gmra.mxu2 %v7726_v48  ;;  %v2383_v17 = vand.u32 2147483648, %v7674_v59  ;;  %v2639_v46 = vmul.f32 %v2340_v35, %v6923_v43  ;;  %v4938_v42 = vmul.f32 -1.442695, %v1960_v34  ;;  %5573 = vrcp.f32 %v7729_v20 }
 0x28b   :  { %v2370_v14 = vsel %vm2367_vm13, %v2369_v60, %v2365_v33  ;;  %v2380_v58 = vsel %vm2379_vm14, %v7702_v0, %v2376_v25  ;;  %v2672_v47 = vpack.c.bf16 %v2640_v52, %v2640_v52  ;;  %5575 = vpow2.f32 %v4939_v29 }
 0x28c   :  { %v2384_v53 = vor.u32 1.1754944e-38, %v2383_v17  ;;  %vm2382_vm15 = vcmp.eq.f32.partialorder %v2381_v15, 8.507059e+37  ;;  %v2641_v49 = vmul.f32 %v2370_v14, %v6947_v51  ;;  %v2671_v4 = vpack.c.bf16 %v2639_v46, %v2639_v46 }
 0x28d   :  { %v5572_v6 = vpop.eup %5571  ;;  %5577 = vpow2.f32 %v4938_v42  ;;  %v2756_v43 = vunpack.c.l.b16 %v2672_v47  ;;  %v2413_v28 = vand.u32 2147483648, %v7722_v2  ;;  %vm2407_vm1 = vweird.f32 %v7722_v2 }
 0x28e   :  { %v2385_v50 = vsel %vm2382_vm15, %v2384_v53, %v2380_v58  ;;  %v2673_v37 = vpack.c.bf16 %v2641_v49, %v2641_v49  ;;  %v2403_v0 = vmul.f32 %v5572_v6, %v7722_v2  ;;  %v2755_v36 = vunpack.c.l.b16 %v2671_v4 }
 0x28f   :  { %v2642_v59 = vmul.f32 %v2385_v50, %v6959_v45  ;;  %v1964_v35 = vpop.xlane.xlu2 %1963  ;;  %vm2408_vm0 = vweird.f32 %v5572_v6  ;;  %v2411_v25 = vand.u32 2147483647, %v7722_v2  ;;  %v2398_v46 = vand.u32 2147483648, %v7729_v20 }
 0x290   :  { %v5574_v10 = vpop.eup %5573  ;;  %v2757_v62 = vunpack.c.l.b16 %v2673_v37  ;;  %v2781_v51 = vpack.c.b16 %v2756_v43, %v2755_v36  ;;  %v2404_v32 = vsub.f32 1.0, %v2403_v0  ;;  %v4940_v52 = vmul.f32 -1.442695, %v1964_v35  ;;  %vm7770_vm3 = vmor %vm2407_vm1, %vm2408_vm0 }
 0x291   :  { %v2674_v54 = vpack.c.bf16 %v2642_v59, %v2642_v59  ;;  %v5576_v55 = vpop.eup %5575  ;;  %v2388_v1 = vmul.f32 %v5574_v10, %v7729_v20  ;;  %vm2393_vm2 = vweird.f32 %v5574_v10  ;;  %vm2392_vm4 = vweird.f32 %v7729_v20 }
 0x292   :  { %v7758_v7 = vadd.f32 1.0, %v5576_v55  ;;  %v2405_v12 = vmul.f32 %v5572_v6, %v2404_v32  ;;  %v2396_v2 = vand.u32 2147483647, %v7729_v20  ;;  %v2414_v58 = vor.u32 1.1754944e-38, %v2413_v28  ;;  %vm2394_vm5 = vmor %vm2392_vm4, %vm2393_vm2 }
 0x293   :  { %v2758_v39 = vunpack.c.l.b16 %v2674_v54  ;;  %v5578_v11 = vpop.eup %5577  ;;  %v2389_v44 = vsub.f32 1.0, %v2388_v1  ;;  %vm2412_vm6 = vcmp.eq.f32.partialorder %v2411_v25, 8.507059e+37  ;;  %v2399_v4 = vor.u32 1.1754944e-38, %v2398_v46 }
 0x294   :  { %v7760_v45 = vadd.f32 1.0, %v5578_v11  ;;  %5579 = vrcp.f32 %v7758_v7  ;;  %v2406_v33 = vadd.f32 %v5572_v6, %v2405_v12  ;;  %vm2397_vm7 = vcmp.eq.f32.partialorder %v2396_v2, 8.507059e+37 }
 0x295   :  { %v2782_v13 = vpack.c.b16 %v2758_v39, %v2757_v62  ;;  %v2390_v34 = vmul.f32 %v5574_v10, %v2389_v44  ;;  %vm2437_vm10 = vweird.f32 %v7758_v7  ;;  %v2441_v32 = vand.u32 2147483647, %v7758_v7 }
 0x296   :  { %5581 = vrcp.f32 %v7760_v45  ;;  %vm2422_vm11 = vweird.f32 %v7760_v45 }
 0x297   :  { %4034 = vmatpush.bf16.msra.mxu3 %v2782_v13  ;;  %v2391_v15 = vadd.f32 %v5574_v10, %v2390_v34  ;;  %vm2442_vm14 = vcmp.eq.f32.partialorder %v2441_v32, 8.507059e+37 }
 0x299   :  { %v1966_v57 = vpop.xlane.xlu0 %1965  ;;  %v2395_v49 = vsel %vm2394_vm5, %v5574_v10, %v2391_v15 }
 0x29a   :  { %2893 = vmatmul.bf16.gmra.mxu2 %v2781_v51  ;;  %v4941_v31 = vmul.f32 -1.442695, %v1966_v57  ;;  %v7766_v60 = vpop.eup %5579  ;;  %v2400_v20 = vsel %vm2397_vm7, %v2399_v4, %v2395_v49 }
 0x29b   :  { %4035 = vmatpush.bf16.msra.mxu3 %v2781_v51  ;;  %v2433_v14 = vmul.f32 %v7766_v60, %v7758_v7  ;;  %v2643_v10 = vmul.f32 %v2400_v20, %v6971_v61  ;;  %vm2438_vm8 = vweird.f32 %v7766_v60  ;;  %v2443_v51 = vand.u32 2147483648, %v7758_v7 }
 0x29c   :  { %5583 = vpow2.f32 %v4941_v31  ;;  %v7774_v17 = vpop.eup %5581  ;;  %vm7814_vm12 = vmor %vm2437_vm10, %vm2438_vm8 }
 0x29d   :  { %5585 = vpow2.f32 %v4940_v52  ;;  %v2418_v47 = vmul.f32 %v7774_v17, %v7760_v45  ;;  %v2434_v59 = vsub.f32 1.0, %v2433_v14  ;;  %v1968_v54 = vpop.xlane.xlu1 %1967  ;;  %v2675_v11 = vpack.c.bf16 %v2643_v10, %v2643_v10 }
 0x29e   :  { %v4942_v36 = vmul.f32 -1.442695, %v1968_v54  ;;  %vm2423_vm9 = vweird.f32 %v7774_v17  ;;  %v2426_v52 = vand.u32 2147483647, %v7760_v45  ;;  %v2444_v34 = vor.u32 1.1754944e-38, %v2443_v51 }
 0x29f   :  { %4036 = vmatpush.bf16.msra.mxu3 %v7726_v48  ;;  %v2410_v48 = vsel %vm7770_vm3, %v5572_v6, %v2406_v33  ;;  %v2419_v0 = vsub.f32 1.0, %v2418_v47  ;;  %v2435_v62 = vmul.f32 %v7766_v60, %v2434_v59  ;;  %v2759_v12 = vunpack.c.l.b16 %v2675_v11  ;;  %vm2424_vm13 = vmor %vm2422_vm11, %vm2423_vm9 }
 0x2a0   :  { %v2415_v50 = vsel %vm2412_vm6, %v2414_v58, %v2410_v48  ;;  %vm2427_vm15 = vcmp.eq.f32.partialorder %v2426_v52, 8.507059e+37 }
 0x2a1   :  { %v2644_v43 = vmul.f32 %v2415_v50, %v6998_v18  ;;  %v2420_v18 = vmul.f32 %v7774_v17, %v2419_v0  ;;  %v2436_v1 = vadd.f32 %v7766_v60, %v2435_v62 }
 0x2a2   :  { %v5584_v42 = vpop.eup %5583  ;;  %v7797_v39 = vpop.f32.mrf.mxu2 }
 0x2a3   :  { %4037 = vmatpush.bf16.msra.mxu3 %v7662_v3  ;;  %v5586_v53 = vpop.eup %5585  ;;  %v7786_v6 = vadd.f32 1.0, %v5584_v42  ;;  %v2440_v7 = vsel %vm7814_vm12, %v7766_v60, %v2436_v1 }
 0x2a4   :  { %v7789_v37 = vadd.f32 1.0, %v5586_v53  ;;  %v2445_v46 = vsel %vm2442_vm14, %v2444_v34, %v2440_v7 }
 0x2a5   :  { %5587 = vrcp.f32 %v7786_v6  ;;  %v2646_v2 = vmul.f32 %v2445_v46, %v7093_v40  ;;  %vm2467_vm2 = vweird.f32 %v7786_v6 }
 0x2a6   :  { %5589 = vrcp.f32 %v7789_v37  ;;  %vm2452_vm3 = vweird.f32 %v7789_v37  ;;  %v2456_v11 = vand.u32 2147483647, %v7789_v37 }
 0x2a7   :  { %4038 = vmatpush.bf16.msra.mxu3 %v7561_v38  ;;  %v1970_v3 = vpop.xlane.xlu2 %1969  ;;  %v2676_v38 = vpack.c.bf16 %v2644_v43, %v2644_v43  ;;  %v2678_v4 = vpack.c.bf16 %v2646_v2, %v2646_v2  ;;  %v2473_v43 = vand.u32 2147483648, %v7786_v6 }
 0x2a8   :  { %v4943_v55 = vmul.f32 -1.442695, %v1970_v3  ;;  %vm2457_vm7 = vcmp.eq.f32.partialorder %v2456_v11, 8.507059e+37 }
 0x2a9   :  { %v2762_v54 = vunpack.c.l.b16 %v2678_v4 }
 0x2aa   :  { %2898 = vmatmul.bf16.gmra.mxu2 %v2782_v13  ;;  %5591 = vpow2.f32 %v4943_v55  ;;  %v2421_v13 = vadd.f32 %v7774_v17, %v2420_v18  ;;  %v2471_v55 = vand.u32 2147483647, %v7786_v6 }
 0x2ab   :  { %4039 = vmatpush.bf16.msra.mxu3 %v7417_v27  ;;  %5593 = vpow2.f32 %v4942_v36  ;;  %v7803_v61 = vpop.eup %5587  ;;  %v2760_v27 = vunpack.c.l.b16 %v2676_v38  ;;  %v2458_v36 = vand.u32 2147483648, %v7789_v37 }
 0x2ac   :  { %v7810_v35 = vpop.eup %5589  ;;  %v2463_v31 = vmul.f32 %v7803_v61, %v7786_v6  ;;  %v2425_v15 = vsel %vm2424_vm13, %v7774_v17, %v2421_v13  ;;  %vm2468_vm0 = vweird.f32 %v7803_v61  ;;  %vm2472_vm6 = vcmp.eq.f32.partialorder %v2471_v55, 8.507059e+37 }
 0x2ad   :  { %v2448_v28 = vmul.f32 %v7810_v35, %v7789_v37  ;;  %v7827_v25 = vpack.c.b16 %v2760_v27, %v2759_v12  ;;  %vm2453_vm1 = vweird.f32 %v7810_v35  ;;  %vm7858_vm4 = vmor %vm2467_vm2, %vm2468_vm0  ;;  %v2474_v27 = vor.u32 1.1754944e-38, %v2473_v43 }
 0x2ae   :  { %v2464_v48 = vsub.f32 1.0, %v2463_v31  ;;  %v1972_v17 = vpop.xlane.xlu0 %1971  ;;  %vm2454_vm5 = vmor %vm2452_vm3, %vm2453_vm1  ;;  %v2459_v37 = vor.u32 1.1754944e-38, %v2458_v36 }
 0x2af   :  { %4040 = vmatpush.bf16.msra.mxu3 %v7290_v8  ;;  %v2428_v8 = vand.u32 2147483648, %v7760_v45  ;;  %v2449_v14 = vsub.f32 1.0, %v2448_v28  ;;  %v4944_v53 = vmul.f32 -1.442695, %v1972_v17 }
 0x2b0   :  { %v5592_v44 = vpop.eup %5591  ;;  %v2465_v49 = vmul.f32 %v7803_v61, %v2464_v48 }
 0x2b1   :  { %v5594_v33 = vpop.eup %5593  ;;  %v7830_v29 = vadd.f32 1.0, %v5592_v44  ;;  %v2429_v45 = vor.u32 1.1754944e-38, %v2428_v8  ;;  %v2450_v59 = vmul.f32 %v7810_v35, %v2449_v14 }
 0x2b2   :  { %v7834_v60 = vadd.f32 1.0, %v5594_v33  ;;  %v2466_v40 = vadd.f32 %v7803_v61, %v2465_v49 }
 0x2b3   :  { %4041 = vmatpush.bf16.msra.mxu3 %v7176_v56  ;;  %v7832_v56 = vpop.f32.mrf.mxu2  ;;  %v2430_v42 = vsel %vm2427_vm15, %v2429_v45, %v2425_v15  ;;  %5595 = vrcp.f32 %v7830_v29  ;;  %v2451_v0 = vadd.f32 %v7810_v35, %v2450_v59  ;;  %vm2497_vm10 = vweird.f32 %v7830_v29 }
 0x2b4   :  { %v2645_v58 = vmul.f32 %v2430_v42, %v7026_v21  ;;  %5597 = vrcp.f32 %v7834_v60  ;;  %v2470_v6 = vsel %vm7858_vm4, %v7803_v61, %v2466_v40  ;;  %v2501_v17 = vand.u32 2147483647, %v7830_v29 }
 0x2b5   :  { %5599 = vpow2.f32 %v4944_v53  ;;  %v2455_v8 = vsel %vm2454_vm5, %v7810_v35, %v2451_v0  ;;  %v2475_v44 = vsel %vm2472_vm6, %v2474_v27, %v2470_v6  ;;  %vm2482_vm11 = vweird.f32 %v7834_v60 }
 0x2b6   :  { %v2677_v3 = vpack.c.bf16 %v2645_v58, %v2645_v58  ;;  %v2460_v12 = vsel %vm2457_vm7, %v2459_v37, %v2455_v8  ;;  %v2648_v34 = vmul.f32 %v2475_v44, %v7174_v30  ;;  %v2488_v53 = vand.u32 2147483648, %v7834_v60 }
 0x2b7   :  { %v2647_v35 = vmul.f32 %v2460_v12, %v7136_v63  ;;  %v2503_v63 = vand.u32 2147483648, %v7830_v29  ;;  %v2486_v4 = vand.u32 2147483647, %v7834_v60  ;;  %vm2502_vm14 = vcmp.eq.f32.partialorder %v2501_v17, 8.507059e+37 }
 0x2b8   :  { %v2761_v18 = vunpack.c.l.b16 %v2677_v3  ;;  %v2680_v45 = vpack.c.bf16 %v2648_v34, %v2648_v34  ;;  %v2489_v55 = vor.u32 1.1754944e-38, %v2488_v53 }
 0x2b9   :  { %v1974_v47 = vpop.xlane.xlu1 %1973  ;;  %v7845_v20 = vpop.eup %5595  ;;  %v2679_v48 = vpack.c.bf16 %v2647_v35, %v2647_v35  ;;  %v2504_v3 = vor.u32 1.1754944e-38, %v2503_v63  ;;  %vm2487_vm15 = vcmp.eq.f32.partialorder %v2486_v4, 8.507059e+37 }
 0x2ba   :  { %2903 = vmatmul.bf16.gmra.mxu2 %v7827_v25  ;;  %v4945_v50 = vmul.f32 -1.442695, %v1974_v47  ;;  %v7854_v10 = vpop.eup %5597  ;;  %v2493_v38 = vmul.f32 %v7845_v20, %v7830_v29  ;;  %v7872_v32 = vpack.c.b16 %v2762_v54, %v2761_v18  ;;  %vm2498_vm8 = vweird.f32 %v7845_v20 }
 0x2bb   :  { %v5600_v1 = vpop.eup %5599  ;;  %v2478_v13 = vmul.f32 %v7854_v10, %v7834_v60  ;;  %vm2483_vm9 = vweird.f32 %v7854_v10  ;;  %v2764_v14 = vunpack.c.l.b16 %v2680_v45  ;;  %vm7901_vm12 = vmor %vm2497_vm10, %vm2498_vm8 }
 0x2bc   :  { %5601 = vpow2.f32 %v4945_v50  ;;  %v7847_v21 = vpop.f32.mrf.mxu2  ;;  %v2494_v31 = vsub.f32 1.0, %v2493_v38  ;;  %v7877_v61 = vadd.f32 1.0, %v5600_v1  ;;  %v2763_v50 = vunpack.c.l.b16 %v2679_v48  ;;  %vm2484_vm13 = vmor %vm2482_vm11, %vm2483_vm9 }
 0x2bd   :  { %v2479_v7 = vsub.f32 1.0, %v2478_v13 }
 0x2be   :  { %v2495_v15 = vmul.f32 %v7845_v20, %v2494_v31  ;;  %v7917_v54 = vpack.c.b16 %v2764_v14, %v2763_v50  ;;  %vm2512_vm4 = vweird.f32 %v7877_v61  ;;  %v2516_v48 = vand.u32 2147483647, %v7877_v61 }
 0x2bf   :  { %v2480_v46 = vmul.f32 %v7854_v10, %v2479_v7 }
 0x2c0   :  { %v2496_v42 = vadd.f32 %v7845_v20, %v2495_v15  ;;  %vm2517_vm7 = vcmp.eq.f32.partialorder %v2516_v48, 8.507059e+37 }
 0x2c1   :  { %v2481_v2 = vadd.f32 %v7854_v10, %v2480_v46 }
 0x2c2   :  { %v5602_v51 = vpop.eup %5601  ;;  %v2500_v29 = vsel %vm7901_vm12, %v7845_v20, %v2496_v42 }
 0x2c3   :  { %v7875_v57 = vadd.f32 1.0, %v5602_v51  ;;  %v2485_v0 = vsel %vm2484_vm13, %v7854_v10, %v2481_v2  ;;  %v2505_v36 = vsel %vm2502_vm14, %v2504_v3, %v2500_v29 }
 0x2c4   :  { %v7882_v33 = vpop.f32.mrf.mxu2  ;;  %v2490_v18 = vsel %vm2487_vm15, %v2489_v55, %v2485_v0  ;;  %v2650_v1 = vmul.f32 %v2505_v36, %v7256_v22 }
 0x2c5   :  { %v1976_v52 = vpop.xlane.xlu2 %1975  ;;  %5603 = vrcp.f32 %v7875_v57  ;;  %v2649_v27 = vmul.f32 %v2490_v18, %v7210_v41  ;;  %v2533_v41 = vand.u32 2147483648, %v7875_v57  ;;  %vm2527_vm2 = vweird.f32 %v7875_v57 }
 0x2c6   :  { %v4946_v28 = vmul.f32 -1.442695, %v1976_v52  ;;  %5605 = vrcp.f32 %v7877_v61  ;;  %v2682_v13 = vpack.c.bf16 %v2650_v1, %v2650_v1  ;;  %v2531_v34 = vand.u32 2147483647, %v7875_v57 }
 0x2c7   :  { %v2681_v31 = vpack.c.bf16 %v2649_v27, %v2649_v27  ;;  %v2534_v63 = vor.u32 1.1754944e-38, %v2533_v41 }
 0x2c8   :  { %5607 = vpow2.f32 %v4946_v28  ;;  %v2766_v52 = vunpack.c.l.b16 %v2682_v13  ;;  %v2518_v28 = vand.u32 2147483648, %v7877_v61  ;;  %vm2532_vm6 = vcmp.eq.f32.partialorder %v2531_v34, 8.507059e+37 }
 0x2c9   :  { %v2765_v45 = vunpack.c.l.b16 %v2681_v31 }
 0x2ca   :  { %2908 = vmatmul.bf16.gmra.mxu2 %v7872_v32 }
 0x2cb   :  { %v7890_v30 = vpop.eup %5603  ;;  %v7956_v17 = vpack.c.b16 %v2766_v52, %v2765_v45 }
 0x2cc   :  { %v7897_v58 = vpop.eup %5605  ;;  %v2523_v49 = vmul.f32 %v7890_v30, %v7875_v57  ;;  %vm2528_vm0 = vweird.f32 %v7890_v30 }
 0x2cd   :  { %v2508_v43 = vmul.f32 %v7897_v58, %v7877_v61  ;;  %vm2513_vm1 = vweird.f32 %v7897_v58  ;;  %vm7943_vm3 = vmor %vm2527_vm2, %vm2528_vm0  ;;  %v2519_v61 = vor.u32 1.1754944e-38, %v2518_v28 }
 0x2ce   :  { %v5608_v40 = vpop.eup %5607  ;;  %v2524_v62 = vsub.f32 1.0, %v2523_v49  ;;  %vm2514_vm5 = vmor %vm2512_vm4, %vm2513_vm1 }
 0x2cf   :  { %v7920_v38 = vadd.f32 1.0, %v5608_v40  ;;  %v2509_v6 = vsub.f32 1.0, %v2508_v43 }
 0x2d0   :  { %v2525_v51 = vmul.f32 %v7890_v30, %v2524_v62 }
 0x2d1   :  { %v2510_v8 = vmul.f32 %v7897_v58, %v2509_v6  ;;  %v2548_v13 = vand.u32 2147483648, %v7920_v38  ;;  %vm2542_vm12 = vweird.f32 %v7920_v38 }
 0x2d2   :  { %v2526_v12 = vadd.f32 %v7890_v30, %v2525_v51 }
 0x2d3   :  { %v2511_v7 = vadd.f32 %v7897_v58, %v2510_v8  ;;  %v2549_v48 = vor.u32 1.1754944e-38, %v2548_v13 }
 0x2d4   :  { %v7911_v59 = vpop.f32.mrf.mxu2  ;;  %v2530_v57 = vsel %vm7943_vm3, %v7890_v30, %v2526_v12  ;;  %v2546_v12 = vand.u32 2147483647, %v7920_v38 }
 0x2d5   :  { %v2515_v53 = vsel %vm2514_vm5, %v7897_v58, %v2511_v7  ;;  %v2535_v47 = vsel %vm2532_vm6, %v2534_v63, %v2530_v57 }
 0x2d6   :  { %v2520_v4 = vsel %vm2517_vm7, %v2519_v61, %v2515_v53  ;;  %v2652_v40 = vmul.f32 %v2535_v47, %v7345_v16  ;;  %vm2547_vm15 = vcmp.eq.f32.partialorder %v2546_v12, 8.507059e+37  ;;  %v8004_v53 = vld [vmem:[%s9455_s9] ss:$0 sm:$0xff] }
 0x2d7   :  { %v1978_v60 = vpop.xlane.xlu0 %1977  ;;  %v1980_v11 = vpop.xlane.xlu1 %1979  ;;  %v2651_v0 = vmul.f32 %v2520_v4, %v7284_v9 }
 0x2d8   :  { %v4947_v20 = vmul.f32 -1.442695, %v1978_v60  ;;  %v4948_v10 = vmul.f32 -1.442695, %v1980_v11  ;;  %v2684_v62 = vpack.c.bf16 %v2652_v40, %v2652_v40 }
 0x2d9   :  { %v2683_v11 = vpack.c.bf16 %v2651_v0, %v2651_v0 }
 0x2da   :  { %2913 = vmatmul.bf16.gmra.mxu2 %v7917_v54  ;;  %5609 = vpow2.f32 %v4947_v20  ;;  %v2768_v1 = vunpack.c.l.b16 %v2684_v62 }
 0x2db   :  { %5611 = vrcp.f32 %v7920_v38 }
 0x2dc   :  { %v7928_v37 = vpop.f32.mrf.mxu2  ;;  %5613 = vpow2.f32 %v4948_v10 }
 0x2e0   :  { %v5610_v44 = vpop.eup %5609 }
 0x2e1   :  { %v7932_v22 = vadd.f32 1.0, %v5610_v44  ;;  %v7939_v35 = vpop.eup %5611  ;;  %v2767_v44 = vunpack.c.l.b16 %v2683_v11 }
 0x2e2   :  { %v5614_v14 = vpop.eup %5613  ;;  %v2538_v2 = vmul.f32 %v7939_v35, %v7920_v38  ;;  %vm2543_vm9 = vweird.f32 %v7939_v35 }
 0x2e3   :  { %5615 = vrcp.f32 %v7932_v22  ;;  %v7959_v30 = vadd.f32 1.0, %v5614_v14  ;;  %v2561_v16 = vand.u32 2147483647, %v7932_v22  ;;  %v2563_v9 = vand.u32 2147483648, %v7932_v22  ;;  %vm2544_vm13 = vmor %vm2542_vm12, %vm2543_vm9 }
 0x2e4   :  { %v1982_v46 = vpop.xlane.xlu2 %1981  ;;  %v2539_v29 = vsub.f32 1.0, %v2538_v2  ;;  %vm2557_vm10 = vweird.f32 %v7932_v22  ;;  %v7992_v15 = vpack.c.b16 %v2768_v1, %v2767_v44 }
 0x2e5   :  { %v4949_v42 = vmul.f32 -1.442695, %v1982_v46  ;;  %vm2562_vm14 = vcmp.eq.f32.partialorder %v2561_v16, 8.507059e+37  ;;  %v2564_v7 = vor.u32 1.1754944e-38, %v2563_v9  ;;  %vm2572_vm3 = vweird.f32 %v7959_v30 }
 0x2e6   :  { %v1984_v43 = vpop.xlane.xlu0 %1983  ;;  %v2540_v20 = vmul.f32 %v7939_v35, %v2539_v29  ;;  %v2576_v9 = vand.u32 2147483647, %v7959_v30 }
 0x2e7   :  { %5617 = vpow2.f32 %v4949_v42  ;;  %v4950_v60 = vmul.f32 -1.442695, %v1984_v43  ;;  %v8014_v43 = vadd.f32 %v8004_v53, %v7797_v39 }
 0x2e8   :  { %5619 = vrcp.f32 %v7959_v30  ;;  %v2541_v27 = vadd.f32 %v7939_v35, %v2540_v20  ;;  %vm2577_vm7 = vcmp.eq.f32.partialorder %v2576_v9, 8.507059e+37 }
 0x2e9   :  { %v5616_v49 = vpop.eup %5615  ;;  %v7961_v50 = vpop.f32.mrf.mxu2  ;;  %5621 = vpow2.f32 %v4950_v60  ;;  %v4984_v11 = vmul.f32 -1.442695, %v8014_v43 }
 0x2ea   :  { %v2553_v3 = vmul.f32 %v5616_v49, %v7932_v22  ;;  %2918 = vmatmul.bf16.gmra.mxu2 %v7956_v17  ;;  %vm2558_vm8 = vweird.f32 %v5616_v49  ;;  %v2545_v46 = vsel %vm2544_vm13, %v7939_v35, %v2541_v27  ;;  %v9629_v35 = vld [vmem:[#allocation5_spill] sm:$0xff] }
 0x2eb   :  { %vm7982_vm11 = vmor %vm2557_vm10, %vm2558_vm8  ;;  %v2550_v42 = vsel %vm2547_vm15, %v2549_v48, %v2545_v46  ;;  %v8052_v46 = vadd.f32 %v8004_v53, %v7961_v50 }
 0x2ec   :  { %v2554_v58 = vsub.f32 1.0, %v2553_v3  ;;  %v2653_v61 = vmul.f32 %v2550_v42, %v9629_v35 }
 0x2ed   :  { %v5618_v55 = vpop.eup %5617 }
 0x2ee   :  { %v7968_v36 = vadd.f32 1.0, %v5618_v55  ;;  %v2555_v18 = vmul.f32 %v5616_v49, %v2554_v58  ;;  %v7977_v10 = vpop.eup %5619  ;;  %v2685_v0 = vpack.c.bf16 %v2653_v61, %v2653_v61  ;;  %v4990_v61 = vmul.f32 -1.442695, %v8052_v46 }
 0x2ef   :  { %v5622_v22 = vpop.eup %5621  ;;  %v2568_v28 = vmul.f32 %v7977_v10, %v7959_v30  ;;  %vm2573_vm1 = vweird.f32 %v7977_v10 }
 0x2f0   :  { %5623 = vrcp.f32 %v7968_v36  ;;  %v2556_v6 = vadd.f32 %v5616_v49, %v2555_v18  ;;  %v7994_v45 = vadd.f32 1.0, %v5622_v22  ;;  %v2593_v62 = vand.u32 2147483648, %v7968_v36  ;;  %vm2574_vm5 = vmor %vm2572_vm3, %vm2573_vm1 }
 0x2f1   :  { %v7979_v51 = vpop.f32.mrf.mxu2  ;;  %v2569_v63 = vsub.f32 1.0, %v2568_v28  ;;  %vm2587_vm2 = vweird.f32 %v7968_v36  ;;  %v2591_v39 = vand.u32 2147483647, %v7968_v36  ;;  %v2769_v16 = vunpack.c.l.b16 %v2685_v0 }
 0x2f2   :  { %v2560_v41 = vsel %vm7982_vm11, %v5616_v49, %v2556_v6  ;;  %5625 = vrcp.f32 %v7994_v45  ;;  %v2578_v6 = vand.u32 2147483648, %v7959_v30  ;;  %v8042_v22 = vadd.f32 %v8004_v53, %v7832_v56 }
 0x2f3   :  { %v2565_v38 = vsel %vm2562_vm14, %v2564_v7, %v2560_v41  ;;  %v2570_v3 = vmul.f32 %v7977_v10, %v2569_v63  ;;  %vm2592_vm6 = vcmp.eq.f32.partialorder %v2591_v39, 8.507059e+37  ;;  %v2606_v7 = vand.u32 2147483647, %v7994_v45 }
 0x2f4   :  { %v1986_v31 = vpop.xlane.xlu1 %1985  ;;  %v2654_v2 = vmul.f32 %v2565_v38, %v7519_v26  ;;  %vm2602_vm9 = vweird.f32 %v7994_v45  ;;  %v4985_v42 = vmul.f32 -1.442695, %v8042_v22 }
 0x2f5   :  { %v4951_v52 = vmul.f32 -1.442695, %v1986_v31  ;;  %v2571_v18 = vadd.f32 %v7977_v10, %v2570_v3  ;;  %v2579_v31 = vor.u32 1.1754944e-38, %v2578_v6  ;;  %vm2607_vm11 = vcmp.eq.f32.partialorder %v2606_v7, 8.507059e+37 }
 0x2f6   :  { %v5624_v34 = vpop.eup %5623  ;;  %v2686_v29 = vpack.c.bf16 %v2654_v2, %v2654_v2 }
 0x2f7   :  { %v2583_v57 = vmul.f32 %v5624_v34, %v7968_v36  ;;  %5627 = vpow2.f32 %v4951_v52  ;;  %vm2588_vm0 = vweird.f32 %v5624_v34  ;;  %v2594_v36 = vor.u32 1.1754944e-38, %v2593_v62 }
 0x2f8   :  { %v8009_v4 = vpop.eup %5625  ;;  %v2770_v20 = vunpack.c.l.b16 %v2686_v29  ;;  %vm2589_vm4 = vmor %vm2587_vm2, %vm2588_vm0  ;;  %v2575_v44 = vsel %vm2574_vm5, %v7977_v10, %v2571_v18 }
 0x2f9   :  { %v2584_v14 = vsub.f32 1.0, %v2583_v57  ;;  %v2598_v26 = vmul.f32 %v8009_v4, %v7994_v45  ;;  %vm2603_vm8 = vweird.f32 %v8009_v4  ;;  %v2580_v52 = vsel %vm2577_vm7, %v2579_v31, %v2575_v44 }
 0x2fa   :  { %2923 = vmatmul.bf16.gmra.mxu2 %v7992_v15  ;;  %v8035_v8 = vpack.c.b16 %v2770_v20, %v2769_v16  ;;  %vm8054_vm10 = vmor %vm2602_vm9, %vm2603_vm8  ;;  %v2655_v38 = vmul.f32 %v2580_v52, %v7527_v24  ;;  %v8069_v24 = vadd.f32 %v8004_v53, %v7928_v37  ;;  %v8087_v44 = vadd.f32 %v8004_v53, %v7847_v21 }
 0x2fb   :  { %v2585_v47 = vmul.f32 %v5624_v34, %v2584_v14  ;;  %v2599_v55 = vsub.f32 1.0, %v2598_v26  ;;  %v8098_v52 = vadd.f32 %v8004_v53, %v7911_v59 }
 0x2fc   :  { %v2687_v3 = vpack.c.bf16 %v2655_v38, %v2655_v38  ;;  %v4989_v62 = vmul.f32 -1.442695, %v8069_v24 }
 0x2fd   :  { %v8007_v49 = vpop.f32.mrf.mxu2  ;;  %v5628_v40 = vpop.eup %5627  ;;  %v2586_v60 = vadd.f32 %v5624_v34, %v2585_v47  ;;  %v2600_v27 = vmul.f32 %v8009_v4, %v2599_v55 }
 0x2fe   :  { %v8018_v58 = vadd.f32 1.0, %v5628_v40  ;;  %v2771_v20 = vunpack.c.l.b16 %v2687_v3  ;;  %v8111_v59 = vadd.f32 %v8004_v53, %v8007_v49 }
 0x2ff   :  { %v2590_v1 = vsel %vm2589_vm4, %v5624_v34, %v2586_v60  ;;  %v2601_v30 = vadd.f32 %v8009_v4, %v2600_v27  ;;  %v2608_v34 = vand.u32 2147483648, %v7994_v45 }
 0x300   :  { %5629 = vrcp.f32 %v8018_v58  ;;  %v2595_v12 = vsel %vm2592_vm6, %v2594_v36, %v2590_v1  ;;  %v2623_v63 = vand.u32 2147483648, %v8018_v58  ;;  %vm2617_vm13 = vweird.f32 %v8018_v58 }
 0x301   :  { %5631 = vpow2.f32 %v4984_v11  ;;  %v2656_v28 = vmul.f32 %v2595_v12, %v7596_v23  ;;  %v2605_v57 = vsel %vm8054_vm10, %v8009_v4, %v2601_v30  ;;  %v2609_v45 = vor.u32 1.1754944e-38, %v2608_v34 }
 0x302   :  { %v2621_v4 = vand.u32 2147483647, %v8018_v58  ;;  %5633 = vpow2.f32 %v4985_v42  ;;  %v2624_v0 = vor.u32 1.1754944e-38, %v2623_v63  ;;  %v4986_v34 = vmul.f32 -1.442695, %v8087_v44 }
 0x303   :  { %v2688_v2 = vpack.c.bf16 %v2656_v28, %v2656_v28  ;;  %v2610_v47 = vsel %vm2607_vm11, %v2609_v45, %v2605_v57  ;;  %v4988_v57 = vmul.f32 -1.442695, %v8098_v52  ;;  %v8120_v63 = vadd.f32 %v8004_v53, %v7979_v51 }
 0x304   :  { %v2657_v55 = vmul.f32 %v2610_v47, %v7618_v19  ;;  %vm2622_vm15 = vcmp.eq.f32.partialorder %v2621_v4, 8.507059e+37 }
 0x305   :  { %v8031_v13 = vpop.f32.mrf.mxu2  ;;  %v2772_v60 = vunpack.c.l.b16 %v2688_v2 }
 0x306   :  { %v5630_v41 = vpop.eup %5629  ;;  %v2689_v16 = vpack.c.bf16 %v2657_v55, %v2657_v55  ;;  %v8133_v51 = vadd.f32 %v8004_v53, %v8031_v13 }
 0x307   :  { %v2613_v10 = vmul.f32 %v5630_v41, %v8018_v58  ;;  %v5632_v50 = vpop.eup %5631  ;;  %vm2618_vm12 = vweird.f32 %v5630_v41  ;;  %v2789_v6 = vpack.c.b16 %v2772_v60, %v2771_v20 }
 0x308   :  { %v8075_v26 = vadd.f32 1.0, %v5632_v50  ;;  %vm2619_vm14 = vmor %vm2617_vm13, %vm2618_vm12  ;;  %v5634_v9 = vpop.eup %5633  ;;  %v2773_v12 = vunpack.c.l.b16 %v2689_v16 }
 0x309   :  { %v2614_v48 = vsub.f32 1.0, %v2613_v10  ;;  %v8091_v30 = vadd.f32 1.0, %v5634_v9 }
 0x30a   :  { %2928 = vmatmul.bf16.gmra.mxu2 %v8035_v8  ;;  %vm3077_vm0 = vweird.f32 %v8075_v26 }
 0x30b   :  { %v2615_v35 = vmul.f32 %v5630_v41, %v2614_v48 }
 0x30d   :  { %v2889_v23 = vpop.f32.mrf.mxu2  ;;  %v2616_v40 = vadd.f32 %v5630_v41, %v2615_v35  ;;  %v8127_v35 = vadd.f32 %v8004_v53, %v7882_v33  ;;  %v4991_v33 = vmul.f32 -1.442695, %v8120_v63 }
 0x30e   :  { %v8065_v14 = vadd.f32 %v8004_v53, %v2889_v23 }
 0x30f   :  { %v2620_v37 = vsel %vm2619_vm14, %v5630_v41, %v2616_v40  ;;  %v4987_v20 = vmul.f32 -1.442695, %v8127_v35 }
 0x310   :  { %v4994_v29 = vmul.f32 -1.442695, %v8065_v14  ;;  %v2625_v18 = vsel %vm2622_vm15, %v2624_v0, %v2620_v37 }
 0x311   :  { %v2658_v11 = vmul.f32 %v2625_v18, %v7689_v5 }
 0x312   :  { %5635 = vpow2.f32 %v4994_v29  ;;  %v3083_v29 = vand.u32 2147483648, %v8075_v26 }
 0x313   :  { %5637 = vpow2.f32 %v4990_v61  ;;  %v2690_v1 = vpack.c.bf16 %v2658_v11, %v2658_v11  ;;  %v4992_v61 = vmul.f32 -1.442695, %v8111_v59 }
 0x314   :  { %5639 = vrcp.f32 %v8075_v26 }
 0x315   :  { %v2891_v39 = vpop.f32.mrf.mxu2  ;;  %5641 = vpow2.f32 %v4989_v62  ;;  %v2774_v5 = vunpack.c.l.b16 %v2690_v1 }
 0x316   :  { %v8082_v58 = vadd.f32 %v8004_v53, %v2891_v39  ;;  %v4993_v39 = vmul.f32 -1.442695, %v8133_v51 }
 0x317   :  { %v2790_v21 = vpack.c.b16 %v2774_v5, %v2773_v12 }
 0x318   :  { %v5636_v27 = vpop.eup %5635  ;;  %v4995_v19 = vmul.f32 -1.442695, %v8082_v58 }
 0x319   :  { %v5638_v36 = vpop.eup %5637  ;;  %v8089_v31 = vadd.f32 1.0, %v5636_v27  ;;  %4063 = vmatpush.bf16.msrb.mxu3 %v2790_v21 }
 0x31a   :  { %5643 = vpow2.f32 %v4995_v19  ;;  %2933 = vmatmul.bf16.gmra.mxu2 %v2789_v6  ;;  %v8094_v41 = vpop.eup %5639  ;;  %v8100_v7 = vadd.f32 1.0, %v5638_v36 }
 0x31b   :  { %5645 = vrcp.f32 %v8089_v31  ;;  %v5642_v28 = vpop.eup %5641  ;;  %v3073_v48 = vmul.f32 %v8094_v41, %v8075_v26  ;;  %v3233_v3 = vand.u32 2147483648, %v8089_v31  ;;  %v3231_v13 = vand.u32 2147483647, %v8089_v31 }
 0x31c   :  { %5647 = vrcp.f32 %v8091_v30  ;;  %v8116_v45 = vadd.f32 1.0, %v5642_v28  ;;  %vm3078_vm2 = vweird.f32 %v8094_v41  ;;  %vm3227_vm3 = vweird.f32 %v8089_v31 }
 0x31d   :  { %v2894_v10 = vpop.f32.mrf.mxu2  ;;  %5649 = vrcp.f32 %v8100_v7  ;;  %4064 = vmatpush.bf16.msrb.mxu3 %v2789_v6  ;;  %v3074_v2 = vsub.f32 1.0, %v3073_v48  ;;  %v3234_v9 = vor.u32 1.1754944e-38, %v3233_v3  ;;  %vm3232_vm5 = vcmp.eq.f32.partialorder %v3231_v13, 8.507059e+37  ;;  %vm8183_vm6 = vmor %vm3077_vm0, %vm3078_vm2 }
 0x31e   :  { %v8104_v56 = vadd.f32 %v8004_v53, %v2894_v10  ;;  %5651 = vpow2.f32 %v4986_v34  ;;  %v3081_v10 = vand.u32 2147483647, %v8075_v26  ;;  %v8196_v26 = vor.u32 1.1754944e-38, %v3083_v29 }
 0x31f   :  { %v3075_v62 = vmul.f32 %v8094_v41, %v3074_v2  ;;  %vm3152_vm15 = vweird.f32 %v8116_v45  ;;  %vm3167_vm0 = vweird.f32 %v8100_v7 }
 0x320   :  { %v5644_v38 = vpop.eup %5643  ;;  %v4996_v42 = vmul.f32 -1.442695, %v8104_v56  ;;  %vm8229_vm13 = vcmp.eq.f32.partialorder %v3081_v10, 8.507059e+37  ;;  %v3173_v10 = vand.u32 2147483648, %v8100_v7 }
 0x321   :  { %v5646_v23 = vpop.eup %5645  ;;  %v8122_v50 = vadd.f32 1.0, %v5644_v38  ;;  %4065 = vmatpush.bf16.msrb.mxu3 %v8035_v8  ;;  %v8165_v5 = vadd.f32 %v8094_v41, %v3075_v62 }
 0x322   :  { %v3223_v49 = vmul.f32 %v5646_v23, %v8089_v31  ;;  %5653 = vpow2.f32 %v4996_v42  ;;  %v8135_v4 = vpop.eup %5647  ;;  %vm3228_vm1 = vweird.f32 %v5646_v23 }
 0x323   :  { %5655 = vrcp.f32 %v8122_v50  ;;  %v8142_v0 = vpop.eup %5649  ;;  %vm3229_vm4 = vmor %vm3227_vm3, %vm3228_vm1  ;;  %v3248_v42 = vand.u32 2147483648, %v8122_v50  ;;  %vm3242_vm8 = vweird.f32 %v8122_v50 }
 0x324   :  { %5657 = vpow2.f32 %v4988_v57  ;;  %v3224_v47 = vsub.f32 1.0, %v3223_v49  ;;  %v5652_v55 = vpop.eup %5651  ;;  %v3163_v8 = vmul.f32 %v8142_v0, %v8100_v7  ;;  %v3246_v57 = vand.u32 2147483647, %v8122_v50 }
 0x325   :  { %5659 = vrcp.f32 %v8116_v45  ;;  %v2896_v40 = vpop.f32.mrf.mxu2  ;;  %4066 = vmatpush.bf16.msrb.mxu3 %v7992_v15  ;;  %v8167_v12 = vadd.f32 1.0, %v5652_v55  ;;  %v8175_v15 = vld [vmem:[%s9456_s10] ss:$0 sm:$0xff]  ;;  %vm3168_vm11 = vweird.f32 %v8142_v0 }
 0x326   :  { %v3225_v60 = vmul.f32 %v5646_v23, %v3224_v47  ;;  %v8146_v37 = vadd.f32 %v8004_v53, %v2896_v40  ;;  %5661 = vpow2.f32 %v4992_v61  ;;  %v3164_v38 = vsub.f32 1.0, %v3163_v8  ;;  %vm8245_vm1 = vmor %vm3167_vm0, %vm3168_vm11 }
 0x327   :  { %5663 = vpow2.f32 %v4991_v33  ;;  %v3080_v33 = vsel %vm8183_vm6, %v8094_v41, %v8165_v5  ;;  %vm3247_vm10 = vcmp.eq.f32.partialorder %v3246_v57, 8.507059e+37 }
 0x328   :  { %v5654_v18 = vpop.eup %5653  ;;  %v3226_v11 = vadd.f32 %v5646_v23, %v3225_v60  ;;  %v4997_v6 = vmul.f32 -1.442695, %v8146_v37  ;;  %v3165_v29 = vmul.f32 %v8142_v0, %v3164_v38 }
 0x329   :  { %v5656_v16 = vpop.eup %5655  ;;  %v8158_v1 = vadd.f32 1.0, %v5654_v18  ;;  %4067 = vmatpush.bf16.msrb.mxu3 %v7956_v17 }
 0x32a   :  { %v5658_v27 = vpop.eup %5657  ;;  %v3230_v19 = vsel %vm3229_vm4, %v5646_v23, %v3226_v11  ;;  %v3238_v36 = vmul.f32 %v5656_v16, %v8122_v50  ;;  %5665 = vpow2.f32 %v4997_v6  ;;  %2938 = vmatmul.bf16.gmra.mxu2 %v2790_v21  ;;  %vm3243_vm7 = vweird.f32 %v5656_v16 }
 0x32b   :  { %v8162_v31 = vpop.eup %5659  ;;  %v3235_v34 = vsel %vm3232_vm5, %v3234_v9, %v3230_v19  ;;  %5667 = vrcp.f32 %v8158_v1  ;;  %v8205_v62 = vadd.f32 1.0, %v5658_v27  ;;  %vm3244_vm9 = vmor %vm3242_vm8, %vm3243_vm7  ;;  %vm3257_vm2 = vweird.f32 %v8158_v1 }
 0x32c   :  { %5669 = vpow2.f32 %v4993_v39  ;;  %v3562_v28 = vmul.f32 %v3235_v34, %v8065_v14  ;;  %v3239_v48 = vsub.f32 1.0, %v3238_v36  ;;  %v5662_v21 = vpop.eup %5661  ;;  %v3148_v3 = vmul.f32 %v8162_v31, %v8116_v45 }
 0x32d   :  { %5671 = vpow2.f32 %v4987_v20  ;;  %v2899_v23 = vpop.f32.mrf.mxu2  ;;  %v5664_v47 = vpop.eup %5663  ;;  %v8201_v60 = vadd.f32 1.0, %v5662_v21  ;;  %v3249_v20 = vor.u32 1.1754944e-38, %v3248_v42  ;;  %4068 = vmatpush.bf16.msrb.mxu3 %v7917_v54  ;;  %vm3153_vm12 = vweird.f32 %v8162_v31 }
 0x32e   :  { %v3240_v49 = vmul.f32 %v5656_v16, %v3239_v48  ;;  %v8188_v2 = vadd.f32 %v8004_v53, %v2899_v23  ;;  %v3598_v61 = vmul.f32 %v8175_v15, %v3562_v28  ;;  %5673 = vrcp.f32 %v8167_v12  ;;  %vm8292_vm8 = vmor %vm3152_vm15, %vm3153_vm12 }
 0x32f   :  { %v8215_v8 = vadd.f32 1.0, %v5664_v47  ;;  %v3149_v27 = vsub.f32 1.0, %v3148_v3  ;;  %v3166_v54 = vadd.f32 %v8142_v0, %v3165_v29  ;;  %v3261_v28 = vand.u32 2147483647, %v8158_v1 }
 0x330   :  { %v5666_v40 = vpop.eup %5665  ;;  %v3241_v13 = vadd.f32 %v5656_v16, %v3240_v49  ;;  %v4998_v17 = vmul.f32 -1.442695, %v8188_v2  ;;  %3640 = vadd.xlane.f32.xlu0 %v3598_v61  ;;  %v3263_v48 = vand.u32 2147483648, %v8158_v1  ;;  %v3171_v23 = vand.u32 2147483647, %v8100_v7 }
 0x331   :  { %v5668_v55 = vpop.eup %5667  ;;  %v8209_v18 = vadd.f32 1.0, %v5666_v40  ;;  %4069 = vmatpush.bf16.msrb.mxu3 %v7872_v32  ;;  %v3150_v49 = vmul.f32 %v8162_v31, %v3149_v27  ;;  %v3170_v7 = vsel %vm8245_vm1, %v8142_v0, %v3166_v54  ;;  %vm3262_vm4 = vcmp.eq.f32.partialorder %v3261_v28, 8.507059e+37 }
 0x332   :  { %v5670_v39 = vpop.eup %5669  ;;  %v3245_v11 = vsel %vm3244_vm9, %v5656_v16, %v3241_v13  ;;  %v3253_v6 = vmul.f32 %v5668_v55, %v8158_v1  ;;  %5675 = vpow2.f32 %v4998_v17  ;;  %vm3258_vm14 = vweird.f32 %v5668_v55 }
 0x333   :  { %v8213_v50 = vpop.eup %5671  ;;  %v3250_v9 = vsel %vm3247_vm10, %v3249_v20, %v3245_v11  ;;  %5677 = vrcp.f32 %v8209_v18  ;;  %v8225_v34 = vadd.f32 1.0, %v5670_v39  ;;  %vm3259_vm3 = vmor %vm3257_vm2, %vm3258_vm14  ;;  %v3264_v13 = vor.u32 1.1754944e-38, %v3263_v48 }
 0x334   :  { %5679 = vrcp.f32 %v8201_v60  ;;  %v3563_v16 = vmul.f32 %v3250_v9, %v8082_v58  ;;  %v3254_v19 = vsub.f32 1.0, %v3253_v6  ;;  %v8222_v36 = vpop.eup %5673  ;;  %v3174_v39 = vor.u32 1.1754944e-38, %v3173_v10 }
 0x335   :  { %v2901_v21 = vpop.f32.mrf.mxu2  ;;  %5681 = vrcp.f32 %v8215_v8  ;;  %4070 = vmatpush.bf16.msrb.mxu3 %v7827_v25  ;;  %v3158_v0 = vand.u32 2147483648, %v8116_v45  ;;  %vm3172_vm5 = vcmp.eq.f32.partialorder %v3171_v23, 8.507059e+37  ;;  %v3151_v27 = vadd.f32 %v8162_v31, %v3150_v49 }
 0x336   :  { %v3255_v57 = vmul.f32 %v5668_v55, %v3254_v19  ;;  %v8234_v58 = vadd.f32 %v8004_v53, %v2901_v21  ;;  %v3599_v42 = vmul.f32 %v8175_v15, %v3563_v16  ;;  %5683 = vrcp.f32 %v8225_v34 }
 0x337   :  { %v3175_v16 = vsel %vm3172_vm5, %v3174_v39, %v3170_v7  ;;  %v3278_v19 = vand.u32 2147483648, %v8209_v18  ;;  %v3156_v25 = vand.u32 2147483647, %v8116_v45  ;;  %v3276_v21 = vand.u32 2147483647, %v8209_v18 }
 0x338   :  { %v5676_v61 = vpop.eup %5675  ;;  %v3256_v32 = vadd.f32 %v5668_v55, %v3255_v57  ;;  %v4999_v3 = vmul.f32 -1.442695, %v8234_v58  ;;  %3642 = vadd.xlane.f32.xlu1 %v3599_v42  ;;  %v3085_v42 = vsel %vm8229_vm13, %v8196_v26, %v3080_v33  ;;  %vm3272_vm9 = vweird.f32 %v8209_v18 }
 0x339   :  { %v5678_v40 = vpop.eup %5677  ;;  %v8257_v17 = vadd.f32 1.0, %v5676_v61  ;;  %v3155_v41 = vsel %vm8292_vm8, %v8162_v31, %v3151_v27  ;;  %v3159_v5 = vor.u32 1.1754944e-38, %v3158_v0  ;;  %v3558_v33 = vmul.f32 %v3175_v16, %v8052_v46 }
 0x33a   :  { %v8259_v29 = vpop.eup %5679  ;;  %v3260_v20 = vsel %vm3259_vm3, %v5668_v55, %v3256_v32  ;;  %v3268_v1 = vmul.f32 %v5678_v40, %v8209_v18  ;;  %5685 = vpow2.f32 %v4999_v3  ;;  %vm3273_vm7 = vweird.f32 %v5678_v40 }
 0x33b   :  { %v3265_v11 = vsel %vm3262_vm4, %v3264_v13, %v3260_v20  ;;  %5687 = vrcp.f32 %v8257_v17  ;;  %v3193_v55 = vmul.f32 %v8259_v29, %v8201_v60  ;;  %v8273_v28 = vpop.eup %5681  ;;  %vm3274_vm6 = vmor %vm3272_vm9, %vm3273_vm7  ;;  %v3279_v45 = vor.u32 1.1754944e-38, %v3278_v19 }
 0x33c   :  { %v3564_v6 = vmul.f32 %v3265_v11, %v8104_v56  ;;  %v3269_v9 = vsub.f32 1.0, %v3268_v1  ;;  %v8277_v57 = vpop.eup %5683  ;;  %5689 = vrcp.f32 %v8205_v62  ;;  %vm3277_vm10 = vcmp.eq.f32.partialorder %v3276_v21, 8.507059e+37 }
 0x33d   :  { %v8270_v54 = vpop.f32.mrf.mxu2  ;;  %v3194_v26 = vsub.f32 1.0, %v3193_v55  ;;  %vm3157_vm11 = vcmp.eq.f32.partialorder %v3156_v25, 8.507059e+37  ;;  %v8306_v18 = vadd.f32 1.0, %v8213_v50  ;;  %v3208_v46 = vmul.f32 %v8277_v57, %v8225_v34 }
 0x33e   :  { %v3270_v48 = vmul.f32 %v5678_v40, %v3269_v9  ;;  %v3600_v56 = vmul.f32 %v8175_v15, %v3564_v6  ;;  %v3160_v31 = vsel %vm3157_vm11, %v3159_v5, %v3155_v41  ;;  %v8318_v20 = vmul.f32 %v8222_v36, %v8167_v12 }
 0x33f   :  { %v3195_v50 = vmul.f32 %v8259_v29, %v3194_v26  ;;  %v3293_v1 = vand.u32 2147483648, %v8257_v17  ;;  %v3594_v11 = vmul.f32 %v8175_v15, %v3558_v33  ;;  %v8328_v9 = vmul.f32 %v3085_v42, %v8014_v43 }
 0x340   :  { %v5686_v10 = vpop.eup %5685  ;;  %v3271_v49 = vadd.f32 %v5678_v40, %v3270_v48  ;;  %3644 = vadd.xlane.f32.xlu1 %v3600_v56  ;;  %v3557_v27 = vmul.f32 %v3160_v31, %v8069_v24  ;;  %v3209_v16 = vsub.f32 1.0, %v3208_v46  ;;  %vm3287_vm13 = vweird.f32 %v8257_v17 }
 0x341   :  { %v5688_v14 = vpop.eup %5687  ;;  %v8302_v38 = vadd.f32 1.0, %v5686_v10  ;;  %v3196_v48 = vadd.f32 %v8259_v29, %v3195_v50  ;;  %vm3198_vm14 = vweird.f32 %v8259_v29  ;;  %v3203_v21 = vand.u32 2147483648, %v8201_v60 }
 0x342   :  { %v3275_v61 = vsel %vm3274_vm6, %v5678_v40, %v3271_v49  ;;  %v3283_v47 = vmul.f32 %v5688_v14, %v8257_v17  ;;  %v3178_v40 = vmul.f32 %v8273_v28, %v8215_v8  ;;  %v8314_v13 = vpop.eup %5689  ;;  %vm3288_vm12 = vweird.f32 %v5688_v14 }
 0x343   :  { %v3280_v32 = vsel %vm3277_vm10, %v3279_v45, %v3275_v61  ;;  %5691 = vrcp.f32 %v8302_v38  ;;  %vm3289_vm15 = vmor %vm3287_vm13, %vm3288_vm12  ;;  %v3294_v43 = vor.u32 1.1754944e-38, %v3293_v1  ;;  %v3104_v56 = vsub.f32 1.0, %v8318_v20 }
 0x344   :  { %v3565_v3 = vmul.f32 %v3280_v32, %v8146_v37  ;;  %v3284_v7 = vsub.f32 1.0, %v3283_v47  ;;  %v3291_v37 = vand.u32 2147483647, %v8257_v17  ;;  %5693 = vrcp.f32 %v8306_v18 }
 0x345   :  { %v8322_v39 = vpop.f32.mrf.mxu2  ;;  %v3179_v19 = vsub.f32 1.0, %v3178_v40  ;;  %v3133_v17 = vmul.f32 %v8314_v13, %v8205_v62  ;;  %vm3197_vm1 = vweird.f32 %v8201_v60  ;;  %v3201_v23 = vand.u32 2147483647, %v8201_v60 }
 0x346   :  { %v3285_v0 = vmul.f32 %v5688_v14, %v3284_v7  ;;  %v3601_v6 = vmul.f32 %v8175_v15, %v3565_v3  ;;  %vm3292_vm0 = vcmp.eq.f32.partialorder %v3291_v37, 8.507059e+37  ;;  %vm8343_vm2 = vmor %vm3197_vm1, %vm3198_vm14  ;;  %v3210_v41 = vmul.f32 %v8277_v57, %v3209_v16 }
 0x347   :  { %v3593_v33 = vmul.f32 %v8175_v15, %v3557_v27  ;;  %v3200_v45 = vsel %vm8343_vm2, %v8259_v29, %v3196_v48  ;;  %v3204_v61 = vor.u32 1.1754944e-38, %v3203_v21  ;;  %v3308_v60 = vand.u32 2147483648, %v8302_v38 }
 0x348   :  { %v3286_v55 = vadd.f32 %v5688_v14, %v3285_v0  ;;  %3646 = vadd.xlane.f32.xlu2 %v3601_v6  ;;  %3632 = vadd.xlane.f32.xlu1 %v3594_v11  ;;  %v3180_v32 = vmul.f32 %v8273_v28, %v3179_v19  ;;  %v3134_v3 = vsub.f32 1.0, %v3133_v17  ;;  %vm3202_vm4 = vcmp.eq.f32.partialorder %v3201_v23, 8.507059e+37 }
 0x349   :  { %v5692_v25 = vpop.eup %5691  ;;  %vm3213_vm5 = vweird.f32 %v8277_v57  ;;  %vm3183_vm7 = vweird.f32 %v8273_v28  ;;  %v3205_v29 = vsel %vm3202_vm4, %v3204_v61, %v3200_v45  ;;  %v3211_v7 = vadd.f32 %v8277_v57, %v3210_v41 }
 0x34a   :  { %v3290_v24 = vsel %vm3289_vm15, %v5688_v14, %v3286_v55  ;;  %v3298_v42 = vmul.f32 %v5692_v25, %v8302_v38  ;;  %v8350_v26 = vpop.eup %5693  ;;  %vm3303_vm3 = vweird.f32 %v5692_v25  ;;  %vm3302_vm8 = vweird.f32 %v8302_v38 }
 0x34b   :  { %v3295_v10 = vsel %vm3292_vm0, %v3294_v43, %v3290_v24  ;;  %v3218_v20 = vand.u32 2147483648, %v8225_v34  ;;  %vm3304_vm9 = vmor %vm3302_vm8, %vm3303_vm3  ;;  %v3309_v50 = vor.u32 1.1754944e-38, %v3308_v60  ;;  %v3181_v1 = vadd.f32 %v8273_v28, %v3180_v32 }
 0x34c   :  { %v3566_v5 = vmul.f32 %v3295_v10, %v8188_v2  ;;  %v3299_v14 = vsub.f32 1.0, %v3298_v42  ;;  %v3306_v2 = vand.u32 2147483647, %v8302_v38  ;;  %v3188_v11 = vand.u32 2147483648, %v8215_v8 }
 0x34d   :  { %v8356_v47 = vpop.f32.mrf.mxu2  ;;  %vm3212_vm6 = vweird.f32 %v8225_v34  ;;  %v3216_v0 = vand.u32 2147483647, %v8225_v34  ;;  %v3560_v6 = vmul.f32 %v3205_v29, %v8111_v59  ;;  %vm3182_vm12 = vweird.f32 %v8215_v8 }
 0x34e   :  { %v3300_v31 = vmul.f32 %v5692_v25, %v3299_v14  ;;  %v3602_v46 = vmul.f32 %v8175_v15, %v3566_v5  ;;  %vm3307_vm10 = vcmp.eq.f32.partialorder %v3306_v2, 8.507059e+37  ;;  %vm8373_vm11 = vmor %vm3212_vm6, %vm3213_vm5  ;;  %v3186_v16 = vand.u32 2147483647, %v8215_v8 }
 0x34f   :  { %v3135_v55 = vmul.f32 %v8314_v13, %v3134_v3  ;;  %v3215_v34 = vsel %vm8373_vm11, %v8277_v57, %v3211_v7  ;;  %vm8386_vm13 = vmor %vm3182_vm12, %vm3183_vm7  ;;  %v3105_v48 = vmul.f32 %v8222_v36, %v3104_v56  ;;  %v3219_v8 = vor.u32 1.1754944e-38, %v3218_v20 }
 0x350   :  { %v3301_v40 = vadd.f32 %v5692_v25, %v3300_v31  ;;  %3630 = vadd.xlane.f32.xlu1 %v3593_v33  ;;  %3648 = vadd.xlane.f32.xlu2 %v3602_v46  ;;  %v3185_v57 = vsel %vm8386_vm13, %v8273_v28, %v3181_v1  ;;  %vm3217_vm14 = vcmp.eq.f32.partialorder %v3216_v0, 8.507059e+37  ;;  %v3588_v43 = vmul.f32 %v8175_v15, %v8328_v9 }
 0x351   :  { %v3189_v42 = vor.u32 1.1754944e-38, %v3188_v11  ;;  %v3220_v17 = vsel %vm3217_vm14, %v3219_v8, %v3215_v34  ;;  %v3596_v56 = vmul.f32 %v8175_v15, %v3560_v6  ;;  %vm3187_vm15 = vcmp.eq.f32.partialorder %v3186_v16, 8.507059e+37 }
 0x352   :  { %v3305_v37 = vsel %vm3304_vm9, %v5692_v25, %v3301_v40  ;;  %v3118_v25 = vmul.f32 %v8350_v26, %v8306_v18  ;;  %v3136_v23 = vadd.f32 %v8314_v13, %v3135_v55  ;;  %vm3138_vm0 = vweird.f32 %v8314_v13 }
 0x353   :  { %v3310_v27 = vsel %vm3307_vm10, %v3309_v50, %v3305_v37  ;;  %v3190_v28 = vsel %vm3187_vm15, %v3189_v42, %v3185_v57  ;;  %v3106_v49 = vadd.f32 %v8222_v36, %v3105_v48  ;;  %vm3108_vm1 = vweird.f32 %v8222_v36 }
 0x354   :  { %v3567_v19 = vmul.f32 %v3310_v27, %v8234_v58  ;;  %v3088_v58 = vmul.f32 %v8135_v4, %v8091_v30  ;;  %v3119_v10 = vsub.f32 1.0, %v3118_v25  ;;  %v3143_v9 = vand.u32 2147483648, %v8205_v62 }
 0x355   :  { %v8393_v21 = vpop.f32.mrf.mxu2  ;;  %v3113_v5 = vand.u32 2147483648, %v8167_v12  ;;  %vm3137_vm2 = vweird.f32 %v8205_v62  ;;  %v3141_v14 = vand.u32 2147483647, %v8205_v62  ;;  %v3561_v33 = vmul.f32 %v3220_v17, %v8133_v51 }
 0x356   :  { %v3603_v24 = vmul.f32 %v8175_v15, %v3567_v19  ;;  %v3089_v41 = vsub.f32 1.0, %v3088_v58  ;;  %vm3107_vm3 = vweird.f32 %v8167_v12  ;;  %v3111_v45 = vand.u32 2147483647, %v8167_v12  ;;  %vm3139_vm4 = vmor %vm3137_vm2, %vm3138_vm0  ;;  %v8463_v58 = vld [vmem:[%s5899_s18] sm:$0x3] }
 0x357   :  { %v3559_v61 = vmul.f32 %v3190_v28, %v8120_v63  ;;  %vm3109_vm5 = vmor %vm3107_vm3, %vm3108_vm1  ;;  %v3140_v60 = vsel %vm3139_vm4, %v8314_v13, %v3136_v23  ;;  %v3120_v32 = vmul.f32 %v8350_v26, %v3119_v10  ;;  %v3144_v2 = vor.u32 1.1754944e-38, %v3143_v9 }
 0x358   :  { %3620 = vadd.xlane.f32.xlu1 %v3588_v43  ;;  %3650 = vadd.xlane.f32.xlu0 %v3603_v24  ;;  %v3110_v31 = vsel %vm3109_vm5, %v8222_v36, %v3106_v49  ;;  %v3090_v51 = vmul.f32 %v8135_v4, %v3089_v41  ;;  %v3114_v46 = vor.u32 1.1754944e-38, %v3113_v5  ;;  %vm3142_vm7 = vcmp.eq.f32.partialorder %v3141_v14, 8.507059e+37 }
 0x359   :  { %3636 = vadd.xlane.f32.xlu2 %v3596_v56  ;;  %v3597_v12 = vmul.f32 %v8175_v15, %v3561_v33  ;;  %vm3112_vm8 = vcmp.eq.f32.partialorder %v3111_v45, 8.507059e+37  ;;  %v3145_v3 = vsel %vm3142_vm7, %v3144_v2, %v3140_v60  ;;  %v3595_v63 = vmul.f32 %v8175_v15, %v3559_v61 }
 0x35a   :  { %v3115_v29 = vsel %vm3112_vm8, %v3114_v46, %v3110_v31  ;;  %v3121_v13 = vadd.f32 %v8350_v26, %v3120_v32  ;;  %vm3123_vm9 = vweird.f32 %v8350_v26  ;;  %v3128_v36 = vand.u32 2147483648, %v8306_v18 }
 0x35b   :  { %v3091_v7 = vadd.f32 %v8135_v4, %v3090_v51  ;;  %vm3093_vm6 = vweird.f32 %v8135_v4  ;;  %v3098_v40 = vand.u32 2147483648, %v8091_v30  ;;  %v3556_v20 = vmul.f32 %v3145_v3, %v8098_v52 }
 0x35c   :  { %v8435_v50 = vadd.f32 %v8004_v53, %v8270_v54  ;;  %vm3122_vm10 = vweird.f32 %v8306_v18  ;;  %v3126_v1 = vand.u32 2147483647, %v8306_v18  ;;  %v3554_v11 = vmul.f32 %v3115_v29, %v8087_v44 }
 0x35d   :  { %v8421_v62 = vpop.f32.mrf.mxu2  ;;  %vm3124_vm11 = vmor %vm3122_vm10, %vm3123_vm9  ;;  %vm3092_vm12 = vweird.f32 %v8091_v30  ;;  %v3096_v0 = vand.u32 2147483647, %v8091_v30  ;;  %v3129_v52 = vor.u32 1.1754944e-38, %v3128_v36  ;;  %v3592_v27 = vmul.f32 %v8175_v15, %v3556_v20 }
 0x35e   :  { %v3125_v37 = vsel %vm3124_vm11, %v8350_v26, %v3121_v13  ;;  %vm3094_vm13 = vmor %vm3092_vm12, %vm3093_vm6  ;;  %v5000_v54 = vmul.f32 -1.442695, %v8435_v50  ;;  %vm3127_vm14 = vcmp.eq.f32.partialorder %v3126_v1, 8.507059e+37  ;;  %v3099_v18 = vor.u32 1.1754944e-38, %v3098_v40 }
 0x35f   :  { %v3095_v38 = vsel %vm3094_vm13, %v8135_v4, %v3091_v7  ;;  %v3590_v44 = vmul.f32 %v8175_v15, %v3554_v11  ;;  %v3130_v16 = vsel %vm3127_vm14, %v3129_v52, %v3125_v37  ;;  %vm3097_vm15 = vcmp.eq.f32.partialorder %v3096_v0, 8.507059e+37  ;;  %v8534_v7 = vld [vmem:[%s9455_s9] ss:$0 sm:$0xff] }
 0x360   :  { %3638 = vadd.xlane.f32.xlu0 %v3597_v12  ;;  %v3100_v55 = vsel %vm3097_vm15, %v3099_v18, %v3095_v38  ;;  %5695 = vpow2.f32 %v5000_v54  ;;  %v3555_v30 = vmul.f32 %v3130_v16, %v8127_v35  ;;  %v8453_v25 = vadd.f32 %v8004_v53, %v8356_v47 }
 0x361   :  { %3634 = vadd.xlane.f32.xlu2 %v3595_v63  ;;  %v3553_v26 = vmul.f32 %v3100_v55, %v8042_v22  ;;  %v8459_v8 = vadd.f32 %v8004_v53, %v8322_v39  ;;  %v3941_v35 = vlaneseq  ;;  %v8473_v42 = vperm.slane %v8463_v58, 0 }
 0x362   :  { %v3591_v34 = vmul.f32 %v8175_v15, %v3555_v30  ;;  %9646 = vst [vmem:[#allocation5_spill] sm:$0xff] %v8453_v25  ;;  %v5002_v22 = vmul.f32 -1.442695, %v8453_v25  ;;  %v8480_v17 = vadd.f32 %v8004_v53, %v8421_v62  ;;  %v8486_v56 = vadd.f32 %v8004_v53, %v8393_v21 }
 0x363   :  { %v3589_v19 = vmul.f32 %v8175_v15, %v3553_v26  ;;  %9647 = vst [vmem:[#allocation6_spill] sm:$0xff] %v8459_v8  ;;  %v8465_v43 = vshrl.u32 %v3941_v35, 7  ;;  %v5001_v47 = vmul.f32 -1.442695, %v8459_v8  ;;  %v9650_v9 = vmov 0 }
 0x364   :  { %9648 = vst [vmem:[#allocation7_spill] sm:$0xff] %v8480_v17  ;;  %v5004_v5 = vmul.f32 -1.442695, %v8480_v17  ;;  %v9467_v21 = vmov 1.0|1.0   ;;  %v9654_v20 = vmov 0 }
 0x365   :  { %v2916_v6 = vpop.f32.mrf.mxu2  ;;  %v8476_v39 = vadd.s32 8, %v8465_v43  ;;  %vm3962_vm0 = vcmp.eq.s32.totalorder %v8465_v43, %v8473_v42  ;;  %9649 = vst [vmem:[#allocation8_spill] sm:$0xff] %v8486_v56  ;;  %v8514_v62 = vadd.s32 16, %v8465_v43  ;;  %v8517_v51 = vadd.s32 24, %v8465_v43 }
 0x366   :  { %v5696_v59 = vpop.eup %5695  ;;  %v8470_v24 = vadd.f32 %v8004_v53, %v2916_v6  ;;  %v9671_v17 = vmov 0 }
 0x367   :  { %v8455_v48 = vadd.f32 1.0, %v5696_v59  ;;  %vm3964_vm1 = vcmp.eq.s32.totalorder %v8476_v39, %v8473_v42  ;;  %vm3966_vm3 = vcmp.eq.s32.totalorder %v8514_v62, %v8473_v42  ;;  %vm3968_vm4 = vcmp.eq.s32.totalorder %v8517_v51, %v8473_v42 }
 0x368   :  { %3628 = vadd.xlane.f32.xlu0 %v3592_v27  ;;  %v5005_v23 = vmul.f32 -1.442695, %v8470_v24  ;;  %vm8496_vm2 = vmpackc.low %vm3964_vm1, %vm3962_vm0 }
 0x369   :  { %3624 = vadd.xlane.f32.xlu2 %v3590_v44  ;;  %5697 = vrcp.f32 %v8455_v48  ;;  %v9651_v9 = vsel %vm8496_vm2, 4294967295, %v9650_v9  ;;  %5033 = vmatmul.msk.bf16.vlgmr.msra.gmra.mxu3 %vm8496_vm2, %v9467_v21  ;;  %vm8539_vm5 = vmpackc.low %vm3968_vm4, %vm3966_vm3  ;;  %v3323_v38 = vand.u32 2147483648, %v8455_v48  ;;  %vm3317_vm8 = vweird.f32 %v8455_v48 }
 0x36a   :  { %5699 = vpow2.f32 %v5002_v22  ;;  %9652 = vst [vmem:[#allocation9_spill] sm:$0xff] %v9651_v9  ;;  %v9655_v20 = vsel %vm8539_vm5, 4294967295, %v9654_v20  ;;  %v3321_v18 = vand.u32 2147483647, %v8455_v48 }
 0x36b   :  { %5701 = vpow2.f32 %v5001_v47  ;;  %9656 = vst [vmem:[#allocation11_spill] sm:$0xff] %v9655_v20 }
 0x36c   :  { %5703 = vpow2.f32 %v5005_v23  ;;  %vm3322_vm6 = vcmp.eq.f32.partialorder %v3321_v18, 8.507059e+37 }
 0x36d   :  { %v2919_v4 = vpop.f32.mrf.mxu2  ;;  %5705 = vpow2.f32 %v5004_v5 }
 0x36e   :  { %v8490_v28 = vadd.f32 %v8004_v53, %v2919_v4  ;;  %v5003_v53 = vmul.f32 -1.442695, %v8486_v56 }
 0x36f   :  { %v8494_v10 = vpop.eup %5697 }
 0x370   :  { %3626 = vadd.xlane.f32.xlu0 %v3591_v34  ;;  %v5700_v41 = vpop.eup %5699  ;;  %v5006_v14 = vmul.f32 -1.442695, %v8490_v28  ;;  %v3313_v45 = vmul.f32 %v8494_v10, %v8455_v48  ;;  %5707 = vpow2.f32 %v5003_v53  ;;  %vm3318_vm7 = vweird.f32 %v8494_v10 }
 0x371   :  { %3622 = vadd.xlane.f32.xlu2 %v3589_v19  ;;  %v5702_v33 = vpop.eup %5701  ;;  %v8508_v61 = vadd.f32 1.0, %v5700_v41  ;;  %vm3319_vm9 = vmor %vm3317_vm8, %vm3318_vm7  ;;  %v3324_v34 = vor.u32 1.1754944e-38, %v3323_v38  ;;  %v8589_v41 = vadd.s32 32, %v8465_v43 }
 0x372   :  { %v8510_v60 = vadd.f32 1.0, %v5702_v33  ;;  %5709 = vpow2.f32 %v5006_v14  ;;  %v5704_v32 = vpop.eup %5703  ;;  %v3314_v31 = vsub.f32 1.0, %v3313_v45  ;;  %v8599_v45 = vadd.s32 40, %v8465_v43 }
 0x373   :  { %5711 = vrcp.f32 %v8508_v61  ;;  %v5706_v46 = vpop.eup %5705  ;;  %v8520_v12 = vadd.f32 1.0, %v5704_v32  ;;  %vm3970_vm10 = vcmp.eq.s32.totalorder %v8589_v41, %v8473_v42  ;;  %vm3347_vm13 = vweird.f32 %v8508_v61 }
 0x374   :  { %5713 = vrcp.f32 %v8510_v60  ;;  %v3315_v63 = vmul.f32 %v8494_v10, %v3314_v31  ;;  %v8529_v36 = vadd.f32 1.0, %v5706_v46  ;;  %v3353_v31 = vand.u32 2147483648, %v8508_v61 }
 0x375   :  { %v2921_v57 = vpop.f32.mrf.mxu2  ;;  %5715 = vrcp.f32 %v8520_v12  ;;  %vm3972_vm11 = vcmp.eq.s32.totalorder %v8599_v45, %v8473_v42  ;;  %vm3392_vm1 = vweird.f32 %v8520_v12 }
 0x376   :  { %v5708_v3 = vpop.eup %5707  ;;  %v8537_v40 = vadd.f32 %v8534_v7, %v2921_v57  ;;  %v3316_v0 = vadd.f32 %v8494_v10, %v3315_v63  ;;  %5717 = vrcp.f32 %v8529_v36  ;;  %vm8626_vm14 = vmpackc.low %vm3972_vm11, %vm3970_vm10 }
 0x377   :  { %v8543_v1 = vadd.f32 1.0, %v5708_v3 }
 0x378   :  { %v5710_v29 = vpop.eup %5709  ;;  %v5007_v44 = vmul.f32 -1.442695, %v8537_v40  ;;  %v3320_v30 = vsel %vm3319_vm9, %v8494_v10, %v3316_v0 }
 0x379   :  { %v8527_v13 = vpop.eup %5711  ;;  %v8551_v37 = vadd.f32 1.0, %v5710_v29  ;;  %5035 = vmatmul.msk.bf16.gmra.mxu3 %vm8539_vm5, %v9467_v21  ;;  %5719 = vrcp.f32 %v8543_v1  ;;  %v3325_v59 = vsel %vm3322_vm6, %v3324_v34, %v3320_v30 }
 0x37a   :  { %9653 = vst [vmem:[#allocation10_spill] sm:$0xff] %v8527_v13  ;;  %v8553_v52 = vpop.eup %5713  ;;  %v3343_v54 = vmul.f32 %v8527_v13, %v8508_v61  ;;  %v3568_v53 = vmul.f32 %v3325_v59, %v8435_v50  ;;  %vm3348_vm12 = vweird.f32 %v8527_v13 }
 0x37b   :  { %v3328_v26 = vmul.f32 %v8553_v52, %v8510_v60  ;;  %5721 = vrcp.f32 %v8551_v37  ;;  %v8575_v4 = vpop.eup %5715  ;;  %vm8638_vm15 = vmor %vm3347_vm13, %vm3348_vm12  ;;  %vm3407_vm7 = vweird.f32 %v8551_v37 }
 0x37c   :  { %v3344_v19 = vsub.f32 1.0, %v3343_v54  ;;  %v8577_v48 = vpop.eup %5717  ;;  %v3388_v35 = vmul.f32 %v8575_v4, %v8520_v12  ;;  %vm3393_vm0 = vweird.f32 %v8575_v4 }
 0x37d   :  { %v2924_v49 = vpop.f32.mrf.mxu2  ;;  %v3329_v22 = vsub.f32 1.0, %v3328_v26  ;;  %v3373_v46 = vmul.f32 %v8577_v48, %v8529_v36  ;;  %vm8685_vm4 = vmor %vm3392_vm1, %vm3393_vm0 }
 0x37e   :  { %v8547_v11 = vadd.f32 %v8534_v7, %v2924_v49  ;;  %v3345_v10 = vmul.f32 %v8527_v13, %v3344_v19  ;;  %v3389_v29 = vsub.f32 1.0, %v3388_v35  ;;  %v9663_v19 = vmov 0 }
 0x37f   :  { %v8581_v47 = vpop.eup %5719  ;;  %v3330_v63 = vmul.f32 %v8553_v52, %v3329_v22  ;;  %v3374_v30 = vsub.f32 1.0, %v3373_v46  ;;  %v9664_v19 = vsel %vm8638_vm15, 4294967295, %v9663_v19  ;;  %v8657_v46 = vmul.f32 %v8175_v15, %v3568_v53 }
 0x380   :  { %v5008_v16 = vmul.f32 -1.442695, %v8547_v11  ;;  %v3358_v38 = vmul.f32 %v8581_v47, %v8543_v1  ;;  %9665 = vst [vmem:[#allocation16_spill] sm:$0xff] %v9664_v19  ;;  %v3390_v22 = vmul.f32 %v8575_v4, %v3389_v29 }
 0x381   :  { %v8591_v5 = vpop.eup %5721  ;;  %v8636_v34 = vadd.f32 %v8553_v52, %v3330_v63 }
 0x382   :  { %v3403_v54 = vmul.f32 %v8591_v5, %v8551_v37  ;;  %v3391_v14 = vadd.f32 %v8575_v4, %v3390_v22  ;;  %vm3408_vm9 = vweird.f32 %v8591_v5 }
 0x383   :  { %9662 = vst [vmem:[#allocation15_spill] sm:$0xff] %v8636_v34  ;;  %vm8737_vm1 = vmor %vm3407_vm7, %vm3408_vm9 }
 0x384   :  { %v3404_v63 = vsub.f32 1.0, %v3403_v54 }
 0x385   :  { %v2926_v2 = vpop.f32.mrf.mxu2 }
 0x386   :  { %v8596_v33 = vadd.f32 %v8534_v7, %v2926_v2  ;;  %v3405_v22 = vmul.f32 %v8591_v5, %v3404_v63  ;;  %v3411_v63 = vand.u32 2147483647, %v8551_v37 }
 0x388   :  { %v5009_v18 = vmul.f32 -1.442695, %v8596_v33 }
 0x389   :  { %5037 = vmatmul.msk.bf16.gmra.mxu3 %vm8626_vm14, %v9467_v21 }
 0x38d   :  { %v2929_v6 = vpop.f32.mrf.mxu2 }
 0x38e   :  { %v8559_v27 = vadd.f32 %v8534_v7, %v2929_v6  ;;  %v8613_v6 = vadd.f32 %v8527_v13, %v3345_v10 }
 0x390   :  { %v5010_v55 = vmul.f32 -1.442695, %v8559_v27  ;;  %9657 = vst [vmem:[#allocation12_spill] sm:$0xff] %v8613_v6 }
 0x392   :  { %5723 = vpow2.f32 %v5010_v55  ;;  %v8631_v55 = vor.u32 1.1754944e-38, %v3353_v31 }
 0x393   :  { %5725 = vpow2.f32 %v5007_v44  ;;  %v9658_v44 = vmov 0 }
 0x394   :  { %5727 = vpow2.f32 %v5008_v16  ;;  %v9659_v44 = vsel %vm8626_vm14, 4294967295, %v9658_v44  ;;  %9661 = vst [vmem:[#allocation14_spill] sm:$0xff] %v8631_v55 }
 0x395   :  { %v2931_v57 = vpop.f32.mrf.mxu2  ;;  %9660 = vst [vmem:[#allocation13_spill] sm:$0xff] %v9659_v44 }
 0x396   :  { %v8586_v49 = vadd.f32 %v8534_v7, %v2931_v57 }
 0x398   :  { %v5724_v32 = vpop.eup %5723  ;;  %v5011_v3 = vmul.f32 -1.442695, %v8586_v49 }
 0x399   :  { %v5726_v50 = vpop.eup %5725  ;;  %v8608_v2 = vadd.f32 1.0, %v5724_v32  ;;  %v3359_v32 = vsub.f32 1.0, %v3358_v38  ;;  %v3398_v38 = vand.u32 2147483648, %v8520_v12 }
 0x39a   :  { %v5728_v0 = vpop.eup %5727  ;;  %5729 = vpow2.f32 %v5011_v3  ;;  %v8633_v26 = vadd.f32 1.0, %v5726_v50  ;;  %v3396_v50 = vand.u32 2147483647, %v8520_v12 }
 0x39b   :  { %5731 = vrcp.f32 %v8608_v2  ;;  %v8644_v35 = vadd.f32 1.0, %v5728_v0  ;;  %v3375_v0 = vmul.f32 %v8577_v48, %v3374_v30  ;;  %v8671_v54 = vmul.f32 %v8581_v47, %v3359_v32 }
 0x39c   :  { %5733 = vpow2.f32 %v5009_v18  ;;  %vm8676_vm3 = vcmp.eq.f32.partialorder %v3396_v50, 8.507059e+37  ;;  %v3399_v10 = vor.u32 1.1754944e-38, %v3398_v38  ;;  %v3395_v50 = vsel %vm8685_vm4, %v8575_v4, %v3391_v14 }
 0x39d   :  { %v2934_v57 = vpop.f32.mrf.mxu2  ;;  %5735 = vrcp.f32 %v8633_v26  ;;  %9666 = vst [vmem:[#allocation17_spill] sm:$0xff] %v8671_v54  ;;  %v3471_v38 = vand.u32 2147483647, %v8608_v2  ;;  %v3406_v4 = vadd.f32 %v8591_v5, %v3405_v22  ;;  %v8707_v14 = vadd.s32 48, %v8465_v43 }
 0x39e   :  { %v8651_v31 = vadd.f32 %v8534_v7, %v2934_v57  ;;  %5737 = vrcp.f32 %v8644_v35  ;;  %v8710_v32 = vadd.s32 56, %v8465_v43  ;;  %vm3467_vm6 = vweird.f32 %v8608_v2 }
 0x39f   :  { %vm3974_vm11 = vcmp.eq.s32.totalorder %v8707_v14, %v8473_v42  ;;  %vm3472_vm13 = vcmp.eq.f32.partialorder %v3471_v38, 8.507059e+37  ;;  %v9676_v54 = vmov 1.0|1.0   ;;  %vm3412_vm4 = vcmp.eq.f32.partialorder %v3411_v63, 8.507059e+37 }
 0x3a0   :  { %v5730_v29 = vpop.eup %5729  ;;  %v5012_v57 = vmul.f32 -1.442695, %v8651_v31  ;;  %vm3976_vm12 = vcmp.eq.s32.totalorder %v8710_v32, %v8473_v42  ;;  %v9683_v55 = vand.u32 2147483647, %v8633_v26 }
 0x3a1   :  { %v5732_v59 = vpop.eup %5731  ;;  %v8668_v53 = vadd.f32 1.0, %v5730_v29  ;;  %v8683_v29 = vadd.f32 %v8577_v48, %v3375_v0  ;;  %v3413_v0 = vand.u32 2147483648, %v8551_v37  ;;  %vm8729_vm0 = vmpackc.low %vm3976_vm12, %vm3974_vm11  ;;  %vm3437_vm11 = vweird.f32 %v8644_v35 }
 0x3a2   :  { %v3463_v30 = vmul.f32 %v5732_v59, %v8608_v2  ;;  %5739 = vpow2.f32 %v5012_v57  ;;  %v3473_v57 = vand.u32 2147483648, %v8608_v2  ;;  %v5734_v12 = vpop.eup %5733  ;;  %vm3468_vm8 = vweird.f32 %v5732_v59  ;;  %5039 = vmatmul.msk.bf16.gmra.mxu3 %vm8729_vm0, %v9676_v54 }
 0x3a3   :  { %5741 = vrcp.f32 %v8668_v53  ;;  %v8696_v16 = vpop.eup %5735  ;;  %vm3469_vm10 = vmor %vm3467_vm6, %vm3468_vm8  ;;  %v9672_v17 = vsel %vm8729_vm0, 4294967295, %v9671_v17  ;;  %v3488_v37 = vand.u32 2147483648, %v8668_v53  ;;  %vm3482_vm7 = vweird.f32 %v8668_v53 }
 0x3a4   :  { %v3464_v18 = vsub.f32 1.0, %v3463_v30  ;;  %v8702_v44 = vpop.eup %5737  ;;  %v3418_v2 = vmul.f32 %v8696_v16, %v8633_v26  ;;  %9673 = vst [vmem:[#allocation18_spill] sm:$0xff] %v9672_v17  ;;  %vm3422_vm8 = vweird.f32 %v8633_v26 }
 0x3a5   :  { %v2936_v3 = vpop.f32.mrf.mxu2  ;;  %v3489_v63 = vor.u32 1.1754944e-38, %v3488_v37 }
 0x3a6   :  { %v3465_v21 = vmul.f32 %v5732_v59, %v3464_v18  ;;  %v8700_v30 = vadd.f32 %v8534_v7, %v2936_v3  ;;  %v8712_v18 = vadd.f32 1.0, %v5734_v12  ;;  %v3474_v3 = vor.u32 1.1754944e-38, %v3473_v57 }
 0x3a7   :  { %v3400_v12 = vsel %vm8676_vm3, %v3399_v10, %v3395_v50  ;;  %v3486_v10 = vand.u32 2147483647, %v8668_v53 }
 0x3a8   :  { %v5740_v20 = vpop.eup %5739  ;;  %v3466_v9 = vadd.f32 %v5732_v59, %v3465_v21  ;;  %v5013_v22 = vmul.f32 -1.442695, %v8700_v30 }
 0x3a9   :  { %v5742_v8 = vpop.eup %5741  ;;  %v8715_v56 = vadd.f32 1.0, %v5740_v20  ;;  %v3428_v20 = vand.u32 2147483648, %v8633_v26  ;;  %vm3487_vm6 = vcmp.eq.f32.partialorder %v3486_v10, 8.507059e+37  ;;  %v3441_v10 = vand.u32 2147483647, %v8644_v35 }
 0x3aa   :  { %v3470_v34 = vsel %vm3469_vm10, %v5732_v59, %v3466_v9  ;;  %v3478_v21 = vmul.f32 %v5742_v8, %v8668_v53  ;;  %v3433_v9 = vmul.f32 %v8702_v44, %v8644_v35  ;;  %v3410_v59 = vsel %vm8737_vm1, %v8591_v5, %v3406_v4 }
 0x3ab   :  { %v3475_v57 = vsel %vm3472_vm13, %v3474_v3, %v3470_v34  ;;  %5743 = vrcp.f32 %v8715_v56  ;;  %vm3483_vm3 = vweird.f32 %v5742_v8  ;;  %v3419_v5 = vsub.f32 1.0, %v3418_v2 }
 0x3ac   :  { %5745 = vrcp.f32 %v8712_v18  ;;  %v3578_v23 = vmul.f32 %v3475_v57, %v8559_v27  ;;  %v3479_v34 = vsub.f32 1.0, %v3478_v21  ;;  %v3414_v27 = vor.u32 1.1754944e-38, %v3413_v0  ;;  %vm3484_vm9 = vmor %vm3482_vm7, %vm3483_vm3 }
 0x3ad   :  { %5747 = vpow2.f32 %v5013_v22  ;;  %v2939_v50 = vpop.f32.mrf.mxu2  ;;  %v3434_v21 = vsub.f32 1.0, %v3433_v9  ;;  %vm3423_vm10 = vweird.f32 %v8696_v16  ;;  %vm3438_vm13 = vweird.f32 %v8702_v44 }
 0x3ae   :  { %v3480_v38 = vmul.f32 %v5742_v8, %v3479_v34  ;;  %v8751_v3 = vadd.f32 %v8534_v7, %v2939_v50  ;;  %v3614_v25 = vmul.f32 %v8175_v15, %v3578_v23  ;;  %v3573_v34 = vmul.f32 %v3400_v12, %v8470_v24 }
 0x3af   :  { %v3415_v15 = vsel %vm3412_vm4, %v3414_v27, %v3410_v59  ;;  %v8762_v23 = vor.u32 1.1754944e-38, %v3428_v20  ;;  %v3435_v12 = vmul.f32 %v8702_v44, %v3434_v21  ;;  %vm3497_vm1 = vweird.f32 %v8715_v56  ;;  %vm8808_vm4 = vmor %vm3422_vm8, %vm3423_vm10 }
 0x3b0   :  { %v3481_v57 = vadd.f32 %v5742_v8, %v3480_v38  ;;  %v5014_v22 = vmul.f32 -1.442695, %v8751_v3  ;;  %3672 = vadd.xlane.f32.xlu1 %v3614_v25  ;;  %v3420_v25 = vmul.f32 %v8696_v16, %v3419_v5  ;;  %v3503_v38 = vand.u32 2147483648, %v8715_v56 }
 0x3b1   :  { %v5744_v42 = vpop.eup %5743  ;;  %vm8812_vm7 = vcmp.eq.f32.partialorder %v3441_v10, 8.507059e+37 }
 0x3b2   :  { %v8765_v0 = vpop.eup %5745  ;;  %v3485_v2 = vsel %vm3484_vm9, %v5742_v8, %v3481_v57  ;;  %v3493_v53 = vmul.f32 %v5744_v42, %v8715_v56  ;;  %5749 = vpow2.f32 %v5014_v22  ;;  %v3574_v8 = vmul.f32 %v3415_v15, %v8490_v28  ;;  %v8794_v15 = vld [vmem:[%s9456_s10] ss:$0 sm:$0xff] }
 0x3b3   :  { %v5748_v9 = vpop.eup %5747  ;;  %v3490_v24 = vsel %vm3487_vm6, %v3489_v63, %v3485_v2  ;;  %v3448_v50 = vmul.f32 %v8765_v0, %v8712_v18  ;;  %vm3498_vm12 = vweird.f32 %v5744_v42  ;;  %v3501_v57 = vand.u32 2147483647, %v8715_v56  ;;  %vm8821_vm6 = vmor %vm3437_vm11, %vm3438_vm13 }
 0x3b4   :  { %v3579_v20 = vmul.f32 %v3490_v24, %v8586_v49  ;;  %v3494_v59 = vsub.f32 1.0, %v3493_v53  ;;  %v8773_v37 = vadd.f32 1.0, %v5748_v9  ;;  %v8782_v49 = vpop.xlane.xlu1 %3642  ;;  %v8785_v21 = vadd.f32 %v8696_v16, %v3420_v25  ;;  %vm3499_vm3 = vmor %vm3497_vm1, %vm3498_vm12 }
 0x3b5   :  { %v2941_v27 = vpop.f32.mrf.mxu2  ;;  %v3443_v28 = vand.u32 2147483648, %v8644_v35  ;;  %v3436_v53 = vadd.f32 %v8702_v44, %v3435_v12  ;;  %v3449_v25 = vsub.f32 1.0, %v3448_v50  ;;  %vm3502_vm9 = vcmp.eq.f32.partialorder %v3501_v57, 8.507059e+37 }
 0x3b6   :  { %v3495_v5 = vmul.f32 %v5744_v42, %v3494_v59  ;;  %5751 = vrcp.f32 %v8773_v37  ;;  %v8789_v22 = vadd.f32 %v8534_v7, %v2941_v27  ;;  %v3615_v63 = vmul.f32 %v8794_v15, %v3579_v20 }
 0x3b7   :  { %v3504_v7 = vor.u32 1.1754944e-38, %v3503_v38  ;;  %v3458_v20 = vand.u32 2147483648, %v8712_v18  ;;  %v3641_v38 = vpop.xlane.xlu0 %3640  ;;  %v3440_v35 = vsel %vm8821_vm6, %v8702_v44, %v3436_v53  ;;  %v3695_v57 = vpack.c.bf16 %v8782_v49, %v8782_v49 }
 0x3b8   :  { %v5750_v2 = vpop.eup %5749  ;;  %v3496_v9 = vadd.f32 %v5744_v42, %v3495_v5  ;;  %v5015_v59 = vmul.f32 -1.442695, %v8789_v22  ;;  %3674 = vadd.xlane.f32.xlu2 %v3615_v63  ;;  %v3444_v5 = vor.u32 1.1754944e-38, %v3443_v28  ;;  %vm3453_vm10 = vweird.f32 %v8765_v0 }
 0x3b9   :  { %v8801_v24 = vadd.f32 1.0, %v5750_v2  ;;  %v8829_v2 = vmul.f32 %v8794_v15, %v3573_v34  ;;  %v3456_v34 = vand.u32 2147483647, %v8712_v18  ;;  %v8844_v17 = vor.u32 1.1754944e-38, %v3458_v20 }
 0x3ba   :  { %v3500_v50 = vsel %vm3499_vm3, %v5744_v42, %v3496_v9  ;;  %v159_v9 = vld [vmem:[%s5904_s21 + $0x28] sm:$0xff]   ;;  %v8852_v53 = vsel %vm8812_vm7, %v3444_v5, %v3440_v35  ;;  %v3518_v20 = vand.u32 2147483648, %v8773_v37  ;;  %v8858_v49 = vperm.slane %v8463_v58, 1 }
 0x3bb   :  { %v3505_v63 = vsel %vm3502_vm9, %v3504_v7, %v3500_v50  ;;  %5753 = vrcp.f32 %v8801_v24  ;;  %v8826_v10 = vpop.xlane.xlu2 %3646  ;;  %v3450_v7 = vmul.f32 %v8765_v0, %v3449_v25  ;;  %v3694_v50 = vpack.c.bf16 %v3641_v38, %v3641_v38 }
 0x3bc   :  { %v5752_v42 = vpop.eup %5751  ;;  %v3580_v28 = vmul.f32 %v3505_v63, %v8651_v31  ;;  %5755 = vpow2.f32 %v5015_v59  ;;  %v3610_v31 = vmul.f32 %v8794_v15, %v3574_v8  ;;  %v3726_v25 = vunpack.c.l.bf16 %v159_v9  ;;  %v3645_v27 = vpop.xlane.xlu1 %3644 }
 0x3bd   :  { %v3508_v4 = vmul.f32 %v5752_v42, %v8773_v37  ;;  %vm3513_vm11 = vweird.f32 %v5752_v42  ;;  %v3516_v38 = vand.u32 2147483647, %v8773_v37  ;;  %v3451_v8 = vadd.f32 %v8765_v0, %v3450_v7 }
 0x3be   :  { %v3616_v44 = vmul.f32 %v8794_v15, %v3580_v28  ;;  %v3758_v28 = vunpack.c.l.bf16 %v3694_v50  ;;  %v3727_v5 = vunpack.c.h.bf16 %v159_v9  ;;  %vm8863_vm12 = vcmp.eq.f32.partialorder %v9683_v55, 8.507059e+37 }
 0x3bf   :  { %v3509_v59 = vsub.f32 1.0, %v3508_v4  ;;  %vm8867_vm13 = vcmp.eq.f32.partialorder %v3456_v34, 8.507059e+37  ;;  %vm3512_vm1 = vweird.f32 %v8773_v37  ;;  %v3759_v58 = vunpack.c.l.bf16 %v3695_v57 }
 0x3c0   :  { %3676 = vadd.xlane.f32.xlu2 %v3616_v44  ;;  %vm3963_vm3 = vcmp.eq.s32.totalorder %v8465_v43, %v8858_v49  ;;  %vm8876_vm7 = vmor %vm3512_vm1, %vm3513_vm11  ;;  %v3696_v26 = vpack.c.bf16 %v3645_v27, %v3645_v27  ;;  %vm3965_vm9 = vcmp.eq.s32.totalorder %v8476_v39, %v8858_v49  ;;  %vm3517_vm6 = vcmp.eq.f32.partialorder %v3516_v38, 8.507059e+37  ;;  %v161_v43 = vld [vmem:[%s5904_s21 + $0x30] sm:$0xff]  }
 0x3c1   :  { %v5754_v63 = vpop.eup %5753  ;;  %v3510_v56 = vmul.f32 %v5752_v42, %v3509_v59  ;;  %v3519_v37 = vor.u32 1.1754944e-38, %v3518_v20  ;;  %v3531_v44 = vand.u32 2147483647, %v8801_v24  ;;  %vm8886_vm8 = vmpackc.low %vm3965_vm9, %vm3963_vm3  ;;  %v9690_v59 = vmov 0 }
 0x3c2   :  { %v5756_v35 = vpop.eup %5755  ;;  %v3523_v7 = vmul.f32 %v5754_v63, %v8801_v24  ;;  %v9691_v59 = vsel %vm8886_vm8, 4294967295, %v9690_v59  ;;  %5041 = vmatmul.msk.bf16.vlgmr.msrb.gmra.mxu3 %vm8886_vm8, %v9676_v54  ;;  %vm9693_vm11 = vweird.f32 %v8712_v18  ;;  %vm3528_vm3 = vweird.f32 %v5754_v63 }
 0x3c3   :  { %v3511_v9 = vadd.f32 %v5752_v42, %v3510_v56  ;;  %v8880_v50 = vadd.f32 1.0, %v5756_v35  ;;  %v3649_v34 = vpop.xlane.xlu2 %3648  ;;  %9692 = vst [vmem:[#allocation19_spill] sm:$0xff] %v9691_v59  ;;  %v3533_v56 = vand.u32 2147483648, %v8801_v24  ;;  %vm8901_vm1 = vmor %vm9693_vm11, %vm3453_vm10  ;;  %v8911_v55 = vmul.f32 %v3758_v28, %v3726_v25 }
 0x3c4   :  { %v3524_v57 = vsub.f32 1.0, %v3523_v7  ;;  %v3698_v35 = vpack.c.bf16 %v3649_v34, %v3649_v34  ;;  %v163_v7 = vld [vmem:[%s5904_s21 + $0x38] sm:$0xff]   ;;  %v3728_v18 = vunpack.c.l.bf16 %v161_v43  ;;  %v8914_v59 = vmul.f32 %v3759_v58, %v3727_v5  ;;  %v8924_v28 = vpop.xlane.xlu1 %3632 }
 0x3c5   :  { %v3515_v27 = vsel %vm8876_vm7, %v5752_v42, %v3511_v9  ;;  %5757 = vrcp.f32 %v8880_v50  ;;  %v3697_v42 = vpack.c.bf16 %v8826_v10, %v8826_v10  ;;  %v3455_v9 = vsel %vm8901_vm1, %v8765_v0, %v3451_v8 }
 0x3c6   :  { %v3520_v38 = vsel %vm3517_vm6, %v3519_v37, %v3515_v27  ;;  %v3525_v20 = vmul.f32 %v5754_v63, %v3524_v57  ;;  %vm3527_vm10 = vweird.f32 %v8801_v24  ;;  %v3760_v37 = vunpack.c.l.bf16 %v3696_v26 }
 0x3c7   :  { %v3581_v34 = vmul.f32 %v3520_v38, %v8700_v30  ;;  %vm8917_vm7 = vmor %vm3527_vm10, %vm3528_vm3  ;;  %v3534_v10 = vor.u32 1.1754944e-38, %v3533_v56  ;;  %v3730_v27 = vunpack.c.l.bf16 %v163_v7  ;;  %v3762_v19 = vunpack.c.l.bf16 %v3698_v35  ;;  %v8956_v35 = vld [vmem:[%s5904_s21 + $0x18] sm:$0xff]  }
 0x3c8   :  { %v3526_v13 = vadd.f32 %v5754_v63, %v3525_v20  ;;  %3664 = vadd.xlane.f32.xlu2 %v3610_v31  ;;  %vm3532_vm9 = vcmp.eq.f32.partialorder %v3531_v44, 8.507059e+37  ;;  %v3729_v25 = vunpack.c.h.bf16 %v161_v43  ;;  %v3761_v8 = vunpack.c.l.bf16 %v3697_v42  ;;  %v157_v20 = vld [vmem:[%s5904_s21 + $0x20] sm:$0xff]  }
 0x3c9   :  { %v3617_v0 = vmul.f32 %v8794_v15, %v3581_v34  ;;  %v9698_v5 = vsel %vm8808_vm4, %v8696_v16, %v8785_v21  ;;  %v8938_v31 = vmul.f32 %v8852_v53, %v8547_v11  ;;  %v3822_v16 = vpack.c.bf16 %v8911_v55, %v8911_v55  ;;  %v9720_v55 = vld [vmem:[#allocation14_spill] sm:$0xff] }
 0x3ca   :  { %v3530_v30 = vsel %vm8917_vm7, %v5754_v63, %v3526_v13  ;;  %v8934_v58 = vsel %vm8863_vm12, %v8762_v23, %v9698_v5  ;;  %v8943_v13 = vsel %vm8867_vm13, %v8844_v17, %v3455_v9  ;;  %v3823_v23 = vpack.c.bf16 %v8914_v59, %v8914_v59 }
 0x3cb   :  { %v5758_v24 = vpop.eup %5757  ;;  %v3535_v63 = vsel %vm3532_vm9, %v3534_v10, %v3530_v30  ;;  %3678 = vadd.xlane.f32.xlu0 %v3617_v0  ;;  %v3651_v12 = vpop.xlane.xlu0 %3650  ;;  %v8951_v4 = vmul.f32 %v3760_v37, %v3728_v18  ;;  %v3794_v6 = vmul.f32 %v3762_v19, %v3730_v27  ;;  %v3731_v17 = vunpack.c.h.bf16 %v163_v7 }
 0x3cc   :  { %v3582_v21 = vmul.f32 %v3535_v63, %v8751_v3  ;;  %v3538_v11 = vmul.f32 %v5758_v24, %v8880_v50  ;;  %v3637_v53 = vpop.xlane.xlu2 %3636  ;;  %v3699_v26 = vpack.c.bf16 %v3651_v12, %v3651_v12  ;;  %vm3378_vm4 = vweird.f32 %v8577_v48 }
 0x3cd   :  { %v3548_v43 = vand.u32 2147483648, %v8880_v50  ;;  %v3793_v56 = vmul.f32 %v3761_v8, %v3729_v25  ;;  %vm3967_vm12 = vcmp.eq.s32.totalorder %v8514_v62, %v8858_v49  ;;  %vm3969_vm13 = vcmp.eq.s32.totalorder %v8517_v51, %v8858_v49  ;;  %v3631_v51 = vpop.xlane.xlu1 %3630 }
 0x3ce   :  { %v3539_v44 = vsub.f32 1.0, %v3538_v11  ;;  %v3763_v3 = vunpack.c.l.bf16 %v3699_v26  ;;  %v3618_v39 = vmul.f32 %v8794_v15, %v3582_v21  ;;  %vm3971_vm6 = vcmp.eq.s32.totalorder %v8589_v41, %v8858_v49  ;;  %vm8987_vm9 = vmpackc.low %vm3969_vm13, %vm3967_vm12 }
 0x3cf   :  { %vm3377_vm11 = vweird.f32 %v8529_v36  ;;  %vm3543_vm1 = vweird.f32 %v5758_v24  ;;  %v3546_v38 = vand.u32 2147483647, %v8880_v50  ;;  %vm3973_vm3 = vcmp.eq.s32.totalorder %v8599_v45, %v8858_v49 }
 0x3d0   :  { %v3540_v19 = vmul.f32 %v5758_v24, %v3539_v44  ;;  %v3722_v42 = vunpack.c.l.bf16 %v8956_v35  ;;  %v3826_v7 = vpack.c.bf16 %v3794_v6, %v3794_v6  ;;  %v3692_v9 = vpack.c.bf16 %v3637_v53, %v3637_v53  ;;  %3662 = vadd.xlane.f32.xlu2 %v8829_v2  ;;  %vm8972_vm10 = vmpackc.low %vm3973_vm3, %vm3971_vm6 }
 0x3d1   :  { %v3795_v34 = vmul.f32 %v3763_v3, %v3731_v17  ;;  %v3824_v41 = vpack.c.bf16 %v8951_v4, %v8951_v4  ;;  %vm3542_vm7 = vweird.f32 %v8880_v50  ;;  %v3690_v45 = vpack.c.bf16 %v8924_v28, %v8924_v28 }
 0x3d2   :  { %v3541_v37 = vadd.f32 %v5758_v24, %v3540_v19  ;;  %v9701_v2 = vmov 0  ;;  %vm8992_vm6 = vmor %vm3542_vm7, %vm3543_vm1  ;;  %v3549_v10 = vor.u32 1.1754944e-38, %v3548_v43  ;;  %v3825_v50 = vpack.c.bf16 %v3793_v56, %v3793_v56  ;;  %5043 = vmatmul.msk.bf16.gmra.mxu3 %vm8987_vm9, %v9676_v54  ;;  %v4023_v19 = vld [vmem:[#allocation2 + $0x68] sm:$0xff] }
 0x3d3   :  { %v9702_v2 = vsel %vm8987_vm9, 4294967295, %v9701_v2  ;;  %v3724_v27 = vunpack.c.l.bf16 %v157_v20  ;;  %v3827_v0 = vpack.c.bf16 %v3795_v34, %v3795_v34  ;;  %3680 = vadd.xlane.f32.xlu0 %v3618_v39  ;;  %v3639_v30 = vpop.xlane.xlu0 %3638  ;;  %vm3547_vm3 = vcmp.eq.f32.partialorder %v3546_v38, 8.507059e+37  ;;  %vm9030_vm9 = vmor %vm3377_vm11, %vm3378_vm4 }
 0x3d4   :  { %v3545_v62 = vsel %vm8992_vm6, %v5758_v24, %v3541_v37  ;;  %v3635_v25 = vpop.xlane.xlu2 %3634  ;;  %v3725_v8 = vunpack.c.h.bf16 %v157_v20  ;;  %v3693_v28 = vpack.c.bf16 %v3639_v30, %v3639_v30  ;;  %v9705_v5 = vand.u32 2147483647, %v8508_v61  ;;  %v154_v37 = vld [vmem:[%s5904_s21 + $0x10] sm:$0xff]   ;;  %v9717_v30 = vld [vmem:[#allocation10_spill] sm:$0xff] }
 0x3d5   :  { %v9708_v12 = vand.u32 2147483647, %v8529_v36  ;;  %v3550_v11 = vsel %vm3547_vm3, %v3549_v10, %v3545_v62  ;;  %v3890_v53 = vunpack.c.l.b16 %v3826_v7  ;;  %v3756_v24 = vunpack.c.l.bf16 %v3692_v9  ;;  %v9718_v62 = vld [vmem:[#allocation12_spill] sm:$0xff] }
 0x3d6   :  { %vm9000_vm12 = vcmp.eq.f32.partialorder %v9705_v5, 8.507059e+37  ;;  %v3891_v4 = vunpack.c.l.b16 %v3827_v0  ;;  %v3583_v61 = vmul.f32 %v3550_v11, %v8789_v22  ;;  %v3691_v6 = vpack.c.bf16 %v3635_v25, %v3635_v25 }
 0x3d7   :  { %vm9006_vm13 = vcmp.eq.f32.partialorder %v9708_v12, 8.507059e+37  ;;  %v3757_v17 = vunpack.c.l.bf16 %v3693_v28  ;;  %vm3975_vm7 = vcmp.eq.s32.totalorder %v8707_v14, %v8858_v49  ;;  %v3889_v26 = vunpack.c.l.b16 %v3825_v50  ;;  %v151_v50 = vld [vmem:[%s5904_s21 + $0x8] sm:$0xff]  }
 0x3d8   :  { %v3915_v44 = vpack.c.b16 %v3891_v4, %v3890_v53  ;;  %v3723_v43 = vunpack.c.h.bf16 %v8956_v35  ;;  %vm3977_vm6 = vcmp.eq.s32.totalorder %v8710_v32, %v8858_v49  ;;  %vm3362_vm3 = vweird.f32 %v8543_v1  ;;  %3652 = vadd.xlane.f32.xlu2 %v8657_v46  ;;  %v9721_v35 = vld [vmem:[#allocation17_spill] sm:$0xff] }
 0x3d9   :  { %v3754_v56 = vunpack.c.l.bf16 %v3690_v45  ;;  %v3755_v3 = vunpack.c.l.bf16 %v3691_v6  ;;  %v3789_v39 = vmul.f32 %v3757_v17, %v3725_v8  ;;  %v3619_v22 = vmul.f32 %v8794_v15, %v3583_v61  ;;  %vm9022_vm1 = vmpackc.low %vm3977_vm6, %vm3975_vm7  ;;  %v3621_v8 = vpop.xlane.xlu1 %3620  ;;  %v149_v4 = vld [vmem:[%s5904_s21] sm:$0xff]  }
 0x3da   :  { %v3888_v32 = vunpack.c.l.b16 %v3824_v41  ;;  %v3689_v49 = vpack.c.bf16 %v3631_v51, %v3631_v51  ;;  %v3788_v38 = vmul.f32 %v3756_v24, %v3724_v27  ;;  %v3612_v20 = vmul.f32 %v8794_v15, %v8938_v31  ;;  %4092 = vmatpush.bf16.msra.mxu3 %v3915_v44 }
 0x3db   :  { %vm3333_vm7 = vweird.f32 %v8553_v52  ;;  %v3380_v7 = vsel %vm9030_vm9, %v8577_v48, %v8683_v29  ;;  %v9715_v9 = vand.u32 2147483648, %v8529_v36  ;;  %v3575_v41 = vmul.f32 %v8934_v58, %v8537_v40  ;;  %3682 = vadd.xlane.f32.xlu1 %v3619_v22  ;;  %v3629_v48 = vpop.xlane.xlu0 %3628 }
 0x3dc   :  { %v3577_v46 = vmul.f32 %v8943_v13, %v8596_v33  ;;  %v3887_v31 = vunpack.c.l.b16 %v3823_v23  ;;  %v3787_v45 = vmul.f32 %v3755_v3, %v3723_v43  ;;  %v3821_v57 = vpack.c.bf16 %v3789_v39, %v3789_v39  ;;  %3668 = vadd.xlane.f32.xlu0 %v3612_v20  ;;  %v3625_v33 = vpop.xlane.xlu2 %3624  ;;  %v9728_v39 = vld [vmem:[#allocation5_spill] sm:$0xff] }
 0x3dd   :  { %v3384_v34 = vor.u32 1.1754944e-38, %v9715_v9  ;;  %v3914_v29 = vpack.c.b16 %v3889_v26, %v3888_v32  ;;  %vm3332_vm4 = vweird.f32 %v8510_v60  ;;  %v3886_v36 = vunpack.c.l.b16 %v3822_v16 }
 0x3de   :  { %v3786_v40 = vmul.f32 %v3754_v56, %v3722_v42  ;;  %v3720_v58 = vunpack.c.l.bf16 %v154_v37  ;;  %v3688_v13 = vpack.c.bf16 %v3629_v48, %v3629_v48  ;;  %v3721_v59 = vunpack.c.h.bf16 %v154_v37 }
 0x3df   :  { %v3753_v23 = vunpack.c.l.bf16 %v3689_v49  ;;  %v3820_v10 = vpack.c.bf16 %v3788_v38, %v3788_v38  ;;  %v3686_v27 = vpack.c.bf16 %v3625_v33, %v3625_v33  ;;  %4093 = vmatpush.bf16.msra.mxu3 %v3914_v29  ;;  %v9719_v51 = vsel %vm8638_vm15, %v9717_v30, %v9718_v62  ;;  %v9729_v49 = vld [vmem:[#allocation7_spill] sm:$0xff] }
 0x3e0   :  { %v3355_v16 = vsel %vm9000_vm12, %v9720_v55, %v9719_v51  ;;  %v3361_v42 = vadd.f32 %v8581_v47, %v9721_v35  ;;  %v3385_v25 = vsel %vm9006_vm13, %v3384_v34, %v3380_v7  ;;  %v3752_v28 = vunpack.c.l.bf16 %v3688_v13  ;;  %vm9098_vm12 = vmor %vm3332_vm4, %vm3333_vm7  ;;  %v9732_v33 = vld [vmem:[#allocation15_spill] sm:$0xff] }
 0x3e1   :  { %v3819_v5 = vpack.c.bf16 %v3787_v45, %v3787_v45  ;;  %v3885_v12 = vunpack.c.l.b16 %v3821_v57  ;;  %v3613_v11 = vmul.f32 %v8794_v15, %v3577_v46  ;;  %v3913_v53 = vpack.c.b16 %v3887_v31, %v3886_v36 }
 0x3e2   :  { %v3818_v24 = vpack.c.bf16 %v3786_v40, %v3786_v40  ;;  %v3718_v61 = vunpack.c.l.bf16 %v151_v50  ;;  %v3750_v6 = vunpack.c.l.bf16 %v3686_v27  ;;  %v3784_v17 = vmul.f32 %v3752_v28, %v3720_v58  ;;  %5045 = vmatmul.msk.bf16.gmra.mxu3 %vm8972_vm10, %v9676_v54 }
 0x3e3   :  { %v9722_v63 = vand.u32 2147483647, %v8510_v60  ;;  %vm9725_vm11 = vweird.f32 %v8581_v47  ;;  %v3785_v44 = vmul.f32 %v3753_v23, %v3721_v59  ;;  %v3684_v43 = vpack.c.bf16 %v3621_v8, %v3621_v8  ;;  %4094 = vmatpush.bf16.msra.mxu3 %v3913_v53  ;;  %3670 = vadd.xlane.f32.xlu1 %v3613_v11  ;;  %v3627_v34 = vpop.xlane.xlu0 %3626 }
 0x3e4   :  { %vm9083_vm9 = vmor %vm3362_vm3, %vm9725_vm11  ;;  %v3884_v56 = vunpack.c.l.b16 %v3820_v10  ;;  %v3611_v3 = vmul.f32 %v8794_v15, %v3575_v41  ;;  %v3570_v22 = vmul.f32 %v3355_v16, %v9728_v39  ;;  %v3368_v32 = vand.u32 2147483648, %v8543_v1  ;;  %v3623_v31 = vpop.xlane.xlu2 %3622 }
 0x3e5   :  { %vm9075_vm15 = vcmp.eq.f32.partialorder %v9722_v63, 8.507059e+37  ;;  %v3365_v14 = vsel %vm9083_vm9, %v8581_v47, %v3361_v42  ;;  %v3572_v38 = vmul.f32 %v3385_v25, %v9729_v49  ;;  %v3716_v20 = vunpack.c.l.bf16 %v149_v4  ;;  %v4018_v47 = vld [vmem:[#allocation2 + $0x30] sm:$0xff] }
 0x3e6   :  { %v3883_v7 = vunpack.c.l.b16 %v3819_v5  ;;  %v3816_v9 = vpack.c.bf16 %v3784_v17, %v3784_v17  ;;  %3666 = vadd.xlane.f32.xlu0 %v3611_v3  ;;  %v3912_v46 = vpack.c.b16 %v3885_v12, %v3884_v56  ;;  %v3882_v37 = vunpack.c.l.b16 %v3818_v24  ;;  %v9735_v5 = vld [vmem:[#allocation8_spill] sm:$0xff]  ;;  %v9736_v24 = vld [vmem:[#allocation6_spill] sm:$0xff] }
 0x3e7   :  { %v3782_v41 = vmul.f32 %v3750_v6, %v3718_v61  ;;  %v3719_v45 = vunpack.c.h.bf16 %v151_v50  ;;  %v3687_v57 = vpack.c.bf16 %v3627_v34, %v3627_v34  ;;  %v3817_v48 = vpack.c.bf16 %v3785_v44, %v3785_v44 }
 0x3e8   :  { %v3748_v29 = vunpack.c.l.bf16 %v3684_v43  ;;  %v3717_v36 = vunpack.c.h.bf16 %v149_v4  ;;  %v3685_v40 = vpack.c.bf16 %v3623_v31, %v3623_v31  ;;  %4095 = vmatpush.bf16.msra.mxu3 %v3912_v46  ;;  %v3335_v58 = vsel %vm9098_vm12, %v8553_v52, %v9732_v33  ;;  %v179_v31 = vld [vmem:[%s5904_s21 + $0x78] sm:$0xff]  }
 0x3e9   :  { %v9733_v13 = vand.u32 2147483648, %v8510_v60  ;;  %v3369_v23 = vor.u32 1.1754944e-38, %v3368_v32  ;;  %v3751_v10 = vunpack.c.l.bf16 %v3687_v57  ;;  %v9734_v50 = vand.u32 2147483647, %v8543_v1 }
 0x3ea   :  { %v3880_v27 = vunpack.c.l.b16 %v3816_v9  ;;  %v3749_v0 = vunpack.c.l.bf16 %v3685_v40  ;;  %v3911_v30 = vpack.c.b16 %v3883_v7, %v3882_v37  ;;  %v3814_v51 = vpack.c.bf16 %v3782_v41, %v3782_v41  ;;  %v177_v40 = vld [vmem:[%s5904_s21 + $0x70] sm:$0xff]  }
 0x3eb   :  { %v3339_v59 = vor.u32 1.1754944e-38, %v9733_v13  ;;  %vm3367_vm13 = vcmp.eq.f32.partialorder %v9734_v50, 8.507059e+37  ;;  %v3783_v55 = vmul.f32 %v3751_v10, %v3719_v45  ;;  %v3608_v52 = vmul.f32 %v8794_v15, %v3572_v38 }
 0x3ec   :  { %v3370_v62 = vsel %vm3367_vm13, %v3369_v23, %v3365_v14  ;;  %v3881_v16 = vunpack.c.l.b16 %v3817_v48  ;;  %v3780_v60 = vmul.f32 %v3748_v29, %v3716_v20  ;;  %v3781_v35 = vmul.f32 %v3749_v0, %v3717_v36  ;;  %4096 = vmatpush.bf16.msra.mxu3 %v3911_v30  ;;  %v4043_v43 = vpop.f32.mrf.mxu3  ;;  %v175_v0 = vld [vmem:[%s5904_s21 + $0x68] sm:$0xff]  }
 0x3ed   :  { %v3606_v42 = vmul.f32 %v8794_v15, %v3570_v22  ;;  %v3340_v25 = vsel %vm9075_vm15, %v3339_v59, %v3335_v58  ;;  %v3815_v8 = vpack.c.bf16 %v3783_v55, %v3783_v55  ;;  %3660 = vadd.xlane.f32.xlu1 %v3608_v52  ;;  %v3571_v12 = vmul.f32 %v3370_v62, %v9735_v5  ;;  %v4020_v5 = vld [vmem:[#allocation2 + $0x58] sm:$0xff] }
 0x3ee   :  { %v3813_v1 = vpack.c.bf16 %v3781_v35, %v3781_v35  ;;  %v3910_v28 = vpack.c.b16 %v3881_v16, %v3880_v27  ;;  %v3878_v11 = vunpack.c.l.b16 %v3814_v51  ;;  %v3569_v4 = vmul.f32 %v3340_v25, %v9736_v24 }
 0x3ef   :  { %3656 = vadd.xlane.f32.xlu0 %v3606_v42  ;;  %v3879_v53 = vunpack.c.l.b16 %v3815_v8  ;;  %v3812_v61 = vpack.c.bf16 %v3780_v60, %v3780_v60  ;;  %v3607_v63 = vmul.f32 %v8794_v15, %v3571_v12  ;;  %v3746_v33 = vunpack.c.l.bf16 %v179_v31 }
 0x3f0   :  { %4097 = vmatpush.bf16.msra.mxu3 %v3910_v28  ;;  %v3877_v17 = vunpack.c.l.b16 %v3813_v1  ;;  %v3605_v26 = vmul.f32 %v8794_v15, %v3569_v4  ;;  %v3745_v50 = vunpack.c.h.bf16 %v177_v40  ;;  %v3744_v30 = vunpack.c.l.bf16 %v177_v40 }
 0x3f1   :  { %v3909_v6 = vpack.c.b16 %v3879_v53, %v3878_v11  ;;  %v3876_v21 = vunpack.c.l.b16 %v3812_v61  ;;  %v3747_v52 = vunpack.c.h.bf16 %v179_v31  ;;  %v3743_v35 = vunpack.c.h.bf16 %v175_v0  ;;  %v173_v61 = vld [vmem:[%s5904_s21 + $0x60] sm:$0xff]  }
 0x3f2   :  { %5047 = vmatmul.msk.bf16.gmra.mxu3 %vm9022_vm1, %v9676_v54  ;;  %v3742_v25 = vunpack.c.l.bf16 %v175_v0  ;;  %v3740_v20 = vunpack.c.l.bf16 %v173_v61  ;;  %v170_v0 = vld [vmem:[%s5904_s21 + $0x50] sm:$0xff]  }
 0x3f3   :  { %v3908_v44 = vpack.c.b16 %v3877_v17, %v3876_v21 }
 0x3f4   :  { %4098 = vmatpush.bf16.msra.mxu3 %v3909_v6  ;;  %v4045_v3 = vpop.f32.mrf.mxu3 }
 0x3f5   :  { %3658 = vadd.xlane.f32.xlu1 %v3607_v63 }
 0x3f7   :  { %3654 = vadd.xlane.f32.xlu0 %v3605_v26  ;;  %v171_v26 = vld [vmem:[%s5904_s21 + $0x58] sm:$0xff]  }
 0x3f8   :  { %4099 = vmatpush.bf16.msra.mxu3 %v3908_v44  ;;  %v3739_v40 = vunpack.c.h.bf16 %v171_v26 }
 0x3fc   :  { %v9127_v39 = vpop.f32.mrf.mxu3 }
 0x402   :  { %5049 = vmatmul.msk.bf16.vlgmr.msra.gmra.mxu3 %vm8496_vm2, %v9676_v54  ;;  %vm9742_vm2 = vnez %v9702_v2 }
 0x404   :  { %v9132_v22 = vpop.f32.mrf.mxu3 }
 0x40c   :  { %v9134_v14 = vpop.f32.mrf.mxu3 }
 0x412   :  { %5051 = vmatmul.msk.bf16.gmra.mxu3 %vm8539_vm5, %v9676_v54 }
 0x414   :  { %v9139_v49 = vpop.f32.mrf.mxu3 }
 0x422   :  { %5053 = vmatmul.msk.bf16.gmra.mxu3 %vm8626_vm14, %v9676_v54 }
 0x423   :  { %v3673_v37 = vpop.xlane.xlu1 %3672 }
 0x424   :  { %v3710_v10 = vpack.c.bf16 %v3673_v37, %v3673_v37 }
 0x425   :  { %v9141_v38 = vpop.f32.mrf.mxu3 }
 0x426   :  { %v3774_v8 = vunpack.c.l.bf16 %v3710_v10 }
 0x428   :  { %v3806_v21 = vmul.f32 %v3774_v8, %v3742_v25 }
 0x42b   :  { %v3675_v7 = vpop.xlane.xlu2 %3674 }
 0x42c   :  { %v3711_v13 = vpack.c.bf16 %v3675_v7, %v3675_v7  ;;  %v3741_v7 = vunpack.c.h.bf16 %v173_v61 }
 0x42d   :  { %v9146_v34 = vpop.f32.mrf.mxu3 }
 0x42e   :  { %v3775_v42 = vunpack.c.l.bf16 %v3711_v13 }
 0x430   :  { %v3807_v17 = vmul.f32 %v3775_v42, %v3743_v35  ;;  %v3737_v42 = vunpack.c.h.bf16 %v170_v0 }
 0x432   :  { %5055 = vmatmul.msk.bf16.gmra.mxu3 %vm8729_vm0, %v9676_v54 }
 0x433   :  { %v3677_v46 = vpop.xlane.xlu2 %3676 }
 0x434   :  { %v3712_v29 = vpack.c.bf16 %v3677_v46, %v3677_v46 }
 0x436   :  { %v3776_v62 = vunpack.c.l.bf16 %v3712_v29 }
 0x438   :  { %v3808_v11 = vmul.f32 %v3776_v62, %v3744_v30 }
 0x43a   :  { %v3840_v56 = vpack.c.bf16 %v3808_v11, %v3808_v11 }
 0x43b   :  { %v3665_v59 = vpop.xlane.xlu2 %3664 }
 0x43c   :  { %v3706_v15 = vpack.c.bf16 %v3665_v59, %v3665_v59 }
 0x43e   :  { %v3679_v9 = vpop.xlane.xlu0 %3678  ;;  %v3770_v13 = vunpack.c.l.bf16 %v3706_v15  ;;  %v165_v15 = vld [vmem:[%s5904_s21 + $0x40] sm:$0xff]  }
 0x43f   :  { %v3713_v57 = vpack.c.bf16 %v3679_v9, %v3679_v9 }
 0x441   :  { %v3777_v27 = vunpack.c.l.bf16 %v3713_v57  ;;  %v3738_v57 = vunpack.c.l.bf16 %v171_v26 }
 0x443   :  { %v3809_v1 = vmul.f32 %v3777_v27, %v3745_v50  ;;  %v3663_v32 = vpop.xlane.xlu2 %3662  ;;  %v3838_v50 = vpack.c.bf16 %v3806_v21, %v3806_v21  ;;  %v3904_v27 = vunpack.c.l.b16 %v3840_v56  ;;  %v3802_v35 = vmul.f32 %v3770_v13, %v3738_v57 }
 0x444   :  { %v3705_v59 = vpack.c.bf16 %v3663_v32, %v3663_v32  ;;  %v3732_v57 = vunpack.c.l.bf16 %v165_v15 }
 0x445   :  { %v4072_v48 = vpop.f32.mrf.mxu3  ;;  %v3841_v44 = vpack.c.bf16 %v3809_v1, %v3809_v1  ;;  %v3902_v1 = vunpack.c.l.b16 %v3838_v50  ;;  %v3834_v26 = vpack.c.bf16 %v3802_v35, %v3802_v35 }
 0x446   :  { %v3681_v41 = vpop.xlane.xlu0 %3680  ;;  %v4073_v36 = vadd.f32 %v4072_v48, %v4043_v43  ;;  %v3769_v25 = vunpack.c.l.bf16 %v3705_v59 }
 0x447   :  { %v3714_v45 = vpack.c.bf16 %v3681_v41, %v3681_v41  ;;  %v3905_v48 = vunpack.c.l.b16 %v3841_v44 }
 0x448   :  { %v4150_v23 = vadd.f32 %v4073_v36, %v4018_v47  ;;  %v3801_v44 = vmul.f32 %v3769_v25, %v3737_v42 }
 0x449   :  { %v3778_v58 = vunpack.c.l.bf16 %v3714_v45  ;;  %v3839_v45 = vpack.c.bf16 %v3807_v17, %v3807_v17 }
 0x44a   :  { %4166 = vst [vmem:[#allocation2 + $0x30] sm:$0xff] %v4150_v23 }
 0x44b   :  { %v3810_v55 = vmul.f32 %v3778_v58, %v3746_v33  ;;  %v4022_v33 = vld [vmem:[#allocation2 + $0x50] sm:$0xff] }
 0x44d   :  { %v4074_v12 = vpop.f32.mrf.mxu3  ;;  %v3842_v24 = vpack.c.bf16 %v3810_v55, %v3810_v55  ;;  %v3903_v55 = vunpack.c.l.b16 %v3839_v45  ;;  %v3833_v45 = vpack.c.bf16 %v3801_v44, %v3801_v44 }
 0x44e   :  { %v3683_v51 = vpop.xlane.xlu1 %3682  ;;  %v4075_v53 = vadd.f32 %v4074_v12, %v4045_v3  ;;  %v167_v12 = vld [vmem:[%s5904_s21 + $0x48] sm:$0xff]  }
 0x44f   :  { %v3715_v16 = vpack.c.bf16 %v3683_v51, %v3683_v51  ;;  %v3669_v60 = vpop.xlane.xlu0 %3668  ;;  %v3906_v46 = vunpack.c.l.b16 %v3842_v24  ;;  %v3921_v17 = vpack.c.b16 %v3903_v55, %v3902_v1 }
 0x450   :  { %v3708_v6 = vpack.c.bf16 %v3669_v60, %v3669_v60  ;;  %v4152_v63 = vadd.f32 %v4075_v53, %v4020_v5  ;;  %v3922_v60 = vpack.c.b16 %v3905_v48, %v3904_v27  ;;  %v3653_v53 = vpop.xlane.xlu2 %3652  ;;  %v4026_v27 = vld [vmem:[#allocation2 + $0x40] sm:$0xff] }
 0x451   :  { %v3779_v28 = vunpack.c.l.bf16 %v3715_v16  ;;  %v3700_v32 = vpack.c.bf16 %v3653_v53, %v3653_v53 }
 0x452   :  { %4168 = vst [vmem:[#allocation2 + $0x58] sm:$0xff] %v4152_v63  ;;  %v3772_v3 = vunpack.c.l.bf16 %v3708_v6  ;;  %v4024_v63 = vld [vmem:[#allocation2 + $0x8] sm:$0xff] }
 0x453   :  { %v3811_v4 = vmul.f32 %v3779_v28, %v3747_v52  ;;  %v3764_v48 = vunpack.c.l.bf16 %v3700_v32 }
 0x454   :  { %v3804_v30 = vmul.f32 %v3772_v3, %v3740_v20 }
 0x455   :  { %v3843_v43 = vpack.c.bf16 %v3811_v4, %v3811_v4  ;;  %v4077_v58 = vpop.f32.mrf.mxu3 }
 0x456   :  { %v3671_v9 = vpop.xlane.xlu1 %3670  ;;  %v4078_v10 = vadd.f32 %v4077_v58, %v9127_v39  ;;  %v3836_v28 = vpack.c.bf16 %v3804_v30, %v3804_v30  ;;  %v3736_v39 = vunpack.c.l.bf16 %v170_v0  ;;  %v3796_v30 = vmul.f32 %v3764_v48, %v3732_v57 }
 0x457   :  { %v3907_v37 = vunpack.c.l.b16 %v3843_v43  ;;  %v3709_v41 = vpack.c.bf16 %v3671_v9, %v3671_v9  ;;  %v3734_v43 = vunpack.c.l.bf16 %v167_v12 }
 0x458   :  { %v4154_v51 = vadd.f32 %v4078_v10, %v4022_v33  ;;  %v3900_v20 = vunpack.c.l.b16 %v3836_v28  ;;  %v3733_v33 = vunpack.c.h.bf16 %v165_v15  ;;  %v3897_v10 = vunpack.c.l.b16 %v3833_v45 }
 0x459   :  { %v3667_v31 = vpop.xlane.xlu0 %3666  ;;  %v3923_v29 = vpack.c.b16 %v3907_v37, %v3906_v46  ;;  %v3773_v36 = vunpack.c.l.bf16 %v3709_v41  ;;  %v3828_v25 = vpack.c.bf16 %v3796_v30, %v3796_v30 }
 0x45a   :  { %v3707_v47 = vpack.c.bf16 %v3667_v31, %v3667_v31  ;;  %4170 = vst [vmem:[#allocation2 + $0x50] sm:$0xff] %v4154_v51  ;;  %v3898_v31 = vunpack.c.l.b16 %v3834_v26 }
 0x45b   :  { %v3805_v62 = vmul.f32 %v3773_v36, %v3741_v7  ;;  %4121 = vmatpush.bf16.msrb.mxu3 %v3923_v29  ;;  %v3735_v36 = vunpack.c.h.bf16 %v167_v12 }
 0x45c   :  { %v3771_v23 = vunpack.c.l.bf16 %v3707_v47 }
 0x45d   :  { %v3837_v52 = vpack.c.bf16 %v3805_v62, %v3805_v62  ;;  %v4079_v21 = vpop.f32.mrf.mxu3 }
 0x45e   :  { %v3803_v16 = vmul.f32 %v3771_v23, %v3739_v40  ;;  %v4080_v56 = vadd.f32 %v4079_v21, %v9132_v22  ;;  %v4032_v21 = vld [vmem:[#allocation2 + $0x78] sm:$0xff] }
 0x45f   :  { %4122 = vmatpush.bf16.msrb.mxu3 %v3922_v60  ;;  %v3901_v4 = vunpack.c.l.b16 %v3837_v52 }
 0x460   :  { %v3661_v8 = vpop.xlane.xlu1 %3660  ;;  %v3835_v61 = vpack.c.bf16 %v3803_v16, %v3803_v16  ;;  %v4156_v46 = vadd.f32 %v4080_v56, %v4024_v63 }
 0x461   :  { %v3704_v5 = vpack.c.bf16 %v3661_v8, %v3661_v8  ;;  %v3920_v41 = vpack.c.b16 %v3901_v4, %v3900_v20 }
 0x462   :  { %v3657_v11 = vpop.xlane.xlu0 %3656  ;;  %v3899_v37 = vunpack.c.l.b16 %v3835_v61  ;;  %4172 = vst [vmem:[#allocation2 + $0x8] sm:$0xff] %v4156_v46  ;;  %v4030_v61 = vld [vmem:[#allocation2 + $0x60] sm:$0xff] }
 0x463   :  { %v3702_v24 = vpack.c.bf16 %v3657_v11, %v3657_v11  ;;  %v3768_v6 = vunpack.c.l.bf16 %v3704_v5  ;;  %4123 = vmatpush.bf16.msrb.mxu3 %v3921_v17  ;;  %v4028_v5 = vld [vmem:[#allocation2 + $0x10] sm:$0xff]  ;;  %v3892_v11 = vunpack.c.l.b16 %v3828_v25 }
 0x464   :  { %v3919_v23 = vpack.c.b16 %v3899_v37, %v3898_v31 }
 0x465   :  { %v3800_v7 = vmul.f32 %v3768_v6, %v3736_v39  ;;  %v3766_v9 = vunpack.c.l.bf16 %v3702_v24  ;;  %v4082_v0 = vpop.f32.mrf.mxu3 }
 0x466   :  { %v4083_v55 = vadd.f32 %v4082_v0, %v9134_v14 }
 0x467   :  { %v3832_v3 = vpack.c.bf16 %v3800_v7, %v3800_v7  ;;  %v3798_v29 = vmul.f32 %v3766_v9, %v3734_v43  ;;  %4124 = vmatpush.bf16.msrb.mxu3 %v3920_v41  ;;  %v4019_v9 = vld [vmem:[#allocation2] sm:$0xff] }
 0x468   :  { %v3659_v47 = vpop.xlane.xlu1 %3658  ;;  %v4158_v35 = vadd.f32 %v4083_v55, %v4026_v27 }
 0x469   :  { %v3703_v40 = vpack.c.bf16 %v3659_v47, %v3659_v47  ;;  %v3896_v13 = vunpack.c.l.b16 %v3832_v3  ;;  %v3830_v62 = vpack.c.bf16 %v3798_v29, %v3798_v29  ;;  %v4021_v3 = vld [vmem:[#allocation2 + $0x18] sm:$0xff]  ;;  %v4025_v47 = vld [vmem:[#allocation2 + $0x48] sm:$0xff] }
 0x46a   :  { %v3655_v22 = vpop.xlane.xlu0 %3654  ;;  %4174 = vst [vmem:[#allocation2 + $0x40] sm:$0xff] %v4158_v35 }
 0x46b   :  { %v3701_v58 = vpack.c.bf16 %v3655_v22, %v3655_v22  ;;  %v3767_v59 = vunpack.c.l.bf16 %v3703_v40  ;;  %4125 = vmatpush.bf16.msrb.mxu3 %v3919_v23  ;;  %v3918_v60 = vpack.c.b16 %v3897_v10, %v3896_v13  ;;  %v3894_v8 = vunpack.c.l.b16 %v3830_v62  ;;  %v4027_v40 = vld [vmem:[#allocation2 + $0x20] sm:$0xff]  ;;  %v4029_v13 = vld [vmem:[#allocation2 + $0x38] sm:$0xff]  ;;  %v4033_v62 = vld [vmem:[#allocation2 + $0x28] sm:$0xff] }
 0x46d   :  { %v3765_v50 = vunpack.c.l.bf16 %v3701_v58  ;;  %v3799_v51 = vmul.f32 %v3767_v59, %v3735_v36  ;;  %v4084_v12 = vpop.f32.mrf.mxu3 }
 0x46e   :  { %v4085_v53 = vadd.f32 %v4084_v12, %v9139_v49 }
 0x46f   :  { %v3797_v52 = vmul.f32 %v3765_v50, %v3733_v33  ;;  %v3831_v16 = vpack.c.bf16 %v3799_v51, %v3799_v51  ;;  %4126 = vmatpush.bf16.msrb.mxu3 %v3918_v60  ;;  %v4031_v50 = vld [vmem:[#allocation2 + $0x70] sm:$0xff] }
 0x470   :  { %v4160_v14 = vadd.f32 %v4085_v53, %v4028_v5 }
 0x471   :  { %v3829_v42 = vpack.c.bf16 %v3797_v52, %v3797_v52  ;;  %v3895_v1 = vunpack.c.l.b16 %v3831_v16 }
 0x472   :  { %4176 = vst [vmem:[#allocation2 + $0x10] sm:$0xff] %v4160_v14 }
 0x473   :  { %v3893_v28 = vunpack.c.l.b16 %v3829_v42  ;;  %v3917_v39 = vpack.c.b16 %v3895_v1, %v3894_v8 }
 0x475   :  { %4127 = vmatpush.bf16.msrb.mxu3 %v3917_v39  ;;  %v3916_v24 = vpack.c.b16 %v3893_v28, %v3892_v11  ;;  %v4087_v6 = vpop.f32.mrf.mxu3 }
 0x476   :  { %v4088_v17 = vadd.f32 %v4087_v6, %v9141_v38 }
 0x478   :  { %v4162_v63 = vadd.f32 %v4088_v17, %v4030_v61 }
 0x479   :  { %4128 = vmatpush.bf16.msrb.mxu3 %v3916_v24 }
 0x47a   :  { %4178 = vst [vmem:[#allocation2 + $0x60] sm:$0xff] %v4162_v63 }
 0x47c   :  { %5057 = vmatmul.msk.bf16.vlgmr.msrb.gmra.mxu3 %vm8886_vm8, %v9676_v54 }
 0x47d   :  { %v4089_v26 = vpop.f32.mrf.mxu3 }
 0x47e   :  { %v4090_v44 = vadd.f32 %v4089_v26, %v9146_v34 }
 0x480   :  { %v4164_v43 = vadd.f32 %v4090_v44, %v4032_v21 }
 0x482   :  { %4180 = vst [vmem:[#allocation2 + $0x78] sm:$0xff] %v4164_v43 }
 0x485   :  { %v4101_v49 = vpop.f32.mrf.mxu3 }
 0x48c   :  { %5059 = vmatmul.msk.bf16.gmra.mxu3 %vm9742_vm2, %v9676_v54 }
 0x48d   :  { %v4103_v38 = vpop.f32.mrf.mxu3 }
 0x495   :  { %v4106_v56 = vpop.f32.mrf.mxu3 }
 0x49c   :  { %5061 = vmatmul.msk.bf16.gmra.mxu3 %vm8972_vm10, %v9676_v54 }
 0x49d   :  { %v4108_v15 = vpop.f32.mrf.mxu3 }
 0x4a5   :  { %v4111_v32 = vpop.f32.mrf.mxu3 }
 0x4ac   :  { %5063 = vmatmul.msk.bf16.gmra.mxu3 %vm9022_vm1, %v9676_v54 }
 0x4ad   :  { %v4113_v34 = vpop.f32.mrf.mxu3 }
 0x4b5   :  { %v4116_v20 = vpop.f32.mrf.mxu3 }
 0x4bd   :  { %v4118_v7 = vpop.f32.mrf.mxu3 }
 0x4ff   :  { %v4130_v46 = vpop.f32.mrf.mxu3 }
 0x500   :  { %v4131_v2 = vadd.f32 %v4130_v46, %v4101_v49 }
 0x502   :  { %v4151_v37 = vadd.f32 %v4131_v2, %v4019_v9 }
 0x504   :  { %4167 = vst [vmem:[#allocation2] sm:$0xff] %v4151_v37 }
 0x507   :  { %v4132_v18 = vpop.f32.mrf.mxu3 }
 0x508   :  { %v4133_v41 = vadd.f32 %v4132_v18, %v4103_v38 }
 0x50a   :  { %v4153_v31 = vadd.f32 %v4133_v41, %v4021_v3 }
 0x50c   :  { %4169 = vst [vmem:[#allocation2 + $0x18] sm:$0xff] %v4153_v31 }
 0x50f   :  { %v4135_v54 = vpop.f32.mrf.mxu3 }
 0x510   :  { %v4136_v45 = vadd.f32 %v4135_v54, %v4106_v56 }
 0x512   :  { %v4155_v57 = vadd.f32 %v4136_v45, %v4023_v19 }
 0x514   :  { %4171 = vst [vmem:[#allocation2 + $0x68] sm:$0xff] %v4155_v57 }
 0x517   :  { %v4137_v48 = vpop.f32.mrf.mxu3 }
 0x518   :  { %v4138_v29 = vadd.f32 %v4137_v48, %v4108_v15 }
 0x51a   :  { %v4157_v36 = vadd.f32 %v4138_v29, %v4025_v47 }
 0x51c   :  { %4173 = vst [vmem:[#allocation2 + $0x48] sm:$0xff] %v4157_v36 }
 0x51f   :  { %v4140_v22 = vpop.f32.mrf.mxu3 }
 0x520   :  { %v4141_v33 = vadd.f32 %v4140_v22, %v4111_v32 }
 0x522   :  { %v4159_v58 = vadd.f32 %v4141_v33, %v4027_v40 }
 0x524   :  { %4175 = vst [vmem:[#allocation2 + $0x20] sm:$0xff] %v4159_v58 }
 0x527   :  { %v4142_v59 = vpop.f32.mrf.mxu3 }
 0x528   :  { %v4143_v23 = vadd.f32 %v4142_v59, %v4113_v34 }
 0x52a   :  { %v4161_v10 = vadd.f32 %v4143_v23, %v4029_v13 }
 0x52c   :  { %4177 = vst [vmem:[#allocation2 + $0x38] sm:$0xff] %v4161_v10 }
 0x52f   :  { %v4145_v27 = vpop.f32.mrf.mxu3 }
 0x530   :  { %v4146_v0 = vadd.f32 %v4145_v27, %v4116_v20 }
 0x532   :  { %v4163_v30 = vadd.f32 %v4146_v0, %v4031_v50 }
 0x534   :  { %4179 = vst [vmem:[#allocation2 + $0x70] sm:$0xff] %v4163_v30 }
 0x537   :  { %v4147_v51 = vpop.f32.mrf.mxu3 }
 0x538   :  { %v4148_v55 = vadd.f32 %v4147_v51, %v4118_v7 }
 0x53a   :  { %v4165_v52 = vadd.f32 %v4148_v55, %v4033_v62 }
 0x53c   :  { %4181 = vst [vmem:[#allocation2 + $0x28] sm:$0xff] %v4165_v52 }
 0x53d PF:  { %v5215_v16 = vld [vmem:[%s9457_s11 + $0x38] sm:$0xff]  ;;  %v5214_v35 = vld [vmem:[%s9457_s11 + $0x30] sm:$0xff]  ;;  %v5213_v25 = vld [vmem:[%s9457_s11 + $0x28] sm:$0xff]  ;;  %s9743_s22 = sld [smem:[#allocation21_spill]] }
 0x53e   :  { %v5223_v60 = vld [vmem:[%s9457_s11 + $0x78] sm:$0xff]  ;;  %4349 = vmatpush.bf16.msra.mxu0 %v5215_v16  ;;  %5232 = vmatpush.bf16.msra.mxu3 %v5215_v16  ;;  %v5222_v42 = vld [vmem:[%s9457_s11 + $0x70] sm:$0xff]  ;;  %v5221_v8 = vld [vmem:[%s9457_s11 + $0x68] sm:$0xff] }
 0x53f   :  { %4378 = vmatpush.bf16.msra.mxu1 %v5223_v60  ;;  %v5212_v1 = vld [vmem:[%s9457_s11 + $0x20] sm:$0xff]  ;;  %v5211_v39 = vld [vmem:[%s9457_s11 + $0x18] sm:$0xff]  ;;  %v5210_v12 = vld [vmem:[%s9457_s11 + $0x10] sm:$0xff] }
 0x540   :  { %v5220_v28 = vld [vmem:[%s9457_s11 + $0x60] sm:$0xff]  ;;  %v5219_v5 = vld [vmem:[%s9457_s11 + $0x58] sm:$0xff]  ;;  %v5218_v11 = vld [vmem:[%s9457_s11 + $0x50] sm:$0xff] }
 0x541   :  { %v5209_v53 = vld [vmem:[%s9457_s11 + $0x8] sm:$0xff]  ;;  %v5208_v14 = vld [vmem:[%s9457_s11] sm:$0xff]  ;;  %v9227_v61 = vld [vmem:[%s9449_s3 + $0x10] sm:$0xff] }
 0x542   :  { %4350 = vmatpush.bf16.msra.mxu0 %v5214_v35  ;;  %5233 = vmatpush.bf16.msra.mxu3 %v5214_v35  ;;  %v5217_v24 = vld [vmem:[%s9457_s11 + $0x48] sm:$0xff]  ;;  %v9222_v4 = vld [vmem:[%s9449_s3] sm:$0xff]  ;;  %v9237_v17 = vld [vmem:[%s9449_s3 + $0x30] sm:$0xff] }
 0x543   :  { %4379 = vmatpush.bf16.msra.mxu1 %v5222_v42  ;;  %v9232_v6 = vld [vmem:[%s9449_s3 + $0x20] sm:$0xff]  ;;  %v4201_v21 = vld [vmem:[#allocation2 + $0x30] sm:$0xff]  ;;  %v4202_v26 = vld [vmem:[#allocation2 + $0x58] sm:$0xff]  ;;  %v4209_v44 = vpack.c.bf16 %v9227_v61, %v9222_v4 }
 0x544   :  { %v5216_v63 = vld [vmem:[%s9457_s11 + $0x40] sm:$0xff]  ;;  %v4211_v43 = vpack.c.bf16 %v9237_v17, %v9232_v6  ;;  %v4210_v49 = vpack.c.bf16 %v4202_v26, %v4201_v21  ;;  %v9254_v56 = vld [vmem:[%s9449_s3 + $0x50] sm:$0xff]  ;;  %v4204_v32 = vld [vmem:[#allocation2 + $0x8] sm:$0xff] }
 0x545   :  { %v9249_v38 = vld [vmem:[%s9449_s3 + $0x40] sm:$0xff]  ;;  %v4203_v15 = vld [vmem:[#allocation2 + $0x50] sm:$0xff]  ;;  %v4208_v41 = vld [vmem:[#allocation2 + $0x78] sm:$0xff] }
 0x546   :  { %4351 = vmatpush.bf16.msra.mxu0 %v5213_v25  ;;  %5234 = vmatpush.bf16.msra.mxu3 %v5213_v25  ;;  %v4213_v34 = vpack.c.bf16 %v9254_v56, %v9249_v38  ;;  %v4212_v20 = vpack.c.bf16 %v4204_v32, %v4203_v15  ;;  %v9261_v7 = vld [vmem:[%s9449_s3 + $0x60] sm:$0xff]  ;;  %v9266_v9 = vld [vmem:[%s9449_s3 + $0x70] sm:$0xff]  ;;  %v5231_v19 = vld [vmem:[%s9459_s13 + $0x38] sm:$0xff] }
 0x547   :  { %4380 = vmatpush.bf16.msra.mxu1 %v5221_v8  ;;  %v4205_v46 = vld [vmem:[#allocation2 + $0x40] sm:$0xff]  ;;  %v4206_v2 = vld [vmem:[#allocation2 + $0x10] sm:$0xff]  ;;  %v4215_v37 = vpack.c.bf16 %v9266_v9, %v9261_v7  ;;  %4639 = vmatpush.bf16.msra.mxu2 %v5231_v19  ;;  %v5229_v45 = vld [vmem:[%s9459_s13 + $0x28] sm:$0xff] }
 0x548   :  { %v4214_v3 = vpack.c.bf16 %v4206_v2, %v4205_v46  ;;  %v4207_v18 = vld [vmem:[#allocation2 + $0x60] sm:$0xff]  ;;  %v5230_v54 = vld [vmem:[%s9459_s13 + $0x30] sm:$0xff]  ;;  %v5227_v48 = vld [vmem:[%s9459_s13 + $0x18] sm:$0xff] }
 0x549   :  { %v4216_v31 = vpack.c.bf16 %v4208_v41, %v4207_v18  ;;  %v5228_v57 = vld [vmem:[%s9459_s13 + $0x20] sm:$0xff]  ;;  %v5226_v22 = vld [vmem:[%s9459_s13 + $0x10] sm:$0xff]  ;;  %v5225_v59 = vld [vmem:[%s9459_s13 + $0x8] sm:$0xff] }
 0x54a   :  { %4352 = vmatpush.bf16.msra.mxu0 %v5212_v1  ;;  %5235 = vmatpush.bf16.msra.mxu3 %v5212_v1  ;;  %v9285_v47 = vld [vmem:[%s9743_s22] ss:$0 sm:$0xff] }
 0x54b   :  { %4381 = vmatpush.bf16.msra.mxu1 %v5220_v28  ;;  %4640 = vmatpush.bf16.msra.mxu2 %v5230_v54  ;;  %v5224_v27 = vld [vmem:[%s9459_s13] sm:$0xff] }
 0x54e   :  { %4353 = vmatpush.bf16.msra.mxu0 %v5211_v39  ;;  %5236 = vmatpush.bf16.msra.mxu3 %v5211_v39 }
 0x54f   :  { %4382 = vmatpush.bf16.msra.mxu1 %v5219_v5  ;;  %4641 = vmatpush.bf16.msra.mxu2 %v5229_v45 }
 0x552   :  { %4354 = vmatpush.bf16.msra.mxu0 %v5210_v12  ;;  %5237 = vmatpush.bf16.msra.mxu3 %v5210_v12 }
 0x553   :  { %4383 = vmatpush.bf16.msra.mxu1 %v5218_v11  ;;  %4642 = vmatpush.bf16.msra.mxu2 %v5228_v57 }
 0x556   :  { %4355 = vmatpush.bf16.msra.mxu0 %v5209_v53  ;;  %5238 = vmatpush.bf16.msra.mxu3 %v5209_v53 }
 0x557   :  { %4384 = vmatpush.bf16.msra.mxu1 %v5217_v24  ;;  %4643 = vmatpush.bf16.msra.mxu2 %v5227_v48 }
 0x55a   :  { %4356 = vmatpush.bf16.msra.mxu0 %v5208_v14  ;;  %5239 = vmatpush.bf16.msra.mxu3 %v5208_v14 }
 0x55b   :  { %4385 = vmatpush.bf16.msra.mxu1 %v5216_v63  ;;  %4644 = vmatpush.bf16.msra.mxu2 %v5226_v22 }
 0x55d   :  { %4357 = vmatmul.bf16.vlgmr.msra.gmra.mxu0 %v4209_v44  ;;  %4362 = vmatmul.bf16.vlgmr.msra.gmra.mxu3 %v4211_v43 }
 0x55e   :  { %4386 = vmatmul.bf16.vlgmr.msra.gmra.mxu1 %v4210_v49 }
 0x55f   :  { %4645 = vmatpush.bf16.msra.mxu2 %v5225_v59 }
 0x563   :  { %4646 = vmatpush.bf16.msra.mxu2 %v5224_v27 }
 0x56d   :  { %4367 = vmatmul.bf16.gmra.mxu3 %v4213_v34 }
 0x56e   :  { %4391 = vmatmul.bf16.gmra.mxu1 %v4212_v20 }
 0x57d   :  { %4372 = vmatmul.bf16.gmra.mxu3 %v4215_v37 }
 0x57e   :  { %4396 = vmatmul.bf16.gmra.mxu1 %v4214_v3 }
 0x58e   :  { %4401 = vmatmul.bf16.gmra.mxu1 %v4216_v31 }
 0x5da   :  { %v4358_v29 = vpop.f32.mrf.mxu0 }
 0x5db   :  { %v4359_v36 = vadd.f32 %v9285_v47, %v4358_v29  ;;  %v4387_v40 = vpop.f32.mrf.mxu1 }
 0x5dd   :  { %v9294_v33 = vadd.f32 %v4387_v40, %v4359_v36 }
 0x5df   :  { %v5128_v58 = vmul.f32 -1.442695, %v9294_v33 }
 0x5e0   :  { %v4363_v13 = vpop.f32.mrf.mxu3 }
 0x5e1   :  { %5768 = vpow2.f32 %v5128_v58  ;;  %v4364_v55 = vadd.f32 %v9285_v47, %v4363_v13 }
 0x5e2   :  { %v4360_v23 = vpop.f32.mrf.mxu0 }
 0x5e3   :  { %v4361_v10 = vadd.f32 %v9285_v47, %v4360_v23  ;;  %v4389_v50 = vpop.f32.mrf.mxu1 }
 0x5e5   :  { %v9304_v0 = vadd.f32 %v4389_v50, %v4361_v10 }
 0x5e7   :  { %v5769_v30 = vpop.eup %5768  ;;  %v5129_v62 = vmul.f32 -1.442695, %v9304_v0 }
 0x5e8   :  { %v4431_v51 = vadd.f32 1.0, %v5769_v30  ;;  %v4365_v52 = vpop.f32.mrf.mxu3 }
 0x5e9   :  { %5770 = vpow2.f32 %v5129_v62  ;;  %v4366_v39 = vadd.f32 %v9285_v47, %v4365_v52 }
 0x5ea   :  { %5772 = vrcp.f32 %v4431_v51  ;;  %v4450_v49 = vand.u32 2147483648, %v4431_v51  ;;  %vm4444_vm14 = vweird.f32 %v4431_v51  ;;  %v4448_v15 = vand.u32 2147483647, %v4431_v51 }
 0x5eb   :  { %v4392_v16 = vpop.f32.mrf.mxu1 }
 0x5ec   :  { %v9308_v60 = vadd.f32 %v4392_v16, %v4364_v55  ;;  %v4451_v19 = vor.u32 1.1754944e-38, %v4450_v49  ;;  %vm4449_vm10 = vcmp.eq.f32.partialorder %v4448_v15, 8.507059e+37 }
 0x5ee   :  { %v5130_v35 = vmul.f32 -1.442695, %v9308_v60 }
 0x5ef   :  { %v5771_v42 = vpop.eup %5770 }
 0x5f0   :  { %v5773_v25 = vpop.eup %5772  ;;  %v4432_v8 = vadd.f32 1.0, %v5771_v42  ;;  %5774 = vpow2.f32 %v5130_v35  ;;  %v4368_v28 = vpop.f32.mrf.mxu3 }
 0x5f1   :  { %v4440_v1 = vmul.f32 %v5773_v25, %v4431_v51  ;;  %v4369_v26 = vadd.f32 %v9285_v47, %v4368_v28  ;;  %vm4445_vm5 = vweird.f32 %v5773_v25 }
 0x5f2   :  { %5776 = vrcp.f32 %v4432_v8  ;;  %vm9319_vm0 = vmor %vm4444_vm14, %vm4445_vm5  ;;  %v4465_v2 = vand.u32 2147483648, %v4432_v8  ;;  %v4463_v41 = vand.u32 2147483647, %v4432_v8  ;;  %vm4459_vm1 = vweird.f32 %v4432_v8 }
 0x5f3   :  { %v4441_v5 = vsub.f32 1.0, %v4440_v1  ;;  %v4394_v12 = vpop.f32.mrf.mxu1 }
 0x5f4   :  { %v9312_v11 = vadd.f32 %v4394_v12, %v4366_v39  ;;  %v4466_v36 = vor.u32 1.1754944e-38, %v4465_v2  ;;  %vm4464_vm3 = vcmp.eq.f32.partialorder %v4463_v41, 8.507059e+37 }
 0x5f5   :  { %v4442_v53 = vmul.f32 %v5773_v25, %v4441_v5 }
 0x5f6   :  { %v5775_v24 = vpop.eup %5774  ;;  %v5131_v14 = vmul.f32 -1.442695, %v9312_v11 }
 0x5f7   :  { %v9315_v63 = vadd.f32 1.0, %v5775_v24  ;;  %v4443_v44 = vadd.f32 %v5773_v25, %v4442_v53 }
 0x5f8   :  { %v5777_v21 = vpop.eup %5776  ;;  %5778 = vpow2.f32 %v5131_v14  ;;  %v4370_v34 = vpop.f32.mrf.mxu3 }
 0x5f9   :  { %v4455_v43 = vmul.f32 %v5777_v21, %v4432_v8  ;;  %5780 = vrcp.f32 %v9315_v63  ;;  %v4447_v3 = vsel %vm9319_vm0, %v5773_v25, %v4443_v44  ;;  %vm4460_vm8 = vweird.f32 %v5777_v21 }
 0x5fa   :  { %v4452_v29 = vsel %vm4449_vm10, %v4451_v19, %v4447_v3  ;;  %vm4461_vm6 = vmor %vm4459_vm1, %vm4460_vm8  ;;  %v4371_v59 = vadd.f32 %v9285_v47, %v4370_v34  ;;  %vm4474_vm4 = vweird.f32 %v9315_v63  ;;  %v4478_v1 = vand.u32 2147483647, %v9315_v63 }
 0x5fb   :  { %v4456_v32 = vsub.f32 1.0, %v4455_v43  ;;  %v4397_v20 = vpop.f32.mrf.mxu1  ;;  %v4559_v23 = vmul.f32 %v4452_v29, %v9294_v33 }
 0x5fc   :  { %v9323_v37 = vadd.f32 %v4397_v20, %v4369_v26  ;;  %vm4479_vm12 = vcmp.eq.f32.partialorder %v4478_v1, 8.507059e+37 }
 0x5fd   :  { %v4457_v18 = vmul.f32 %v5777_v21, %v4456_v32 }
 0x5fe   :  { %v5779_v31 = vpop.eup %5778  ;;  %v5132_v54 = vmul.f32 -1.442695, %v9323_v37 }
 0x5ff   :  { %v5781_v45 = vpop.eup %5780  ;;  %v4458_v57 = vadd.f32 %v5777_v21, %v4457_v18  ;;  %v4434_v48 = vadd.f32 1.0, %v5779_v31 }
 0x600   :  { %v4470_v40 = vmul.f32 %v5781_v45, %v9315_v63  ;;  %5782 = vpow2.f32 %v5132_v54  ;;  %v4373_v62 = vpop.f32.mrf.mxu3  ;;  %vm4475_vm7 = vweird.f32 %v5781_v45 }
 0x601   :  { %v4462_v22 = vsel %vm4461_vm6, %v5777_v21, %v4458_v57  ;;  %5784 = vrcp.f32 %v4434_v48  ;;  %v4374_v25 = vadd.f32 %v9285_v47, %v4373_v62  ;;  %v4493_v28 = vand.u32 2147483647, %v4434_v48  ;;  %vm9342_vm15 = vmor %vm4474_vm4, %vm4475_vm7 }
 0x602   :  { %v4467_v58 = vsel %vm4464_vm3, %v4466_v36, %v4462_v22  ;;  %v4471_v13 = vsub.f32 1.0, %v4470_v40  ;;  %v4495_v39 = vand.u32 2147483648, %v4434_v48  ;;  %vm4489_vm9 = vweird.f32 %v4434_v48 }
 0x603   :  { %v4560_v10 = vmul.f32 %v4467_v58, %v9304_v0  ;;  %v4399_v50 = vpop.f32.mrf.mxu1  ;;  %v4480_v0 = vand.u32 2147483648, %v9315_v63  ;;  %vm4494_vm2 = vcmp.eq.f32.partialorder %v4493_v28, 8.507059e+37 }
 0x604   :  { %v9332_v27 = vadd.f32 %v4399_v50, %v4371_v59  ;;  %v4472_v30 = vmul.f32 %v5781_v45, %v4471_v13  ;;  %v4496_v49 = vor.u32 1.1754944e-38, %v4495_v39 }
 0x605   :  { %v4567_v51 = vpack.c.bf16 %v4560_v10, %v4559_v23  ;;  %v4481_v26 = vor.u32 1.1754944e-38, %v4480_v0 }
 0x606   :  { %v5783_v55 = vpop.eup %5782  ;;  %v5133_v52 = vmul.f32 -1.442695, %v9332_v27  ;;  %v4473_v33 = vadd.f32 %v5781_v45, %v4472_v30 }
 0x607   :  { %v5785_v16 = vpop.eup %5784  ;;  %v9335_v35 = vadd.f32 1.0, %v5783_v55  ;;  %4647 = vmatmul.bf16.vlgmr.msra.gmra.mxu2 %v4567_v51 }
 0x608   :  { %v4485_v42 = vmul.f32 %v5785_v16, %v4434_v48  ;;  %5786 = vpow2.f32 %v5133_v52  ;;  %vm4490_vm11 = vweird.f32 %v5785_v16  ;;  %v4477_v14 = vsel %vm9342_vm15, %v5781_v45, %v4473_v33  ;;  %v4375_v32 = vpop.f32.mrf.mxu3 }
 0x609   :  { %5788 = vrcp.f32 %v9335_v35  ;;  %vm4491_vm13 = vmor %vm4489_vm9, %vm4490_vm11  ;;  %v4482_v34 = vsel %vm4479_vm12, %v4481_v26, %v4477_v14  ;;  %v4376_v41 = vadd.f32 %v9285_v47, %v4375_v32  ;;  %v4510_v47 = vand.u32 2147483648, %v9335_v35 }
 0x60a   :  { %v4486_v8 = vsub.f32 1.0, %v4485_v42  ;;  %v4561_v31 = vmul.f32 %v4482_v34, %v9308_v60  ;;  %vm4504_vm14 = vweird.f32 %v9335_v35  ;;  %v4508_v60 = vand.u32 2147483647, %v9335_v35 }
 0x60b   :  { %v4402_v5 = vpop.f32.mrf.mxu1  ;;  %v4511_v30 = vor.u32 1.1754944e-38, %v4510_v47 }
 0x60c   :  { %v4487_v53 = vmul.f32 %v5785_v16, %v4486_v8  ;;  %v9346_v24 = vadd.f32 %v4402_v5, %v4374_v25  ;;  %vm4509_vm1 = vcmp.eq.f32.partialorder %v4508_v60, 8.507059e+37  ;;  %v4685_v60 = vld [vmem:[#allocation2 + $0x18] sm:$0xff] }
 0x60e   :  { %v5787_v21 = vpop.eup %5786  ;;  %v4488_v44 = vadd.f32 %v5785_v16, %v4487_v53  ;;  %v5134_v63 = vmul.f32 -1.442695, %v9346_v24 }
 0x60f   :  { %v5789_v43 = vpop.eup %5788  ;;  %v4436_v15 = vadd.f32 1.0, %v5787_v21 }
 0x610   :  { %v4492_v20 = vsel %vm4491_vm13, %v5785_v16, %v4488_v44  ;;  %v4500_v46 = vmul.f32 %v5789_v43, %v9335_v35  ;;  %5790 = vpow2.f32 %v5134_v63  ;;  %vm4505_vm5 = vweird.f32 %v5789_v43 }
 0x611   :  { %v4497_v2 = vsel %vm4494_vm2, %v4496_v49, %v4492_v20  ;;  %5792 = vrcp.f32 %v4436_v15  ;;  %v4525_v13 = vand.u32 2147483648, %v4436_v15  ;;  %vm4506_vm0 = vmor %vm4504_vm14, %vm4505_vm5  ;;  %v4523_v23 = vand.u32 2147483647, %v4436_v15 }
 0x612   :  { %v4562_v3 = vmul.f32 %v4497_v2, %v9312_v11  ;;  %v4501_v18 = vsub.f32 1.0, %v4500_v46  ;;  %vm4519_vm10 = vweird.f32 %v4436_v15 }
 0x613   :  { %v4404_v19 = vpop.f32.mrf.mxu1  ;;  %v4526_v55 = vor.u32 1.1754944e-38, %v4525_v13  ;;  %vm4524_vm3 = vcmp.eq.f32.partialorder %v4523_v23, 8.507059e+37  ;;  %v4686_v13 = vld [vmem:[#allocation2 + $0x68] sm:$0xff]  ;;  %v4688_v23 = vld [vmem:[#allocation2 + $0x20] sm:$0xff] }
 0x614   :  { %v9355_v54 = vadd.f32 %v4404_v19, %v4376_v41  ;;  %v4502_v45 = vmul.f32 %v5789_v43, %v4501_v18  ;;  %v4568_v57 = vpack.c.bf16 %v4562_v3, %v4561_v31  ;;  %v5767_v3 = vld [vmem:[%s9460_s14] ss:$0 sm:$0xff] }
 0x616   :  { %v5791_v48 = vpop.eup %5790  ;;  %v5135_v29 = vmul.f32 -1.442695, %v9355_v54  ;;  %v4503_v58 = vadd.f32 %v5789_v43, %v4502_v45 }
 0x617   :  { %v5793_v36 = vpop.eup %5792  ;;  %v4437_v40 = vadd.f32 1.0, %v5791_v48  ;;  %4652 = vmatmul.bf16.gmra.mxu2 %v4568_v57 }
 0x618   :  { %v4515_v22 = vmul.f32 %v5793_v36, %v4436_v15  ;;  %5794 = vpow2.f32 %v5135_v29  ;;  %vm4520_vm8 = vweird.f32 %v5793_v36  ;;  %v4507_v10 = vsel %vm4506_vm0, %v5789_v43, %v4503_v58  ;;  %v4196_v58 = vld [vmem:[%s9449_s3 + $0x58] sm:$0xff] }
 0x619   :  { %5796 = vrcp.f32 %v4437_v40  ;;  %vm4521_vm6 = vmor %vm4519_vm10, %vm4520_vm8  ;;  %v4512_v16 = vsel %vm4509_vm1, %v4511_v30, %v4507_v10  ;;  %v4540_v53 = vand.u32 2147483648, %v4437_v40  ;;  %vm4534_vm4 = vweird.f32 %v4437_v40  ;;  %v4689_v10 = vld [vmem:[#allocation2 + $0x38] sm:$0xff] }
 0x61a   :  { %v4516_v11 = vsub.f32 1.0, %v4515_v22  ;;  %v4563_v8 = vmul.f32 %v4512_v16, %v9323_v37  ;;  %v4538_v21 = vand.u32 2147483647, %v4437_v40  ;;  %v4194_v22 = vld [vmem:[%s9449_s3 + $0x48] sm:$0xff]  ;;  %v4200_v16 = vld [vmem:[%s9449_s3 + $0x78] sm:$0xff] }
 0x61b   :  { %v4541_v43 = vor.u32 1.1754944e-38, %v4540_v53 }
 0x61c   :  { %v4517_v59 = vmul.f32 %v5793_v36, %v4516_v11  ;;  %vm4539_vm12 = vcmp.eq.f32.partialorder %v4538_v21, 8.507059e+37  ;;  %v4684_v11 = vld [vmem:[#allocation2] sm:$0xff] }
 0x61e   :  { %v5795_v50 = vpop.eup %5794  ;;  %v4518_v62 = vadd.f32 %v5793_v36, %v4517_v59  ;;  %v4687_v59 = vld [vmem:[#allocation2 + $0x48] sm:$0xff] }
 0x61f   :  { %v5797_v51 = vpop.eup %5796  ;;  %v4438_v52 = vadd.f32 1.0, %v5795_v50 }
 0x620   :  { %v4522_v42 = vsel %vm4521_vm6, %v5793_v36, %v4518_v62  ;;  %v4530_v25 = vmul.f32 %v5797_v51, %v4437_v40  ;;  %vm4535_vm7 = vweird.f32 %v5797_v51  ;;  %v4186_v36 = vld [vmem:[%s9449_s3 + $0x8] sm:$0xff] }
 0x621   :  { %v4527_v35 = vsel %vm4524_vm3, %v4526_v55, %v4522_v42  ;;  %5798 = vrcp.f32 %v4438_v52  ;;  %v4555_v26 = vand.u32 2147483648, %v4438_v52  ;;  %vm4536_vm15 = vmor %vm4534_vm4, %vm4535_vm7  ;;  %v4553_v63 = vand.u32 2147483647, %v4438_v52  ;;  %v4190_v40 = vld [vmem:[%s9449_s3 + $0x28] sm:$0xff] }
 0x622   :  { %v4564_v33 = vmul.f32 %v4527_v35, %v9332_v27  ;;  %v4531_v0 = vsub.f32 1.0, %v4530_v25  ;;  %vm4549_vm9 = vweird.f32 %v4438_v52  ;;  %v4692_v50 = vadd.f32 %v4684_v11, %v4186_v36  ;;  %v4198_v55 = vld [vmem:[%s9449_s3 + $0x68] sm:$0xff] }
 0x623   :  { %v4556_v37 = vor.u32 1.1754944e-38, %v4555_v26  ;;  %vm4554_vm2 = vcmp.eq.f32.partialorder %v4553_v63, 8.507059e+37  ;;  %v4694_v62 = vadd.f32 %v4686_v13, %v4190_v40  ;;  %v4691_v25 = vld [vmem:[#allocation2 + $0x28] sm:$0xff]  ;;  %v4697_v35 = vadd.f32 %v4689_v10, %v4196_v58 }
 0x624   :  { %v4532_v1 = vmul.f32 %v5797_v51, %v4531_v0  ;;  %v4569_v28 = vpack.c.bf16 %v4564_v33, %v4563_v8  ;;  %4700 = vst [vmem:[%s9462_s16 + $0x8] sm:$0xff] %v4692_v50 }
 0x625   :  { %4702 = vst [vmem:[%s9462_s16 + $0x28] sm:$0xff] %v4694_v62 }
 0x626   :  { %v4533_v12 = vadd.f32 %v5797_v51, %v4532_v1  ;;  %v4699_v1 = vadd.f32 %v4691_v25, %v4200_v16  ;;  %4705 = vst [vmem:[%s9462_s16 + $0x58] sm:$0xff] %v4697_v35 }
 0x627   :  { %v5799_v39 = vpop.eup %5798  ;;  %4657 = vmatmul.bf16.gmra.mxu2 %v4569_v28 }
 0x628   :  { %v4545_v5 = vmul.f32 %v5799_v39, %v4438_v52  ;;  %vm4550_vm11 = vweird.f32 %v5799_v39  ;;  %v4537_v27 = vsel %vm4536_vm15, %v5797_v51, %v4533_v12  ;;  %v4690_v52 = vld [vmem:[#allocation2 + $0x70] sm:$0xff]  ;;  %4707 = vst [vmem:[%s9462_s16 + $0x78] sm:$0xff] %v4699_v1 }
 0x629   :  { %vm4551_vm13 = vmor %vm4549_vm9, %vm4550_vm11  ;;  %v4542_v15 = vsel %vm4539_vm12, %v4541_v43, %v4537_v27  ;;  %v4698_v0 = vadd.f32 %v4690_v52, %v4198_v55 }
 0x62a   :  { %v4546_v14 = vsub.f32 1.0, %v4545_v5  ;;  %v4565_v46 = vmul.f32 %v4542_v15, %v9346_v24 }
 0x62b   :  { %4706 = vst [vmem:[%s9462_s16 + $0x68] sm:$0xff] %v4698_v0 }
 0x62c   :  { %v4547_v44 = vmul.f32 %v5799_v39, %v4546_v14 }
 0x62e   :  { %v4548_v49 = vadd.f32 %v5799_v39, %v4547_v44 }
 0x630   :  { %v4552_v32 = vsel %vm4551_vm13, %v5799_v39, %v4548_v49 }
 0x631   :  { %v4557_v34 = vsel %vm4554_vm2, %v4556_v37, %v4552_v32 }
 0x632   :  { %v4566_v20 = vmul.f32 %v4557_v34, %v9355_v54 }
 0x634   :  { %v4570_v2 = vpack.c.bf16 %v4566_v20, %v4565_v46 }
 0x637   :  { %4662 = vmatmul.bf16.gmra.mxu2 %v4570_v2 }
 0x68a   :  { %v4648_v18 = vpop.f32.mrf.mxu2 }
 0x68b   :  { %v4649_v41 = vadd.f32 %v5767_v3, %v4648_v18 }
 0x68d   :  { %v4668_v31 = vadd.f32 %v4649_v41, %v9222_v4 }
 0x68f   :  { %4676 = vst [vmem:[%s9462_s16] sm:$0xff] %v4668_v31 }
 0x692   :  { %v4650_v19 = vpop.f32.mrf.mxu2 }
 0x693   :  { %v4651_v45 = vadd.f32 %v5767_v3, %v4650_v19 }
 0x695   :  { %v4669_v54 = vadd.f32 %v4651_v45, %v9227_v61  ;;  %v4188_v61 = vld [vmem:[%s9449_s3 + $0x18] sm:$0xff] }
 0x696   :  { %v4693_v30 = vadd.f32 %v4685_v60, %v4188_v61 }
 0x697   :  { %4677 = vst [vmem:[%s9462_s16 + $0x10] sm:$0xff] %v4669_v54 }
 0x698   :  { %4701 = vst [vmem:[%s9462_s16 + $0x18] sm:$0xff] %v4693_v30 }
 0x69a   :  { %v4653_v24 = vpop.f32.mrf.mxu2 }
 0x69b   :  { %v4654_v57 = vadd.f32 %v5767_v3, %v4653_v24 }
 0x69d   :  { %v4670_v48 = vadd.f32 %v4654_v57, %v9232_v6  ;;  %v4192_v6 = vld [vmem:[%s9449_s3 + $0x38] sm:$0xff] }
 0x69e   :  { %v4695_v51 = vadd.f32 %v4687_v59, %v4192_v6 }
 0x69f   :  { %4678 = vst [vmem:[%s9462_s16 + $0x20] sm:$0xff] %v4670_v48 }
 0x6a0   :  { %4703 = vst [vmem:[%s9462_s16 + $0x38] sm:$0xff] %v4695_v51 }
 0x6a2   :  { %v4655_v4 = vpop.f32.mrf.mxu2 }
 0x6a3   :  { %v4656_v29 = vadd.f32 %v5767_v3, %v4655_v4 }
 0x6a5   :  { %v4671_v47 = vadd.f32 %v4656_v29, %v9237_v17  ;;  %v4696_v17 = vadd.f32 %v4688_v23, %v4194_v22 }
 0x6a7   :  { %4679 = vst [vmem:[%s9462_s16 + $0x30] sm:$0xff] %v4671_v47 }
 0x6a8   :  { %4704 = vst [vmem:[%s9462_s16 + $0x48] sm:$0xff] %v4696_v17 }
 0x6aa   :  { %v4658_v42 = vpop.f32.mrf.mxu2 }
 0x6ab   :  { %v4659_v33 = vadd.f32 %v5767_v3, %v4658_v42 }
 0x6ad   :  { %v4672_v8 = vadd.f32 %v4659_v33, %v9249_v38 }
 0x6af   :  { %4680 = vst [vmem:[%s9462_s16 + $0x40] sm:$0xff] %v4672_v8 }
 0x6b2   :  { %v4660_v38 = vpop.f32.mrf.mxu2 }
 0x6b3   :  { %v4661_v28 = vadd.f32 %v5767_v3, %v4660_v38 }
 0x6b5   :  { %v4673_v39 = vadd.f32 %v4661_v28, %v9254_v56 }
 0x6b7   :  { %4681 = vst [vmem:[%s9462_s16 + $0x50] sm:$0xff] %v4673_v39 }
 0x6ba   :  { %v4663_v5 = vpop.f32.mrf.mxu2 }
 0x6bb   :  { %v4664_v12 = vadd.f32 %v5767_v3, %v4663_v5 }
 0x6bd   :  { %v4674_v53 = vadd.f32 %v4664_v12, %v9261_v7 }
 0x6bf   :  { %4682 = vst [vmem:[%s9462_s16 + $0x60] sm:$0xff] %v4674_v53 }
 0x6c2   :  { %v4665_v14 = vpop.f32.mrf.mxu2 }
 0x6c3   :  { %v4666_v21 = vadd.f32 %v5767_v3, %v4665_v14 }
 0x6c5   :  { %v4675_v26 = vadd.f32 %v4666_v21, %v9266_v9 }
 0x6c7   :  { %4683 = vst [vmem:[%s9462_s16 + $0x70] sm:$0xff] %v4675_v26 }

// kernel: _lambda_.9
= control target key start
LH: loop header
LB: loop body
LE: loop exit
PB: predicated region body
PF: predicated region fallthrough
CT: control target
= control target key end

     0   :  { %v4862_v0 = vmov 0.0   ;;  %s7813_s0 = inlined_call_operand.<no memory space> [shape: s32[1,1], index: 0, kind: input, shape index: {}]   ;;  %s7814_s3 = inlined_call_operand.vmem [shape: f32[64,256], index: 3, kind: input, shape index: {}]   ;;  %s7815_s4 = inlined_call_operand.vmem [shape: bf16[128,128], index: 4, kind: input, shape index: {}]   ;;  %s7816_s5 = inlined_call_operand.vmem [shape: f32[1,128], index: 5, kind: input, shape index: {}]   ;;  %s7817_s6 = inlined_call_operand.vmem [shape: bf16[128,128], index: 6, kind: input, shape index: {}]   ;;  %s7818_s7 = inlined_call_operand.vmem [shape: f32[1,128], index: 7, kind: input, shape index: {}, may-alias: {7,9,12,14}]   ;;  %s7819_s8 = inlined_call_operand.vmem [shape: bf16[128,128], index: 8, kind: input, shape index: {}]   ;;  %s7820_s9 = inlined_call_operand.vmem [shape: f32[1,128], index: 9, kind: input, shape index: {}, may-alias: {7,9,12,14}]   ;;  %s7821_s10 = inlined_call_operand.vmem [shape: f32[1,128], index: 10, kind: input, shape index: {}]   ;;  %s7822_s11 = inlined_call_operand.vmem [shape: bf16[256,128], index: 11, kind: input, shape index: {}]   ;;  %s7823_s12 = inlined_call_operand.vmem [shape: f32[1,128], index: 12, kind: input, shape index: {}, may-alias: {7,9,12,14}]   ;;  %s7824_s13 = inlined_call_operand.vmem [shape: bf16[128,128], index: 13, kind: input, shape index: {}]   ;;  %s7825_s14 = inlined_call_operand.vmem [shape: f32[1,128], index: 14, kind: input, shape index: {}, may-alias: {7,9,12,14}]   ;;  %s7826_s15 = inlined_call_operand.vmem [shape: f32[64,256], index: 15, kind: output, shape index: {}]   ;;  %s7827_s2 = inlined_call_operand.vmem [shape: s32[2,1,256], index: 2, kind: input, shape index: {}]   ;;  %s7828_s1 = inlined_call_operand.vmem [shape: bf16[512,128], index: 1, kind: input, shape index: {}]  }
   0x1   :  { %s3949_s20 = sshll.u32 %s7813_s0, 5  ;;  %p110_p0 = scmp.lt.s32.totalorder %s7813_s0, 1  ;;  %122 = vst [vmem:[#allocation2 + $0x30] sm:$0xff] %v4862_v0 }
   0x2   :  { %p97_p1 = scmp.lt.s32.totalorder %s3949_s20, 63  ;;  %123 = vst [vmem:[#allocation2] sm:$0xff] %v4862_v0  ;;  %p3952_p2 = scmp.eq.s32.totalorder %s7813_s0, 1 }
   0x3   :  { %s111_s25 = scalar_select %p110_p0, %s7813_s0, 1  ;;  %124 = vst [vmem:[#allocation2 + $0x58] sm:$0xff] %v4862_v0 }
   0x4   :  { %s8069_s20 = smov (!%p97_p1, %s3949_s20), 63  ;;  %125 = vst [vmem:[#allocation2 + $0x18] sm:$0xff] %v4862_v0 }
   0x5   :  { %s3951_s26 = sshll.u32 %s111_s25, 1  ;;  %126 = vst [vmem:[#allocation2 + $0x50] sm:$0xff] %v4862_v0  ;;  %s3950_s27 = sshll.u32 %s8069_s20, 2 }
   0x6   :  { %s4956_s30 = scalar_lea.vmem %s7827_s2, %s3951_s26  ;;  %127 = vst [vmem:[#allocation2 + $0x68] sm:$0xff] %v4862_v0  ;;  %s4961_s18 = scalar_lea.vmem %s7828_s1, %s3950_s27 }
   0x7   :  { %128 = vst [vmem:[#allocation2 + $0x8] sm:$0xff] %v4862_v0 }
   0x8   :  { %129 = vst [vmem:[#allocation2 + $0x48] sm:$0xff] %v4862_v0 }
   0x9   :  { %130 = vst [vmem:[#allocation2 + $0x40] sm:$0xff] %v4862_v0 }
   0xa   :  { %131 = vst [vmem:[#allocation2 + $0x20] sm:$0xff] %v4862_v0 }
   0xb   :  { %132 = vst [vmem:[#allocation2 + $0x10] sm:$0xff] %v4862_v0 }
   0xc   :  { %133 = vst [vmem:[#allocation2 + $0x38] sm:$0xff] %v4862_v0  ;;  %145 = sbr.rel (%p3952_p2) target bundleno = 1178 (0x49a), region = 65 }
   0xd   :  { %134 = vst [vmem:[#allocation2 + $0x60] sm:$0xff] %v4862_v0 }
   0xe   :  { %135 = vst [vmem:[#allocation2 + $0x70] sm:$0xff] %v4862_v0 }
   0xf   :  { %136 = vst [vmem:[#allocation2 + $0x78] sm:$0xff] %v4862_v0 }
  0x10   :  { %137 = vst [vmem:[#allocation2 + $0x28] sm:$0xff] %v4862_v0 }
  0x11   :  { %v4384_v1 = vld [vmem:[%s7815_s4 + $0x38] sm:$0xff]  ;;  %v4383_v2 = vld [vmem:[%s7815_s4 + $0x30] sm:$0xff]  ;;  %v4382_v3 = vld [vmem:[%s7815_s4 + $0x28] sm:$0xff] }
  0x12   :  { %342 = vmatpush.bf16.msra.mxu0 %v4384_v1  ;;  %v4381_v4 = vld [vmem:[%s7815_s4 + $0x20] sm:$0xff]  ;;  %v4380_v5 = vld [vmem:[%s7815_s4 + $0x18] sm:$0xff]  ;;  %v4379_v6 = vld [vmem:[%s7815_s4 + $0x10] sm:$0xff] }
  0x13   :  { %v4378_v7 = vld [vmem:[%s7815_s4 + $0x8] sm:$0xff]  ;;  %v4377_v8 = vld [vmem:[%s7815_s4] sm:$0xff]  ;;  %v4363_v11 = vld [vmem:[%s4961_s18 + $0x10] sm:$0xff] }
  0x14   :  { %v4361_v9 = vld [vmem:[%s4961_s18] sm:$0xff]  ;;  %v4362_v10 = vld [vmem:[%s4961_s18 + $0x8] sm:$0xff]  ;;  %v4364_v12 = vld [vmem:[%s4961_s18 + $0x18] sm:$0xff] }
  0x15   :  { %v4365_v13 = vld [vmem:[%s4961_s18 + $0x20] sm:$0xff]  ;;  %v4366_v14 = vld [vmem:[%s4961_s18 + $0x28] sm:$0xff]  ;;  %v4367_v15 = vld [vmem:[%s4961_s18 + $0x30] sm:$0xff] }
  0x16   :  { %343 = vmatpush.bf16.msra.mxu0 %v4383_v2  ;;  %v4392_v16 = vld [vmem:[%s7817_s6 + $0x38] sm:$0xff]  ;;  %v4391_v18 = vld [vmem:[%s7817_s6 + $0x30] sm:$0xff]  ;;  %v4390_v19 = vld [vmem:[%s7817_s6 + $0x28] sm:$0xff] }
  0x17   :  { %1155 = vmatpush.bf16.msra.mxu1 %v4392_v16  ;;  %v4368_v17 = vld [vmem:[%s4961_s18 + $0x38] sm:$0xff]  ;;  %v4389_v20 = vld [vmem:[%s7817_s6 + $0x20] sm:$0xff]  ;;  %v4387_v24 = vld [vmem:[%s7817_s6 + $0x10] sm:$0xff] }
  0x18   :  { %v4388_v21 = vld [vmem:[%s7817_s6 + $0x18] sm:$0xff]  ;;  %v5016_v22 = vld [vmem:[%s7816_s5] ss:$0 sm:$0xff]  ;;  %v4386_v28 = vld [vmem:[%s7817_s6 + $0x8] sm:$0xff] }
  0x19   :  { %v4369_v23 = vld [vmem:[%s4961_s18 + $0x40] sm:$0xff]  ;;  %v4370_v35 = vld [vmem:[%s4961_s18 + $0x48] sm:$0xff]  ;;  %v4371_v55 = vld [vmem:[%s4961_s18 + $0x50] sm:$0xff] }
  0x1a   :  { %344 = vmatpush.bf16.msra.mxu0 %v4382_v3  ;;  %v4385_v29 = vld [vmem:[%s7817_s6] sm:$0xff] }
  0x1b   :  { %1156 = vmatpush.bf16.msra.mxu1 %v4391_v18 }
  0x1e   :  { %345 = vmatpush.bf16.msra.mxu0 %v4381_v4 }
  0x1f   :  { %1157 = vmatpush.bf16.msra.mxu1 %v4390_v19 }
  0x22   :  { %346 = vmatpush.bf16.msra.mxu0 %v4380_v5 }
  0x23   :  { %1158 = vmatpush.bf16.msra.mxu1 %v4389_v20 }
  0x26   :  { %347 = vmatpush.bf16.msra.mxu0 %v4379_v6 }
  0x27   :  { %1159 = vmatpush.bf16.msra.mxu1 %v4388_v21 }
  0x2a   :  { %348 = vmatpush.bf16.msra.mxu0 %v4378_v7 }
  0x2b   :  { %1160 = vmatpush.bf16.msra.mxu1 %v4387_v24 }
  0x2e   :  { %349 = vmatpush.bf16.msra.mxu0 %v4377_v8 }
  0x2f   :  { %1161 = vmatpush.bf16.msra.mxu1 %v4386_v28 }
  0x31   :  { %350 = vmatmul.bf16.vlgmr.msra.gmra.mxu0 %v4361_v9 }
  0x33   :  { %1162 = vmatpush.bf16.msra.mxu1 %v4385_v29 }
  0x41   :  { %355 = vmatmul.bf16.gmra.mxu0 %v4362_v10 }
  0x51   :  { %360 = vmatmul.bf16.gmra.mxu0 %v4363_v11 }
  0x61   :  { %365 = vmatmul.bf16.gmra.mxu0 %v4364_v12 }
  0x71   :  { %370 = vmatmul.bf16.gmra.mxu0 %v4365_v13 }
  0x81   :  { %375 = vmatmul.bf16.gmra.mxu0 %v4366_v14 }
  0x91   :  { %380 = vmatmul.bf16.gmra.mxu0 %v4367_v15 }
  0xa1   :  { %385 = vmatmul.bf16.gmra.mxu0 %v4368_v17 }
  0xae   :  { %v351_v25 = vpop.f32.mrf.mxu0 }
  0xaf   :  { %v5023_v26 = vadd.f32 %v5016_v22, %v351_v25 }
  0xb1   :  { %v4049_v27 = vmul.f32 -1.442695, %v5023_v26  ;;  %390 = vmatmul.bf16.gmra.mxu0 %v4369_v23 }
  0xb3   :  { %4439 = vpow2.f32 %v4049_v27  ;;  %v4372_v27 = vld [vmem:[%s4961_s18 + $0x58] sm:$0xff] }
  0xb6   :  { %v353_v30 = vpop.f32.mrf.mxu0 }
  0xb7   :  { %v5033_v31 = vadd.f32 %v5016_v22, %v353_v30 }
  0xb9   :  { %v4440_v32 = vpop.eup %4439  ;;  %v4050_v33 = vmul.f32 -1.442695, %v5033_v31 }
  0xba   :  { %v527_v34 = vadd.f32 1.0, %v4440_v32 }
  0xbb   :  { %4441 = vpow2.f32 %v4050_v33 }
  0xbc   :  { %4443 = vrcp.f32 %v527_v34  ;;  %v570_v53 = vand.u32 2147483648, %v527_v34  ;;  %vm564_vm1 = vweird.f32 %v527_v34  ;;  %v568_v54 = vand.u32 2147483647, %v527_v34 }
  0xbe   :  { %v356_v36 = vpop.f32.mrf.mxu0  ;;  %v571_v0 = vor.u32 1.1754944e-38, %v570_v53  ;;  %vm569_vm4 = vcmp.eq.f32.partialorder %v568_v54, 8.507059e+37 }
  0xbf   :  { %v5038_v37 = vadd.f32 %v5016_v22, %v356_v36 }
  0xc1   :  { %v4442_v38 = vpop.eup %4441  ;;  %v4051_v39 = vmul.f32 -1.442695, %v5038_v37  ;;  %395 = vmatmul.bf16.gmra.mxu0 %v4370_v35 }
  0xc2   :  { %v4444_v40 = vpop.eup %4443  ;;  %v528_v41 = vadd.f32 1.0, %v4442_v38 }
  0xc3   :  { %v560_v42 = vmul.f32 %v4444_v40, %v527_v34  ;;  %4445 = vpow2.f32 %v4051_v39  ;;  %vm565_vm0 = vweird.f32 %v4444_v40 }
  0xc4   :  { %4447 = vrcp.f32 %v528_v41  ;;  %vm5049_vm2 = vmor %vm564_vm1, %vm565_vm0  ;;  %v583_v59 = vand.u32 2147483647, %v528_v41  ;;  %v585_v60 = vand.u32 2147483648, %v528_v41  ;;  %vm579_vm5 = vweird.f32 %v528_v41 }
  0xc5   :  { %v561_v43 = vsub.f32 1.0, %v560_v42 }
  0xc6   :  { %v358_v44 = vpop.f32.mrf.mxu0  ;;  %v586_v7 = vor.u32 1.1754944e-38, %v585_v60  ;;  %vm584_vm7 = vcmp.eq.f32.partialorder %v583_v59, 8.507059e+37 }
  0xc7   :  { %v562_v45 = vmul.f32 %v4444_v40, %v561_v43  ;;  %v5042_v46 = vadd.f32 %v5016_v22, %v358_v44 }
  0xc9   :  { %v4446_v47 = vpop.eup %4445  ;;  %v4052_v48 = vmul.f32 -1.442695, %v5042_v46  ;;  %v563_v51 = vadd.f32 %v4444_v40, %v562_v45 }
  0xca   :  { %v4448_v49 = vpop.eup %4447  ;;  %v5045_v50 = vadd.f32 1.0, %v4446_v47 }
  0xcb   :  { %4449 = vpow2.f32 %v4052_v48  ;;  %v575_v52 = vmul.f32 %v4448_v49, %v528_v41  ;;  %v567_v61 = vsel %vm5049_vm2, %v4444_v40, %v563_v51  ;;  %vm580_vm3 = vweird.f32 %v4448_v49 }
  0xcc   :  { %4451 = vrcp.f32 %v5045_v50  ;;  %v572_v5 = vsel %vm569_vm4, %v571_v0, %v567_v61  ;;  %vm581_vm6 = vmor %vm579_vm5, %vm580_vm3  ;;  %v600_v25 = vand.u32 2147483648, %v5045_v50  ;;  %vm594_vm9 = vweird.f32 %v5045_v50 }
  0xcd   :  { %v576_v56 = vsub.f32 1.0, %v575_v52  ;;  %v1039_v11 = vmul.f32 %v572_v5, %v5023_v26  ;;  %v598_v26 = vand.u32 2147483647, %v5045_v50 }
  0xce   :  { %v361_v58 = vpop.f32.mrf.mxu0  ;;  %v601_v36 = vor.u32 1.1754944e-38, %v600_v25 }
  0xcf   :  { %v5056_v62 = vadd.f32 %v5016_v22, %v361_v58  ;;  %v577_v63 = vmul.f32 %v4448_v49, %v576_v56  ;;  %vm599_vm12 = vcmp.eq.f32.partialorder %v598_v26, 8.507059e+37 }
  0xd1   :  { %v4450_v1 = vpop.eup %4449  ;;  %v4053_v2 = vmul.f32 -1.442695, %v5056_v62  ;;  %400 = vmatmul.bf16.gmra.mxu0 %v4371_v55  ;;  %v578_v3 = vadd.f32 %v4448_v49, %v577_v63  ;;  %v4373_v63 = vld [vmem:[%s4961_s18 + $0x60] sm:$0xff] }
  0xd2   :  { %v4452_v4 = vpop.eup %4451  ;;  %v530_v6 = vadd.f32 1.0, %v4450_v1 }
  0xd3   :  { %v590_v8 = vmul.f32 %v4452_v4, %v5045_v50  ;;  %4453 = vpow2.f32 %v4053_v2  ;;  %v582_v9 = vsel %vm581_vm6, %v4448_v49, %v578_v3  ;;  %vm595_vm8 = vweird.f32 %v4452_v4 }
  0xd4   :  { %4455 = vrcp.f32 %v530_v6  ;;  %v587_v10 = vsel %vm584_vm7, %v586_v7, %v582_v9  ;;  %vm5073_vm10 = vmor %vm594_vm9, %vm595_vm8  ;;  %v615_v32 = vand.u32 2147483648, %v530_v6  ;;  %vm609_vm13 = vweird.f32 %v530_v6 }
  0xd5   :  { %v591_v12 = vsub.f32 1.0, %v590_v8  ;;  %v1040_v13 = vmul.f32 %v587_v10, %v5033_v31  ;;  %v613_v31 = vand.u32 2147483647, %v530_v6 }
  0xd6   :  { %v363_v14 = vpop.f32.mrf.mxu0  ;;  %v616_v44 = vor.u32 1.1754944e-38, %v615_v32 }
  0xd7   :  { %v592_v15 = vmul.f32 %v4452_v4, %v591_v12  ;;  %v5063_v16 = vadd.f32 %v5016_v22, %v363_v14  ;;  %v1071_v17 = vpack.c.bf16 %v1040_v13, %v1039_v11  ;;  %vm614_vm15 = vcmp.eq.f32.partialorder %v613_v31, 8.507059e+37 }
  0xd9   :  { %v4454_v18 = vpop.eup %4453  ;;  %v4054_v19 = vmul.f32 -1.442695, %v5063_v16  ;;  %1163 = vmatmul.bf16.vlgmr.msra.gmra.mxu1 %v1071_v17  ;;  %v593_v23 = vadd.f32 %v4452_v4, %v592_v15 }
  0xda   :  { %v4456_v20 = vpop.eup %4455  ;;  %v5066_v21 = vadd.f32 1.0, %v4454_v18 }
  0xdb   :  { %4457 = vpow2.f32 %v4054_v19  ;;  %v605_v24 = vmul.f32 %v4456_v20, %v530_v6  ;;  %v597_v33 = vsel %vm5073_vm10, %v4452_v4, %v593_v23  ;;  %vm610_vm11 = vweird.f32 %v4456_v20 }
  0xdc   :  { %4459 = vrcp.f32 %v5066_v21  ;;  %v602_v42 = vsel %vm599_vm12, %v601_v36, %v597_v33  ;;  %vm611_vm14 = vmor %vm609_vm13, %vm610_vm11  ;;  %vm624_vm1 = vweird.f32 %v5066_v21  ;;  %v628_v61 = vand.u32 2147483647, %v5066_v21  ;;  %v4374_v33 = vld [vmem:[%s4961_s18 + $0x68] sm:$0xff] }
  0xdd   :  { %v606_v28 = vsub.f32 1.0, %v605_v24  ;;  %v1041_v49 = vmul.f32 %v602_v42, %v5038_v37 }
  0xde   :  { %v366_v30 = vpop.f32.mrf.mxu0  ;;  %vm629_vm4 = vcmp.eq.f32.partialorder %v628_v61, 8.507059e+37 }
  0xdf   :  { %v5080_v34 = vadd.f32 %v5016_v22, %v366_v30  ;;  %v607_v35 = vmul.f32 %v4456_v20, %v606_v28 }
  0xe1   :  { %v4458_v38 = vpop.eup %4457  ;;  %v4055_v39 = vmul.f32 -1.442695, %v5080_v34  ;;  %405 = vmatmul.bf16.gmra.mxu0 %v4372_v27  ;;  %v608_v40 = vadd.f32 %v4456_v20, %v607_v35 }
  0xe2   :  { %v4460_v41 = vpop.eup %4459  ;;  %v532_v43 = vadd.f32 1.0, %v4458_v38 }
  0xe3   :  { %v620_v45 = vmul.f32 %v4460_v41, %v5066_v21  ;;  %4461 = vpow2.f32 %v4055_v39  ;;  %v612_v47 = vsel %vm611_vm14, %v4456_v20, %v608_v40  ;;  %vm625_vm0 = vweird.f32 %v4460_v41 }
  0xe4   :  { %4463 = vrcp.f32 %v532_v43  ;;  %v617_v48 = vsel %vm614_vm15, %v616_v44, %v612_v47  ;;  %vm5097_vm2 = vmor %vm624_vm1, %vm625_vm0  ;;  %v643_v3 = vand.u32 2147483647, %v532_v43  ;;  %v645_v4 = vand.u32 2147483648, %v532_v43 }
  0xe5   :  { %v621_v50 = vsub.f32 1.0, %v620_v45  ;;  %v1042_v51 = vmul.f32 %v617_v48, %v5042_v46  ;;  %v630_v46 = vand.u32 2147483648, %v5066_v21  ;;  %vm639_vm5 = vweird.f32 %v532_v43 }
  0xe6   :  { %v368_v52 = vpop.f32.mrf.mxu0  ;;  %v646_v15 = vor.u32 1.1754944e-38, %v645_v4  ;;  %vm644_vm7 = vcmp.eq.f32.partialorder %v643_v3, 8.507059e+37 }
  0xe7   :  { %v622_v53 = vmul.f32 %v4460_v41, %v621_v50  ;;  %v5087_v54 = vadd.f32 %v5016_v22, %v368_v52  ;;  %v1072_v55 = vpack.c.bf16 %v1042_v51, %v1041_v49  ;;  %v631_v8 = vor.u32 1.1754944e-38, %v630_v46 }
  0xe9   :  { %v4462_v56 = vpop.eup %4461  ;;  %v4056_v57 = vmul.f32 -1.442695, %v5087_v54  ;;  %1168 = vmatmul.bf16.gmra.mxu1 %v1072_v55  ;;  %v623_v60 = vadd.f32 %v4460_v41, %v622_v53 }
  0xea   :  { %v4464_v58 = vpop.eup %4463  ;;  %v5090_v59 = vadd.f32 1.0, %v4462_v56 }
  0xeb   :  { %4465 = vpow2.f32 %v4056_v57  ;;  %v635_v37 = vmul.f32 %v4464_v58, %v532_v43  ;;  %v627_v5 = vsel %vm5097_vm2, %v4460_v41, %v623_v60  ;;  %vm640_vm3 = vweird.f32 %v4464_v58 }
  0xec   :  { %4467 = vrcp.f32 %v5090_v59  ;;  %v632_v13 = vsel %vm629_vm4, %v631_v8, %v627_v5  ;;  %vm641_vm6 = vmor %vm639_vm5, %vm640_vm3  ;;  %vm654_vm9 = vweird.f32 %v5090_v59  ;;  %v658_v36 = vand.u32 2147483647, %v5090_v59  ;;  %v4375_v8 = vld [vmem:[%s4961_s18 + $0x70] sm:$0xff] }
  0xed   :  { %v636_v0 = vsub.f32 1.0, %v635_v37  ;;  %v1043_v20 = vmul.f32 %v632_v13, %v5056_v62 }
  0xee   :  { %v371_v2 = vpop.f32.mrf.mxu0  ;;  %vm659_vm13 = vcmp.eq.f32.partialorder %v658_v36, 8.507059e+37 }
  0xef   :  { %v5104_v6 = vadd.f32 %v5016_v22, %v371_v2  ;;  %v637_v7 = vmul.f32 %v4464_v58, %v636_v0 }
  0xf1   :  { %v4466_v9 = vpop.eup %4465  ;;  %v4057_v10 = vmul.f32 -1.442695, %v5104_v6  ;;  %410 = vmatmul.bf16.gmra.mxu0 %v4373_v63  ;;  %v638_v11 = vadd.f32 %v4464_v58, %v637_v7 }
  0xf2   :  { %v4468_v12 = vpop.eup %4467  ;;  %v534_v14 = vadd.f32 1.0, %v4466_v9 }
  0xf3   :  { %v650_v17 = vmul.f32 %v4468_v12, %v5090_v59  ;;  %4469 = vpow2.f32 %v4057_v10  ;;  %v642_v18 = vsel %vm641_vm6, %v4464_v58, %v638_v11  ;;  %vm655_vm8 = vweird.f32 %v4468_v12 }
  0xf4   :  { %4471 = vrcp.f32 %v534_v14  ;;  %v647_v19 = vsel %vm644_vm7, %v646_v15, %v642_v18  ;;  %v675_v39 = vand.u32 2147483648, %v534_v14  ;;  %vm5121_vm10 = vmor %vm654_vm9, %vm655_vm8  ;;  %v673_v44 = vand.u32 2147483647, %v534_v14 }
  0xf5   :  { %v651_v21 = vsub.f32 1.0, %v650_v17  ;;  %v1044_v23 = vmul.f32 %v647_v19, %v5063_v16  ;;  %v660_v16 = vand.u32 2147483648, %v5090_v59  ;;  %vm669_vm12 = vweird.f32 %v534_v14 }
  0xf6   :  { %v373_v24 = vpop.f32.mrf.mxu0  ;;  %v676_v52 = vor.u32 1.1754944e-38, %v675_v39  ;;  %vm674_vm15 = vcmp.eq.f32.partialorder %v673_v44, 8.507059e+37 }
  0xf7   :  { %v5111_v25 = vadd.f32 %v5016_v22, %v373_v24  ;;  %v1073_v26 = vpack.c.bf16 %v1044_v23, %v1043_v20  ;;  %v652_v27 = vmul.f32 %v4468_v12, %v651_v21  ;;  %v661_v47 = vor.u32 1.1754944e-38, %v660_v16 }
  0xf9   :  { %v4470_v28 = vpop.eup %4469  ;;  %v4058_v29 = vmul.f32 -1.442695, %v5111_v25  ;;  %1173 = vmatmul.bf16.gmra.mxu1 %v1073_v26  ;;  %v653_v62 = vadd.f32 %v4468_v12, %v652_v27 }
  0xfa   :  { %v4472_v30 = vpop.eup %4471  ;;  %v5114_v31 = vadd.f32 1.0, %v4470_v28 }
  0xfb   :  { %4473 = vpow2.f32 %v4058_v29  ;;  %v665_v32 = vmul.f32 %v4472_v30, %v534_v14  ;;  %vm670_vm11 = vweird.f32 %v4472_v30  ;;  %v657_v43 = vsel %vm5121_vm10, %v4468_v12, %v653_v62 }
  0xfc   :  { %4475 = vrcp.f32 %v5114_v31  ;;  %vm671_vm14 = vmor %vm669_vm12, %vm670_vm11  ;;  %v662_v53 = vsel %vm659_vm13, %v661_v47, %v657_v43  ;;  %vm684_vm1 = vweird.f32 %v5114_v31 }
  0xfd   :  { %v666_v35 = vsub.f32 1.0, %v665_v32  ;;  %v1045_v59 = vmul.f32 %v662_v53, %v5080_v34  ;;  %v690_v34 = vand.u32 2147483648, %v5114_v31 }
  0xfe   :  { %v376_v38 = vpop.f32.mrf.mxu0 }
  0xff   :  { %v5126_v41 = vadd.f32 %v5016_v22, %v376_v38  ;;  %v667_v42 = vmul.f32 %v4472_v30, %v666_v35  ;;  %v691_v17 = vor.u32 1.1754944e-38, %v690_v34 }
 0x101   :  { %v4474_v45 = vpop.eup %4473  ;;  %v4059_v48 = vmul.f32 -1.442695, %v5126_v41  ;;  %415 = vmatmul.bf16.gmra.mxu0 %v4374_v33  ;;  %v668_v49 = vadd.f32 %v4472_v30, %v667_v42 }
 0x102   :  { %v4476_v50 = vpop.eup %4475  ;;  %v536_v51 = vadd.f32 1.0, %v4474_v45  ;;  %v4376_v45 = vld [vmem:[%s4961_s18 + $0x78] sm:$0xff] }
 0x103   :  { %v680_v55 = vmul.f32 %v4476_v50, %v5114_v31  ;;  %4477 = vpow2.f32 %v4059_v48  ;;  %v672_v56 = vsel %vm671_vm14, %v4472_v30, %v668_v49  ;;  %vm685_vm0 = vweird.f32 %v4476_v50 }
 0x104   :  { %4479 = vrcp.f32 %v536_v51  ;;  %v677_v58 = vsel %vm674_vm15, %v676_v52, %v672_v56  ;;  %vm5145_vm2 = vmor %vm684_vm1, %vm685_vm0  ;;  %v703_v10 = vand.u32 2147483647, %v536_v51  ;;  %v705_v11 = vand.u32 2147483648, %v536_v51 }
 0x105   :  { %v681_v57 = vsub.f32 1.0, %v680_v55  ;;  %v1046_v37 = vmul.f32 %v677_v58, %v5087_v54  ;;  %v688_v54 = vand.u32 2147483647, %v5114_v31  ;;  %vm699_vm5 = vweird.f32 %v536_v51 }
 0x106   :  { %v378_v60 = vpop.f32.mrf.mxu0  ;;  %v706_v24 = vor.u32 1.1754944e-38, %v705_v11  ;;  %vm704_vm7 = vcmp.eq.f32.partialorder %v703_v10, 8.507059e+37 }
 0x107   :  { %v682_v46 = vmul.f32 %v4476_v50, %v681_v57  ;;  %v5135_v61 = vadd.f32 %v5016_v22, %v378_v60  ;;  %v1074_v63 = vpack.c.bf16 %v1046_v37, %v1045_v59  ;;  %vm689_vm4 = vcmp.eq.f32.partialorder %v688_v54, 8.507059e+37 }
 0x109   :  { %v4478_v0 = vpop.eup %4477  ;;  %v4060_v1 = vmul.f32 -1.442695, %v5135_v61  ;;  %1178 = vmatmul.bf16.gmra.mxu1 %v1074_v63  ;;  %v683_v4 = vadd.f32 %v4476_v50, %v682_v46 }
 0x10a   :  { %v4480_v2 = vpop.eup %4479  ;;  %v5138_v3 = vadd.f32 1.0, %v4478_v0 }
 0x10b   :  { %v695_v5 = vmul.f32 %v4480_v2, %v536_v51  ;;  %4481 = vpow2.f32 %v4060_v1  ;;  %v687_v13 = vsel %vm5145_vm2, %v4476_v50, %v683_v4  ;;  %vm700_vm3 = vweird.f32 %v4480_v2 }
 0x10c   :  { %4483 = vrcp.f32 %v5138_v3  ;;  %v692_v23 = vsel %vm689_vm4, %v691_v17, %v687_v13  ;;  %vm701_vm6 = vmor %vm699_vm5, %vm700_vm3  ;;  %vm714_vm9 = vweird.f32 %v5138_v3  ;;  %v718_v43 = vand.u32 2147483647, %v5138_v3 }
 0x10d   :  { %v696_v7 = vsub.f32 1.0, %v695_v5  ;;  %v1047_v30 = vmul.f32 %v692_v23, %v5104_v6 }
 0x10e   :  { %v381_v12 = vpop.f32.mrf.mxu0  ;;  %vm719_vm12 = vcmp.eq.f32.partialorder %v718_v43, 8.507059e+37 }
 0x10f   :  { %v697_v14 = vmul.f32 %v4480_v2, %v696_v7  ;;  %v5152_v15 = vadd.f32 %v5016_v22, %v381_v12 }
 0x111   :  { %v4482_v18 = vpop.eup %4481  ;;  %v698_v19 = vadd.f32 %v4480_v2, %v697_v14  ;;  %v4061_v20 = vmul.f32 -1.442695, %v5152_v15  ;;  %420 = vmatmul.bf16.gmra.mxu0 %v4375_v8 }
 0x112   :  { %v4484_v21 = vpop.eup %4483  ;;  %v538_v26 = vadd.f32 1.0, %v4482_v18 }
 0x113   :  { %v702_v27 = vsel %vm701_vm6, %v4480_v2, %v698_v19  ;;  %v710_v28 = vmul.f32 %v4484_v21, %v5138_v3  ;;  %4485 = vpow2.f32 %v4061_v20  ;;  %vm715_vm8 = vweird.f32 %v4484_v21 }
 0x114   :  { %v707_v29 = vsel %vm704_vm7, %v706_v24, %v702_v27  ;;  %4487 = vrcp.f32 %v538_v26  ;;  %vm5169_vm10 = vmor %vm714_vm9, %vm715_vm8  ;;  %v733_v48 = vand.u32 2147483647, %v538_v26  ;;  %v735_v49 = vand.u32 2147483648, %v538_v26 }
 0x115   :  { %v1048_v31 = vmul.f32 %v707_v29, %v5111_v25  ;;  %v711_v32 = vsub.f32 1.0, %v710_v28  ;;  %v720_v25 = vand.u32 2147483648, %v5138_v3  ;;  %vm729_vm13 = vweird.f32 %v538_v26 }
 0x116   :  { %v383_v62 = vpop.f32.mrf.mxu0  ;;  %v736_v37 = vor.u32 1.1754944e-38, %v735_v49  ;;  %vm734_vm15 = vcmp.eq.f32.partialorder %v733_v48, 8.507059e+37 }
 0x117   :  { %v712_v16 = vmul.f32 %v4484_v21, %v711_v32  ;;  %v5159_v33 = vadd.f32 %v5016_v22, %v383_v62  ;;  %v1075_v35 = vpack.c.bf16 %v1048_v31, %v1047_v30  ;;  %v721_v55 = vor.u32 1.1754944e-38, %v720_v25 }
 0x119   :  { %v4486_v36 = vpop.eup %4485  ;;  %v4062_v38 = vmul.f32 -1.442695, %v5159_v33  ;;  %1183 = vmatmul.bf16.gmra.mxu1 %v1075_v35  ;;  %v713_v42 = vadd.f32 %v4484_v21, %v712_v16 }
 0x11a   :  { %v4488_v39 = vpop.eup %4487  ;;  %v5162_v40 = vadd.f32 1.0, %v4486_v36 }
 0x11b   :  { %v725_v6 = vmul.f32 %v4488_v39, %v538_v26  ;;  %4489 = vpow2.f32 %v4062_v38  ;;  %v717_v51 = vsel %vm5169_vm10, %v4484_v21, %v713_v42  ;;  %vm730_vm11 = vweird.f32 %v4488_v39 }
 0x11c   :  { %4491 = vrcp.f32 %v5162_v40  ;;  %v722_v60 = vsel %vm719_vm12, %v721_v55, %v717_v51  ;;  %vm731_vm14 = vmor %vm729_vm13, %vm730_vm11  ;;  %vm744_vm1 = vweird.f32 %v5162_v40 }
 0x11d   :  { %v726_v44 = vsub.f32 1.0, %v725_v6  ;;  %v1049_v2 = vmul.f32 %v722_v60, %v5126_v41  ;;  %v750_v41 = vand.u32 2147483648, %v5162_v40 }
 0x11e   :  { %v386_v50 = vpop.f32.mrf.mxu0 }
 0x11f   :  { %v727_v52 = vmul.f32 %v4488_v39, %v726_v44  ;;  %v5176_v53 = vadd.f32 %v5016_v22, %v386_v50  ;;  %v751_v26 = vor.u32 1.1754944e-38, %v750_v41 }
 0x121   :  { %v4490_v56 = vpop.eup %4489  ;;  %v728_v57 = vadd.f32 %v4488_v39, %v727_v52  ;;  %v4063_v58 = vmul.f32 -1.442695, %v5176_v53  ;;  %425 = vmatmul.bf16.gmra.mxu0 %v4376_v45 }
 0x122   :  { %v4492_v59 = vpop.eup %4491  ;;  %v540_v46 = vadd.f32 1.0, %v4490_v56 }
 0x123   :  { %v732_v63 = vsel %vm731_vm14, %v4488_v39, %v728_v57  ;;  %v740_v0 = vmul.f32 %v4492_v59, %v5162_v40  ;;  %4493 = vpow2.f32 %v4063_v58  ;;  %vm745_vm0 = vweird.f32 %v4492_v59 }
 0x124   :  { %v737_v1 = vsel %vm734_vm15, %v736_v37, %v732_v63  ;;  %4495 = vrcp.f32 %v540_v46  ;;  %vm5192_vm2 = vmor %vm744_vm1, %vm745_vm0  ;;  %v763_v18 = vand.u32 2147483647, %v540_v46  ;;  %v765_v19 = vand.u32 2147483648, %v540_v46 }
 0x125   :  { %v1050_v3 = vmul.f32 %v737_v1, %v5135_v61  ;;  %v741_v4 = vsub.f32 1.0, %v740_v0  ;;  %v748_v61 = vand.u32 2147483647, %v5162_v40  ;;  %vm759_vm5 = vweird.f32 %v540_v46 }
 0x126   :  { %v388_v5 = vpop.f32.mrf.mxu0  ;;  %v766_v32 = vor.u32 1.1754944e-38, %v765_v19  ;;  %vm764_vm7 = vcmp.eq.f32.partialorder %v763_v18, 8.507059e+37 }
 0x127   :  { %v742_v34 = vmul.f32 %v4492_v59, %v741_v4  ;;  %v5183_v54 = vadd.f32 %v5016_v22, %v388_v5  ;;  %v1076_v7 = vpack.c.bf16 %v1050_v3, %v1049_v2  ;;  %vm749_vm4 = vcmp.eq.f32.partialorder %v748_v61, 8.507059e+37 }
 0x129   :  { %v4494_v8 = vpop.eup %4493  ;;  %v4064_v9 = vmul.f32 -1.442695, %v5183_v54  ;;  %1188 = vmatmul.bf16.gmra.mxu1 %v1076_v7  ;;  %v743_v12 = vadd.f32 %v4492_v59, %v742_v34 }
 0x12a   :  { %v4496_v10 = vpop.eup %4495  ;;  %v5186_v11 = vadd.f32 1.0, %v4494_v8 }
 0x12b   :  { %v755_v13 = vmul.f32 %v4496_v10, %v540_v46  ;;  %4497 = vpow2.f32 %v4064_v9  ;;  %v747_v21 = vsel %vm5192_vm2, %v4492_v59, %v743_v12  ;;  %vm760_vm3 = vweird.f32 %v4496_v10 }
 0x12c   :  { %4499 = vrcp.f32 %v5186_v11  ;;  %v752_v31 = vsel %vm749_vm4, %v751_v26, %v747_v21  ;;  %vm761_vm6 = vmor %vm759_vm5, %vm760_vm3  ;;  %vm774_vm9 = vweird.f32 %v5186_v11 }
 0x12d   :  { %v756_v14 = vsub.f32 1.0, %v755_v13  ;;  %v1051_v38 = vmul.f32 %v752_v31, %v5152_v15  ;;  %v780_v15 = vand.u32 2147483648, %v5186_v11 }
 0x12e   :  { %v391_v20 = vpop.f32.mrf.mxu0 }
 0x12f   :  { %v757_v23 = vmul.f32 %v4496_v10, %v756_v14  ;;  %v5199_v24 = vadd.f32 %v5016_v22, %v391_v20  ;;  %v781_v37 = vor.u32 1.1754944e-38, %v780_v15 }
 0x131   :  { %v4498_v27 = vpop.eup %4497  ;;  %v758_v28 = vadd.f32 %v4496_v10, %v757_v23  ;;  %v4065_v29 = vmul.f32 -1.442695, %v5199_v24 }
 0x132   :  { %v4500_v30 = vpop.eup %4499  ;;  %v542_v62 = vadd.f32 1.0, %v4498_v27 }
 0x133   :  { %v762_v16 = vsel %vm761_vm6, %v4496_v10, %v758_v28  ;;  %v770_v35 = vmul.f32 %v4500_v30, %v5186_v11  ;;  %4501 = vpow2.f32 %v4065_v29  ;;  %vm775_vm8 = vweird.f32 %v4500_v30 }
 0x134   :  { %v767_v36 = vsel %vm764_vm7, %v766_v32, %v762_v16  ;;  %4503 = vrcp.f32 %v542_v62  ;;  %vm5215_vm10 = vmor %vm774_vm9, %vm775_vm8  ;;  %v793_v55 = vand.u32 2147483647, %v542_v62  ;;  %v795_v56 = vand.u32 2147483648, %v542_v62 }
 0x135   :  { %v1052_v39 = vmul.f32 %v767_v36, %v5159_v33  ;;  %v771_v40 = vsub.f32 1.0, %v770_v35  ;;  %v778_v33 = vand.u32 2147483647, %v5186_v11  ;;  %vm789_vm13 = vweird.f32 %v542_v62 }
 0x136   :  { %v393_v42 = vpop.f32.mrf.mxu0  ;;  %v796_v3 = vor.u32 1.1754944e-38, %v795_v56  ;;  %vm794_vm15 = vcmp.eq.f32.partialorder %v793_v55, 8.507059e+37 }
 0x137   :  { %v772_v6 = vmul.f32 %v4500_v30, %v771_v40  ;;  %v5206_v25 = vadd.f32 %v5016_v22, %v393_v42  ;;  %v1077_v43 = vpack.c.bf16 %v1052_v39, %v1051_v38  ;;  %vm779_vm12 = vcmp.eq.f32.partialorder %v778_v33, 8.507059e+37 }
 0x139   :  { %v4502_v44 = vpop.eup %4501  ;;  %v4066_v45 = vmul.f32 -1.442695, %v5206_v25  ;;  %1193 = vmatmul.bf16.gmra.mxu1 %v1077_v43  ;;  %v773_v49 = vadd.f32 %v4500_v30, %v772_v6 }
 0x13a   :  { %v4504_v47 = vpop.eup %4503  ;;  %v5209_v48 = vadd.f32 1.0, %v4502_v44 }
 0x13b   :  { %v785_v50 = vmul.f32 %v4504_v47, %v542_v62  ;;  %4505 = vpow2.f32 %v4066_v45  ;;  %v777_v58 = vsel %vm5215_vm10, %v4500_v30, %v773_v49  ;;  %vm790_vm11 = vweird.f32 %v4504_v47  ;;  %v4399_v62 = vld [vmem:[%s7819_s8 + $0x30] sm:$0xff]  ;;  %v5263_v45 = vld [vmem:[%s7818_s7] ss:$0 sm:$0xff] }
 0x13c   :  { %4507 = vrcp.f32 %v5209_v48  ;;  %v782_v2 = vsel %vm779_vm12, %v781_v37, %v777_v58  ;;  %vm791_vm14 = vmor %vm789_vm13, %vm790_vm11  ;;  %vm804_vm1 = vweird.f32 %v5209_v48  ;;  %v808_v23 = vand.u32 2147483647, %v5209_v48 }
 0x13d   :  { %v786_v51 = vsub.f32 1.0, %v785_v50  ;;  %v1053_v8 = vmul.f32 %v782_v2, %v5176_v53  ;;  %v4400_v53 = vld [vmem:[%s7819_s8 + $0x38] sm:$0xff] }
 0x13e   :  { %v396_v57 = vpop.f32.mrf.mxu0  ;;  %2080 = vmatpush.bf16.msra.mxu2 %v4400_v53  ;;  %vm809_vm5 = vcmp.eq.f32.partialorder %v808_v23, 8.507059e+37 }
 0x13f   :  { %v787_v59 = vmul.f32 %v4504_v47, %v786_v51  ;;  %v5222_v60 = vadd.f32 %v5016_v22, %v396_v57  ;;  %v4397_v57 = vld [vmem:[%s7819_s8 + $0x20] sm:$0xff] }
 0x141   :  { %v4506_v46 = vpop.eup %4505  ;;  %v788_v63 = vadd.f32 %v4504_v47, %v787_v59  ;;  %v4067_v0 = vmul.f32 -1.442695, %v5222_v60 }
 0x142   :  { %v4508_v1 = vpop.eup %4507  ;;  %v544_v4 = vadd.f32 1.0, %v4506_v46  ;;  %2081 = vmatpush.bf16.msra.mxu2 %v4399_v62 }
 0x143   :  { %v792_v5 = vsel %vm791_vm14, %v4504_v47, %v788_v63  ;;  %v800_v34 = vmul.f32 %v4508_v1, %v5209_v48  ;;  %4509 = vpow2.f32 %v4067_v0  ;;  %vm805_vm0 = vweird.f32 %v4508_v1 }
 0x144   :  { %v797_v7 = vsel %vm794_vm15, %v796_v3, %v792_v5  ;;  %4511 = vrcp.f32 %v544_v4  ;;  %v823_v26 = vand.u32 2147483647, %v544_v4  ;;  %v825_v27 = vand.u32 2147483648, %v544_v4  ;;  %vm5241_vm2 = vmor %vm804_vm1, %vm805_vm0 }
 0x145   :  { %v1054_v9 = vmul.f32 %v797_v7, %v5183_v54  ;;  %v801_v10 = vsub.f32 1.0, %v800_v34  ;;  %v810_v54 = vand.u32 2147483648, %v5209_v48  ;;  %vm819_vm4 = vweird.f32 %v544_v4  ;;  %v4398_v48 = vld [vmem:[%s7819_s8 + $0x28] sm:$0xff] }
 0x146   :  { %v398_v11 = vpop.f32.mrf.mxu0  ;;  %vm824_vm7 = vcmp.eq.f32.partialorder %v823_v26, 8.507059e+37  ;;  %v826_v40 = vor.u32 1.1754944e-38, %v825_v27  ;;  %2082 = vmatpush.bf16.msra.mxu2 %v4398_v48 }
 0x147   :  { %v5229_v12 = vadd.f32 %v5016_v22, %v398_v11  ;;  %v1078_v13 = vpack.c.bf16 %v1054_v9, %v1053_v8  ;;  %v802_v41 = vmul.f32 %v4508_v1, %v801_v10  ;;  %v811_v35 = vor.u32 1.1754944e-38, %v810_v54 }
 0x149   :  { %v4510_v61 = vpop.eup %4509  ;;  %v4068_v14 = vmul.f32 -1.442695, %v5229_v12  ;;  %1198 = vmatmul.bf16.gmra.mxu1 %v1078_v13  ;;  %v803_v20 = vadd.f32 %v4508_v1, %v802_v41 }
 0x14a   :  { %v4512_v17 = vpop.eup %4511  ;;  %v5232_v18 = vadd.f32 1.0, %v4510_v61  ;;  %2083 = vmatpush.bf16.msra.mxu2 %v4397_v57  ;;  %v4393_v57 = vld [vmem:[%s7819_s8] sm:$0xff] }
 0x14b   :  { %v815_v19 = vmul.f32 %v4512_v17, %v544_v4  ;;  %4513 = vpow2.f32 %v4068_v14  ;;  %vm820_vm3 = vweird.f32 %v4512_v17  ;;  %v807_v32 = vsel %vm5241_vm2, %v4508_v1, %v803_v20  ;;  %v4396_v14 = vld [vmem:[%s7819_s8 + $0x18] sm:$0xff] }
 0x14c   :  { %4515 = vrcp.f32 %v5232_v18  ;;  %vm821_vm6 = vmor %vm819_vm4, %vm820_vm3  ;;  %v812_v6 = vsel %vm809_vm5, %v811_v35, %v807_v32  ;;  %vm834_vm8 = vweird.f32 %v5232_v18  ;;  %v838_v2 = vand.u32 2147483647, %v5232_v18 }
 0x14d   :  { %v816_v21 = vsub.f32 1.0, %v815_v19  ;;  %v1055_v15 = vmul.f32 %v812_v6, %v5199_v24  ;;  %v840_v3 = vand.u32 2147483648, %v5232_v18 }
 0x14e   :  { %v401_v28 = vpop.f32.mrf.mxu0  ;;  %vm839_vm14 = vcmp.eq.f32.partialorder %v838_v2, 8.507059e+37  ;;  %2084 = vmatpush.bf16.msra.mxu2 %v4396_v14 }
 0x14f   :  { %v817_v30 = vmul.f32 %v4512_v17, %v816_v21  ;;  %v5246_v31 = vadd.f32 %v5016_v22, %v401_v28 }
 0x151   :  { %v4514_v16 = vpop.eup %4513  ;;  %v818_v36 = vadd.f32 %v4512_v17, %v817_v30  ;;  %v4069_v38 = vmul.f32 -1.442695, %v5246_v31  ;;  %v4395_v30 = vld [vmem:[%s7819_s8 + $0x10] sm:$0xff] }
 0x152   :  { %v5254_v39 = vpop.eup %4515  ;;  %v5256_v42 = vadd.f32 1.0, %v4514_v16  ;;  %2085 = vmatpush.bf16.msra.mxu2 %v4395_v30 }
 0x153   :  { %v822_v43 = vsel %vm821_vm6, %v4512_v17, %v818_v36  ;;  %v830_v44 = vmul.f32 %v5254_v39, %v5232_v18  ;;  %4517 = vpow2.f32 %v4069_v38  ;;  %vm835_vm9 = vweird.f32 %v5254_v39  ;;  %v5333_v36 = vld [vmem:[%s7816_s5] ss:$0 sm:$0xff] }
 0x154   :  { %v827_v47 = vsel %vm824_vm7, %v826_v40, %v822_v43  ;;  %4519 = vrcp.f32 %v5256_v42  ;;  %v853_v4 = vand.u32 2147483647, %v5256_v42  ;;  %v855_v5 = vand.u32 2147483648, %v5256_v42  ;;  %vm5302_vm11 = vmor %vm834_vm8, %vm835_vm9 }
 0x155   :  { %v1056_v49 = vmul.f32 %v827_v47, %v5206_v25  ;;  %v831_v50 = vsub.f32 1.0, %v830_v44  ;;  %vm849_vm12 = vweird.f32 %v5256_v42  ;;  %v841_v18 = vor.u32 1.1754944e-38, %v840_v3 }
 0x156   :  { %v403_v33 = vpop.f32.mrf.mxu0  ;;  %v1164_v51 = vpop.f32.mrf.mxu1  ;;  %v856_v19 = vor.u32 1.1754944e-38, %v855_v5  ;;  %vm854_vm15 = vcmp.eq.f32.partialorder %v853_v4, 8.507059e+37 }
 0x157   :  { %v5272_v52 = vadd.f32 %v5016_v22, %v403_v33  ;;  %v5275_v55 = vadd.f32 %v5263_v45, %v1164_v51  ;;  %v1079_v56 = vpack.c.bf16 %v1056_v49, %v1055_v15  ;;  %v832_v25 = vmul.f32 %v5254_v39, %v831_v50 }
 0x159   :  { %v4518_v58 = vpop.eup %4517  ;;  %v4070_v59 = vmul.f32 -1.442695, %v5272_v52  ;;  %v4113_v24 = vmul.f32 -1.442695, %v5275_v55  ;;  %1203 = vmatmul.bf16.gmra.mxu1 %v1079_v56  ;;  %v833_v0 = vadd.f32 %v5254_v39, %v832_v25 }
 0x15a   :  { %v4520_v37 = vpop.eup %4519  ;;  %v5283_v46 = vadd.f32 1.0, %v4518_v58 }
 0x15b   :  { %v845_v63 = vmul.f32 %v4520_v37, %v5256_v42  ;;  %4521 = vpow2.f32 %v4070_v59  ;;  %vm850_vm10 = vweird.f32 %v4520_v37  ;;  %v837_v41 = vsel %vm5302_vm11, %v5254_v39, %v833_v0 }
 0x15c   :  { %4523 = vrcp.f32 %v5283_v46  ;;  %vm851_vm13 = vmor %vm849_vm12, %vm850_vm10  ;;  %v842_v23 = vsel %vm839_vm14, %v841_v18, %v837_v41  ;;  %v868_v44 = vand.u32 2147483647, %v5283_v46  ;;  %v870_v33 = vand.u32 2147483648, %v5283_v46 }
 0x15d   :  { %v846_v1 = vsub.f32 1.0, %v845_v63  ;;  %4525 = vpow2.f32 %v4113_v24  ;;  %v1057_v16 = vmul.f32 %v842_v23, %v5222_v60  ;;  %v4394_v60 = vld [vmem:[%s7819_s8 + $0x8] sm:$0xff]  ;;  %vm864_vm0 = vweird.f32 %v5283_v46 }
 0x15e   :  { %v406_v34 = vpop.f32.mrf.mxu0  ;;  %v1166_v7 = vpop.f32.mrf.mxu1  ;;  %2086 = vmatpush.bf16.msra.mxu2 %v4394_v60  ;;  %vm5367_vm2 = vcmp.eq.f32.partialorder %v868_v44, 8.507059e+37 }
 0x15f   :  { %v847_v8 = vmul.f32 %v4520_v37, %v846_v1  ;;  %v5295_v9 = vadd.f32 %v5016_v22, %v406_v34  ;;  %v5298_v10 = vadd.f32 %v5263_v45, %v1166_v7  ;;  %v871_v1 = vor.u32 1.1754944e-38, %v870_v33 }
 0x161   :  { %v4522_v13 = vpop.eup %4521  ;;  %v848_v61 = vadd.f32 %v4520_v37, %v847_v8  ;;  %v4071_v22 = vmul.f32 -1.442695, %v5295_v9  ;;  %v4114_v53 = vmul.f32 -1.442695, %v5298_v10 }
 0x162   :  { %v5314_v17 = vpop.eup %4523  ;;  %v5316_v20 = vadd.f32 1.0, %v4522_v13  ;;  %2087 = vmatpush.bf16.msra.mxu2 %v4393_v57 }
 0x163   :  { %v4526_v54 = vpop.eup %4525  ;;  %v852_v21 = vsel %vm851_vm13, %v4520_v37, %v848_v61  ;;  %4527 = vpow2.f32 %v4071_v22  ;;  %v860_v27 = vmul.f32 %v5314_v17, %v5283_v46  ;;  %vm865_vm1 = vweird.f32 %v5314_v17 }
 0x164   :  { %v857_v26 = vsel %vm854_vm15, %v856_v19, %v852_v21  ;;  %4529 = vrcp.f32 %v5316_v20  ;;  %v5323_v29 = vadd.f32 1.0, %v4526_v54  ;;  %v883_v63 = vand.u32 2147483647, %v5316_v20  ;;  %vm5391_vm5 = vmor %vm864_vm0, %vm865_vm1 }
 0x165   :  { %v1058_v28 = vmul.f32 %v857_v26, %v5229_v12  ;;  %4531 = vpow2.f32 %v4114_v53  ;;  %v861_v35 = vsub.f32 1.0, %v860_v27  ;;  %vm879_vm3 = vweird.f32 %v5316_v20 }
 0x166   :  { %v408_v32 = vpop.f32.mrf.mxu0  ;;  %v1169_v62 = vpop.f32.mrf.mxu1  ;;  %4533 = vrcp.f32 %v5323_v29  ;;  %v885_v34 = vand.u32 2147483648, %v5316_v20  ;;  %vm1377_vm4 = vweird.f32 %v5323_v29  ;;  %v1381_v11 = vand.u32 2147483647, %v5323_v29 }
 0x167   :  { %v5336_v12 = vadd.f32 %v5333_v36, %v408_v32  ;;  %v5339_v38 = vadd.f32 %v5263_v45, %v1169_v62  ;;  %v1080_v40 = vpack.c.bf16 %v1058_v28, %v1057_v16  ;;  %v862_v49 = vmul.f32 %v5314_v17, %v861_v35 }
 0x168   :  { %vm5403_vm7 = vcmp.eq.f32.partialorder %v883_v63, 8.507059e+37  ;;  %v1383_v18 = vand.u32 2147483648, %v5323_v29  ;;  %vm1382_vm10 = vcmp.eq.f32.partialorder %v1381_v11, 8.507059e+37 }
 0x169   :  { %v4528_v39 = vpop.eup %4527  ;;  %v4072_v43 = vmul.f32 -1.442695, %v5336_v12  ;;  %1208 = vmatmul.bf16.gmra.mxu1 %v1080_v40  ;;  %v4115_v50 = vmul.f32 -1.442695, %v5339_v38  ;;  %v863_v37 = vadd.f32 %v5314_v17, %v862_v49 }
 0x16a   :  { %v5344_v42 = vpop.eup %4529  ;;  %v5346_v6 = vadd.f32 1.0, %v4528_v39  ;;  %v1384_v39 = vor.u32 1.1754944e-38, %v1383_v18 }
 0x16b   :  { %v875_v47 = vmul.f32 %v5344_v42, %v5316_v20  ;;  %v4532_v48 = vpop.eup %4531  ;;  %v867_v22 = vsel %vm5391_vm5, %v5314_v17, %v863_v37  ;;  %vm880_vm8 = vweird.f32 %v5344_v42  ;;  %v886_v17 = vor.u32 1.1754944e-38, %v885_v34 }
 0x16c   :  { %4535 = vrcp.f32 %v5346_v6  ;;  %v5355_v15 = vpop.eup %4533  ;;  %v5358_v56 = vadd.f32 1.0, %v4532_v48  ;;  %vm5434_vm11 = vmor %vm879_vm3, %vm880_vm8  ;;  %vm894_vm12 = vweird.f32 %v5346_v6  ;;  %v898_v44 = vand.u32 2147483647, %v5346_v6 }
 0x16d   :  { %v876_v51 = vsub.f32 1.0, %v875_v47  ;;  %v1373_v58 = vmul.f32 %v5355_v15, %v5323_v29  ;;  %4537 = vpow2.f32 %v4072_v43  ;;  %vm1378_vm6 = vweird.f32 %v5355_v15 }
 0x16e   :  { %v411_v25 = vpop.f32.mrf.mxu0  ;;  %v1171_v59 = vpop.f32.mrf.mxu1  ;;  %4539 = vrcp.f32 %v5358_v56  ;;  %vm5418_vm9 = vmor %vm1377_vm4, %vm1378_vm6  ;;  %v1396_v16 = vand.u32 2147483647, %v5358_v56  ;;  %v872_v29 = vsel %vm5367_vm2, %v871_v1, %v867_v22  ;;  %v1398_v60 = vand.u32 2147483648, %v5358_v56 }
 0x16f   :  { %v1374_v0 = vsub.f32 1.0, %v1373_v58  ;;  %4541 = vpow2.f32 %v4115_v50  ;;  %v877_v2 = vmul.f32 %v5344_v42, %v876_v51  ;;  %v5376_v3 = vadd.f32 %v5333_v36, %v411_v25 }
 0x170   :  { %v5379_v4 = vadd.f32 %v5263_v45, %v1171_v59  ;;  %v900_v47 = vand.u32 2147483648, %v5346_v6  ;;  %vm1392_vm14 = vweird.f32 %v5358_v56  ;;  %vm5449_vm15 = vcmp.eq.f32.partialorder %v1396_v16, 8.507059e+37 }
 0x171   :  { %v1375_v7 = vmul.f32 %v5355_v15, %v1374_v0  ;;  %v4073_v41 = vmul.f32 -1.442695, %v5376_v3  ;;  %v878_v54 = vadd.f32 %v5344_v42, %v877_v2  ;;  %v1399_v58 = vor.u32 1.1754944e-38, %v1398_v60 }
 0x172   :  { %v5381_v5 = vpop.eup %4535  ;;  %v4116_v19 = vmul.f32 -1.442695, %v5379_v4  ;;  %vm5484_vm2 = vcmp.eq.f32.partialorder %v898_v44, 8.507059e+37 }
 0x173   :  { %v890_v13 = vmul.f32 %v5381_v5, %v5346_v6  ;;  %v4538_v61 = vpop.eup %4537  ;;  %v1376_v14 = vadd.f32 %v5355_v15, %v1375_v7  ;;  %4543 = vpow2.f32 %v4073_v41  ;;  %v882_v43 = vsel %vm5434_vm11, %v5344_v42, %v878_v54 }
 0x174   :  { %v4540_v53 = vpop.eup %4539  ;;  %v5412_v21 = vadd.f32 1.0, %v4538_v61  ;;  %4545 = vpow2.f32 %v4116_v19  ;;  %vm895_vm0 = vweird.f32 %v5381_v5  ;;  %v1059_v41 = vmul.f32 %v872_v29, %v5246_v31 }
 0x175   :  { %v4542_v23 = vpop.eup %4541  ;;  %v891_v27 = vsub.f32 1.0, %v890_v13  ;;  %v1388_v28 = vmul.f32 %v4540_v53, %v5358_v56  ;;  %v1380_v62 = vsel %vm5418_vm9, %v5355_v15, %v1376_v14  ;;  %vm1393_vm13 = vweird.f32 %v4540_v53  ;;  %vm5494_vm4 = vmor %vm894_vm12, %vm895_vm0 }
 0x176   :  { %v413_v30 = vpop.f32.mrf.mxu0  ;;  %v1174_v32 = vpop.f32.mrf.mxu1  ;;  %4547 = vrcp.f32 %v5412_v21  ;;  %v5445_v48 = vadd.f32 1.0, %v4542_v23  ;;  %v1385_v20 = vsel %vm1382_vm10, %v1384_v39, %v1380_v62  ;;  %v887_v56 = vsel %vm5403_vm7, %v886_v17, %v882_v43  ;;  %vm1394_vm1 = vmor %vm1392_vm14, %vm1393_vm13 }
 0x177   :  { %v1389_v40 = vsub.f32 1.0, %v1388_v28  ;;  %v892_v49 = vmul.f32 %v5381_v5, %v891_v27  ;;  %v5455_v42 = vadd.f32 %v5333_v36, %v413_v30  ;;  %v1852_v24 = vmul.f32 %v1385_v20, %v5275_v55 }
 0x178   :  { %4549 = vrcp.f32 %v5445_v48  ;;  %v913_v37 = vand.u32 2147483647, %v5412_v21  ;;  %v915_v34 = vand.u32 2147483648, %v5412_v21  ;;  %v5477_v13 = vadd.f32 %v5263_v45, %v1174_v32 }
 0x179   :  { %v1390_v50 = vmul.f32 %v4540_v53, %v1389_v40  ;;  %v4544_v15 = vpop.eup %4543  ;;  %v893_v0 = vadd.f32 %v5381_v5, %v892_v49  ;;  %v4074_v55 = vmul.f32 -1.442695, %v5455_v42  ;;  %v1060_v61 = vmul.f32 %v887_v56, %v5272_v52 }
 0x17a   :  { %v4546_v51 = vpop.eup %4545  ;;  %v5458_v25 = vadd.f32 1.0, %v4544_v15  ;;  %v1884_v14 = vpack.c.bf16 %v1852_v24, %v1852_v24  ;;  %v901_v19 = vor.u32 1.1754944e-38, %v900_v47  ;;  %vm909_vm3 = vweird.f32 %v5412_v21 }
 0x17b   :  { %v1391_v57 = vadd.f32 %v4540_v53, %v1390_v50  ;;  %v5466_v63 = vadd.f32 1.0, %v4546_v51  ;;  %vm5499_vm5 = vcmp.eq.f32.partialorder %v913_v37, 8.507059e+37  ;;  %v916_v23 = vor.u32 1.1754944e-38, %v915_v34 }
 0x17c   :  { %v5460_v59 = vpop.eup %4547  ;;  %4551 = vrcp.f32 %v5458_v25  ;;  %v897_v17 = vsel %vm5494_vm4, %v5381_v5, %v893_v0  ;;  %v4117_v6 = vmul.f32 -1.442695, %v5477_v13  ;;  %v1081_v28 = vpack.c.bf16 %v1060_v61, %v1059_v41 }
 0x17d   :  { %v1395_v1 = vsel %vm1394_vm1, %v4540_v53, %v1391_v57  ;;  %v905_v2 = vmul.f32 %v5460_v59, %v5412_v21  ;;  %4553 = vrcp.f32 %v5466_v63  ;;  %vm910_vm6 = vweird.f32 %v5460_v59 }
 0x17e   :  { %v416_v7 = vpop.f32.mrf.mxu0  ;;  %v1176_v8 = vpop.f32.mrf.mxu1  ;;  %v1400_v11 = vsel %vm5449_vm15, %v1399_v58, %v1395_v1  ;;  %4555 = vpow2.f32 %v4074_v55  ;;  %vm1407_vm7 = vweird.f32 %v5445_v48  ;;  %vm5524_vm8 = vmor %vm909_vm3, %vm910_vm6  ;;  %v1411_v39 = vand.u32 2147483647, %v5445_v48  ;;  %1213 = vmatmul.bf16.gmra.mxu1 %v1081_v28 }
 0x17f   :  { %v906_v22 = vsub.f32 1.0, %v905_v2  ;;  %v5482_v46 = vpop.eup %4549  ;;  %v1853_v53 = vmul.f32 %v1400_v11, %v5298_v10  ;;  %v5512_v30 = vadd.f32 %v5333_v36, %v416_v7  ;;  %4557 = vpow2.f32 %v4117_v6 }
 0x180   :  { %v1403_v10 = vmul.f32 %v5482_v46, %v5445_v48  ;;  %v5518_v62 = vadd.f32 %v5263_v45, %v1176_v8  ;;  %v1413_v40 = vand.u32 2147483648, %v5445_v48  ;;  %vm1408_vm9 = vweird.f32 %v5482_v46 }
 0x181   :  { %v907_v52 = vmul.f32 %v5460_v59, %v906_v22  ;;  %v1885_v5 = vpack.c.bf16 %v1853_v53, %v1853_v53  ;;  %v4075_v47 = vmul.f32 -1.442695, %v5512_v30  ;;  %v1968_v33 = vunpack.c.l.b16 %v1884_v14  ;;  %vm5560_vm10 = vmor %vm1407_vm7, %vm1408_vm9 }
 0x182   :  { %v1404_v27 = vsub.f32 1.0, %v1403_v10  ;;  %v5514_v32 = vpop.eup %4551  ;;  %v4118_v15 = vmul.f32 -1.442695, %v5518_v62  ;;  %v902_v56 = vsel %vm5484_vm2, %v901_v19, %v897_v17  ;;  %v1414_v11 = vor.u32 1.1754944e-38, %v1413_v40 }
 0x183   :  { %v908_v26 = vadd.f32 %v5460_v59, %v907_v52  ;;  %v5520_v16 = vpop.eup %4553  ;;  %v920_v60 = vmul.f32 %v5514_v32, %v5458_v25  ;;  %4559 = vpow2.f32 %v4075_v47  ;;  %v1969_v58 = vunpack.c.l.b16 %v1885_v5 }
 0x184   :  { %v1405_v35 = vmul.f32 %v5482_v46, %v1404_v27  ;;  %v1418_v21 = vmul.f32 %v5520_v16, %v5466_v63  ;;  %v4556_v51 = vpop.eup %4555  ;;  %4561 = vpow2.f32 %v4118_v15  ;;  %v928_v55 = vand.u32 2147483647, %v5458_v25 }
 0x185   :  { %v912_v44 = vsel %vm5524_vm8, %v5460_v59, %v908_v26  ;;  %v921_v50 = vsub.f32 1.0, %v920_v60  ;;  %v5549_v37 = vadd.f32 1.0, %v4556_v51  ;;  %v4558_v0 = vpop.eup %4557  ;;  %v5553_v34 = vpack.c.b16 %v1969_v58, %v1968_v33 }
 0x186   :  { %v418_v43 = vpop.f32.mrf.mxu0  ;;  %v1179_v20 = vpop.f32.mrf.mxu1  ;;  %v1406_v49 = vadd.f32 %v5482_v46, %v1405_v35  ;;  %v1419_v57 = vsub.f32 1.0, %v1418_v21  ;;  %v917_v24 = vsel %vm5499_vm5, %v916_v23, %v912_v44  ;;  %vm1423_vm11 = vweird.f32 %v5520_v16 }
 0x187   :  { %v5543_v59 = vadd.f32 %v5333_v36, %v418_v43  ;;  %v922_v1 = vmul.f32 %v5514_v32, %v921_v50  ;;  %4563 = vrcp.f32 %v5549_v37  ;;  %v1428_v22 = vand.u32 2147483648, %v5466_v63  ;;  %2088 = vmatmul.bf16.vlgmr.msra.gmra.mxu2 %v5553_v34 }
 0x188   :  { %v1420_v2 = vmul.f32 %v5520_v16, %v1419_v57  ;;  %v1410_v41 = vsel %vm5560_vm10, %v5482_v46, %v1406_v49  ;;  %v5572_v48 = vadd.f32 1.0, %v4558_v0  ;;  %v1062_v14 = vmul.f32 %v917_v24, %v5336_v12 }
 0x189   :  { %v4076_v7 = vmul.f32 -1.442695, %v5543_v59  ;;  %vm1422_vm12 = vweird.f32 %v5466_v63  ;;  %v1426_v18 = vand.u32 2147483647, %v5466_v63  ;;  %v4560_v53 = vpop.eup %4559  ;;  %v1061_v31 = vmul.f32 %v902_v56, %v5295_v9 }
 0x18a   :  { %v1421_v61 = vadd.f32 %v5520_v16, %v1420_v2  ;;  %vm1412_vm13 = vcmp.eq.f32.partialorder %v1411_v39, 8.507059e+37  ;;  %v923_v46 = vadd.f32 %v5514_v32, %v922_v1  ;;  %vm925_vm14 = vweird.f32 %v5514_v32  ;;  %vm5583_vm15 = vmor %vm1422_vm12, %vm1423_vm11  ;;  %v4562_v54 = vpop.eup %4561 }
 0x18b   :  { %4565 = vpow2.f32 %v4076_v7  ;;  %v1415_v23 = vsel %vm1412_vm13, %v1414_v11, %v1410_v41  ;;  %v930_v63 = vand.u32 2147483648, %v5458_v25  ;;  %vm924_vm0 = vweird.f32 %v5458_v25 }
 0x18c   :  { %v1425_v9 = vsel %vm5583_vm15, %v5520_v16, %v1421_v61  ;;  %4567 = vrcp.f32 %v5572_v48  ;;  %v1429_v10 = vor.u32 1.1754944e-38, %v1428_v22  ;;  %v5593_v17 = vadd.f32 1.0, %v4560_v53  ;;  %vm5600_vm1 = vmor %vm924_vm0, %vm925_vm14 }
 0x18d   :  { %v5596_v6 = vadd.f32 %v5263_v45, %v1179_v20  ;;  %v5598_v26 = vpop.eup %4563  ;;  %vm5604_vm2 = vcmp.eq.f32.partialorder %v928_v55, 8.507059e+37  ;;  %vm1427_vm3 = vcmp.eq.f32.partialorder %v1426_v18, 8.507059e+37  ;;  %v5608_v5 = vadd.f32 1.0, %v4562_v54 }
 0x18e   :  { %v421_v19 = vpop.f32.mrf.mxu0  ;;  %v1181_v12 = vpop.f32.mrf.mxu1  ;;  %v1082_v25 = vpack.c.bf16 %v1062_v14, %v1061_v31  ;;  %v5611_v16 = vmul.f32 %v1415_v23, %v5339_v38  ;;  %v927_v29 = vsel %vm5600_vm1, %v5514_v32, %v923_v46  ;;  %v1430_v35 = vsel %vm1427_vm3, %v1429_v10, %v1425_v9 }
 0x18f   :  { %v935_v39 = vmul.f32 %v5598_v26, %v5549_v37  ;;  %v931_v60 = vor.u32 1.1754944e-38, %v930_v63  ;;  %v943_v43 = vand.u32 2147483647, %v5549_v37  ;;  %v945_v44 = vand.u32 2147483648, %v5549_v37 }
 0x190   :  { %4569 = vrcp.f32 %v5593_v17  ;;  %vm939_vm4 = vweird.f32 %v5549_v37  ;;  %v4119_v38 = vmul.f32 -1.442695, %v5596_v6  ;;  %v1855_v20 = vmul.f32 %v1430_v35, %v5379_v4  ;;  %1218 = vmatmul.bf16.gmra.mxu1 %v1082_v25 }
 0x191   :  { %v4566_v40 = vpop.eup %4565  ;;  %v936_v21 = vsub.f32 1.0, %v935_v39  ;;  %4571 = vrcp.f32 %v5608_v5  ;;  %v932_v47 = vsel %vm5604_vm2, %v931_v60, %v927_v29  ;;  %v5632_v50 = vadd.f32 %v5333_v36, %v421_v19 }
 0x192   :  { %v5624_v32 = vpop.eup %4567  ;;  %v5629_v49 = vadd.f32 1.0, %v4566_v40  ;;  %v1886_v15 = vpack.c.bf16 %v5611_v16, %v5611_v16  ;;  %v1441_v57 = vand.u32 2147483647, %v5572_v48  ;;  %vm5642_vm5 = vcmp.eq.f32.partialorder %v943_v43, 8.507059e+37 }
 0x193   :  { %v937_v33 = vmul.f32 %v5598_v26, %v936_v21  ;;  %v1433_v51 = vmul.f32 %v5624_v32, %v5572_v48  ;;  %v946_v56 = vor.u32 1.1754944e-38, %v945_v44  ;;  %v1443_v24 = vand.u32 2147483648, %v5572_v48 }
 0x194   :  { %4573 = vrcp.f32 %v5629_v49  ;;  %v5651_v1 = vmul.f32 %v932_v47, %v5376_v3  ;;  %vm940_vm6 = vweird.f32 %v5598_v26  ;;  %v4077_v11 = vmul.f32 -1.442695, %v5632_v50 }
 0x195   :  { %v1434_v2 = vsub.f32 1.0, %v1433_v51  ;;  %4575 = vpow2.f32 %v4119_v38  ;;  %v938_v8 = vadd.f32 %v5598_v26, %v937_v33  ;;  %v5659_v55 = vadd.f32 %v5263_v45, %v1181_v12  ;;  %vm5676_vm10 = vmor %vm939_vm4, %vm940_vm6 }
 0x196   :  { %v5640_v58 = vpop.f32.mrf.mxu1  ;;  %v5648_v0 = vpop.f32.mrf.mxu0  ;;  %v1887_v41 = vpack.c.bf16 %v1855_v20, %v1855_v20  ;;  %vm1437_vm7 = vweird.f32 %v5572_v48  ;;  %vm5663_vm8 = vcmp.eq.f32.partialorder %v1441_v57, 8.507059e+37  ;;  %vm1438_vm9 = vweird.f32 %v5624_v32 }
 0x197   :  { %v5654_v7 = vpop.eup %4569  ;;  %v1435_v22 = vmul.f32 %v5624_v32, %v1434_v2  ;;  %v1444_v18 = vor.u32 1.1754944e-38, %v1443_v24  ;;  %v958_v19 = vand.u32 2147483647, %v5593_v17  ;;  %v1456_v12 = vand.u32 2147483647, %v5608_v5  ;;  %vm5692_vm11 = vmor %vm1437_vm7, %vm1438_vm9 }
 0x198   :  { %v4572_v61 = vpop.eup %4571  ;;  %v950_v14 = vmul.f32 %v5654_v7, %v5593_v17  ;;  %4577 = vpow2.f32 %v4077_v11  ;;  %v942_v23 = vsel %vm5676_vm10, %v5598_v26, %v938_v8  ;;  %v4120_v9 = vmul.f32 -1.442695, %v5659_v55 }
 0x199   :  { %v1448_v53 = vmul.f32 %v4572_v61, %v5608_v5  ;;  %v1436_v46 = vadd.f32 %v5624_v32, %v1435_v22  ;;  %v1971_v37 = vunpack.c.l.b16 %v1887_v41  ;;  %vm954_vm12 = vweird.f32 %v5593_v17 }
 0x19a   :  { %v951_v52 = vsub.f32 1.0, %v950_v14  ;;  %v5682_v54 = vpop.eup %4573  ;;  %vm1453_vm13 = vweird.f32 %v4572_v61  ;;  %v1458_v28 = vand.u32 2147483648, %v5608_v5  ;;  %v1970_v25 = vunpack.c.l.b16 %v1886_v15 }
 0x19b   :  { %v1449_v63 = vsub.f32 1.0, %v1448_v53  ;;  %v4576_v10 = vpop.eup %4575  ;;  %v965_v26 = vmul.f32 %v5682_v54, %v5629_v49  ;;  %v1440_v29 = vsel %vm5692_vm11, %v5624_v32, %v1436_v46  ;;  %4579 = vpow2.f32 %v4120_v9 }
 0x19c   :  { %v5703_v48 = vadd.f32 1.0, %v4576_v10  ;;  %v947_v39 = vsel %vm5642_vm5, %v946_v56, %v942_v23  ;;  %v952_v40 = vmul.f32 %v5654_v7, %v951_v52  ;;  %v5708_v43 = vpack.c.b16 %v1971_v37, %v1970_v25 }
 0x19d   :  { %v1450_v35 = vmul.f32 %v4572_v61, %v1449_v63  ;;  %v966_v60 = vsub.f32 1.0, %v965_v26  ;;  %v960_v44 = vand.u32 2147483648, %v5593_v17  ;;  %vm1452_vm14 = vweird.f32 %v5608_v5 }
 0x19e   :  { %v1186_v16 = vpop.f32.mrf.mxu1  ;;  %4581 = vrcp.f32 %v5703_v48  ;;  %v426_v38 = vpop.f32.mrf.mxu0  ;;  %v1445_v47 = vsel %vm5663_vm8, %v1444_v18, %v1440_v29  ;;  %vm1454_vm15 = vmor %vm1452_vm14, %vm1453_vm13  ;;  %vm1457_vm0 = vcmp.eq.f32.partialorder %v1456_v12, 8.507059e+37  ;;  %v1459_v20 = vor.u32 1.1754944e-38, %v1458_v28  ;;  %2093 = vmatmul.bf16.gmra.mxu2 %v5708_v43 }
 0x19f   :  { %v1451_v21 = vadd.f32 %v4572_v61, %v1450_v35  ;;  %v4578_v32 = vpop.eup %4577  ;;  %v967_v15 = vmul.f32 %v5682_v54, %v966_v60  ;;  %v1064_v33 = vmul.f32 %v947_v39, %v5455_v42  ;;  %v973_v5 = vand.u32 2147483647, %v5629_v49 }
 0x1a0   :  { %v5720_v57 = vadd.f32 1.0, %v4578_v32  ;;  %v953_v4 = vadd.f32 %v5654_v7, %v952_v40  ;;  %vm955_vm1 = vweird.f32 %v5654_v7  ;;  %v975_v24 = vand.u32 2147483648, %v5629_v49 }
 0x1a1   :  { %v1455_v51 = vsel %vm1454_vm15, %v4572_v61, %v1451_v21  ;;  %v4580_v2 = vpop.eup %4579  ;;  %v1856_v8 = vmul.f32 %v1445_v47, %v5477_v13  ;;  %v968_v11 = vadd.f32 %v5682_v54, %v967_v15  ;;  %vm970_vm2 = vweird.f32 %v5682_v54  ;;  %vm5743_vm4 = vmor %vm954_vm12, %vm955_vm1 }
 0x1a2   :  { %v1460_v56 = vsel %vm1457_vm0, %v1459_v20, %v1455_v51  ;;  %4583 = vrcp.f32 %v5720_v57  ;;  %vm5729_vm3 = vcmp.eq.f32.partialorder %v958_v19, 8.507059e+37  ;;  %v961_v41 = vor.u32 1.1754944e-38, %v960_v44 }
 0x1a3   :  { %v5733_v61 = vadd.f32 1.0, %v4580_v2  ;;  %v5737_v22 = vadd.f32 %v5333_v36, %v5648_v0  ;;  %v1857_v18 = vmul.f32 %v1460_v56, %v5518_v62  ;;  %vm969_vm5 = vweird.f32 %v5629_v49 }
 0x1a4   :  { %v5739_v14 = vpop.eup %4581  ;;  %v5751_v19 = vadd.f32 %v5263_v45, %v5640_v58  ;;  %v1083_v0 = vpack.c.bf16 %v1064_v33, %v5651_v1  ;;  %v957_v53 = vsel %vm5743_vm4, %v5654_v7, %v953_v4  ;;  %vm5757_vm6 = vmor %vm969_vm5, %vm970_vm2  ;;  %vm5761_vm7 = vcmp.eq.f32.partialorder %v973_v5, 8.507059e+37 }
 0x1a5   :  { %v976_v62 = vor.u32 1.1754944e-38, %v975_v24  ;;  %v1463_v49 = vmul.f32 %v5739_v14, %v5703_v48  ;;  %v1888_v58 = vpack.c.bf16 %v1856_v8, %v1856_v8  ;;  %v972_v1 = vsel %vm5757_vm6, %v5682_v54, %v968_v11 }
 0x1a6   :  { %v1189_v3 = vpop.f32.mrf.mxu1  ;;  %v1471_v46 = vand.u32 2147483647, %v5703_v48  ;;  %4585 = vrcp.f32 %v5733_v61  ;;  %1223 = vmatmul.bf16.gmra.mxu1 %v1083_v0  ;;  %v4078_v52 = vmul.f32 -1.442695, %v5737_v22  ;;  %v4121_v12 = vmul.f32 -1.442695, %v5751_v19  ;;  %v428_v27 = vpop.f32.mrf.mxu0 }
 0x1a7   :  { %v1464_v7 = vsub.f32 1.0, %v1463_v49  ;;  %v5775_v23 = vadd.f32 %v5333_v36, %v426_v38  ;;  %v962_v9 = vsel %vm5729_vm3, %v961_v41, %v957_v53  ;;  %v1473_v54 = vand.u32 2147483648, %v5703_v48 }
 0x1a8   :  { %v5777_v63 = vpop.eup %4583  ;;  %v5783_v37 = vadd.f32 %v5263_v45, %v1186_v16  ;;  %v1889_v10 = vpack.c.bf16 %v1857_v18, %v1857_v18  ;;  %v977_v28 = vsel %vm5761_vm7, %v976_v62, %v972_v1  ;;  %4587 = vpow2.f32 %v4078_v52 }
 0x1a9   :  { %v1465_v26 = vmul.f32 %v5739_v14, %v1464_v7  ;;  %v980_v25 = vmul.f32 %v5777_v63, %v5720_v57  ;;  %vm1468_vm8 = vweird.f32 %v5739_v14  ;;  %4589 = vpow2.f32 %v4121_v12 }
 0x1aa   :  { %v4079_v29 = vmul.f32 -1.442695, %v5775_v23  ;;  %v4122_v35 = vmul.f32 -1.442695, %v5783_v37  ;;  %v1973_v40 = vunpack.c.l.b16 %v1889_v10  ;;  %v5795_v60 = vadd.f32 %v5333_v36, %v428_v27 }
 0x1ab   :  { %v1466_v16 = vadd.f32 %v5739_v14, %v1465_v26  ;;  %v981_v39 = vsub.f32 1.0, %v980_v25  ;;  %v1066_v38 = vmul.f32 %v977_v28, %v5543_v59  ;;  %vm1467_vm9 = vweird.f32 %v5703_v48 }
 0x1ac   :  { %v4586_v21 = vpop.eup %4585  ;;  %4591 = vpow2.f32 %v4079_v29  ;;  %v1972_v32 = vunpack.c.l.b16 %v1888_v58  ;;  %v1065_v47 = vmul.f32 %v962_v9, %v5512_v30  ;;  %vm5800_vm10 = vcmp.eq.f32.partialorder %v1471_v46, 8.507059e+37  ;;  %vm5810_vm11 = vmor %vm1467_vm9, %vm1468_vm8 }
 0x1ad   :  { %v1478_v15 = vmul.f32 %v4586_v21, %v5733_v61  ;;  %v5806_v33 = vadd.f32 %v5263_v45, %v1189_v3  ;;  %v982_v59 = vmul.f32 %v5777_v63, %v981_v39  ;;  %4593 = vpow2.f32 %v4122_v35 }
 0x1ae   :  { %v1191_v44 = vpop.f32.mrf.mxu1  ;;  %v5815_v48 = vpack.c.b16 %v1973_v40, %v1972_v32  ;;  %v4080_v30 = vmul.f32 -1.442695, %v5795_v60  ;;  %v4588_v51 = vpop.eup %4587  ;;  %v1470_v5 = vsel %vm5810_vm11, %v5739_v14, %v1466_v16  ;;  %v1474_v4 = vor.u32 1.1754944e-38, %v1473_v54 }
 0x1af   :  { %v1479_v56 = vsub.f32 1.0, %v1478_v15  ;;  %v1486_v24 = vand.u32 2147483647, %v5733_v61  ;;  %v4590_v2 = vpop.eup %4589  ;;  %vm985_vm12 = vweird.f32 %v5777_v63  ;;  %v1488_v8 = vand.u32 2147483648, %v5733_v61 }
 0x1b0   :  { %v5824_v11 = vadd.f32 1.0, %v4588_v51  ;;  %2098 = vmatmul.bf16.gmra.mxu2 %v5815_v48  ;;  %v1084_v42 = vpack.c.bf16 %v1066_v38, %v1065_v47  ;;  %vm1483_vm13 = vweird.f32 %v4586_v21  ;;  %v5827_v3 = vadd.f32 1.0, %v4590_v2 }
 0x1b1   :  { %v1480_v41 = vmul.f32 %v4586_v21, %v1479_v56  ;;  %4595 = vpow2.f32 %v4080_v30  ;;  %v1475_v13 = vsel %vm5800_vm10, %v1474_v4, %v1470_v5  ;;  %v983_v18 = vadd.f32 %v5777_v63, %v982_v59 }
 0x1b2   :  { %v4592_v14 = vpop.eup %4591  ;;  %4597 = vrcp.f32 %v5824_v11  ;;  %v4123_v0 = vmul.f32 -1.442695, %v5806_v33  ;;  %v990_v53 = vand.u32 2147483648, %v5720_v57  ;;  %vm1482_vm14 = vweird.f32 %v5733_v61 }
 0x1b3   :  { %v1481_v17 = vadd.f32 %v4586_v21, %v1480_v41  ;;  %4599 = vrcp.f32 %v5827_v3  ;;  %v4594_v62 = vpop.eup %4593  ;;  %vm984_vm15 = vweird.f32 %v5720_v57  ;;  %v988_v49 = vand.u32 2147483647, %v5720_v57  ;;  %vm1484_vm0 = vmor %vm1482_vm14, %vm1483_vm13 }
 0x1b4   :  { %v1489_v58 = vor.u32 1.1754944e-38, %v1488_v8  ;;  %v5843_v1 = vadd.f32 %v5263_v45, %v1191_v44  ;;  %v5846_v46 = vmul.f32 %v1475_v13, %v5596_v6  ;;  %vm5850_vm1 = vmor %vm984_vm15, %vm985_vm12  ;;  %v5854_v52 = vadd.f32 1.0, %v4592_v14 }
 0x1b5   :  { %v1485_v7 = vsel %vm1484_vm0, %v4586_v21, %v1481_v17  ;;  %v5856_v12 = vadd.f32 1.0, %v4594_v62  ;;  %v987_v57 = vsel %vm5850_vm1, %v5777_v63, %v983_v18  ;;  %vm1487_vm2 = vcmp.eq.f32.partialorder %v1486_v24, 8.507059e+37 }
 0x1b6   :  { %v5837_v31 = vpop.f32.mrf.mxu1  ;;  %4601 = vpow2.f32 %v4123_v0  ;;  %1228 = vmatmul.bf16.gmra.mxu1 %v1084_v42  ;;  %v991_v6 = vor.u32 1.1754944e-38, %v990_v53  ;;  %v1490_v9 = vsel %vm1487_vm2, %v1489_v58, %v1485_v7  ;;  %vm989_vm3 = vcmp.eq.f32.partialorder %v988_v49, 8.507059e+37  ;;  %v5919_v49 = vld [vmem:[%s7818_s7] ss:$0 sm:$0xff] }
 0x1b7   :  { %v4596_v45 = vpop.eup %4595  ;;  %4603 = vrcp.f32 %v5854_v52  ;;  %v1003_v10 = vand.u32 2147483647, %v5824_v11  ;;  %v4124_v27 = vmul.f32 -1.442695, %v5843_v1  ;;  %v1890_v63 = vpack.c.bf16 %v5846_v46, %v5846_v46 }
 0x1b8   :  { %v4598_v54 = vpop.eup %4597  ;;  %4605 = vrcp.f32 %v5856_v12  ;;  %v992_v26 = vsel %vm989_vm3, %v991_v6, %v987_v57  ;;  %v1859_v29 = vmul.f32 %v1490_v9, %v5659_v55  ;;  %vm999_vm4 = vweird.f32 %v5824_v11 }
 0x1b9   :  { %v5865_v28 = vpop.eup %4599  ;;  %v995_v25 = vmul.f32 %v4598_v54, %v5824_v11  ;;  %v1005_v35 = vand.u32 2147483648, %v5824_v11  ;;  %v1501_v40 = vand.u32 2147483647, %v5827_v3  ;;  %v1503_v44 = vand.u32 2147483648, %v5827_v3 }
 0x1ba   :  { %v1493_v16 = vmul.f32 %v5865_v28, %v5827_v3  ;;  %v5877_v21 = vadd.f32 1.0, %v4596_v45  ;;  %v5882_v47 = vmul.f32 %v992_v26, %v5632_v50  ;;  %vm5884_vm5 = vcmp.eq.f32.partialorder %v1003_v10, 8.507059e+37 }
 0x1bb   :  { %v996_v39 = vsub.f32 1.0, %v995_v25  ;;  %4607 = vpow2.f32 %v4124_v27  ;;  %vm1000_vm6 = vweird.f32 %v4598_v54  ;;  %vm1497_vm7 = vweird.f32 %v5827_v3 }
 0x1bc   :  { %v4602_v32 = vpop.eup %4601  ;;  %v1494_v20 = vsub.f32 1.0, %v1493_v16  ;;  %4609 = vrcp.f32 %v5877_v21  ;;  %v1006_v30 = vor.u32 1.1754944e-38, %v1005_v35  ;;  %v1891_v5 = vpack.c.bf16 %v1859_v29, %v1859_v29  ;;  %vm5902_vm9 = vmor %vm999_vm4, %vm1000_vm6 }
 0x1bd   :  { %v5888_v15 = vpop.eup %4603  ;;  %v997_v36 = vmul.f32 %v4598_v54, %v996_v39  ;;  %vm5895_vm8 = vcmp.eq.f32.partialorder %v1501_v40, 8.507059e+37  ;;  %v1504_v24 = vor.u32 1.1754944e-38, %v1503_v44  ;;  %vm1498_vm10 = vweird.f32 %v5865_v28 }
 0x1be   :  { %v5879_v38 = vpop.f32.mrf.mxu1  ;;  %v4606_v59 = vpop.eup %4605  ;;  %v1495_v51 = vmul.f32 %v5865_v28, %v1494_v20  ;;  %v1010_v50 = vmul.f32 %v5888_v15, %v5854_v52  ;;  %v1018_v41 = vand.u32 2147483647, %v5854_v52  ;;  %v5909_v14 = vadd.f32 1.0, %v4602_v32  ;;  %vm5929_vm11 = vmor %vm1497_vm7, %vm1498_vm10 }
 0x1bf   :  { %v998_v4 = vadd.f32 %v4598_v54, %v997_v36  ;;  %v1508_v2 = vmul.f32 %v4606_v59, %v5856_v12  ;;  %v1516_v0 = vand.u32 2147483647, %v5856_v12  ;;  %v1518_v11 = vand.u32 2147483648, %v5856_v12 }
 0x1c0   :  { %v1496_v42 = vadd.f32 %v5865_v28, %v1495_v51  ;;  %v1011_v17 = vsub.f32 1.0, %v1010_v50  ;;  %4611 = vrcp.f32 %v5909_v14  ;;  %v1975_v62 = vunpack.c.l.b16 %v1891_v5 }
 0x1c1   :  { %v1002_v13 = vsel %vm5902_vm9, %v4598_v54, %v998_v4  ;;  %v1509_v18 = vsub.f32 1.0, %v1508_v2  ;;  %v4608_v53 = vpop.eup %4607  ;;  %v5923_v58 = vadd.f32 %v5919_v49, %v5837_v31  ;;  %v1020_v7 = vand.u32 2147483648, %v5854_v52 }
 0x1c2   :  { %v5925_v46 = vpop.eup %4609  ;;  %vm1512_vm12 = vweird.f32 %v5856_v12  ;;  %vm1513_vm13 = vweird.f32 %v4606_v59  ;;  %v1007_v6 = vsel %vm5884_vm5, %v1006_v30, %v1002_v13  ;;  %v1500_v31 = vsel %vm5929_vm11, %v5865_v28, %v1496_v42 }
 0x1c3   :  { %v1510_v57 = vmul.f32 %v4606_v59, %v1509_v18  ;;  %vm1014_vm14 = vweird.f32 %v5854_v52  ;;  %v1025_v3 = vmul.f32 %v5925_v46, %v5877_v21  ;;  %v1974_v9 = vunpack.c.l.b16 %v1890_v63  ;;  %vm1514_vm0 = vmor %vm1512_vm12, %vm1513_vm13 }
 0x1c4   :  { %vm1517_vm15 = vcmp.eq.f32.partialorder %v1516_v0, 8.507059e+37  ;;  %v1519_v10 = vor.u32 1.1754944e-38, %v1518_v11  ;;  %v5943_v27 = vadd.f32 1.0, %v4608_v53  ;;  %v1012_v12 = vmul.f32 %v5888_v15, %v1011_v17 }
 0x1c5   :  { %v1511_v54 = vadd.f32 %v4606_v59, %v1510_v57  ;;  %v1026_v26 = vsub.f32 1.0, %v1025_v3  ;;  %v5946_v25 = vpack.c.b16 %v1975_v62, %v1974_v9  ;;  %v4125_v29 = vmul.f32 -1.442695, %v5923_v58 }
 0x1c6   :  { %v1199_v45 = vpop.f32.mrf.mxu1  ;;  %v1068_v28 = vmul.f32 %v1007_v6, %v5737_v22  ;;  %v1505_v35 = vsel %vm5895_vm8, %v1504_v24, %v1500_v31  ;;  %v1033_v63 = vand.u32 2147483647, %v5877_v21  ;;  %v5953_v39 = vpop.eup %4611  ;;  %vm5955_vm1 = vcmp.eq.f32.partialorder %v1018_v41, 8.507059e+37 }
 0x1c7   :  { %v1515_v16 = vsel %vm1514_vm0, %v4606_v59, %v1511_v54  ;;  %v1027_v32 = vmul.f32 %v5925_v46, %v1026_v26  ;;  %v1035_v55 = vand.u32 2147483648, %v5877_v21  ;;  %4613 = vrcp.f32 %v5943_v27  ;;  %2103 = vmatmul.bf16.gmra.mxu2 %v5946_v25 }
 0x1c8   :  { %v1520_v44 = vsel %vm1517_vm15, %v1519_v10, %v1515_v16  ;;  %vm1015_vm2 = vweird.f32 %v5888_v15  ;;  %v1021_v22 = vor.u32 1.1754944e-38, %v1020_v7  ;;  %v1523_v36 = vmul.f32 %v5953_v39, %v5909_v14 }
 0x1c9   :  { %v1861_v20 = vmul.f32 %v1520_v44, %v5783_v37  ;;  %v1860_v59 = vmul.f32 %v1505_v35, %v5751_v19  ;;  %v1013_v30 = vadd.f32 %v5888_v15, %v1012_v12  ;;  %vm1030_vm3 = vweird.f32 %v5925_v46  ;;  %vm5985_vm6 = vmor %vm1014_vm14, %vm1015_vm2 }
 0x1ca   :  { %4615 = vpow2.f32 %v4125_v29  ;;  %v1028_v51 = vadd.f32 %v5925_v46, %v1027_v32  ;;  %v1524_v50 = vsub.f32 1.0, %v1523_v36  ;;  %v1085_v5 = vpack.c.bf16 %v1068_v28, %v5882_v47 }
 0x1cb   :  { %v5974_v4 = vadd.f32 %v5919_v49, %v5879_v38  ;;  %v1893_v56 = vpack.c.bf16 %v1861_v20, %v1861_v20  ;;  %vm1029_vm4 = vweird.f32 %v5877_v21  ;;  %vm5977_vm5 = vcmp.eq.f32.partialorder %v1033_v63, 8.507059e+37 }
 0x1cc   :  { %v1036_v24 = vor.u32 1.1754944e-38, %v1035_v55  ;;  %v1525_v38 = vmul.f32 %v5953_v39, %v1524_v50  ;;  %vm1527_vm7 = vweird.f32 %v5909_v14  ;;  %v1533_v47 = vand.u32 2147483648, %v5909_v14  ;;  %1233 = vmatmul.bf16.gmra.mxu1 %v1085_v5  ;;  %vm5998_vm8 = vmor %vm1029_vm4, %vm1030_vm3 }
 0x1cd   :  { %v4126_v21 = vmul.f32 -1.442695, %v5974_v4  ;;  %v4614_v8 = vpop.eup %4613  ;;  %v1892_v42 = vpack.c.bf16 %v1860_v59, %v1860_v59  ;;  %v1017_v41 = vsel %vm5985_vm6, %v5888_v15, %v1013_v30  ;;  %v6003_v13 = vadd.f32 %v5919_v49, %v1199_v45 }
 0x1ce   :  { %v1201_v37 = vpop.f32.mrf.mxu1  ;;  %v1032_v0 = vsel %vm5998_vm8, %v5925_v46, %v1028_v51  ;;  %vm1528_vm9 = vweird.f32 %v5953_v39  ;;  %v1538_v15 = vmul.f32 %v4614_v8, %v5943_v27  ;;  %v1526_v53 = vadd.f32 %v5953_v39, %v1525_v38 }
 0x1cf   :  { %v6006_v18 = vadd.f32 %v5919_v49, %v1201_v37  ;;  %4617 = vpow2.f32 %v4126_v21  ;;  %v1977_v17 = vunpack.c.l.b16 %v1893_v56  ;;  %v4127_v62 = vmul.f32 -1.442695, %v6003_v13  ;;  %vm6028_vm10 = vmor %vm1527_vm7, %vm1528_vm9 }
 0x1d0   :  { %v4616_v11 = vpop.eup %4615  ;;  %v1022_v7 = vsel %vm5955_vm1, %v1021_v22, %v1017_v41  ;;  %v1531_v57 = vand.u32 2147483647, %v5909_v14  ;;  %v1539_v45 = vsub.f32 1.0, %v1538_v15  ;;  %v1037_v6 = vsel %vm5977_vm5, %v1036_v24, %v1032_v0 }
 0x1d1   :  { %v4128_v61 = vmul.f32 -1.442695, %v6006_v18  ;;  %v6019_v46 = vadd.f32 1.0, %v4616_v11  ;;  %v1548_v31 = vand.u32 2147483648, %v5943_v27  ;;  %v1976_v3 = vunpack.c.l.b16 %v1892_v42 }
 0x1d2   :  { %4619 = vpow2.f32 %v4127_v62  ;;  %v1540_v54 = vmul.f32 %v4614_v8, %v1539_v45  ;;  %vm1543_vm11 = vweird.f32 %v4614_v8  ;;  %v1546_v10 = vand.u32 2147483647, %v5943_v27 }
 0x1d3   :  { %4621 = vrcp.f32 %v6019_v46  ;;  %v1530_v26 = vsel %vm6028_vm10, %v5953_v39, %v1526_v53  ;;  %v1534_v29 = vor.u32 1.1754944e-38, %v1533_v47  ;;  %v6037_v28 = vpack.c.b16 %v1977_v17, %v1976_v3 }
 0x1d4   :  { %4623 = vpow2.f32 %v4128_v61  ;;  %v1070_v35 = vmul.f32 %v1037_v6, %v5795_v60  ;;  %v1541_v16 = vadd.f32 %v4614_v8, %v1540_v54  ;;  %vm1542_vm12 = vweird.f32 %v5943_v27 }
 0x1d5   :  { %v4618_v14 = vpop.eup %4617  ;;  %vm1532_vm13 = vcmp.eq.f32.partialorder %v1531_v57, 8.507059e+37  ;;  %vm1544_vm14 = vmor %vm1542_vm12, %vm1543_vm11  ;;  %v1549_v40 = vor.u32 1.1754944e-38, %v1548_v31  ;;  %v1069_v39 = vmul.f32 %v1022_v7, %v5775_v23  ;;  %vm1547_vm15 = vcmp.eq.f32.partialorder %v1546_v10, 8.507059e+37 }
 0x1d6   :  { %v1204_v12 = vpop.f32.mrf.mxu1  ;;  %v6044_v44 = vadd.f32 1.0, %v4618_v14  ;;  %v1535_v32 = vsel %vm1532_vm13, %v1534_v29, %v1530_v26  ;;  %v1545_v55 = vsel %vm1544_vm14, %v4614_v8, %v1541_v16  ;;  %v1561_v24 = vand.u32 2147483647, %v6019_v46 }
 0x1d7   :  { %v6042_v63 = vadd.f32 %v5919_v49, %v1204_v12  ;;  %v1550_v20 = vsel %vm1547_vm15, %v1549_v40, %v1545_v55  ;;  %2108 = vmatmul.bf16.gmra.mxu2 %v6037_v28  ;;  %v1086_v59 = vpack.c.bf16 %v1070_v35, %v1069_v39  ;;  %v1862_v23 = vmul.f32 %v1535_v32, %v5806_v33 }
 0x1d8   :  { %v4620_v22 = vpop.eup %4619  ;;  %4625 = vrcp.f32 %v6044_v44  ;;  %v1863_v27 = vmul.f32 %v1550_v20, %v5843_v1  ;;  %v1563_v1 = vand.u32 2147483648, %v6019_v46  ;;  %v1576_v8 = vand.u32 2147483647, %v6044_v44 }
 0x1d9   :  { %v4622_v60 = vpop.eup %4621  ;;  %v6050_v36 = vadd.f32 1.0, %v4620_v22  ;;  %v4129_v30 = vmul.f32 -1.442695, %v6042_v63  ;;  %v1894_v33 = vpack.c.bf16 %v1862_v23, %v1862_v23  ;;  %v1578_v42 = vand.u32 2147483648, %v6044_v44 }
 0x1da   :  { %v4624_v51 = vpop.eup %4623  ;;  %v1553_v50 = vmul.f32 %v4622_v60, %v6019_v46  ;;  %v1895_v37 = vpack.c.bf16 %v1863_v27, %v1863_v27  ;;  %vm1557_vm0 = vweird.f32 %v6019_v46  ;;  %vm1558_vm1 = vweird.f32 %v4622_v60 }
 0x1db   :  { %4627 = vrcp.f32 %v6050_v36  ;;  %v6056_v19 = vadd.f32 1.0, %v4624_v51  ;;  %vm6068_vm2 = vcmp.eq.f32.partialorder %v1561_v24, 8.507059e+37  ;;  %v1564_v11 = vor.u32 1.1754944e-38, %v1563_v1  ;;  %vm6076_vm4 = vmor %vm1557_vm0, %vm1558_vm1 }
 0x1dc   :  { %v1554_v56 = vsub.f32 1.0, %v1553_v50  ;;  %1238 = vmatmul.bf16.gmra.mxu1 %v1086_v59  ;;  %4629 = vpow2.f32 %v4129_v30  ;;  %v1979_v52 = vunpack.c.l.b16 %v1895_v37  ;;  %vm1572_vm3 = vweird.f32 %v6044_v44 }
 0x1dd   :  { %4631 = vrcp.f32 %v6056_v19  ;;  %v1593_v61 = vand.u32 2147483648, %v6050_v36  ;;  %v1978_v7 = vunpack.c.l.b16 %v1894_v33  ;;  %vm6080_vm6 = vcmp.eq.f32.partialorder %v1576_v8, 8.507059e+37 }
 0x1de   :  { %v1206_v5 = vpop.f32.mrf.mxu1  ;;  %v4626_v38 = vpop.eup %4625  ;;  %v1555_v47 = vmul.f32 %v4622_v60, %v1554_v56  ;;  %v1579_v31 = vor.u32 1.1754944e-38, %v1578_v42  ;;  %vm1587_vm7 = vweird.f32 %v6050_v36  ;;  %v1591_v29 = vand.u32 2147483647, %v6050_v36 }
 0x1df   :  { %v6061_v2 = vadd.f32 %v5919_v49, %v1206_v5  ;;  %v1568_v21 = vmul.f32 %v4626_v38, %v6044_v44  ;;  %vm1573_vm5 = vweird.f32 %v4626_v38  ;;  %v6087_v10 = vpack.c.b16 %v1979_v52, %v1978_v7 }
 0x1e0   :  { %v1556_v41 = vadd.f32 %v4622_v60, %v1555_v47  ;;  %vm1574_vm8 = vmor %vm1572_vm3, %vm1573_vm5  ;;  %v1594_v16 = vor.u32 1.1754944e-38, %v1593_v61  ;;  %v1606_v44 = vand.u32 2147483647, %v6056_v19  ;;  %v1608_v27 = vand.u32 2147483648, %v6056_v19 }
 0x1e1   :  { %v4628_v0 = vpop.eup %4627  ;;  %v1569_v53 = vsub.f32 1.0, %v1568_v21  ;;  %v4130_v17 = vmul.f32 -1.442695, %v6061_v2  ;;  %vm1592_vm12 = vcmp.eq.f32.partialorder %v1591_v29, 8.507059e+37  ;;  %vm1602_vm13 = vweird.f32 %v6056_v19 }
 0x1e2   :  { %v1583_v62 = vmul.f32 %v4628_v0, %v6050_v36  ;;  %v4630_v57 = vpop.eup %4629  ;;  %v1560_v9 = vsel %vm6076_vm4, %v4622_v60, %v1556_v41  ;;  %vm1588_vm9 = vweird.f32 %v4628_v0  ;;  %v1609_v36 = vor.u32 1.1754944e-38, %v1608_v27 }
 0x1e3   :  { %v1570_v46 = vmul.f32 %v4626_v38, %v1569_v53  ;;  %v4632_v3 = vpop.eup %4631  ;;  %4633 = vpow2.f32 %v4130_v17  ;;  %v6093_v40 = vadd.f32 1.0, %v4630_v57  ;;  %v1565_v39 = vsel %vm6068_vm2, %v1564_v11, %v1560_v9  ;;  %vm1589_vm10 = vmor %vm1587_vm7, %vm1588_vm9 }
 0x1e4   :  { %v1584_v54 = vsub.f32 1.0, %v1583_v62  ;;  %v1598_v14 = vmul.f32 %v4632_v3, %v6056_v19  ;;  %vm1603_vm11 = vweird.f32 %v4632_v3  ;;  %v1864_v23 = vmul.f32 %v1565_v39, %v5923_v58 }
 0x1e5   :  { %v1571_v26 = vadd.f32 %v4626_v38, %v1570_v46  ;;  %4635 = vrcp.f32 %v6093_v40  ;;  %vm1604_vm14 = vmor %vm1602_vm13, %vm1603_vm11  ;;  %vm1607_vm15 = vcmp.eq.f32.partialorder %v1606_v44, 8.507059e+37  ;;  %vm1617_vm3 = vweird.f32 %v6093_v40 }
 0x1e6   :  { %v1209_v12 = vpop.f32.mrf.mxu1  ;;  %v1585_v35 = vmul.f32 %v4628_v0, %v1584_v54  ;;  %v1599_v55 = vsub.f32 1.0, %v1598_v14  ;;  %v1896_v47 = vpack.c.bf16 %v1864_v23, %v1864_v23 }
 0x1e7   :  { %v1575_v32 = vsel %vm1574_vm8, %v4626_v38, %v1571_v26  ;;  %v6098_v22 = vadd.f32 %v5919_v49, %v1209_v12  ;;  %2113 = vmatmul.bf16.gmra.mxu2 %v6087_v10 }
 0x1e8   :  { %v1580_v20 = vsel %vm6080_vm6, %v1579_v31, %v1575_v32  ;;  %v1586_v60 = vadd.f32 %v4628_v0, %v1585_v35  ;;  %v1600_v30 = vmul.f32 %v4632_v3, %v1599_v55  ;;  %v1623_v32 = vand.u32 2147483648, %v6093_v40 }
 0x1e9   :  { %v1865_v59 = vmul.f32 %v1580_v20, %v5974_v4  ;;  %v4131_v51 = vmul.f32 -1.442695, %v6098_v22  ;;  %v4634_v5 = vpop.eup %4633  ;;  %v1621_v55 = vand.u32 2147483647, %v6093_v40 }
 0x1ea   :  { %v1590_v50 = vsel %vm1589_vm10, %v4628_v0, %v1586_v60  ;;  %v1601_v56 = vadd.f32 %v4632_v3, %v1600_v30  ;;  %v1357_v1 = vadd.f32 1.0, %v4634_v5  ;;  %v1980_v0 = vunpack.c.l.b16 %v1896_v47 }
 0x1eb   :  { %v1595_v37 = vsel %vm1592_vm12, %v1594_v16, %v1590_v50  ;;  %v1897_v24 = vpack.c.bf16 %v1865_v59, %v1865_v59  ;;  %4637 = vpow2.f32 %v4131_v51  ;;  %v1624_v30 = vor.u32 1.1754944e-38, %v1623_v32 }
 0x1ec   :  { %v1866_v4 = vmul.f32 %v1595_v37, %v6003_v13  ;;  %v1605_v33 = vsel %vm1604_vm14, %v4632_v3, %v1601_v56  ;;  %4639 = vrcp.f32 %v1357_v1  ;;  %v4636_v13 = vpop.eup %4635  ;;  %v1638_v12 = vand.u32 2147483648, %v1357_v1 }
 0x1ed   :  { %v1610_v21 = vsel %vm1607_vm15, %v1609_v36, %v1605_v33  ;;  %v1981_v42 = vunpack.c.l.b16 %v1897_v24  ;;  %v1613_v62 = vmul.f32 %v4636_v13, %v6093_v40  ;;  %vm1618_vm1 = vweird.f32 %v4636_v13 }
 0x1ee   :  { %v1211_v38 = vpop.f32.mrf.mxu1  ;;  %v1898_v8 = vpack.c.bf16 %v1866_v4, %v1866_v4  ;;  %v1867_v19 = vmul.f32 %v1610_v21, %v6006_v18  ;;  %vm1632_vm2 = vweird.f32 %v1357_v1  ;;  %v1636_v35 = vand.u32 2147483647, %v1357_v1  ;;  %vm1619_vm5 = vmor %vm1617_vm3, %vm1618_vm1 }
 0x1ef   :  { %v6114_v58 = vadd.f32 %v5919_v49, %v1211_v38  ;;  %v2006_v61 = vpack.c.b16 %v1981_v42, %v1980_v0  ;;  %v1614_v6 = vsub.f32 1.0, %v1613_v62  ;;  %v1639_v44 = vor.u32 1.1754944e-38, %v1638_v12 }
 0x1f0   :  { %v1899_v52 = vpack.c.bf16 %v1867_v19, %v1867_v19  ;;  %v1982_v11 = vunpack.c.l.b16 %v1898_v8  ;;  %vm1637_vm6 = vcmp.eq.f32.partialorder %v1636_v35, 8.507059e+37  ;;  %vm1622_vm7 = vcmp.eq.f32.partialorder %v1621_v55, 8.507059e+37 }
 0x1f1   :  { %v4132_v41 = vmul.f32 -1.442695, %v6114_v58  ;;  %v4638_v15 = vpop.eup %4637  ;;  %v1615_v9 = vmul.f32 %v4636_v13, %v1614_v6 }
 0x1f2   :  { %v1983_v53 = vunpack.c.l.b16 %v1899_v52  ;;  %v4640_v17 = vpop.eup %4639  ;;  %v6119_v45 = vadd.f32 1.0, %v4638_v15 }
 0x1f3   :  { %4641 = vpow2.f32 %v4132_v41  ;;  %v1628_v7 = vmul.f32 %v4640_v17, %v1357_v1  ;;  %vm1633_vm0 = vweird.f32 %v4640_v17  ;;  %v1616_v14 = vadd.f32 %v4636_v13, %v1615_v9 }
 0x1f4   :  { %v2007_v57 = vpack.c.b16 %v1983_v53, %v1982_v11  ;;  %4643 = vrcp.f32 %v6119_v45  ;;  %vm1634_vm4 = vmor %vm1632_vm2, %vm1633_vm0  ;;  %v1653_v47 = vand.u32 2147483648, %v6119_v45  ;;  %vm1647_vm12 = vweird.f32 %v6119_v45 }
 0x1f5   :  { %v1629_v46 = vsub.f32 1.0, %v1628_v7  ;;  %v1620_v59 = vsel %vm1619_vm5, %v4636_v13, %v1616_v14  ;;  %v1651_v52 = vand.u32 2147483647, %v6119_v45 }
 0x1f6   :  { %3259 = vmatpush.bf16.msra.mxu3 %v2007_v57  ;;  %v1625_v23 = vsel %vm1622_vm7, %v1624_v30, %v1620_v59  ;;  %v1654_v7 = vor.u32 1.1754944e-38, %v1653_v47 }
 0x1f7   :  { %2118 = vmatmul.bf16.gmra.mxu2 %v2006_v61  ;;  %v1630_v3 = vmul.f32 %v4640_v17, %v1629_v46  ;;  %v1868_v4 = vmul.f32 %v1625_v23, %v6042_v63  ;;  %vm1652_vm15 = vcmp.eq.f32.partialorder %v1651_v52, 8.507059e+37 }
 0x1f9   :  { %v4642_v18 = vpop.eup %4641  ;;  %v1631_v54 = vadd.f32 %v4640_v17, %v1630_v3  ;;  %v1900_v33 = vpack.c.bf16 %v1868_v4, %v1868_v4 }
 0x1fa   :  { %v6121_v31 = vadd.f32 1.0, %v4642_v18  ;;  %3260 = vmatpush.bf16.msra.mxu3 %v2006_v61  ;;  %v6126_v29 = vpop.eup %4643 }
 0x1fb   :  { %v1214_v26 = vpop.f32.mrf.mxu1  ;;  %v1635_v20 = vsel %vm1634_vm4, %v4640_v17, %v1631_v54  ;;  %v1643_v27 = vmul.f32 %v6126_v29, %v6119_v45  ;;  %vm1648_vm9 = vweird.f32 %v6126_v29  ;;  %v1984_v53 = vunpack.c.l.b16 %v1900_v33 }
 0x1fc   :  { %4645 = vrcp.f32 %v6121_v31  ;;  %v6129_v16 = vadd.f32 %v5919_v49, %v1214_v26  ;;  %v1640_v51 = vsel %vm1637_vm6, %v1639_v44, %v1635_v20  ;;  %v1668_v63 = vand.u32 2147483648, %v6121_v31  ;;  %vm6179_vm13 = vmor %vm1647_vm12, %vm1648_vm9 }
 0x1fd   :  { %v1644_v50 = vsub.f32 1.0, %v1643_v27  ;;  %v1869_v37 = vmul.f32 %v1640_v51, %v6061_v2  ;;  %vm1662_vm10 = vweird.f32 %v6121_v31 }
 0x1fe   :  { %3261 = vmatpush.bf16.msra.mxu3 %v6087_v10  ;;  %v4133_v60 = vmul.f32 -1.442695, %v6129_v16 }
 0x1ff   :  { %v1645_v1 = vmul.f32 %v6126_v29, %v1644_v50 }
 0x200   :  { %4647 = vpow2.f32 %v4133_v60 }
 0x201   :  { %v1646_v21 = vadd.f32 %v6126_v29, %v1645_v1 }
 0x202   :  { %v6131_v39 = vpop.eup %4645  ;;  %3262 = vmatpush.bf16.msra.mxu3 %v6037_v28 }
 0x203   :  { %v1658_v10 = vmul.f32 %v6131_v39, %v6121_v31  ;;  %v1216_v5 = vpop.f32.mrf.mxu1  ;;  %vm1663_vm8 = vweird.f32 %v6131_v39  ;;  %v1650_v61 = vsel %vm6179_vm13, %v6126_v29, %v1646_v21 }
 0x204   :  { %v6146_v56 = vadd.f32 %v5919_v49, %v1216_v5  ;;  %vm6167_vm11 = vmor %vm1662_vm10, %vm1663_vm8  ;;  %v1655_v6 = vsel %vm1652_vm15, %v1654_v7, %v1650_v61 }
 0x205   :  { %v1659_v40 = vsub.f32 1.0, %v1658_v10 }
 0x206   :  { %3263 = vmatpush.bf16.msra.mxu3 %v5946_v25  ;;  %v4648_v24 = vpop.eup %4647  ;;  %v4134_v36 = vmul.f32 -1.442695, %v6146_v56  ;;  %v1901_v25 = vpack.c.bf16 %v1869_v37, %v1869_v37 }
 0x207   :  { %2123 = vmatmul.bf16.gmra.mxu2 %v2007_v57  ;;  %v1660_v28 = vmul.f32 %v6131_v39, %v1659_v40  ;;  %v6152_v38 = vadd.f32 1.0, %v4648_v24 }
 0x208   :  { %4649 = vpow2.f32 %v4134_v36  ;;  %v1985_v41 = vunpack.c.l.b16 %v1901_v25 }
 0x209   :  { %v1661_v2 = vadd.f32 %v6131_v39, %v1660_v28  ;;  %4651 = vrcp.f32 %v6152_v38  ;;  %vm1677_vm2 = vweird.f32 %v6152_v38  ;;  %v1683_v59 = vand.u32 2147483648, %v6152_v38 }
 0x20a   :  { %3264 = vmatpush.bf16.msra.mxu3 %v5815_v48  ;;  %v1666_v48 = vand.u32 2147483647, %v6121_v31  ;;  %v6164_v19 = vpop.f32.mrf.mxu2  ;;  %v6192_v18 = vpack.c.b16 %v1985_v41, %v1984_v53  ;;  %v1681_v40 = vand.u32 2147483647, %v6152_v38 }
 0x20b   :  { %v1665_v0 = vsel %vm6167_vm11, %v6131_v39, %v1661_v2  ;;  %v1684_v25 = vor.u32 1.1754944e-38, %v1683_v59 }
 0x20c   :  { %vm1667_vm14 = vcmp.eq.f32.partialorder %v1666_v48, 8.507059e+37  ;;  %vm1682_vm7 = vcmp.eq.f32.partialorder %v1681_v40, 8.507059e+37 }
 0x20d   :  { %v1219_v8 = vpop.f32.mrf.mxu1 }
 0x20e   :  { %3265 = vmatpush.bf16.msra.mxu3 %v5708_v43  ;;  %v6172_v13 = vadd.f32 %v5919_v49, %v1219_v8  ;;  %v4650_v15 = vpop.eup %4649  ;;  %v1669_v43 = vor.u32 1.1754944e-38, %v1668_v63 }
 0x20f   :  { %v6184_v62 = vpop.eup %4651  ;;  %v1361_v57 = vadd.f32 1.0, %v4650_v15 }
 0x210   :  { %v4135_v17 = vmul.f32 -1.442695, %v6172_v13  ;;  %v1670_v45 = vsel %vm1667_vm14, %v1669_v43, %v1665_v0  ;;  %v1673_v46 = vmul.f32 %v6184_v62, %v6152_v38  ;;  %vm1678_vm0 = vweird.f32 %v6184_v62 }
 0x211   :  { %v1871_v31 = vmul.f32 %v1670_v45, %v6114_v58  ;;  %v1698_v10 = vand.u32 2147483648, %v1361_v57  ;;  %v1696_v27 = vand.u32 2147483647, %v1361_v57  ;;  %vm6211_vm3 = vmor %vm1677_vm2, %vm1678_vm0  ;;  %vm1692_vm4 = vweird.f32 %v1361_v57 }
 0x212   :  { %3266 = vmatpush.bf16.msra.mxu3 %v5553_v34  ;;  %4653 = vpow2.f32 %v4135_v17  ;;  %v1674_v9 = vsub.f32 1.0, %v1673_v46  ;;  %v1870_v34 = vmul.f32 %v1655_v6, %v6098_v22  ;;  %v6200_v12 = vpop.f32.mrf.mxu2 }
 0x213   :  { %4655 = vrcp.f32 %v1361_v57  ;;  %v1903_v14 = vpack.c.bf16 %v1871_v31, %v1871_v31  ;;  %v1699_v5 = vor.u32 1.1754944e-38, %v1698_v10  ;;  %vm1697_vm6 = vcmp.eq.f32.partialorder %v1696_v27, 8.507059e+37 }
 0x214   :  { %v1675_v58 = vmul.f32 %v6184_v62, %v1674_v9  ;;  %v1902_v55 = vpack.c.bf16 %v1870_v34, %v1870_v34 }
 0x215   :  { %v1221_v3 = vpop.f32.mrf.mxu1  ;;  %v1987_v22 = vunpack.c.l.b16 %v1903_v14 }
 0x216   :  { %v6197_v54 = vadd.f32 %v5919_v49, %v1221_v3  ;;  %v1676_v60 = vadd.f32 %v6184_v62, %v1675_v58  ;;  %v1986_v30 = vunpack.c.l.b16 %v1902_v55 }
 0x217   :  { %2128 = vmatmul.bf16.gmra.mxu2 %v6192_v18 }
 0x218   :  { %v4654_v26 = vpop.eup %4653  ;;  %v4136_v39 = vmul.f32 -1.442695, %v6197_v54  ;;  %v6218_v37 = vpack.c.b16 %v1987_v22, %v1986_v30  ;;  %v1680_v4 = vsel %vm6211_vm3, %v6184_v62, %v1676_v60 }
 0x219   :  { %v4656_v29 = vpop.eup %4655  ;;  %v6202_v35 = vadd.f32 1.0, %v4654_v26  ;;  %v1685_v63 = vsel %vm1682_vm7, %v1684_v25, %v1680_v4 }
 0x21a   :  { %v1688_v32 = vmul.f32 %v4656_v29, %v1361_v57  ;;  %vm1693_vm1 = vweird.f32 %v4656_v29  ;;  %v1872_v42 = vmul.f32 %v1685_v63, %v6129_v16 }
 0x21b   :  { %4657 = vrcp.f32 %v6202_v35  ;;  %vm1694_vm5 = vmor %vm1692_vm4, %vm1693_vm1  ;;  %vm1707_vm9 = vweird.f32 %v6202_v35  ;;  %v1713_v57 = vand.u32 2147483648, %v6202_v35  ;;  %v1711_v46 = vand.u32 2147483647, %v6202_v35 }
 0x21c   :  { %v1689_v20 = vsub.f32 1.0, %v1688_v32  ;;  %4659 = vpow2.f32 %v4136_v39  ;;  %v1904_v53 = vpack.c.bf16 %v1872_v42, %v1872_v42 }
 0x21d   :  { %v1714_v39 = vor.u32 1.1754944e-38, %v1713_v57  ;;  %vm1712_vm13 = vcmp.eq.f32.partialorder %v1711_v46, 8.507059e+37  ;;  %v6286_v57 = vld [vmem:[%s7820_s9] ss:$0 sm:$0xff] }
 0x21e   :  { %v1690_v44 = vmul.f32 %v4656_v29, %v1689_v20  ;;  %v1988_v31 = vunpack.c.l.b16 %v1904_v53 }
 0x220   :  { %v1691_v23 = vadd.f32 %v4656_v29, %v1690_v44 }
 0x221   :  { %v6216_v50 = vpop.eup %4657  ;;  %v6220_v24 = vpop.f32.mrf.mxu2 }
 0x222   :  { %v1695_v36 = vsel %vm1694_vm5, %v4656_v29, %v1691_v23  ;;  %v1703_v1 = vmul.f32 %v6216_v50, %v6202_v35  ;;  %v4660_v38 = vpop.eup %4659  ;;  %vm1708_vm8 = vweird.f32 %v6216_v50 }
 0x223   :  { %v1224_v28 = vpop.f32.mrf.mxu1  ;;  %v1700_v2 = vsel %vm1697_vm6, %v1699_v5, %v1695_v36  ;;  %v1363_v47 = vadd.f32 1.0, %v4660_v38  ;;  %vm6249_vm10 = vmor %vm1707_vm9, %vm1708_vm8 }
 0x224   :  { %v6228_v33 = vadd.f32 %v5919_v49, %v1224_v28  ;;  %v1873_v48 = vmul.f32 %v1700_v2, %v6146_v56  ;;  %v1704_v8 = vsub.f32 1.0, %v1703_v1 }
 0x225   :  { %4661 = vrcp.f32 %v1363_v47  ;;  %v1728_v6 = vand.u32 2147483648, %v1363_v47  ;;  %v1726_v34 = vand.u32 2147483647, %v1363_v47  ;;  %vm1722_vm12 = vweird.f32 %v1363_v47 }
 0x226   :  { %v4137_v21 = vmul.f32 -1.442695, %v6228_v33  ;;  %v1905_v52 = vpack.c.bf16 %v1873_v48, %v1873_v48  ;;  %v1705_v0 = vmul.f32 %v6216_v50, %v1704_v8 }
 0x227   :  { %2133 = vmatmul.bf16.gmra.mxu2 %v6218_v37  ;;  %v1729_v32 = vor.u32 1.1754944e-38, %v1728_v6  ;;  %vm1727_vm15 = vcmp.eq.f32.partialorder %v1726_v34, 8.507059e+37 }
 0x228   :  { %4663 = vpow2.f32 %v4137_v21  ;;  %v1706_v61 = vadd.f32 %v6216_v50, %v1705_v0  ;;  %v1989_v7 = vunpack.c.l.b16 %v1905_v52 }
 0x229   :  { %v6238_v11 = vpop.f32.mrf.mxu2 }
 0x22a   :  { %v1710_v29 = vsel %vm6249_vm10, %v6216_v50, %v1706_v61  ;;  %v6256_v14 = vpack.c.b16 %v1989_v7, %v1988_v31 }
 0x22b   :  { %v1226_v41 = vpop.f32.mrf.mxu1  ;;  %v4662_v43 = vpop.eup %4661  ;;  %v1715_v20 = vsel %vm1712_vm13, %v1714_v39, %v1710_v29  ;;  %v6295_v29 = vadd.f32 %v6286_v57, %v6164_v19 }
 0x22c   :  { %v6236_v15 = vadd.f32 %v5919_v49, %v1226_v41  ;;  %v1718_v62 = vmul.f32 %v4662_v43, %v1363_v47  ;;  %vm1723_vm11 = vweird.f32 %v4662_v43  ;;  %v1874_v40 = vmul.f32 %v1715_v20, %v6172_v13 }
 0x22d   :  { %vm1724_vm14 = vmor %vm1722_vm12, %vm1723_vm11 }
 0x22e   :  { %v4138_v56 = vmul.f32 -1.442695, %v6236_v15  ;;  %v4664_v17 = vpop.eup %4663  ;;  %v1719_v45 = vsub.f32 1.0, %v1718_v62  ;;  %v1906_v36 = vpack.c.bf16 %v1874_v40, %v1874_v40 }
 0x22f   :  { %v6243_v16 = vadd.f32 1.0, %v4664_v17 }
 0x230   :  { %4665 = vpow2.f32 %v4138_v56  ;;  %v1720_v9 = vmul.f32 %v4662_v43, %v1719_v45  ;;  %v1990_v8 = vunpack.c.l.b16 %v1906_v36 }
 0x231   :  { %4667 = vrcp.f32 %v6243_v16  ;;  %v1743_v13 = vand.u32 2147483648, %v6243_v16  ;;  %vm1737_vm1 = vweird.f32 %v6243_v16  ;;  %v1741_v21 = vand.u32 2147483647, %v6243_v16 }
 0x232   :  { %v1721_v58 = vadd.f32 %v4662_v43, %v1720_v9 }
 0x233   :  { %v1229_v26 = vpop.f32.mrf.mxu1  ;;  %v6262_v60 = vpop.f32.mrf.mxu2  ;;  %vm1742_vm4 = vcmp.eq.f32.partialorder %v1741_v21, 8.507059e+37 }
 0x234   :  { %v6259_v35 = vadd.f32 %v5919_v49, %v1229_v26  ;;  %v1725_v10 = vsel %vm1724_vm14, %v4662_v43, %v1721_v58  ;;  %v1744_v43 = vor.u32 1.1754944e-38, %v1743_v13 }
 0x235   :  { %v1730_v27 = vsel %vm1727_vm15, %v1729_v32, %v1725_v10 }
 0x236   :  { %v4666_v55 = vpop.eup %4665  ;;  %v4139_v22 = vmul.f32 -1.442695, %v6259_v35  ;;  %v1875_v30 = vmul.f32 %v1730_v27, %v6197_v54 }
 0x237   :  { %v4668_v44 = vpop.eup %4667  ;;  %v1365_v59 = vadd.f32 1.0, %v4666_v55  ;;  %2138 = vmatmul.bf16.gmra.mxu2 %v6256_v14 }
 0x238   :  { %v1733_v51 = vmul.f32 %v4668_v44, %v6243_v16  ;;  %v1907_v5 = vpack.c.bf16 %v1875_v30, %v1875_v30  ;;  %vm1738_vm0 = vweird.f32 %v4668_v44 }
 0x239   :  { %4669 = vrcp.f32 %v1365_v59  ;;  %vm1739_vm2 = vmor %vm1737_vm1, %vm1738_vm0  ;;  %v1758_v52 = vand.u32 2147483648, %v1365_v59  ;;  %v1756_v56 = vand.u32 2147483647, %v1365_v59  ;;  %vm1752_vm5 = vweird.f32 %v1365_v59 }
 0x23a   :  { %v1734_v23 = vsub.f32 1.0, %v1733_v51  ;;  %4671 = vpow2.f32 %v4139_v22  ;;  %v1991_v54 = vunpack.c.l.b16 %v1907_v5 }
 0x23b   :  { %v1231_v50 = vpop.f32.mrf.mxu1  ;;  %v6273_v63 = vpop.f32.mrf.mxu2  ;;  %v1759_v7 = vor.u32 1.1754944e-38, %v1758_v52  ;;  %vm1757_vm7 = vcmp.eq.f32.partialorder %v1756_v56, 8.507059e+37 }
 0x23c   :  { %v6269_v28 = vadd.f32 %v5919_v49, %v1231_v50  ;;  %v1735_v4 = vmul.f32 %v4668_v44, %v1734_v23  ;;  %v6280_v0 = vpack.c.b16 %v1991_v54, %v1990_v8  ;;  %v6366_v23 = vadd.f32 %v6286_v57, %v6262_v60 }
 0x23e   :  { %v4140_v1 = vmul.f32 -1.442695, %v6269_v28  ;;  %v1736_v25 = vadd.f32 %v4668_v44, %v1735_v4 }
 0x23f   :  { %v4670_v38 = vpop.eup %4669 }
 0x240   :  { %4673 = vpow2.f32 %v4140_v1  ;;  %v4672_v2 = vpop.eup %4671  ;;  %v1748_v47 = vmul.f32 %v4670_v38, %v1365_v59  ;;  %v1740_v41 = vsel %vm1739_vm2, %v4668_v44, %v1736_v25  ;;  %vm1753_vm3 = vweird.f32 %v4670_v38 }
 0x241   :  { %v6277_v48 = vadd.f32 1.0, %v4672_v2  ;;  %v1745_v62 = vsel %vm1742_vm4, %v1744_v43, %v1740_v41  ;;  %vm1754_vm6 = vmor %vm1752_vm5, %vm1753_vm3  ;;  %v4177_v44 = vmul.f32 -1.442695, %v6295_v29 }
 0x242   :  { %v1749_v42 = vsub.f32 1.0, %v1748_v47  ;;  %v1876_v6 = vmul.f32 %v1745_v62, %v6228_v33 }
 0x243   :  { %4675 = vrcp.f32 %v6277_v48  ;;  %v1773_v59 = vand.u32 2147483648, %v6277_v48  ;;  %vm1767_vm9 = vweird.f32 %v6277_v48  ;;  %v1771_v30 = vand.u32 2147483647, %v6277_v48 }
 0x244   :  { %v1750_v53 = vmul.f32 %v4670_v38, %v1749_v42  ;;  %v1908_v55 = vpack.c.bf16 %v1876_v6, %v1876_v6 }
 0x245   :  { %v1774_v54 = vor.u32 1.1754944e-38, %v1773_v59  ;;  %vm1772_vm12 = vcmp.eq.f32.partialorder %v1771_v30, 8.507059e+37 }
 0x246   :  { %v4674_v17 = vpop.eup %4673  ;;  %v1751_v61 = vadd.f32 %v4670_v38, %v1750_v53  ;;  %v1992_v19 = vunpack.c.l.b16 %v1908_v55  ;;  %v6352_v55 = vadd.f32 %v6286_v57, %v6200_v12 }
 0x247   :  { %v1367_v16 = vadd.f32 1.0, %v4674_v17  ;;  %2143 = vmatmul.bf16.gmra.mxu2 %v6280_v0  ;;  %v6326_v17 = vadd.f32 %v6286_v57, %v6238_v11 }
 0x248   :  { %v1755_v45 = vsel %vm1754_vm6, %v4670_v38, %v1751_v61  ;;  %v4825_v61 = vld [vmem:[%s7818_s7] ss:$0 sm:$0xff]  ;;  %7945 = vst [vmem:[#allocation5_spill] sm:$0xff] %v6352_v55 }
 0x249   :  { %4677 = vrcp.f32 %v1367_v16  ;;  %v4676_v46 = vpop.eup %4675  ;;  %v1760_v31 = vsel %vm1757_vm7, %v1759_v7, %v1755_v45  ;;  %v1234_v3 = vpop.f32.mrf.mxu1  ;;  %v1786_v50 = vand.u32 2147483647, %v1367_v16  ;;  %v1788_v5 = vand.u32 2147483648, %v1367_v16 }
 0x24a   :  { %v1877_v9 = vmul.f32 %v1760_v31, %v6236_v15  ;;  %v1763_v34 = vmul.f32 %v4676_v46, %v6277_v48  ;;  %v6291_v26 = vpop.f32.mrf.mxu2  ;;  %v6298_v32 = vadd.f32 %v5919_v49, %v1234_v3  ;;  %vm1768_vm8 = vweird.f32 %v4676_v46 }
 0x24b   :  { %vm6305_vm10 = vmor %vm1767_vm9, %vm1768_vm8  ;;  %vm1782_vm13 = vweird.f32 %v1367_v16  ;;  %vm1787_vm15 = vcmp.eq.f32.partialorder %v1786_v50, 8.507059e+37  ;;  %v6337_v45 = vadd.f32 %v6286_v57, %v6273_v63  ;;  %v4180_v31 = vmul.f32 -1.442695, %v6326_v17 }
 0x24c   :  { %v1909_v39 = vpack.c.bf16 %v1877_v9, %v1877_v9  ;;  %v1764_v58 = vsub.f32 1.0, %v1763_v34  ;;  %v4141_v10 = vmul.f32 -1.442695, %v6298_v32  ;;  %v6345_v9 = vadd.f32 %v6286_v57, %v6291_v26 }
 0x24d   :  { %v4182_v63 = vmul.f32 -1.442695, %v6337_v45 }
 0x24e   :  { %v1765_v33 = vmul.f32 %v4676_v46, %v1764_v58  ;;  %v1993_v22 = vunpack.c.l.b16 %v1909_v39  ;;  %4679 = vpow2.f32 %v4141_v10 }
 0x24f   :  { %v4678_v20 = vpop.eup %4677  ;;  %4681 = vpow2.f32 %v4177_v44 }
 0x250   :  { %v1778_v15 = vmul.f32 %v4678_v20, %v1367_v16  ;;  %v1766_v27 = vadd.f32 %v4676_v46, %v1765_v33  ;;  %vm1783_vm11 = vweird.f32 %v4678_v20  ;;  %v6316_v25 = vpack.c.b16 %v1993_v22, %v1992_v19 }
 0x251   :  { %v1236_v40 = vpop.f32.mrf.mxu1  ;;  %vm1784_vm14 = vmor %vm1782_vm13, %vm1783_vm11  ;;  %v4183_v22 = vmul.f32 -1.442695, %v6345_v9 }
 0x252   :  { %v1779_v51 = vsub.f32 1.0, %v1778_v15  ;;  %v6310_v4 = vadd.f32 %v5919_v49, %v1236_v40  ;;  %v6312_v36 = vpop.f32.mrf.mxu2  ;;  %v1770_v1 = vsel %vm6305_vm10, %v4676_v46, %v1766_v27  ;;  %v1789_v49 = vor.u32 1.1754944e-38, %v1788_v5 }
 0x253   :  { %v1775_v21 = vsel %vm1772_vm12, %v1774_v54, %v1770_v1  ;;  %v4178_v40 = vmul.f32 -1.442695, %v6352_v55 }
 0x254   :  { %v1780_v38 = vmul.f32 %v4678_v20, %v1779_v51  ;;  %v4142_v2 = vmul.f32 -1.442695, %v6310_v4  ;;  %v4680_v47 = vpop.eup %4679  ;;  %v1878_v41 = vmul.f32 %v1775_v21, %v6259_v35 }
 0x255   :  { %v1368_v8 = vadd.f32 1.0, %v4680_v47  ;;  %v4682_v53 = vpop.eup %4681 }
 0x256   :  { %v1781_v13 = vadd.f32 %v4678_v20, %v1780_v38  ;;  %4683 = vpow2.f32 %v4142_v2  ;;  %v6333_v35 = vadd.f32 1.0, %v4682_v53  ;;  %v6371_v2 = vadd.f32 %v6286_v57, %v6220_v24 }
 0x257   :  { %2148 = vmatmul.bf16.gmra.mxu2 %v6316_v25  ;;  %4685 = vrcp.f32 %v1368_v8  ;;  %v1803_v26 = vand.u32 2147483648, %v1368_v8  ;;  %v1801_v27 = vand.u32 2147483647, %v1368_v8  ;;  %vm1797_vm1 = vweird.f32 %v1368_v8 }
 0x258   :  { %v1785_v48 = vsel %vm1784_vm14, %v4678_v20, %v1781_v13  ;;  %7946 = vst [vmem:[#allocation6_spill] sm:$0xff] %v6371_v2  ;;  %v4179_v53 = vmul.f32 -1.442695, %v6371_v2 }
 0x259   :  { %v1790_v42 = vsel %vm1787_vm15, %v1789_v49, %v1785_v48  ;;  %v1239_v43 = vpop.f32.mrf.mxu1  ;;  %v1804_v50 = vor.u32 1.1754944e-38, %v1803_v26  ;;  %vm1802_vm3 = vcmp.eq.f32.partialorder %v1801_v27, 8.507059e+37  ;;  %vm2302_vm15 = vweird.f32 %v6333_v35 }
 0x25a   :  { %v1879_v52 = vmul.f32 %v1790_v42, %v6269_v28  ;;  %v6322_v56 = vpop.f32.mrf.mxu2  ;;  %v6331_v16 = vadd.f32 %v4825_v61, %v1239_v43  ;;  %v1910_v28 = vpack.c.bf16 %v1878_v41, %v1878_v41  ;;  %v4181_v42 = vmul.f32 -1.442695, %v6366_v23 }
 0x25c   :  { %v1911_v62 = vpack.c.bf16 %v1879_v52, %v1879_v52  ;;  %v4684_v7 = vpop.eup %4683  ;;  %v4143_v11 = vmul.f32 -1.442695, %v6331_v16  ;;  %v1994_v39 = vunpack.c.l.b16 %v1910_v28 }
 0x25d   :  { %v6339_v46 = vadd.f32 1.0, %v4684_v7  ;;  %v4686_v6 = vpop.eup %4685 }
 0x25e   :  { %v1995_v3 = vunpack.c.l.b16 %v1911_v62  ;;  %v1793_v34 = vmul.f32 %v4686_v6, %v1368_v8  ;;  %vm1798_vm0 = vweird.f32 %v4686_v6 }
 0x25f   :  { %4687 = vrcp.f32 %v6339_v46  ;;  %vm1799_vm2 = vmor %vm1797_vm1, %vm1798_vm0  ;;  %v1818_v47 = vand.u32 2147483648, %v6339_v46  ;;  %v1816_v49 = vand.u32 2147483647, %v6339_v46  ;;  %vm1812_vm5 = vweird.f32 %v6339_v46 }
 0x260   :  { %4689 = vrcp.f32 %v6333_v35  ;;  %v1794_v20 = vsub.f32 1.0, %v1793_v34  ;;  %v6357_v15 = vpack.c.b16 %v1995_v3, %v1994_v39 }
 0x261   :  { %v1241_v58 = vpop.f32.mrf.mxu1  ;;  %4691 = vpow2.f32 %v4143_v11  ;;  %v1819_v62 = vor.u32 1.1754944e-38, %v1818_v47  ;;  %vm1817_vm7 = vcmp.eq.f32.partialorder %v1816_v49, 8.507059e+37 }
 0x262   :  { %v6354_v33 = vadd.f32 %v4825_v61, %v1241_v58  ;;  %v2111_v10 = vpop.f32.mrf.mxu2  ;;  %4693 = vpow2.f32 %v4180_v31  ;;  %v1795_v44 = vmul.f32 %v4686_v6, %v1794_v20 }
 0x263   :  { %4695 = vpow2.f32 %v4182_v63 }
 0x264   :  { %v4144_v59 = vmul.f32 -1.442695, %v6354_v33  ;;  %v1796_v12 = vadd.f32 %v4686_v6, %v1795_v44 }
 0x265   :  { %v4688_v19 = vpop.eup %4687 }
 0x266   :  { %v1808_v30 = vmul.f32 %v4688_v19, %v6339_v46  ;;  %4697 = vpow2.f32 %v4144_v59  ;;  %v6361_v51 = vpop.eup %4689  ;;  %v1800_v1 = vsel %vm1799_vm2, %v4686_v6, %v1796_v12  ;;  %vm1813_vm4 = vweird.f32 %v4688_v19 }
 0x267   :  { %2153 = vmatmul.bf16.gmra.mxu2 %v6357_v15  ;;  %v4692_v5 = vpop.eup %4691  ;;  %4699 = vpow2.f32 %v4183_v22  ;;  %v1805_v13 = vsel %vm1802_vm3, %v1804_v50, %v1800_v1  ;;  %v2298_v43 = vmul.f32 %v6361_v51, %v6333_v35  ;;  %vm1814_vm6 = vmor %vm1812_vm5, %vm1813_vm4  ;;  %v6391_v46 = vadd.f32 %v6286_v57, %v2111_v10 }
 0x268   :  { %v1809_v38 = vsub.f32 1.0, %v1808_v30  ;;  %v4694_v54 = vpop.eup %4693  ;;  %v6374_v21 = vadd.f32 1.0, %v4692_v5  ;;  %v1880_v52 = vmul.f32 %v1805_v13, %v6298_v32  ;;  %vm2303_vm13 = vweird.f32 %v6361_v51 }
 0x269   :  { %v4696_v8 = vpop.eup %4695  ;;  %v6384_v7 = vadd.f32 1.0, %v4694_v54  ;;  %v2299_v22 = vsub.f32 1.0, %v2298_v43  ;;  %v4186_v10 = vmul.f32 -1.442695, %v6391_v46  ;;  %vm6451_vm3 = vmor %vm2302_vm15, %vm2303_vm13 }
 0x26a   :  { %v1810_v60 = vmul.f32 %v4688_v19, %v1809_v38  ;;  %v2114_v48 = vpop.f32.mrf.mxu2  ;;  %4701 = vrcp.f32 %v6374_v21  ;;  %v6388_v32 = vadd.f32 1.0, %v4696_v8  ;;  %v1912_v31 = vpack.c.bf16 %v1880_v52, %v1880_v52 }
 0x26b   :  { %4703 = vpow2.f32 %v4178_v40  ;;  %v6404_v59 = vadd.f32 %v6286_v57, %v2114_v48  ;;  %v1831_v12 = vand.u32 2147483647, %v6374_v21  ;;  %v1833_v30 = vand.u32 2147483648, %v6374_v21 }
 0x26c   :  { %v4698_v41 = vpop.eup %4697  ;;  %v1811_v24 = vadd.f32 %v4688_v19, %v1810_v60  ;;  %4705 = vpow2.f32 %v4181_v42  ;;  %v2300_v13 = vmul.f32 %v6361_v51, %v2299_v22  ;;  %vm1827_vm9 = vweird.f32 %v6374_v21 }
 0x26d   :  { %v4700_v61 = vpop.eup %4699  ;;  %v6386_v11 = vadd.f32 1.0, %v4698_v41  ;;  %v4187_v1 = vmul.f32 -1.442695, %v6404_v59  ;;  %v2306_v41 = vand.u32 2147483647, %v6333_v35  ;;  %v1834_v52 = vor.u32 1.1754944e-38, %v1833_v30 }
 0x26e   :  { %v1815_v28 = vsel %vm1814_vm6, %v4688_v19, %v1811_v24  ;;  %v6395_v39 = vadd.f32 1.0, %v4700_v61  ;;  %vm1832_vm11 = vcmp.eq.f32.partialorder %v1831_v12, 8.507059e+37 }
 0x26f   :  { %v1820_v6 = vsel %vm1817_vm7, %v1819_v62, %v1815_v28  ;;  %4707 = vrcp.f32 %v6386_v11  ;;  %v1848_v62 = vand.u32 2147483648, %v6386_v11  ;;  %vm1842_vm14 = vweird.f32 %v6386_v11 }
 0x270   :  { %v1881_v3 = vmul.f32 %v1820_v6, %v6310_v4  ;;  %v4702_v34 = vpop.eup %4701  ;;  %4709 = vpow2.f32 %v4179_v53  ;;  %v1996_v4 = vunpack.c.l.b16 %v1912_v31  ;;  %v1846_v53 = vand.u32 2147483647, %v6386_v11 }
 0x271   :  { %4711 = vrcp.f32 %v6384_v7  ;;  %v1823_v58 = vmul.f32 %v4702_v34, %v6374_v21  ;;  %v6399_v26 = vpop.eup %4703  ;;  %vm1828_vm8 = vweird.f32 %v4702_v34  ;;  %vm6443_vm0 = vcmp.eq.f32.partialorder %v2306_v41, 8.507059e+37 }
 0x272   :  { %v1913_v63 = vpack.c.bf16 %v1881_v3, %v1881_v3  ;;  %v2116_v20 = vpop.f32.mrf.mxu2  ;;  %4713 = vrcp.f32 %v6388_v32  ;;  %v4706_v19 = vpop.eup %4705  ;;  %vm1829_vm10 = vmor %vm1827_vm9, %vm1828_vm8  ;;  %v2301_v3 = vadd.f32 %v6361_v51, %v2300_v13  ;;  %vm1847_vm2 = vcmp.eq.f32.partialorder %v1846_v53, 8.507059e+37 }
 0x273   :  { %v1824_v27 = vsub.f32 1.0, %v1823_v58  ;;  %4715 = vrcp.f32 %v6395_v39  ;;  %v6410_v40 = vadd.f32 %v6286_v57, %v2116_v20  ;;  %v6420_v48 = vadd.f32 1.0, %v4706_v19 }
 0x274   :  { %v1997_v44 = vunpack.c.l.b16 %v1913_v63  ;;  %4717 = vpow2.f32 %v4186_v10  ;;  %vm2392_vm7 = vweird.f32 %v6395_v39 }
 0x275   :  { %v4708_v50 = vpop.eup %4707  ;;  %v1825_v5 = vmul.f32 %v4702_v34, %v1824_v27  ;;  %v4188_v60 = vmul.f32 -1.442695, %v6410_v40  ;;  %4719 = vpow2.f32 %v4187_v1 }
 0x276   :  { %v6413_v38 = vpack.c.b16 %v1997_v44, %v1996_v4  ;;  %v4710_v54 = vpop.eup %4709  ;;  %v1838_v47 = vmul.f32 %v4708_v50, %v6386_v11  ;;  %vm1843_vm12 = vweird.f32 %v4708_v50  ;;  %v1849_v44 = vor.u32 1.1754944e-38, %v1848_v62 }
 0x277   :  { %v6418_v49 = vpop.eup %4711  ;;  %v1826_v8 = vadd.f32 %v4702_v34, %v1825_v5  ;;  %4721 = vpow2.f32 %v4188_v60  ;;  %vm1844_vm1 = vmor %vm1842_vm14, %vm1843_vm12  ;;  %v6468_v60 = vadd.f32 %v6286_v57, %v6312_v36 }
 0x278   :  { %2158 = vmatmul.bf16.gmra.mxu2 %v6413_v38  ;;  %v6424_v42 = vpop.eup %4713  ;;  %v1839_v24 = vsub.f32 1.0, %v1838_v47  ;;  %4723 = vrcp.f32 %v6420_v48  ;;  %v6494_v53 = vmul.f32 %v6418_v49, %v6384_v7 }
 0x279   :  { %v1830_v43 = vsel %vm1829_vm10, %v4702_v34, %v1826_v8  ;;  %v6430_v21 = vpop.eup %4715  ;;  %v2308_v34 = vand.u32 2147483648, %v6333_v35  ;;  %v6455_v35 = vadd.f32 1.0, %v4710_v54  ;;  %v2373_v41 = vmul.f32 %v6424_v42, %v6388_v32 }
 0x27a   :  { %v2119_v61 = vpop.f32.mrf.mxu2  ;;  %v1835_v28 = vsel %vm1832_vm11, %v1834_v52, %v1830_v43  ;;  %v1840_v6 = vmul.f32 %v4708_v50, %v1839_v24  ;;  %v4718_v63 = vpop.eup %4717  ;;  %v6489_v43 = vadd.f32 1.0, %v6399_v26  ;;  %vm2393_vm4 = vweird.f32 %v6430_v21 }
 0x27b   :  { %v6433_v31 = vadd.f32 %v6286_v57, %v2119_v61  ;;  %v1882_v58 = vmul.f32 %v1835_v28, %v6331_v16  ;;  %v4720_v10 = vpop.eup %4719  ;;  %v2309_v11 = vor.u32 1.1754944e-38, %v2308_v34  ;;  %v6470_v54 = vadd.f32 1.0, %v4718_v63 }
 0x27c   :  { %v1841_v20 = vadd.f32 %v4708_v50, %v1840_v6  ;;  %v6447_v12 = vadd.f32 1.0, %v4720_v10  ;;  %v2374_v34 = vsub.f32 1.0, %v2373_v41 }
 0x27d   :  { %v4189_v22 = vmul.f32 -1.442695, %v6433_v31  ;;  %v4722_v27 = vpop.eup %4721  ;;  %v1914_v1 = vpack.c.bf16 %v1882_v58, %v1882_v58 }
 0x27e   :  { %v1845_v19 = vsel %vm1844_vm1, %v4708_v50, %v1841_v20  ;;  %v6457_v5 = vadd.f32 1.0, %v4722_v27  ;;  %v2305_v50 = vsel %vm6451_vm3, %v6361_v51, %v2301_v3  ;;  %v6464_v47 = vpop.eup %4723  ;;  %v2388_v51 = vmul.f32 %v6430_v21, %v6395_v39 }
 0x27f   :  { %4725 = vpow2.f32 %v4189_v22  ;;  %v1850_v30 = vsel %vm1847_vm2, %v1849_v44, %v1845_v19  ;;  %v6486_v36 = vsel %vm6443_vm0, %v2309_v11, %v2305_v50  ;;  %v1998_v61 = vunpack.c.l.b16 %v1914_v1  ;;  %vm6604_vm2 = vmor %vm2392_vm7, %vm2393_vm4 }
 0x280   :  { %v1883_v13 = vmul.f32 %v1850_v30, %v6354_v33  ;;  %4727 = vrcp.f32 %v6447_v12  ;;  %v6479_v33 = vadd.f32 %v6286_v57, %v6322_v56  ;;  %v6498_v56 = vmul.f32 %v6464_v47, %v6420_v48 }
 0x281   :  { %4729 = vrcp.f32 %v6457_v5  ;;  %v4184_v3 = vmul.f32 -1.442695, %v6468_v60  ;;  %v2389_v58 = vsub.f32 1.0, %v2388_v51  ;;  %v6524_v41 = vmul.f32 %v6424_v42, %v2374_v34 }
 0x282   :  { %v2121_v8 = vpop.f32.mrf.mxu2  ;;  %v1915_v52 = vpack.c.bf16 %v1883_v13, %v1883_v13  ;;  %4731 = vrcp.f32 %v6455_v35  ;;  %v4185_v20 = vmul.f32 -1.442695, %v6479_v33  ;;  %vm2452_vm8 = vweird.f32 %v6447_v12 }
 0x283   :  { %v6482_v24 = vadd.f32 %v6286_v57, %v2121_v8  ;;  %4733 = vrcp.f32 %v6470_v54  ;;  %v2390_v51 = vmul.f32 %v6430_v21, %v2389_v58  ;;  %vm2467_vm9 = vweird.f32 %v6457_v5 }
 0x284   :  { %v1999_v28 = vunpack.c.l.b16 %v1915_v52  ;;  %vm2377_vm3 = vweird.f32 %v6388_v32  ;;  %vm2363_vm7 = vweird.f32 %v6464_v47 }
 0x285   :  { %v4726_v62 = vpop.eup %4725  ;;  %v4190_v6 = vmul.f32 -1.442695, %v6482_v24 }
 0x286   :  { %v6503_v26 = vadd.f32 1.0, %v4726_v62  ;;  %v6505_v63 = vpop.eup %4727  ;;  %v2015_v22 = vpack.c.b16 %v1999_v28, %v1998_v61  ;;  %v2471_v28 = vand.u32 2147483647, %v6457_v5 }
 0x287   :  { %4735 = vpow2.f32 %v4190_v6  ;;  %v6508_v10 = vpop.eup %4729  ;;  %v2448_v44 = vmul.f32 %v6505_v63, %v6447_v12  ;;  %vm2453_vm5 = vweird.f32 %v6505_v63 }
 0x288   :  { %4737 = vrcp.f32 %v6503_v26  ;;  %v2463_v11 = vmul.f32 %v6508_v10, %v6457_v5  ;;  %2163 = vmatmul.bf16.gmra.mxu2 %v2015_v22  ;;  %3288 = vmatpush.bf16.msrb.mxu3 %v2015_v22  ;;  %v6520_v50 = vpop.eup %4731  ;;  %vm2468_vm6 = vweird.f32 %v6508_v10  ;;  %v2456_v22 = vand.u32 2147483647, %v6447_v12  ;;  %vm6552_vm10 = vmor %vm2452_vm8, %vm2453_vm5 }
 0x289   :  { %4739 = vpow2.f32 %v4184_v3  ;;  %v2449_v8 = vsub.f32 1.0, %v2448_v44  ;;  %v6530_v61 = vpop.eup %4733  ;;  %v2458_v3 = vand.u32 2147483648, %v6447_v12  ;;  %vm6561_vm11 = vmor %vm2467_vm9, %vm2468_vm6  ;;  %vm6565_vm12 = vcmp.eq.f32.partialorder %v2471_v28, 8.507059e+37 }
 0x28a   :  { %v2124_v13 = vpop.f32.mrf.mxu2  ;;  %4741 = vpow2.f32 %v4185_v20  ;;  %v2464_v52 = vsub.f32 1.0, %v2463_v11  ;;  %v2473_v11 = vand.u32 2147483648, %v6457_v5  ;;  %vm2457_vm13 = vcmp.eq.f32.partialorder %v2456_v22, 8.507059e+37 }
 0x28b   :  { %v6528_v62 = vadd.f32 %v6286_v57, %v2124_v13  ;;  %v2450_v6 = vmul.f32 %v6505_v63, %v2449_v8  ;;  %v2486_v55 = vand.u32 2147483647, %v6503_v26  ;;  %vm2482_vm15 = vweird.f32 %v6503_v26 }
 0x28c   :  { %v2465_v58 = vmul.f32 %v6508_v10, %v2464_v52  ;;  %3289 = vmatpush.bf16.msrb.mxu3 %v6413_v38  ;;  %v2474_v28 = vor.u32 1.1754944e-38, %v2473_v11  ;;  %vm2378_vm6 = vweird.f32 %v6424_v42  ;;  %vm2438_vm8 = vweird.f32 %v6530_v61 }
 0x28d   :  { %v4736_v34 = vpop.eup %4735  ;;  %v4191_v20 = vmul.f32 -1.442695, %v6528_v62  ;;  %v2451_v8 = vadd.f32 %v6505_v63, %v2450_v6  ;;  %v2459_v6 = vor.u32 1.1754944e-38, %v2458_v3  ;;  %v2488_v3 = vand.u32 2147483648, %v6503_v26 }
 0x28e   :  { %v4738_v44 = vpop.eup %4737  ;;  %v6544_v13 = vadd.f32 1.0, %v4736_v34  ;;  %v2466_v52 = vadd.f32 %v6508_v10, %v2465_v58  ;;  %v2433_v34 = vmul.f32 %v6530_v61, %v6470_v54  ;;  %vm2487_vm1 = vcmp.eq.f32.partialorder %v2486_v55, 8.507059e+37 }
 0x28f   :  { %4743 = vpow2.f32 %v4191_v20  ;;  %v2478_v27 = vmul.f32 %v4738_v44, %v6503_v26  ;;  %v4740_v16 = vpop.eup %4739  ;;  %v2455_v4 = vsel %vm6552_vm10, %v6505_v63, %v2451_v8  ;;  %vm2483_vm14 = vweird.f32 %v4738_v44 }
 0x290   :  { %4745 = vrcp.f32 %v6544_v13  ;;  %v4742_v58 = vpop.eup %4741  ;;  %v2470_v20 = vsel %vm6561_vm11, %v6508_v10, %v2466_v52  ;;  %3290 = vmatpush.bf16.msrb.mxu3 %v6357_v15  ;;  %v2460_v19 = vsel %vm2457_vm13, %v2459_v6, %v2455_v4  ;;  %v6583_v10 = vld [vmem:[%s7821_s10] ss:$0 sm:$0xff]  ;;  %v2391_v15 = vadd.f32 %v6430_v21, %v2390_v51  ;;  %vm2484_vm0 = vmor %vm2482_vm15, %vm2483_vm14 }
 0x291   :  { %v2479_v30 = vsub.f32 1.0, %v2478_v27  ;;  %v2787_v2 = vmul.f32 %v2460_v19, %v6404_v59  ;;  %v6589_v4 = vadd.f32 1.0, %v4742_v58  ;;  %v2434_v27 = vsub.f32 1.0, %v2433_v34  ;;  %vm6671_vm14 = vmor %vm2377_vm3, %vm2378_vm6 }
 0x292   :  { %v2126_v1 = vpop.f32.mrf.mxu2  ;;  %v2475_v11 = vsel %vm6565_vm12, %v2474_v28, %v2470_v20  ;;  %v2489_v51 = vor.u32 1.1754944e-38, %v2488_v3  ;;  %v2395_v55 = vsel %vm6604_vm2, %v6430_v21, %v2391_v15  ;;  %v6613_v34 = vadd.f32 1.0, %v4740_v16 }
 0x293   :  { %v6586_v63 = vadd.f32 %v6286_v57, %v2126_v1  ;;  %v2480_v22 = vmul.f32 %v4738_v44, %v2479_v30  ;;  %v2823_v59 = vmul.f32 %v6583_v10, %v2787_v2  ;;  %v2398_v30 = vand.u32 2147483648, %v6395_v39 }
 0x294   :  { %3291 = vmatpush.bf16.msrb.mxu3 %v6316_v25  ;;  %v2788_v25 = vmul.f32 %v2475_v11, %v6410_v40  ;;  %v2435_v40 = vmul.f32 %v6530_v61, %v2434_v27  ;;  %v7959_v6 = vand.u32 2147483647, %v6395_v39  ;;  %v2501_v16 = vand.u32 2147483647, %v6544_v13 }
 0x295   :  { %v4744_v8 = vpop.eup %4743  ;;  %v4192_v19 = vmul.f32 -1.442695, %v6586_v63  ;;  %v2481_v52 = vadd.f32 %v4738_v44, %v2480_v22  ;;  %2865 = vadd.xlane.f32.xlu2 %v2823_v59  ;;  %v2399_v21 = vor.u32 1.1754944e-38, %v2398_v30  ;;  %v2503_v58 = vand.u32 2147483648, %v6544_v13 }
 0x296   :  { %v4746_v57 = vpop.eup %4745  ;;  %v6598_v1 = vadd.f32 1.0, %v4744_v8  ;;  %vm2397_vm4 = vcmp.eq.f32.partialorder %v7959_v6, 8.507059e+37  ;;  %v2824_v3 = vmul.f32 %v6583_v10, %v2788_v25  ;;  %vm2497_vm9 = vweird.f32 %v6544_v13 }
 0x297   :  { %v2493_v26 = vmul.f32 %v4746_v57, %v6544_v13  ;;  %4747 = vpow2.f32 %v4192_v19  ;;  %v2485_v38 = vsel %vm2484_vm0, %v4738_v44, %v2481_v52  ;;  %vm2498_vm5 = vweird.f32 %v4746_v57 }
 0x298   :  { %4749 = vrcp.f32 %v6598_v1  ;;  %v2490_v12 = vsel %vm2487_vm1, %v2489_v51, %v2485_v38  ;;  %3292 = vmatpush.bf16.msrb.mxu3 %v6280_v0  ;;  %v2400_v15 = vsel %vm2397_vm4, %v2399_v21, %v2395_v55  ;;  %v2376_v0 = vadd.f32 %v6424_v42, %v6524_v41  ;;  %vm2499_vm10 = vmor %vm2497_vm9, %vm2498_vm5 }
 0x299   :  { %4751 = vrcp.f32 %v6589_v4  ;;  %v2494_v5 = vsub.f32 1.0, %v2493_v26  ;;  %v2789_v44 = vmul.f32 %v2490_v12, %v6433_v31  ;;  %v2436_v31 = vadd.f32 %v6530_v61, %v2435_v40 }
 0x29a   :  { %v6625_v20 = vpop.f32.mrf.mxu2  ;;  %4753 = vrcp.f32 %v6613_v34  ;;  %v2441_v8 = vand.u32 2147483647, %v6470_v54  ;;  %v2443_v41 = vand.u32 2147483648, %v6470_v54  ;;  %v2504_v59 = vor.u32 1.1754944e-38, %v2503_v58 }
 0x29b   :  { %v2495_v28 = vmul.f32 %v4746_v57, %v2494_v5  ;;  %v2825_v22 = vmul.f32 %v6583_v10, %v2789_v44  ;;  %vm2437_vm11 = vweird.f32 %v6470_v54  ;;  %vm2502_vm12 = vcmp.eq.f32.partialorder %v2501_v16, 8.507059e+37 }
 0x29c   :  { %3293 = vmatpush.bf16.msrb.mxu3 %v6256_v14  ;;  %v7960_v13 = vsub.f32 1.0, %v6498_v56  ;;  %vm6655_vm13 = vmor %vm2437_vm11, %vm2438_vm8  ;;  %v2383_v54 = vand.u32 2147483648, %v6388_v32  ;;  %vm2442_vm15 = vcmp.eq.f32.partialorder %v2441_v8, 8.507059e+37  ;;  %v2518_v44 = vand.u32 2147483648, %v6598_v1 }
 0x29d   :  { %v4748_v39 = vpop.eup %4747  ;;  %v2496_v27 = vadd.f32 %v4746_v57, %v2495_v28  ;;  %2869 = vadd.xlane.f32.xlu1 %v2825_v22  ;;  %2867 = vadd.xlane.f32.xlu2 %v2824_v3  ;;  %v2440_v26 = vsel %vm6655_vm13, %v6530_v61, %v2436_v31  ;;  %v2444_v61 = vor.u32 1.1754944e-38, %v2443_v41  ;;  %v7965_v21 = vand.u32 2147483647, %v6388_v32 }
 0x29e   :  { %v6638_v11 = vpop.eup %4749  ;;  %v6643_v19 = vadd.f32 1.0, %v4748_v39  ;;  %v2360_v51 = vmul.f32 %v6464_v47, %v7960_v13  ;;  %v2384_v16 = vor.u32 1.1754944e-38, %v2383_v54  ;;  %v2516_v58 = vand.u32 2147483647, %v6598_v1 }
 0x29f   :  { %v6645_v52 = vpop.eup %4751  ;;  %v2500_v30 = vsel %vm2499_vm10, %v4746_v57, %v2496_v27  ;;  %v2508_v14 = vmul.f32 %v6638_v11, %v6598_v1  ;;  %v2783_v57 = vmul.f32 %v2400_v15, %v6345_v9  ;;  %vm2513_vm0 = vweird.f32 %v6638_v11 }
 0x2a0   :  { %v2505_v25 = vsel %vm2502_vm12, %v2504_v59, %v2500_v30  ;;  %4755 = vrcp.f32 %v6643_v19  ;;  %3294 = vmatpush.bf16.msrb.mxu3 %v6218_v37  ;;  %v6675_v12 = vpop.eup %4753  ;;  %v2418_v9 = vmul.f32 %v6645_v52, %v6589_v4  ;;  %v2380_v37 = vsel %vm6671_vm14, %v6424_v42, %v2376_v0 }
 0x2a1   :  { %v2790_v56 = vmul.f32 %v2505_v25, %v6482_v24  ;;  %v2509_v55 = vsub.f32 1.0, %v2508_v14  ;;  %v2445_v6 = vsel %vm2442_vm15, %v2444_v61, %v2440_v26  ;;  %vm2382_vm1 = vcmp.eq.f32.partialorder %v7965_v21, 8.507059e+37 }
 0x2a2   :  { %v6679_v40 = vpop.f32.mrf.mxu2  ;;  %v2361_v28 = vadd.f32 %v6464_v47, %v2360_v51  ;;  %v2819_v3 = vmul.f32 %v6583_v10, %v2783_v57  ;;  %vm2512_vm2 = vweird.f32 %v6598_v1  ;;  %vm2362_vm3 = vweird.f32 %v6420_v48 }
 0x2a3   :  { %v2826_v24 = vmul.f32 %v6583_v10, %v2790_v56  ;;  %v2510_v5 = vmul.f32 %v6638_v11, %v2509_v55  ;;  %v2419_v15 = vsub.f32 1.0, %v2418_v9  ;;  %v2385_v32 = vsel %vm2382_vm1, %v2384_v16, %v2380_v37  ;;  %vm6699_vm4 = vmor %vm2512_vm2, %vm2513_vm0 }
 0x2a4   :  { %3295 = vmatpush.bf16.msrb.mxu3 %v6192_v18  ;;  %v2351_v39 = vand.u32 2147483647, %v6384_v7  ;;  %v2786_v18 = vmul.f32 %v2445_v6, %v6391_v46  ;;  %v2519_v27 = vor.u32 1.1754944e-38, %v2518_v44  ;;  %vm2347_vm5 = vweird.f32 %v6384_v7  ;;  %vm6712_vm6 = vmor %vm2362_vm3, %vm2363_vm7 }
 0x2a5   :  { %2871 = vadd.xlane.f32.xlu1 %v2826_v24  ;;  %v2511_v42 = vadd.f32 %v6638_v11, %v2510_v5  ;;  %2857 = vadd.xlane.f32.xlu2 %v2819_v3  ;;  %v7970_v41 = vand.u32 2147483647, %v6420_v48  ;;  %v7973_v59 = vand.u32 2147483648, %v6420_v48  ;;  %vm2517_vm9 = vcmp.eq.f32.partialorder %v2516_v58, 8.507059e+37 }
 0x2a6   :  { %v4756_v22 = vpop.eup %4755  ;;  %v2365_v13 = vsel %vm6712_vm6, %v6464_v47, %v2361_v28  ;;  %v2782_v2 = vmul.f32 %v2385_v32, %v6337_v45  ;;  %v2420_v54 = vmul.f32 %v6645_v52, %v2419_v15  ;;  %v2533_v57 = vand.u32 2147483648, %v6643_v19 }
 0x2a7   :  { %v2523_v31 = vmul.f32 %v4756_v22, %v6643_v19  ;;  %v2515_v1 = vsel %vm6699_vm4, %v6638_v11, %v2511_v42  ;;  %vm6718_vm8 = vcmp.eq.f32.partialorder %v7970_v41, 8.507059e+37  ;;  %v2369_v30 = vor.u32 1.1754944e-38, %v7973_v59 }
 0x2a8   :  { %v7974_v11 = vsub.f32 1.0, %v6494_v53  ;;  %v2520_v25 = vsel %vm2517_vm9, %v2519_v27, %v2515_v1  ;;  %v2403_v53 = vmul.f32 %v6675_v12, %v6613_v34  ;;  %vm2528_vm7 = vweird.f32 %v4756_v22 }
 0x2a9   :  { %v2524_v51 = vsub.f32 1.0, %v2523_v31  ;;  %v2791_v48 = vmul.f32 %v2520_v25, %v6528_v62  ;;  %v2531_v38 = vand.u32 2147483647, %v6643_v19  ;;  %v2822_v47 = vmul.f32 %v6583_v10, %v2786_v18 }
 0x2aa   :  { %v2345_v14 = vmul.f32 %v6418_v49, %v7974_v11  ;;  %v6733_v26 = vpop.f32.mrf.mxu2  ;;  %v2370_v45 = vsel %vm6718_vm8, %v2369_v30, %v2365_v13  ;;  %vm2348_vm10 = vweird.f32 %v6418_v49  ;;  %v2353_v9 = vand.u32 2147483648, %v6384_v7 }
 0x2ab   :  { %v2525_v56 = vmul.f32 %v4756_v22, %v2524_v51  ;;  %v2827_v55 = vmul.f32 %v6583_v10, %v2791_v48  ;;  %vm2527_vm11 = vweird.f32 %v6643_v19  ;;  %v2818_v62 = vmul.f32 %v6583_v10, %v2782_v2  ;;  %vm6758_vm0 = vmor %vm2347_vm5, %vm2348_vm10 }
 0x2ac   :  { %v2346_v37 = vadd.f32 %v6418_v49, %v2345_v14  ;;  %v2421_v24 = vadd.f32 %v6645_v52, %v2420_v54  ;;  %vm2423_vm12 = vweird.f32 %v6645_v52  ;;  %vm2529_vm13 = vmor %vm2527_vm11, %vm2528_vm7  ;;  %v2534_v5 = vor.u32 1.1754944e-38, %v2533_v57 }
 0x2ad   :  { %v2526_v61 = vadd.f32 %v4756_v22, %v2525_v56  ;;  %2863 = vadd.xlane.f32.xlu1 %v2822_v47  ;;  %2873 = vadd.xlane.f32.xlu0 %v2827_v55  ;;  %v2404_v44 = vsub.f32 1.0, %v2403_v53  ;;  %v2781_v6 = vmul.f32 %v2370_v45, %v6366_v23  ;;  %v2428_v21 = vand.u32 2147483648, %v6589_v4  ;;  %v6803_v47 = vld [vmem:[%s7820_s9] ss:$0 sm:$0xff]  ;;  %v7977_v45 = vld [vmem:[#allocation6_spill] sm:$0xff] }
 0x2ae   :  { %vm2532_vm14 = vcmp.eq.f32.partialorder %v2531_v38, 8.507059e+37  ;;  %2855 = vadd.xlane.f32.xlu2 %v2818_v62  ;;  %vm2422_vm15 = vweird.f32 %v6589_v4  ;;  %v2426_v19 = vand.u32 2147483647, %v6589_v4  ;;  %v2777_v23 = vmul.f32 %v6486_v36, %v6295_v29 }
 0x2af   :  { %v2530_v16 = vsel %vm2529_vm13, %v4756_v22, %v2526_v61  ;;  %4757 = vrcp.f32 %v6489_v43  ;;  %vm2424_vm1 = vmor %vm2422_vm15, %vm2423_vm12  ;;  %v2350_v4 = vsel %vm6758_vm0, %v6418_v49, %v2346_v37  ;;  %v2328_v7 = vmul.f32 %v6520_v50, %v6455_v35 }
 0x2b0   :  { %v2535_v58 = vsel %vm2532_vm14, %v2534_v5, %v2530_v16  ;;  %v2425_v42 = vsel %vm2424_vm1, %v6645_v52, %v2421_v24  ;;  %v2354_v15 = vor.u32 1.1754944e-38, %v2353_v9  ;;  %v2405_v29 = vmul.f32 %v6675_v12, %v2404_v44 }
 0x2b1   :  { %v2792_v3 = vmul.f32 %v2535_v58, %v6586_v63  ;;  %v2429_v36 = vor.u32 1.1754944e-38, %v2428_v21  ;;  %v2817_v0 = vmul.f32 %v6583_v10, %v2781_v6  ;;  %vm2352_vm2 = vcmp.eq.f32.partialorder %v2351_v39, 8.507059e+37 }
 0x2b2   :  { %v6774_v22 = vpop.f32.mrf.mxu2  ;;  %vm2427_vm3 = vcmp.eq.f32.partialorder %v2426_v19, 8.507059e+37  ;;  %v2355_v63 = vsel %vm2352_vm2, %v2354_v15, %v2350_v4  ;;  %v2813_v49 = vmul.f32 %v6583_v10, %v2777_v23  ;;  %v2329_v31 = vsub.f32 1.0, %v2328_v7 }
 0x2b3   :  { %v2828_v32 = vmul.f32 %v6583_v10, %v2792_v3  ;;  %v2430_v18 = vsel %vm2427_vm3, %v2429_v36, %v2425_v42  ;;  %v2406_v52 = vadd.f32 %v6675_v12, %v2405_v29  ;;  %vm2408_vm4 = vweird.f32 %v6675_v12 }
 0x2b4   :  { %v2780_v27 = vmul.f32 %v2355_v63, %v6326_v17  ;;  %v2413_v8 = vand.u32 2147483648, %v6613_v34  ;;  %v2785_v39 = vmul.f32 %v2430_v18, %v6479_v33  ;;  %vm2407_vm5 = vweird.f32 %v6613_v34 }
 0x2b5   :  { %2853 = vadd.xlane.f32.xlu1 %v2817_v0  ;;  %2875 = vadd.xlane.f32.xlu0 %v2828_v32  ;;  %v4758_v1 = vpop.eup %4757  ;;  %v2411_v41 = vand.u32 2147483647, %v6613_v34  ;;  %vm2409_vm6 = vmor %vm2407_vm5, %vm2408_vm4  ;;  %v2330_v46 = vmul.f32 %v6520_v50, %v2329_v31  ;;  %vm2333_vm9 = vweird.f32 %v6520_v50  ;;  %v2338_v2 = vand.u32 2147483648, %v6455_v35 }
 0x2b6   :  { %2845 = vadd.xlane.f32.xlu2 %v2813_v49  ;;  %v2410_v30 = vsel %vm2409_vm6, %v6675_v12, %v2406_v52  ;;  %v2313_v11 = vmul.f32 %v4758_v1, %v6489_v43  ;;  %v2816_v14 = vmul.f32 %v6583_v10, %v2780_v27  ;;  %v2414_v13 = vor.u32 1.1754944e-38, %v2413_v8  ;;  %v6851_v49 = vld [vmem:[%s4956_s30] sm:$0x3] }
 0x2b7   :  { %v2821_v17 = vmul.f32 %v6583_v10, %v2785_v39  ;;  %vm2412_vm8 = vcmp.eq.f32.partialorder %v2411_v41, 8.507059e+37  ;;  %v2331_v51 = vadd.f32 %v6520_v50, %v2330_v46  ;;  %vm2332_vm7 = vweird.f32 %v6455_v35 }
 0x2b8   :  { %v2415_v33 = vsel %vm2412_vm8, %v2414_v13, %v2410_v30  ;;  %v2314_v34 = vsub.f32 1.0, %v2313_v11  ;;  %v2336_v12 = vand.u32 2147483647, %v6455_v35  ;;  %vm2334_vm10 = vmor %vm2332_vm7, %vm2333_vm9  ;;  %v2339_v53 = vor.u32 1.1754944e-38, %v2338_v2 }
 0x2b9   :  { %v2784_v25 = vmul.f32 %v2415_v33, %v6468_v60  ;;  %v2335_v54 = vsel %vm2334_vm10, %v6520_v50, %v2331_v51  ;;  %v6807_v35 = vadd.f32 %v6803_v47, %v6625_v20  ;;  %vm2318_vm12 = vweird.f32 %v4758_v1 }
 0x2ba   :  { %v2139_v59 = vpop.f32.mrf.mxu2  ;;  %v2315_v48 = vmul.f32 %v4758_v1, %v2314_v34  ;;  %vm2337_vm11 = vcmp.eq.f32.partialorder %v2336_v12, 8.507059e+37  ;;  %v2323_v50 = vand.u32 2147483648, %v6489_v43  ;;  %vm2317_vm13 = vweird.f32 %v6489_v43 }
 0x2bb   :  { %v2820_v56 = vmul.f32 %v6583_v10, %v2784_v25  ;;  %v2340_v38 = vsel %vm2337_vm11, %v2339_v53, %v2335_v54  ;;  %v2321_v9 = vand.u32 2147483647, %v6489_v43  ;;  %vm2319_vm14 = vmor %vm2317_vm13, %vm2318_vm12  ;;  %v4193_v61 = vmul.f32 -1.442695, %v6807_v35  ;;  %v7980_v43 = vld [vmem:[#allocation5_spill] sm:$0xff] }
 0x2bc   :  { %v2316_v60 = vadd.f32 %v4758_v1, %v2315_v48  ;;  %v2779_v55 = vmul.f32 %v2340_v38, %v7977_v45  ;;  %v2324_v24 = vor.u32 1.1754944e-38, %v2323_v50  ;;  %v6817_v5 = vadd.f32 %v6803_v47, %v6733_v26 }
 0x2bd   :  { %2851 = vadd.xlane.f32.xlu1 %v2816_v14  ;;  %2861 = vadd.xlane.f32.xlu0 %v2821_v17  ;;  %vm2322_vm15 = vcmp.eq.f32.partialorder %v2321_v9, 8.507059e+37  ;;  %4759 = vpow2.f32 %v4193_v61  ;;  %v6821_v6 = vadd.f32 %v6803_v47, %v6679_v40  ;;  %v6834_v40 = vadd.f32 %v6803_v47, %v6774_v22 }
 0x2be   :  { %v2320_v37 = vsel %vm2319_vm14, %v4758_v1, %v2316_v60  ;;  %v2815_v20 = vmul.f32 %v6583_v10, %v2779_v55  ;;  %7978 = vst [vmem:[#allocation6_spill] sm:$0xff] %v6817_v5  ;;  %v4195_v16 = vmul.f32 -1.442695, %v6817_v5  ;;  %v6837_v4 = vadd.f32 %v6803_v47, %v2139_v59 }
 0x2bf   :  { %v2325_v44 = vsel %vm2322_vm15, %v2324_v24, %v2320_v37  ;;  %7979 = vst [vmem:[#allocation7_spill] sm:$0xff] %v6821_v6  ;;  %v4194_v28 = vmul.f32 -1.442695, %v6821_v6  ;;  %v3166_v29 = vlaneseq  ;;  %v4196_v36 = vmul.f32 -1.442695, %v6834_v40 }
 0x2c0   :  { %v2778_v21 = vmul.f32 %v2325_v44, %v7980_v43  ;;  %4761 = vpow2.f32 %v4195_v16  ;;  %7981 = vst [vmem:[#allocation5_spill] sm:$0xff] %v6834_v40  ;;  %v4197_v0 = vmul.f32 -1.442695, %v6837_v4  ;;  %v6863_v39 = vperm.slane %v6851_v49, 0 }
 0x2c1   :  { %4763 = vpow2.f32 %v4194_v28  ;;  %7982 = vst [vmem:[#allocation8_spill] sm:$0xff] %v6837_v4  ;;  %v6846_v63 = vshrl.u32 %v3166_v29, 7  ;;  %v7983_v59 = vmov 0  ;;  %v7831_v11 = vmov 1.0|1.0  }
 0x2c2   :  { %v2141_v57 = vpop.f32.mrf.mxu2  ;;  %v2814_v23 = vmul.f32 %v6583_v10, %v2778_v21 }
 0x2c3   :  { %v4760_v58 = vpop.eup %4759  ;;  %v6830_v3 = vadd.f32 %v6803_v47, %v2141_v57  ;;  %v6859_v27 = vadd.s32 8, %v6846_v63  ;;  %vm3187_vm0 = vcmp.eq.s32.totalorder %v6846_v63, %v6863_v39 }
 0x2c4   :  { %v6827_v26 = vadd.f32 1.0, %v4760_v58 }
 0x2c5   :  { %2859 = vadd.xlane.f32.xlu0 %v2820_v56  ;;  %v4198_v15 = vmul.f32 -1.442695, %v6830_v3  ;;  %vm3189_vm1 = vcmp.eq.s32.totalorder %v6859_v27, %v6863_v39 }
 0x2c6   :  { %v4762_v42 = vpop.eup %4761  ;;  %4765 = vrcp.f32 %v6827_v26  ;;  %vm6872_vm2 = vmpackc.low %vm3189_vm1, %vm3187_vm0  ;;  %v2546_v37 = vand.u32 2147483647, %v6827_v26  ;;  %vm2542_vm4 = vweird.f32 %v6827_v26  ;;  %v2548_v24 = vand.u32 2147483648, %v6827_v26 }
 0x2c7   :  { %v4764_v22 = vpop.eup %4763  ;;  %v6848_v18 = vadd.f32 1.0, %v4762_v42  ;;  %4767 = vpow2.f32 %v4198_v15  ;;  %v7984_v59 = vsel %vm6872_vm2, 4294967295, %v7983_v59  ;;  %4226 = vmatmul.msk.bf16.vlgmr.msra.gmra.mxu3 %vm6872_vm2, %v7831_v11 }
 0x2c8   :  { %4769 = vpow2.f32 %v4196_v36  ;;  %v6856_v1 = vadd.f32 1.0, %v4764_v22  ;;  %7985 = vst [vmem:[#allocation9_spill] sm:$0xff] %v7984_v59  ;;  %vm2547_vm8 = vcmp.eq.f32.partialorder %v2546_v37, 8.507059e+37  ;;  %v2549_v29 = vor.u32 1.1754944e-38, %v2548_v24 }
 0x2c9   :  { %4771 = vpow2.f32 %v4197_v0  ;;  %vm2572_vm11 = vweird.f32 %v6848_v18  ;;  %v7020_v36 = vadd.s32 32, %v6846_v63 }
 0x2ca   :  { %v2144_v62 = vpop.f32.mrf.mxu2  ;;  %4773 = vrcp.f32 %v6848_v18 }
 0x2cb   :  { %v6843_v32 = vadd.f32 %v6803_v47, %v2144_v62  ;;  %vm3195_vm1 = vcmp.eq.s32.totalorder %v7020_v36, %v6863_v39 }
 0x2cc   :  { %v6854_v52 = vpop.eup %4765 }
 0x2cd   :  { %2849 = vadd.xlane.f32.xlu0 %v2815_v20  ;;  %v4199_v31 = vmul.f32 -1.442695, %v6843_v32  ;;  %v2538_v41 = vmul.f32 %v6854_v52, %v6827_v26  ;;  %v4768_v46 = vpop.eup %4767  ;;  %vm2543_vm3 = vweird.f32 %v6854_v52  ;;  %v6921_v20 = vadd.s32 16, %v6846_v63 }
 0x2ce   :  { %v4770_v30 = vpop.eup %4769  ;;  %v6881_v33 = vadd.f32 1.0, %v4768_v46  ;;  %vm6931_vm5 = vmor %vm2542_vm4, %vm2543_vm3 }
 0x2cf   :  { %4775 = vpow2.f32 %v4199_v31  ;;  %v4772_v14 = vpop.eup %4771  ;;  %v2539_v17 = vsub.f32 1.0, %v2538_v41  ;;  %v6886_v34 = vadd.f32 1.0, %v4770_v30  ;;  %vm3191_vm6 = vcmp.eq.s32.totalorder %v6921_v20, %v6863_v39 }
 0x2d0   :  { %4777 = vrcp.f32 %v6856_v1  ;;  %v6879_v13 = vpop.eup %4773  ;;  %v6888_v12 = vadd.f32 1.0, %v4772_v14  ;;  %v7988_v31 = vmov 0  ;;  %v2578_v41 = vand.u32 2147483648, %v6848_v18 }
 0x2d1   :  { %v2568_v48 = vmul.f32 %v6879_v13, %v6848_v18  ;;  %v2540_v56 = vmul.f32 %v6854_v52, %v2539_v17  ;;  %4779 = vrcp.f32 %v6881_v33  ;;  %vm2573_vm10 = vweird.f32 %v6879_v13 }
 0x2d2   :  { %v2146_v19 = vpop.f32.mrf.mxu2  ;;  %4781 = vrcp.f32 %v6886_v34  ;;  %vm6985_vm12 = vmor %vm2572_vm11, %vm2573_vm10  ;;  %v6989_v37 = vor.u32 1.1754944e-38, %v2578_v41  ;;  %vm2617_vm13 = vweird.f32 %v6881_v33 }
 0x2d3   :  { %v6884_v51 = vadd.f32 %v6803_v47, %v2146_v19  ;;  %4783 = vrcp.f32 %v6888_v12  ;;  %v2569_v61 = vsub.f32 1.0, %v2568_v48  ;;  %v2541_v62 = vadd.f32 %v6854_v52, %v2540_v56 }
 0x2d4   :  { %v6927_v19 = vadd.s32 24, %v6846_v63  ;;  %7995 = vst [vmem:[#allocation13_spill] sm:$0xff] %v6989_v37 }
 0x2d5   :  { %2847 = vadd.xlane.f32.xlu0 %v2814_v23  ;;  %v4776_v2 = vpop.eup %4775  ;;  %v4200_v38 = vmul.f32 -1.442695, %v6884_v51  ;;  %v2570_v23 = vmul.f32 %v6879_v13, %v2569_v61  ;;  %v2545_v42 = vsel %vm6931_vm5, %v6854_v52, %v2541_v62 }
 0x2d6   :  { %v6893_v57 = vpop.eup %4777  ;;  %v6904_v60 = vadd.f32 1.0, %v4776_v2  ;;  %vm3193_vm9 = vcmp.eq.s32.totalorder %v6927_v19, %v6863_v39  ;;  %v2550_v14 = vsel %vm2547_vm8, %v2549_v29, %v2545_v42  ;;  %v2623_v29 = vand.u32 2147483648, %v6881_v33 }
 0x2d7   :  { %v2553_v45 = vmul.f32 %v6893_v57, %v6856_v1  ;;  %v6923_v44 = vpop.eup %4779  ;;  %vm6952_vm7 = vmpackc.low %vm3193_vm9, %vm3191_vm6  ;;  %v6966_v17 = vadd.f32 %v6879_v13, %v2570_v23 }
 0x2d8   :  { %v6929_v58 = vpop.eup %4781  ;;  %v2613_v0 = vmul.f32 %v6923_v44, %v6881_v33  ;;  %v7989_v31 = vsel %vm6952_vm7, 4294967295, %v7988_v31  ;;  %4228 = vmatmul.msk.bf16.gmra.mxu3 %vm6952_vm7, %v7831_v11  ;;  %vm2618_vm14 = vweird.f32 %v6923_v44  ;;  %vm2632_vm0 = vweird.f32 %v6904_v60 }
 0x2d9   :  { %v2554_v43 = vsub.f32 1.0, %v2553_v45  ;;  %7990 = vst [vmem:[#allocation10_spill] sm:$0xff] %v7989_v31  ;;  %vm7049_vm4 = vmor %vm2617_vm13, %vm2618_vm14  ;;  %v2638_v56 = vand.u32 2147483648, %v6904_v60 }
 0x2da   :  { %v2149_v7 = vpop.f32.mrf.mxu2  ;;  %7991 = vst [vmem:[#allocation11_spill] sm:$0xff] %v6966_v17 }
 0x2db   :  { %v6891_v25 = vadd.f32 %v6803_v47, %v2149_v7  ;;  %v6941_v7 = vpop.eup %4783  ;;  %v2555_v52 = vmul.f32 %v6893_v57, %v2554_v43  ;;  %v2624_v43 = vor.u32 1.1754944e-38, %v2623_v29 }
 0x2dc   :  { %v2598_v48 = vmul.f32 %v6941_v7, %v6888_v12 }
 0x2dd   :  { %v4201_v55 = vmul.f32 -1.442695, %v6891_v25  ;;  %v6983_v61 = vadd.f32 %v6893_v57, %v2555_v52 }
 0x2de   :  { %v2599_v42 = vsub.f32 1.0, %v2598_v48 }
 0x2df   :  { %7992 = vst [vmem:[#allocation12_spill] sm:$0xff] %v6983_v61 }
 0x2e2   :  { %v2151_v8 = vpop.f32.mrf.mxu2 }
 0x2e3   :  { %v6912_v9 = vadd.f32 %v6803_v47, %v2151_v8 }
 0x2e5   :  { %v4202_v21 = vmul.f32 -1.442695, %v6912_v9 }
 0x2ea   :  { %v2154_v54 = vpop.f32.mrf.mxu2 }
 0x2eb   :  { %v6898_v53 = vadd.f32 %v6803_v47, %v2154_v54 }
 0x2ed   :  { %v4203_v50 = vmul.f32 -1.442695, %v6898_v53 }
 0x2ef   :  { %4785 = vpow2.f32 %v4203_v50  ;;  %v2614_v50 = vsub.f32 1.0, %v2613_v0 }
 0x2f0   :  { %4787 = vpow2.f32 %v4200_v38  ;;  %v6977_v38 = vmul.f32 %v6929_v58, %v6886_v34 }
 0x2f1   :  { %4789 = vrcp.f32 %v6904_v60  ;;  %v2615_v41 = vmul.f32 %v6923_v44, %v2614_v50  ;;  %v7023_v50 = vmul.f32 %v6941_v7, %v2599_v42 }
 0x2f2   :  { %4791 = vpow2.f32 %v4201_v55  ;;  %v2156_v16 = vpop.f32.mrf.mxu2  ;;  %v2793_v55 = vmul.f32 %v2550_v14, %v6807_v35 }
 0x2f3   :  { %v6937_v26 = vadd.f32 %v6803_v47, %v2156_v16  ;;  %4793 = vpow2.f32 %v4202_v21  ;;  %v7037_v21 = vadd.s32 40, %v6846_v63 }
 0x2f4   :  { %v7015_v24 = vmul.f32 %v6583_v10, %v2793_v55  ;;  %v2616_v55 = vadd.f32 %v6923_v44, %v2615_v41 }
 0x2f5   :  { %v4786_v15 = vpop.eup %4785  ;;  %v4204_v22 = vmul.f32 -1.442695, %v6937_v26  ;;  %vm3197_vm5 = vcmp.eq.s32.totalorder %v7037_v21, %v6863_v39 }
 0x2f6   :  { %v4788_v8 = vpop.eup %4787  ;;  %v6958_v46 = vadd.f32 1.0, %v4786_v15  ;;  %v2621_v15 = vand.u32 2147483647, %v6881_v33  ;;  %v2620_v33 = vsel %vm7049_vm4, %v6923_v44, %v2616_v55  ;;  %vm7070_vm8 = vmpackc.low %vm3197_vm5, %vm3195_vm1  ;;  %v8003_v55 = vmov 1.0|1.0  }
 0x2f7   :  { %v6963_v30 = vpop.eup %4789  ;;  %4795 = vpow2.f32 %v4204_v22  ;;  %v6979_v45 = vadd.f32 1.0, %v4788_v8  ;;  %4230 = vmatmul.msk.bf16.gmra.mxu3 %vm7070_vm8, %v8003_v55 }
 0x2f8   :  { %v4792_v2 = vpop.eup %4791  ;;  %4797 = vrcp.f32 %v6958_v46  ;;  %v2628_v35 = vmul.f32 %v6963_v30, %v6904_v60  ;;  %vm7026_vm15 = vcmp.eq.f32.partialorder %v2621_v15, 8.507059e+37  ;;  %v2698_v42 = vand.u32 2147483648, %v6958_v46 }
 0x2f9   :  { %v6999_v16 = vadd.f32 1.0, %v4792_v2  ;;  %v4794_v23 = vpop.eup %4793  ;;  %4799 = vrcp.f32 %v6979_v45  ;;  %vm2692_vm6 = vweird.f32 %v6958_v46  ;;  %vm2633_vm9 = vweird.f32 %v6963_v30 }
 0x2fa   :  { %v2699_v44 = vor.u32 1.1754944e-38, %v2698_v42  ;;  %v2625_v42 = vsel %vm7026_vm15, %v2624_v43, %v2620_v33  ;;  %vm7103_vm14 = vmor %vm2632_vm0, %vm2633_vm9  ;;  %vm2647_vm1 = vweird.f32 %v6979_v45 }
 0x2fb   :  { %v2159_v28 = vpop.f32.mrf.mxu2  ;;  %4801 = vrcp.f32 %v6999_v16 }
 0x2fc   :  { %v7004_v0 = vadd.f32 %v6803_v47, %v2159_v28  ;;  %v2629_v28 = vsub.f32 1.0, %v2628_v35  ;;  %v7032_v35 = vadd.f32 1.0, %v4794_v23  ;;  %v2696_v23 = vand.u32 2147483647, %v6958_v46 }
 0x2fd   :  { %v4796_v22 = vpop.eup %4795 }
 0x2fe   :  { %v4798_v14 = vpop.eup %4797  ;;  %v7011_v2 = vadd.f32 1.0, %v4796_v22  ;;  %v4205_v48 = vmul.f32 -1.442695, %v7004_v0  ;;  %v2630_v29 = vmul.f32 %v6963_v30, %v2629_v28  ;;  %vm2697_vm11 = vcmp.eq.f32.partialorder %v2696_v23, 8.507059e+37 }
 0x2ff   :  { %v2688_v54 = vmul.f32 %v4798_v14, %v6958_v46  ;;  %v7041_v15 = vpop.eup %4799  ;;  %vm2693_vm3 = vweird.f32 %v4798_v14  ;;  %v2639_v23 = vor.u32 1.1754944e-38, %v2638_v56  ;;  %v2651_v22 = vand.u32 2147483647, %v6979_v45 }
 0x300   :  { %4803 = vrcp.f32 %v7011_v2  ;;  %v2643_v59 = vmul.f32 %v7041_v15, %v6979_v45  ;;  %vm2694_vm10 = vmor %vm2692_vm6, %vm2693_vm3  ;;  %v2631_v41 = vadd.f32 %v6963_v30, %v2630_v29  ;;  %v2713_v37 = vand.u32 2147483648, %v7011_v2 }
 0x301   :  { %v2689_v52 = vsub.f32 1.0, %v2688_v54  ;;  %4805 = vpow2.f32 %v4205_v48  ;;  %v2636_v48 = vand.u32 2147483647, %v6904_v60  ;;  %v2653_v60 = vand.u32 2147483648, %v6979_v45 }
 0x302   :  { %4807 = vrcp.f32 %v7032_v35  ;;  %vm2707_vm0 = vweird.f32 %v7011_v2  ;;  %vm2648_vm3 = vweird.f32 %v7041_v15  ;;  %vm2662_vm6 = vweird.f32 %v6999_v16 }
 0x303   :  { %v2690_v8 = vmul.f32 %v4798_v14, %v2689_v52  ;;  %v2161_v54 = vpop.f32.mrf.mxu2  ;;  %v7060_v52 = vpop.eup %4801  ;;  %vm7090_vm13 = vcmp.eq.f32.partialorder %v2636_v48, 8.507059e+37  ;;  %v2654_v17 = vor.u32 1.1754944e-38, %v2653_v60 }
 0x304   :  { %v7056_v11 = vadd.f32 %v6803_v47, %v2161_v54  ;;  %v8000_v54 = vmov 0  ;;  %v2658_v61 = vmul.f32 %v7060_v52, %v6999_v16  ;;  %vm2663_vm9 = vweird.f32 %v7060_v52 }
 0x305   :  { %v2691_v28 = vadd.f32 %v4798_v14, %v2690_v8  ;;  %v8001_v54 = vsel %vm7070_vm8, 4294967295, %v8000_v54 }
 0x306   :  { %8002 = vst [vmem:[#allocation14_spill] sm:$0xff] %v8001_v54  ;;  %v4804_v31 = vpop.eup %4803  ;;  %v4206_v8 = vmul.f32 -1.442695, %v7056_v11  ;;  %v2659_v56 = vsub.f32 1.0, %v2658_v61  ;;  %v2714_v61 = vor.u32 1.1754944e-38, %v2713_v37  ;;  %v2668_v54 = vand.u32 2147483648, %v6999_v16 }
 0x307   :  { %v4806_v46 = vpop.eup %4805  ;;  %v2695_v40 = vsel %vm2694_vm10, %v4798_v14, %v2691_v28  ;;  %v2703_v6 = vmul.f32 %v4804_v31, %v7011_v2  ;;  %v2644_v28 = vsub.f32 1.0, %v2643_v59  ;;  %vm2708_vm15 = vweird.f32 %v4804_v31 }
 0x308   :  { %v2700_v4 = vsel %vm2697_vm11, %v2699_v44, %v2695_v40  ;;  %v7086_v5 = vadd.f32 1.0, %v4806_v46  ;;  %4809 = vpow2.f32 %v4206_v8  ;;  %v7097_v40 = vpop.eup %4807  ;;  %v7110_v59 = vmul.f32 %v2625_v42, %v6830_v3  ;;  %vm2709_vm4 = vmor %vm2707_vm0, %vm2708_vm15 }
 0x309   :  { %v2803_v29 = vmul.f32 %v2700_v4, %v6898_v53  ;;  %v2704_v14 = vsub.f32 1.0, %v2703_v6  ;;  %v2711_v6 = vand.u32 2147483647, %v7011_v2  ;;  %v2635_v53 = vsel %vm7103_vm14, %v6963_v30, %v2631_v41  ;;  %vm7162_vm11 = vmor %vm2647_vm1, %vm2648_vm3 }
 0x30a   :  { %4811 = vrcp.f32 %v7086_v5  ;;  %v2645_v46 = vmul.f32 %v7041_v15, %v2644_v28  ;;  %v2673_v30 = vmul.f32 %v7097_v40, %v7032_v35  ;;  %v2660_v28 = vmul.f32 %v7060_v52, %v2659_v56  ;;  %vm7181_vm15 = vmor %vm2662_vm6, %vm2663_vm9 }
 0x30b   :  { %v2705_v4 = vmul.f32 %v4804_v31, %v2704_v14  ;;  %v2164_v48 = vpop.f32.mrf.mxu2  ;;  %v2839_v8 = vmul.f32 %v6583_v10, %v2803_v29  ;;  %vm2712_vm5 = vcmp.eq.f32.partialorder %v2711_v6, 8.507059e+37  ;;  %v2640_v29 = vsel %vm7090_vm13, %v2639_v23, %v2635_v53 }
 0x30c   :  { %v7119_v44 = vadd.f32 %v6803_v47, %v2164_v48  ;;  %v7136_v48 = vadd.s32 48, %v6846_v63  ;;  %v7148_v23 = vadd.s32 56, %v6846_v63  ;;  %v2674_v53 = vsub.f32 1.0, %v2673_v30 }
 0x30d   :  { %v2706_v33 = vadd.f32 %v4804_v31, %v2705_v4  ;;  %2897 = vadd.xlane.f32.xlu2 %v2839_v8  ;;  %v2661_v8 = vadd.f32 %v7060_v52, %v2660_v28  ;;  %vm7166_vm13 = vcmp.eq.f32.partialorder %v2651_v22, 8.507059e+37  ;;  %vm2722_vm3 = vweird.f32 %v7086_v5 }
 0x30e   :  { %v4810_v3 = vpop.eup %4809  ;;  %v4207_v2 = vmul.f32 -1.442695, %v7119_v44  ;;  %vm3199_vm10 = vcmp.eq.s32.totalorder %v7136_v48, %v6863_v39  ;;  %vm3201_vm0 = vcmp.eq.s32.totalorder %v7148_v23, %v6863_v39  ;;  %vm2678_vm9 = vweird.f32 %v7097_v40 }
 0x30f   :  { %v2710_v41 = vsel %vm2709_vm4, %v4804_v31, %v2706_v33  ;;  %v7127_v42 = vadd.f32 1.0, %v4810_v3  ;;  %v2666_v31 = vand.u32 2147483647, %v6999_v16  ;;  %v7143_v33 = vadd.f32 %v7041_v15, %v2645_v46  ;;  %v7154_v46 = vpop.xlane.xlu2 %2865  ;;  %vm7197_vm4 = vmpackc.low %vm3201_vm0, %vm3199_vm10 }
 0x310   :  { %v4812_v14 = vpop.eup %4811  ;;  %v2715_v43 = vsel %vm2712_vm5, %v2714_v61, %v2710_v41  ;;  %v7133_v4 = vpop.xlane.xlu1 %2869  ;;  %v2728_v3 = vand.u32 2147483648, %v7086_v5  ;;  %4232 = vmatmul.msk.bf16.gmra.mxu3 %vm7197_vm4, %v8003_v55  ;;  %vm2677_vm10 = vweird.f32 %v7032_v35 }
 0x311   :  { %v2804_v37 = vmul.f32 %v2715_v43, %v6937_v26  ;;  %v2718_v6 = vmul.f32 %v4812_v14, %v7086_v5  ;;  %4813 = vrcp.f32 %v7127_v42  ;;  %v2726_v26 = vand.u32 2147483647, %v7086_v5 }
 0x312   :  { %4815 = vpow2.f32 %v4207_v2  ;;  %vm2723_vm14 = vweird.f32 %v4812_v14  ;;  %vm7185_vm1 = vcmp.eq.f32.partialorder %v2666_v31, 8.507059e+37  ;;  %v2669_v31 = vor.u32 1.1754944e-38, %v2668_v54 }
 0x313   :  { %v2719_v56 = vsub.f32 1.0, %v2718_v6  ;;  %v2166_v61 = vpop.f32.mrf.mxu2  ;;  %v2840_v43 = vmul.f32 %v6583_v10, %v2804_v37  ;;  %v7175_v6 = vmul.f32 %v2640_v29, %v6843_v32  ;;  %v2675_v10 = vmul.f32 %v7097_v40, %v2674_v53  ;;  %vm2724_vm5 = vmor %vm2722_vm3, %vm2723_vm14 }
 0x314   :  { %v7171_v28 = vadd.f32 %v6803_v47, %v2166_v61  ;;  %v2650_v29 = vsel %vm7162_vm11, %v7041_v15, %v7143_v33  ;;  %v2681_v37 = vand.u32 2147483647, %v7032_v35  ;;  %v2729_v5 = vor.u32 1.1754944e-38, %v2728_v3  ;;  %vm7237_vm14 = vmor %vm2677_vm10, %vm2678_vm9 }
 0x315   :  { %v2720_v2 = vmul.f32 %v4812_v14, %v2719_v56  ;;  %2899 = vadd.xlane.f32.xlu0 %v2840_v43  ;;  %v2665_v53 = vsel %vm7181_vm15, %v7060_v52, %v2661_v8  ;;  %vm2727_vm6 = vcmp.eq.f32.partialorder %v2726_v26, 8.507059e+37  ;;  %v2683_v54 = vand.u32 2147483648, %v7032_v35  ;;  %v7230_v43 = vld [vmem:[%s4961_s18 + $0x28] sm:$0xff]  }
 0x316   :  { %v4208_v32 = vmul.f32 -1.442695, %v7171_v28  ;;  %v2676_v30 = vadd.f32 %v7097_v40, %v2675_v10  ;;  %v2919_v8 = vpack.c.bf16 %v7154_v46, %v7154_v46  ;;  %v2743_v26 = vand.u32 2147483648, %v7127_v42 }
 0x317   :  { %v2721_v47 = vadd.f32 %v4812_v14, %v2720_v2  ;;  %v4814_v60 = vpop.eup %4813  ;;  %v2741_v10 = vand.u32 2147483647, %v7127_v42  ;;  %vm7241_vm15 = vcmp.eq.f32.partialorder %v2681_v37, 8.507059e+37  ;;  %v2868_v35 = vpop.xlane.xlu2 %2867  ;;  %v2952_v22 = vunpack.c.h.bf16 %v7230_v43 }
 0x318   :  { %v4816_v39 = vpop.eup %4815  ;;  %v2733_v15 = vmul.f32 %v4814_v60, %v7127_v42  ;;  %v7214_v33 = vpop.xlane.xlu1 %2871  ;;  %4817 = vpow2.f32 %v4208_v32  ;;  %vm2738_vm11 = vweird.f32 %v4814_v60  ;;  %v7248_v32 = vld [vmem:[%s7821_s10] ss:$0 sm:$0xff] }
 0x319   :  { %v2725_v56 = vsel %vm2724_vm5, %v4812_v14, %v2721_v47  ;;  %v7217_v3 = vadd.f32 1.0, %v4816_v39  ;;  %v2670_v14 = vsel %vm7185_vm1, %v2669_v31, %v2665_v53  ;;  %v2684_v47 = vor.u32 1.1754944e-38, %v2683_v54 }
 0x31a   :  { %v2730_v61 = vsel %vm2727_vm6, %v2729_v5, %v2725_v56  ;;  %v2734_v52 = vsub.f32 1.0, %v2733_v15  ;;  %v2951_v5 = vunpack.c.l.bf16 %v7230_v43  ;;  %v2983_v39 = vunpack.c.l.bf16 %v2919_v8 }
 0x31b   :  { %v2805_v2 = vmul.f32 %v2730_v61, %v7004_v0  ;;  %4819 = vrcp.f32 %v7217_v3  ;;  %v7235_v0 = vsel %vm7166_vm13, %v2654_v17, %v2650_v29  ;;  %v7252_v17 = vmul.f32 %v2670_v14, %v6891_v25 }
 0x31c   :  { %v2735_v45 = vmul.f32 %v4814_v60, %v2734_v52  ;;  %v2680_v29 = vsel %vm7237_vm14, %v7097_v40, %v2676_v30  ;;  %vm2737_vm13 = vweird.f32 %v7127_v42  ;;  %v2744_v53 = vor.u32 1.1754944e-38, %v2743_v26  ;;  %v158_v40 = vld [vmem:[%s4961_s18 + $0x30] sm:$0xff]   ;;  %v7272_v52 = vld [vmem:[%s4961_s18 + $0x38] sm:$0xff]  }
 0x31d   :  { %v2841_v41 = vmul.f32 %v7248_v32, %v2805_v2  ;;  %vm2739_vm1 = vmor %vm2737_vm13, %vm2738_vm11  ;;  %v7262_v25 = vmul.f32 %v7248_v32, %v7110_v59  ;;  %vm2742_vm0 = vcmp.eq.f32.partialorder %v2741_v10, 8.507059e+37  ;;  %v2920_v15 = vpack.c.bf16 %v2868_v35, %v2868_v35 }
 0x31e   :  { %v2736_v31 = vadd.f32 %v4814_v60, %v2735_v45  ;;  %v4818_v37 = vpop.eup %4817  ;;  %v7269_v30 = vsel %vm7241_vm15, %v2684_v47, %v2680_v29  ;;  %v7275_v59 = vperm.slane %v6851_v49, 1  ;;  %v2921_v26 = vpack.c.bf16 %v7133_v4, %v7133_v4  ;;  %v7294_v29 = vld [vmem:[%s4961_s18 + $0x18] sm:$0xff]  }
 0x31f   :  { %2901 = vadd.xlane.f32.xlu0 %v2841_v41  ;;  %v7265_v54 = vadd.f32 1.0, %v4818_v37  ;;  %v2835_v10 = vmul.f32 %v7248_v32, %v7175_v6  ;;  %v2953_v46 = vunpack.c.l.bf16 %v158_v40  ;;  %v2922_v49 = vpack.c.bf16 %v7214_v33, %v7214_v33 }
 0x320   :  { %v2740_v56 = vsel %vm2739_vm1, %v4814_v60, %v2736_v31  ;;  %v2874_v42 = vpop.xlane.xlu0 %2873  ;;  %v7281_v45 = vpop.xlane.xlu1 %2863  ;;  %v7289_v47 = vmul.f32 %v2983_v39, %v2951_v5  ;;  %v2955_v41 = vunpack.c.l.bf16 %v7272_v52  ;;  %v2758_v4 = vand.u32 2147483648, %v7217_v3 }
 0x321   :  { %v4820_v61 = vpop.eup %4819  ;;  %v2745_v2 = vsel %vm2742_vm0, %v2744_v53, %v2740_v56  ;;  %v2923_v14 = vpack.c.bf16 %v2874_v42, %v2874_v42  ;;  %4821 = vrcp.f32 %v7265_v54  ;;  %vm3188_vm3 = vcmp.eq.s32.totalorder %v6846_v63, %v7275_v59 }
 0x322   :  { %v2806_v60 = vmul.f32 %v2745_v2, %v7056_v11  ;;  %v2748_v8 = vmul.f32 %v4820_v61, %v7217_v3  ;;  %v2984_v11 = vunpack.c.l.bf16 %v2920_v15  ;;  %vm2753_vm5 = vweird.f32 %v4820_v61 }
 0x323   :  { %v2987_v31 = vunpack.c.l.bf16 %v2923_v14  ;;  %v2756_v33 = vand.u32 2147483647, %v7217_v3  ;;  %v2985_v37 = vunpack.c.l.bf16 %v2921_v26  ;;  %v2954_v5 = vunpack.c.h.bf16 %v158_v40  ;;  %v2858_v14 = vpop.xlane.xlu2 %2857  ;;  %v155_v26 = vld [vmem:[%s4961_s18 + $0x20] sm:$0xff]  }
 0x324   :  { %v2749_v35 = vsub.f32 1.0, %v2748_v8  ;;  %v2842_v6 = vmul.f32 %v7248_v32, %v2806_v60  ;;  %v2986_v39 = vunpack.c.l.bf16 %v2922_v49  ;;  %vm3190_vm6 = vcmp.eq.s32.totalorder %v6859_v27, %v7275_v59  ;;  %v3244_v49 = vld [vmem:[#allocation2] sm:$0xff] }
 0x325   :  { %vm3192_vm9 = vcmp.eq.s32.totalorder %v6921_v20, %v7275_v59  ;;  %vm2752_vm10 = vweird.f32 %v7217_v3  ;;  %v2947_v15 = vunpack.c.l.bf16 %v7294_v29  ;;  %vm7311_vm11 = vmpackc.low %vm3190_vm6, %vm3188_vm3  ;;  %v2759_v2 = vor.u32 1.1754944e-38, %v2758_v4 }
 0x326   :  { %v2750_v43 = vmul.f32 %v4820_v61, %v2749_v35  ;;  %2903 = vadd.xlane.f32.xlu1 %v2842_v6  ;;  %vm2754_vm14 = vmor %vm2752_vm10, %vm2753_vm5  ;;  %v3019_v60 = vmul.f32 %v2987_v31, %v2955_v41  ;;  %4234 = vmatmul.msk.bf16.vlgmr.msrb.gmra.mxu3 %vm7311_vm11, %v8003_v55  ;;  %vm3194_vm15 = vcmp.eq.s32.totalorder %v6927_v19, %v7275_v59  ;;  %vm2757_vm13 = vcmp.eq.f32.partialorder %v2756_v33, 8.507059e+37 }
 0x327   :  { %2889 = vadd.xlane.f32.xlu0 %v2835_v10  ;;  %v4822_v27 = vpop.eup %4821  ;;  %v2956_v10 = vunpack.c.h.bf16 %v7272_v52  ;;  %vm7327_vm1 = vmpackc.low %vm3194_vm15, %vm3192_vm9  ;;  %v7331_v35 = vmul.f32 %v2984_v11, %v2952_v22  ;;  %v3017_v4 = vmul.f32 %v2985_v37, %v2953_v46  ;;  %v3018_v31 = vmul.f32 %v2986_v39, %v2954_v5 }
 0x328   :  { %v2751_v56 = vadd.f32 %v4820_v61, %v2750_v43  ;;  %v2876_v42 = vpop.xlane.xlu0 %2875  ;;  %v2763_v63 = vmul.f32 %v4822_v27, %v7265_v54  ;;  %v2771_v6 = vand.u32 2147483647, %v7265_v54  ;;  %v2854_v33 = vpop.xlane.xlu1 %2853  ;;  %v2773_v52 = vand.u32 2147483648, %v7265_v54 }
 0x329   :  { %v2924_v8 = vpack.c.bf16 %v2876_v42, %v2876_v42  ;;  %v2950_v20 = vunpack.c.h.bf16 %v155_v26  ;;  %v2918_v42 = vpack.c.bf16 %v7281_v45, %v7281_v45  ;;  %vm2768_vm0 = vweird.f32 %v4822_v27 }
 0x32a   :  { %v2755_v3 = vsel %vm2754_vm14, %v4820_v61, %v2751_v56  ;;  %v2764_v61 = vsub.f32 1.0, %v2763_v63  ;;  %v3051_v56 = vpack.c.bf16 %v3019_v60, %v3019_v60  ;;  %vm2603_vm3 = vweird.f32 %v6941_v7 }
 0x32b   :  { %v2760_v41 = vsel %vm2757_vm13, %v2759_v2, %v2755_v3  ;;  %v2988_v43 = vunpack.c.l.bf16 %v2924_v8  ;;  %v2915_v11 = vpack.c.bf16 %v2858_v14, %v2858_v14  ;;  %vm2767_vm5 = vweird.f32 %v7265_v54 }
 0x32c   :  { %v2807_v19 = vmul.f32 %v2760_v41, %v7119_v44  ;;  %v2765_v53 = vmul.f32 %v4822_v27, %v2764_v61  ;;  %v3049_v44 = vpack.c.bf16 %v3017_v4, %v3017_v4  ;;  %v2949_v37 = vunpack.c.l.bf16 %v155_v26  ;;  %vm2769_vm10 = vmor %vm2767_vm5, %vm2768_vm0  ;;  %v2856_v41 = vpop.xlane.xlu2 %2855 }
 0x32d   :  { %v3020_v22 = vmul.f32 %v2988_v43, %v2956_v10  ;;  %vm7342_vm6 = vcmp.eq.f32.partialorder %v2771_v6, 8.507059e+37  ;;  %v3050_v45 = vpack.c.bf16 %v3018_v31, %v3018_v31  ;;  %vm2602_vm9 = vweird.f32 %v6888_v12 }
 0x32e   :  { %v2843_v46 = vmul.f32 %v7248_v32, %v2807_v19  ;;  %v2766_v5 = vadd.f32 %v4822_v27, %v2765_v53  ;;  %v2774_v8 = vor.u32 1.1754944e-38, %v2773_v52  ;;  %v2982_v14 = vunpack.c.l.bf16 %v2918_v42  ;;  %v151_v52 = vld [vmem:[%s4961_s18 + $0x10] sm:$0xff]  }
 0x32f   :  { %2887 = vadd.xlane.f32.xlu0 %v7262_v25  ;;  %v3052_v2 = vpack.c.bf16 %v3020_v22, %v3020_v22  ;;  %vm3196_vm14 = vcmp.eq.s32.totalorder %v7020_v36, %v7275_v59  ;;  %v3115_v54 = vunpack.c.l.b16 %v3051_v56  ;;  %vm3198_vm15 = vcmp.eq.s32.totalorder %v7037_v21, %v7275_v59 }
 0x330   :  { %2905 = vadd.xlane.f32.xlu1 %v2843_v46  ;;  %v2862_v60 = vpop.xlane.xlu0 %2861  ;;  %v2770_v25 = vsel %vm2769_vm10, %v4822_v27, %v2766_v5  ;;  %v3048_v63 = vpack.c.bf16 %v7331_v35, %v7331_v35  ;;  %v2979_v26 = vunpack.c.l.bf16 %v2915_v11  ;;  %vm7356_vm13 = vmpackc.low %vm3198_vm15, %vm3196_vm14  ;;  %v3114_v27 = vunpack.c.l.b16 %v3050_v45  ;;  %v2852_v42 = vpop.xlane.xlu1 %2851  ;;  %v149_v45 = vld [vmem:[%s4961_s18 + $0x8] sm:$0xff]  }
 0x331   :  { %v2917_v3 = vpack.c.bf16 %v2862_v60, %v2862_v60  ;;  %v3116_v53 = vunpack.c.l.b16 %v3052_v2  ;;  %v2775_v10 = vsel %vm7342_vm6, %v2774_v8, %v2770_v25  ;;  %v2913_v61 = vpack.c.bf16 %v2854_v33, %v2854_v33  ;;  %vm7400_vm15 = vmor %vm2602_vm9, %vm2603_vm3 }
 0x332   :  { %v2808_v36 = vmul.f32 %v2775_v10, %v7171_v28  ;;  %v3113_v21 = vunpack.c.l.b16 %v3049_v44  ;;  %vm3200_vm0 = vcmp.eq.s32.totalorder %v7136_v48, %v7275_v59  ;;  %vm3202_vm5 = vcmp.eq.s32.totalorder %v7148_v23, %v7275_v59  ;;  %v3248_v48 = vld [vmem:[#allocation2 + $0x68] sm:$0xff] }
 0x333   :  { %v2981_v4 = vunpack.c.l.bf16 %v2917_v3  ;;  %v3140_v19 = vpack.c.b16 %v3116_v53, %v3115_v54  ;;  %v8030_v35 = vand.u32 2147483647, %v6848_v18  ;;  %v2914_v56 = vpack.c.bf16 %v2856_v41, %v2856_v41  ;;  %vm7375_vm10 = vmpackc.low %vm3202_vm5, %vm3200_vm0 }
 0x334   :  { %v3014_v28 = vmul.f32 %v2982_v14, %v2950_v20  ;;  %v2837_v33 = vmul.f32 %v7248_v32, %v7252_v17  ;;  %v2844_v22 = vmul.f32 %v7248_v32, %v2808_v36  ;;  %vm2558_vm14 = vweird.f32 %v6893_v57 }
 0x335   :  { %v3013_v6 = vmul.f32 %v2981_v4, %v2949_v37  ;;  %vm7367_vm6 = vcmp.eq.f32.partialorder %v8030_v35, 8.507059e+37  ;;  %3317 = vmatpush.bf16.msra.mxu3 %v3140_v19  ;;  %v2601_v18 = vadd.f32 %v6941_v7, %v7023_v50  ;;  %v2800_v23 = vmul.f32 %v7235_v0, %v6884_v51  ;;  %v8045_v35 = vld [vmem:[#allocation13_spill] sm:$0xff] }
 0x336   :  { %v3112_v59 = vunpack.c.l.b16 %v3048_v63  ;;  %v2945_v20 = vunpack.c.l.bf16 %v151_v52  ;;  %v3011_v17 = vmul.f32 %v2979_v26, %v2947_v15  ;;  %v2977_v46 = vunpack.c.l.bf16 %v2913_v61  ;;  %2907 = vadd.xlane.f32.xlu2 %v2844_v22  ;;  %4236 = vmatmul.msk.bf16.gmra.mxu3 %vm7327_vm1, %v8003_v55 }
 0x337   :  { %2877 = vadd.xlane.f32.xlu0 %v7015_v24  ;;  %v3045_v44 = vpack.c.bf16 %v3013_v6, %v3013_v6  ;;  %v3139_v37 = vpack.c.b16 %v3114_v27, %v3113_v21  ;;  %vm2557_vm0 = vweird.f32 %v6856_v1  ;;  %v2802_v51 = vmul.f32 %v7269_v30, %v6912_v9  ;;  %v8043_v21 = vld [vmem:[#allocation11_spill] sm:$0xff] }
 0x338   :  { %2893 = vadd.xlane.f32.xlu1 %v2837_v33  ;;  %v2860_v11 = vpop.xlane.xlu0 %2859  ;;  %v2912_v50 = vpack.c.bf16 %v2852_v42, %v2852_v42  ;;  %v2948_v24 = vunpack.c.h.bf16 %v7294_v29  ;;  %vm2587_vm5 = vweird.f32 %v6886_v34  ;;  %v8037_v9 = vpack.c.bf16 %v7289_v47, %v7289_v47 }
 0x339   :  { %v2916_v0 = vpack.c.bf16 %v2860_v11, %v2860_v11  ;;  %v2946_v29 = vunpack.c.h.bf16 %v151_v52  ;;  %v2978_v5 = vunpack.c.l.bf16 %v2914_v56  ;;  %v3046_v39 = vpack.c.bf16 %v3014_v28, %v3014_v28  ;;  %3318 = vmatpush.bf16.msra.mxu3 %v3139_v37  ;;  %v8049_v11 = vld [vmem:[#allocation8_spill] sm:$0xff] }
 0x33a   :  { %v3111_v30 = vunpack.c.l.b16 %v8037_v9  ;;  %v8038_v2 = vsub.f32 1.0, %v6977_v38  ;;  %v2605_v8 = vsel %vm7400_vm15, %v6941_v7, %v2601_v18  ;;  %v8039_v14 = vand.u32 2147483647, %v6888_v12  ;;  %v2846_v7 = vpop.xlane.xlu2 %2845 }
 0x33b   :  { %v2980_v47 = vunpack.c.l.bf16 %v2916_v0  ;;  %v3043_v25 = vpack.c.bf16 %v3011_v17, %v3011_v17  ;;  %v3009_v54 = vmul.f32 %v2977_v46, %v2945_v20  ;;  %v3109_v53 = vunpack.c.l.b16 %v3045_v44  ;;  %v8048_v17 = vld [vmem:[#allocation6_spill] sm:$0xff] }
 0x33c   :  { %v2585_v60 = vmul.f32 %v6929_v58, %v8038_v2  ;;  %vm7416_vm3 = vcmp.eq.f32.partialorder %v8039_v14, 8.507059e+37  ;;  %v3138_v63 = vpack.c.b16 %v3112_v59, %v3111_v30  ;;  %v8042_v26 = vand.u32 2147483648, %v6888_v12 }
 0x33d   :  { %v2944_v10 = vunpack.c.h.bf16 %v149_v45  ;;  %v2976_v41 = vunpack.c.l.bf16 %v2912_v50  ;;  %v3012_v4 = vmul.f32 %v2980_v47, %v2948_v24  ;;  %v3010_v36 = vmul.f32 %v2978_v5, %v2946_v29  ;;  %v146_v50 = vld [vmem:[%s4961_s18] sm:$0xff]  }
 0x33e   :  { %v2609_v38 = vor.u32 1.1754944e-38, %v8042_v26  ;;  %v3110_v27 = vunpack.c.l.b16 %v3046_v39  ;;  %3319 = vmatpush.bf16.msra.mxu3 %v3138_v63  ;;  %v2836_v19 = vmul.f32 %v7248_v32, %v2800_v23  ;;  %v2838_v61 = vmul.f32 %v7248_v32, %v2802_v51  ;;  %v8057_v39 = vld [vmem:[#allocation12_spill] sm:$0xff] }
 0x33f   :  { %v8044_v6 = vsel %vm6985_vm12, %v6879_v13, %v8043_v21  ;;  %v2586_v52 = vadd.f32 %v6929_v58, %v2585_v60  ;;  %v3044_v28 = vpack.c.bf16 %v3012_v4, %v3012_v4  ;;  %v3107_v42 = vunpack.c.l.b16 %v3043_v25  ;;  %vm7439_vm12 = vmor %vm2557_vm0, %vm2558_vm14 }
 0x340   :  { %v2580_v12 = vsel %vm7367_vm6, %v8045_v35, %v8044_v6  ;;  %v2610_v56 = vsel %vm7416_vm3, %v2609_v38, %v2605_v8  ;;  %v3041_v33 = vpack.c.bf16 %v3009_v54, %v3009_v54  ;;  %2891 = vadd.xlane.f32.xlu1 %v2836_v19  ;;  %2895 = vadd.xlane.f32.xlu2 %v2838_v61  ;;  %v2943_v22 = vunpack.c.l.bf16 %v149_v45  ;;  %v2850_v62 = vpop.xlane.xlu0 %2849  ;;  %v8060_v61 = vld [vmem:[#allocation5_spill] sm:$0xff] }
 0x341   :  { %v3137_v18 = vpack.c.b16 %v3110_v27, %v3109_v53  ;;  %v2909_v23 = vpack.c.bf16 %v2846_v7, %v2846_v7  ;;  %v3008_v13 = vmul.f32 %v2976_v41, %v2944_v10  ;;  %v3108_v59 = vunpack.c.l.b16 %v3044_v28  ;;  %v8059_v7 = vld [vmem:[#allocation7_spill] sm:$0xff] }
 0x342   :  { %v2911_v20 = vpack.c.bf16 %v2850_v62, %v2850_v62  ;;  %v2795_v46 = vmul.f32 %v2580_v12, %v8048_v17  ;;  %v2591_v44 = vand.u32 2147483647, %v6886_v34  ;;  %v2797_v37 = vmul.f32 %v2610_v56, %v8049_v11 }
 0x343   :  { %v3042_v51 = vpack.c.bf16 %v3010_v36, %v3010_v36  ;;  %3320 = vmatpush.bf16.msra.mxu3 %v3137_v18  ;;  %v8050_v24 = vand.u32 2147483647, %v6856_v1  ;;  %v8053_v15 = vand.u32 2147483648, %v6856_v1  ;;  %vm8054_vm6 = vweird.f32 %v6929_v58 }
 0x344   :  { %vm7459_vm14 = vmor %vm2587_vm5, %vm8054_vm6  ;;  %v2975_v29 = vunpack.c.l.bf16 %v2911_v20  ;;  %v3136_v5 = vpack.c.b16 %v3108_v59, %v3107_v42  ;;  %v2560_v45 = vsel %vm7439_vm12, %v6893_v57, %v8057_v39  ;;  %v8058_v2 = vand.u32 2147483648, %v6886_v34 }
 0x345   :  { %vm7449_vm9 = vcmp.eq.f32.partialorder %v8050_v24, 8.507059e+37  ;;  %v2564_v9 = vor.u32 1.1754944e-38, %v8053_v15  ;;  %v2590_v1 = vsel %vm7459_vm14, %v6929_v58, %v2586_v52  ;;  %v3105_v8 = vunpack.c.l.b16 %v3041_v33  ;;  %v176_v15 = vld [vmem:[%s4961_s18 + $0x78] sm:$0xff]  }
 0x346   :  { %v2594_v60 = vor.u32 1.1754944e-38, %v8058_v2  ;;  %v2941_v14 = vunpack.c.l.bf16 %v146_v50  ;;  %v2973_v3 = vunpack.c.l.bf16 %v2909_v23  ;;  %v3040_v47 = vpack.c.bf16 %v3008_v13, %v3008_v13  ;;  %4238 = vmatmul.msk.bf16.gmra.mxu3 %vm7356_vm13, %v8003_v55 }
 0x347   :  { %v3007_v25 = vmul.f32 %v2975_v29, %v2943_v22  ;;  %vm2592_vm15 = vcmp.eq.f32.partialorder %v2591_v44, 8.507059e+37  ;;  %v3106_v54 = vunpack.c.l.b16 %v3042_v51  ;;  %3321 = vmatpush.bf16.msra.mxu3 %v3136_v5  ;;  %v2831_v53 = vmul.f32 %v7248_v32, %v2795_v46 }
 0x348   :  { %v2833_v63 = vmul.f32 %v7248_v32, %v2797_v37  ;;  %v2565_v57 = vsel %vm7449_vm9, %v2564_v9, %v2560_v45  ;;  %v2595_v26 = vsel %vm2592_vm15, %v2594_v60, %v2590_v1  ;;  %v2942_v34 = vunpack.c.h.bf16 %v146_v50  ;;  %v2848_v38 = vpop.xlane.xlu0 %2847  ;;  %v174_v45 = vld [vmem:[%s4961_s18 + $0x70] sm:$0xff]  }
 0x349   :  { %v3039_v58 = vpack.c.bf16 %v3007_v25, %v3007_v25  ;;  %2881 = vadd.xlane.f32.xlu1 %v2831_v53  ;;  %v3135_v10 = vpack.c.b16 %v3106_v54, %v3105_v8  ;;  %v3005_v41 = vmul.f32 %v2973_v3, %v2941_v14  ;;  %v3104_v4 = vunpack.c.l.b16 %v3040_v47  ;;  %v172_v14 = vld [vmem:[%s4961_s18 + $0x68] sm:$0xff]  }
 0x34a   :  { %2885 = vadd.xlane.f32.xlu2 %v2833_v63  ;;  %v2910_v27 = vpack.c.bf16 %v2848_v38, %v2848_v38  ;;  %v2794_v19 = vmul.f32 %v2565_v57, %v8059_v7  ;;  %v2796_v21 = vmul.f32 %v2595_v26, %v8060_v61  ;;  %v3268_v18 = vpop.f32.mrf.mxu3  ;;  %v2971_v5 = vunpack.c.l.bf16 %v176_v15  ;;  %v3243_v26 = vld [vmem:[#allocation2 + $0x30] sm:$0xff]  ;;  %v170_v61 = vld [vmem:[%s4961_s18 + $0x60] sm:$0xff]  }
 0x34b   :  { %v3103_v36 = vunpack.c.l.b16 %v3039_v58  ;;  %3322 = vmatpush.bf16.msra.mxu3 %v3135_v10  ;;  %v3037_v12 = vpack.c.bf16 %v3005_v41, %v3005_v41  ;;  %v2970_v60 = vunpack.c.h.bf16 %v174_v45  ;;  %v2969_v3 = vunpack.c.l.bf16 %v174_v45 }
 0x34c   :  { %v2974_v6 = vunpack.c.l.bf16 %v2910_v27  ;;  %v2830_v56 = vmul.f32 %v7248_v32, %v2794_v19  ;;  %v2832_v28 = vmul.f32 %v7248_v32, %v2796_v21  ;;  %v2972_v63 = vunpack.c.h.bf16 %v176_v15  ;;  %v3245_v15 = vld [vmem:[#allocation2 + $0x58] sm:$0xff] }
 0x34d   :  { %v3134_v35 = vpack.c.b16 %v3104_v4, %v3103_v36  ;;  %v3101_v33 = vunpack.c.l.b16 %v3037_v12  ;;  %v2967_v41 = vunpack.c.l.bf16 %v172_v14  ;;  %v2966_v17 = vunpack.c.h.bf16 %v170_v61 }
 0x34e   :  { %v3006_v52 = vmul.f32 %v2974_v6, %v2942_v34  ;;  %v2968_v34 = vunpack.c.h.bf16 %v172_v14 }
 0x34f   :  { %3323 = vmatpush.bf16.msra.mxu3 %v3134_v35 }
 0x350   :  { %v3038_v42 = vpack.c.bf16 %v3006_v52, %v3006_v52 }
 0x351   :  { %2879 = vadd.xlane.f32.xlu1 %v2830_v56 }
 0x352   :  { %2883 = vadd.xlane.f32.xlu2 %v2832_v28  ;;  %v3102_v22 = vunpack.c.l.b16 %v3038_v42  ;;  %v7489_v13 = vpop.f32.mrf.mxu3  ;;  %v168_v28 = vld [vmem:[%s4961_s18 + $0x58] sm:$0xff]  }
 0x354   :  { %v3133_v62 = vpack.c.b16 %v3102_v22, %v3101_v33  ;;  %v2965_v33 = vunpack.c.l.bf16 %v170_v61 }
 0x356   :  { %3324 = vmatpush.bf16.msra.mxu3 %v3133_v62 }
 0x357   :  { %4240 = vmatmul.msk.bf16.gmra.mxu3 %vm7375_vm10, %v8003_v55 }
 0x35b   :  { %v7491_v32 = vpop.f32.mrf.mxu3 }
 0x363   :  { %v7496_v20 = vpop.f32.mrf.mxu3 }
 0x367   :  { %4242 = vmatmul.msk.bf16.vlgmr.msra.gmra.mxu3 %vm6872_vm2, %v8003_v55 }
 0x377   :  { %4244 = vmatmul.msk.bf16.gmra.mxu3 %vm6952_vm7, %v8003_v55 }
 0x37a   :  { %v7498_v43 = vpop.f32.mrf.mxu3 }
 0x380   :  { %v2898_v50 = vpop.xlane.xlu2 %2897 }
 0x381   :  { %v2935_v16 = vpack.c.bf16 %v2898_v50, %v2898_v50 }
 0x382   :  { %v7503_v46 = vpop.f32.mrf.mxu3 }
 0x383   :  { %v2999_v4 = vunpack.c.l.bf16 %v2935_v16 }
 0x385   :  { %v3031_v52 = vmul.f32 %v2999_v4, %v2967_v41 }
 0x387   :  { %4246 = vmatmul.msk.bf16.gmra.mxu3 %vm7070_vm8, %v8003_v55 }
 0x388   :  { %v2900_v44 = vpop.xlane.xlu0 %2899 }
 0x389   :  { %v2936_v2 = vpack.c.bf16 %v2900_v44, %v2900_v44 }
 0x38b   :  { %v3000_v38 = vunpack.c.l.bf16 %v2936_v2 }
 0x38d   :  { %v3032_v12 = vmul.f32 %v3000_v38, %v2968_v34 }
 0x392   :  { %v2902_v51 = vpop.xlane.xlu0 %2901 }
 0x393   :  { %v7508_v37 = vpop.f32.mrf.mxu3  ;;  %v2937_v29 = vpack.c.bf16 %v2902_v51, %v2902_v51 }
 0x395   :  { %v3001_v47 = vunpack.c.l.bf16 %v2937_v29  ;;  %v2963_v29 = vunpack.c.l.bf16 %v168_v28 }
 0x397   :  { %4248 = vmatmul.msk.bf16.gmra.mxu3 %vm7197_vm4, %v8003_v55  ;;  %v3033_v7 = vmul.f32 %v3001_v47, %v2969_v3 }
 0x399   :  { %v2904_v11 = vpop.xlane.xlu1 %2903  ;;  %v3065_v62 = vpack.c.bf16 %v3033_v7, %v3033_v7 }
 0x39a   :  { %v2938_v30 = vpack.c.bf16 %v2904_v11, %v2904_v11  ;;  %v2890_v1 = vpop.xlane.xlu0 %2889 }
 0x39b   :  { %v7510_v0 = vpop.f32.mrf.mxu3  ;;  %v3129_v47 = vunpack.c.l.b16 %v3065_v62  ;;  %v162_v62 = vld [vmem:[%s4961_s18 + $0x40] sm:$0xff]  }
 0x39c   :  { %v3002_v8 = vunpack.c.l.bf16 %v2938_v30  ;;  %v3064_v30 = vpack.c.bf16 %v3032_v12, %v3032_v12 }
 0x39e   :  { %v3034_v36 = vmul.f32 %v3002_v8, %v2970_v60  ;;  %v3063_v60 = vpack.c.bf16 %v3031_v52, %v3031_v52 }
 0x3a0   :  { %v3066_v56 = vpack.c.bf16 %v3034_v36, %v3034_v36 }
 0x3a2   :  { %v2888_v42 = vpop.xlane.xlu0 %2887  ;;  %v3130_v45 = vunpack.c.l.b16 %v3066_v56 }
 0x3a3   :  { %v2906_v24 = vpop.xlane.xlu1 %2905  ;;  %v2930_v14 = vpack.c.bf16 %v2888_v42, %v2888_v42 }
 0x3a4   :  { %v2939_v9 = vpack.c.bf16 %v2906_v24, %v2906_v24 }
 0x3a6   :  { %v3003_v39 = vunpack.c.l.bf16 %v2939_v9 }
 0x3a8   :  { %v3035_v25 = vmul.f32 %v3003_v39, %v2971_v5  ;;  %v2964_v5 = vunpack.c.h.bf16 %v168_v28 }
 0x3a9   :  { %v2908_v53 = vpop.xlane.xlu2 %2907  ;;  %v3297_v58 = vpop.f32.mrf.mxu3 }
 0x3aa   :  { %v2940_v57 = vpack.c.bf16 %v2908_v53, %v2908_v53  ;;  %v3298_v10 = vadd.f32 %v3297_v58, %v3268_v18  ;;  %v3067_v19 = vpack.c.bf16 %v3035_v25, %v3035_v25  ;;  %v2931_v18 = vpack.c.bf16 %v2890_v1, %v2890_v1  ;;  %v167_v25 = vld [vmem:[%s4961_s18 + $0x50] sm:$0xff]  }
 0x3ab   :  { %v2894_v54 = vpop.xlane.xlu1 %2893  ;;  %v3147_v58 = vpack.c.b16 %v3130_v45, %v3129_v47  ;;  %v2962_v38 = vunpack.c.h.bf16 %v167_v25 }
 0x3ac   :  { %v3004_v27 = vunpack.c.l.bf16 %v2940_v57  ;;  %v3375_v21 = vadd.f32 %v3298_v10, %v3243_v26  ;;  %v2933_v6 = vpack.c.bf16 %v2894_v54, %v2894_v54  ;;  %v3131_v23 = vunpack.c.l.b16 %v3067_v19 }
 0x3ad   :  { %v2995_v8 = vunpack.c.l.bf16 %v2931_v18  ;;  %v2994_v10 = vunpack.c.l.bf16 %v2930_v14  ;;  %v2961_v19 = vunpack.c.l.bf16 %v167_v25 }
 0x3ae   :  { %v3036_v35 = vmul.f32 %v3004_v27, %v2972_v63  ;;  %3391 = vst [vmem:[#allocation2 + $0x30] sm:$0xff] %v3375_v21  ;;  %v2997_v11 = vunpack.c.l.bf16 %v2933_v6  ;;  %v3128_v63 = vunpack.c.l.b16 %v3064_v30  ;;  %v164_v27 = vld [vmem:[%s4961_s18 + $0x48] sm:$0xff]   ;;  %v3247_v21 = vld [vmem:[#allocation2 + $0x50] sm:$0xff]  ;;  %v2958_v30 = vunpack.c.h.bf16 %v162_v62 }
 0x3af   :  { %v3027_v34 = vmul.f32 %v2995_v8, %v2963_v29  ;;  %v2959_v18 = vunpack.c.l.bf16 %v164_v27 }
 0x3b0   :  { %v3068_v22 = vpack.c.bf16 %v3036_v35, %v3036_v35  ;;  %v3029_v54 = vmul.f32 %v2997_v11, %v2965_v33  ;;  %v2878_v35 = vpop.xlane.xlu0 %2877 }
 0x3b1   :  { %v3299_v9 = vpop.f32.mrf.mxu3  ;;  %v3059_v33 = vpack.c.bf16 %v3027_v34, %v3027_v34 }
 0x3b2   :  { %v3132_v51 = vunpack.c.l.b16 %v3068_v22  ;;  %v3300_v39 = vadd.f32 %v3299_v9, %v7489_v13  ;;  %v3127_v13 = vunpack.c.l.b16 %v3063_v60  ;;  %v3061_v36 = vpack.c.bf16 %v3029_v54, %v3029_v54  ;;  %v3249_v60 = vld [vmem:[#allocation2 + $0x8] sm:$0xff] }
 0x3b3   :  { %v2892_v59 = vpop.xlane.xlu1 %2891  ;;  %v2896_v44 = vpop.xlane.xlu2 %2895  ;;  %v3026_v22 = vmul.f32 %v2994_v10, %v2962_v38 }
 0x3b4   :  { %v2932_v50 = vpack.c.bf16 %v2892_v59, %v2892_v59  ;;  %v2934_v24 = vpack.c.bf16 %v2896_v44, %v2896_v44  ;;  %v3148_v2 = vpack.c.b16 %v3132_v51, %v3131_v23  ;;  %v3377_v3 = vadd.f32 %v3300_v39, %v3245_v15 }
 0x3b5   :  { %v3146_v42 = vpack.c.b16 %v3128_v63, %v3127_v13  ;;  %v3125_v59 = vunpack.c.l.b16 %v3061_v36  ;;  %v2957_v51 = vunpack.c.l.bf16 %v162_v62  ;;  %v3058_v9 = vpack.c.bf16 %v3026_v22, %v3026_v22  ;;  %v3257_v62 = vld [vmem:[#allocation2 + $0x78] sm:$0xff] }
 0x3b6   :  { %v2996_v16 = vunpack.c.l.bf16 %v2932_v50  ;;  %v2998_v1 = vunpack.c.l.bf16 %v2934_v24  ;;  %3346 = vmatpush.bf16.msrb.mxu3 %v3148_v2  ;;  %3393 = vst [vmem:[#allocation2 + $0x58] sm:$0xff] %v3377_v3 }
 0x3b8   :  { %v3030_v53 = vmul.f32 %v2998_v1, %v2966_v17  ;;  %v3028_v57 = vmul.f32 %v2996_v16, %v2964_v5  ;;  %v2925_v17 = vpack.c.bf16 %v2878_v35, %v2878_v35  ;;  %v2960_v5 = vunpack.c.h.bf16 %v164_v27 }
 0x3b9   :  { %v3302_v6 = vpop.f32.mrf.mxu3 }
 0x3ba   :  { %v3062_v26 = vpack.c.bf16 %v3030_v53, %v3030_v53  ;;  %3347 = vmatpush.bf16.msrb.mxu3 %v3147_v58  ;;  %v3303_v12 = vadd.f32 %v3302_v6, %v7491_v32  ;;  %v3060_v52 = vpack.c.bf16 %v3028_v57, %v3028_v57  ;;  %v3123_v32 = vunpack.c.l.b16 %v3059_v33 }
 0x3bb   :  { %v2989_v45 = vunpack.c.l.bf16 %v2925_v17  ;;  %v3122_v53 = vunpack.c.l.b16 %v3058_v9 }
 0x3bc   :  { %v2882_v41 = vpop.xlane.xlu1 %2881  ;;  %v3126_v56 = vunpack.c.l.b16 %v3062_v26  ;;  %v3379_v23 = vadd.f32 %v3303_v12, %v3247_v21  ;;  %v3124_v50 = vunpack.c.l.b16 %v3060_v52  ;;  %v3253_v12 = vld [vmem:[#allocation2 + $0x10] sm:$0xff] }
 0x3bd   :  { %v2886_v4 = vpop.xlane.xlu2 %2885  ;;  %v2927_v7 = vpack.c.bf16 %v2882_v41, %v2882_v41  ;;  %v3021_v57 = vmul.f32 %v2989_v45, %v2957_v51 }
 0x3be   :  { %v2929_v61 = vpack.c.bf16 %v2886_v4, %v2886_v4  ;;  %3348 = vmatpush.bf16.msrb.mxu3 %v3146_v42  ;;  %3395 = vst [vmem:[#allocation2 + $0x50] sm:$0xff] %v3379_v23  ;;  %v3145_v15 = vpack.c.b16 %v3126_v56, %v3125_v59  ;;  %v3144_v54 = vpack.c.b16 %v3124_v50, %v3123_v32  ;;  %v3255_v42 = vld [vmem:[#allocation2 + $0x60] sm:$0xff]  ;;  %v3246_v32 = vld [vmem:[#allocation2 + $0x18] sm:$0xff] }
 0x3bf   :  { %v2991_v44 = vunpack.c.l.bf16 %v2927_v7  ;;  %v3053_v41 = vpack.c.bf16 %v3021_v57, %v3021_v57 }
 0x3c0   :  { %v2993_v28 = vunpack.c.l.bf16 %v2929_v61 }
 0x3c1   :  { %v3023_v2 = vmul.f32 %v2991_v44, %v2959_v18  ;;  %v3304_v8 = vpop.f32.mrf.mxu3  ;;  %v3117_v6 = vunpack.c.l.b16 %v3053_v41 }
 0x3c2   :  { %v3025_v11 = vmul.f32 %v2993_v28, %v2961_v19  ;;  %3349 = vmatpush.bf16.msrb.mxu3 %v3145_v15  ;;  %v3305_v14 = vadd.f32 %v3304_v8, %v7496_v20  ;;  %v3251_v20 = vld [vmem:[#allocation2 + $0x40] sm:$0xff] }
 0x3c3   :  { %v3055_v26 = vpack.c.bf16 %v3023_v2, %v3023_v2 }
 0x3c4   :  { %v3057_v24 = vpack.c.bf16 %v3025_v11, %v3025_v11  ;;  %v2880_v29 = vpop.xlane.xlu1 %2879  ;;  %v3381_v63 = vadd.f32 %v3305_v14, %v3249_v60 }
 0x3c5   :  { %v2884_v39 = vpop.xlane.xlu2 %2883  ;;  %v2926_v16 = vpack.c.bf16 %v2880_v29, %v2880_v29  ;;  %v3119_v4 = vunpack.c.l.b16 %v3055_v26 }
 0x3c6   :  { %v2928_v1 = vpack.c.bf16 %v2884_v39, %v2884_v39  ;;  %v3121_v3 = vunpack.c.l.b16 %v3057_v24  ;;  %3350 = vmatpush.bf16.msrb.mxu3 %v3144_v54  ;;  %3397 = vst [vmem:[#allocation2 + $0x8] sm:$0xff] %v3381_v63  ;;  %v3250_v39 = vld [vmem:[#allocation2 + $0x48] sm:$0xff] }
 0x3c7   :  { %v2990_v47 = vunpack.c.l.bf16 %v2926_v16 }
 0x3c8   :  { %v2992_v25 = vunpack.c.l.bf16 %v2928_v1  ;;  %v3143_v10 = vpack.c.b16 %v3122_v53, %v3121_v3  ;;  %v3252_v1 = vld [vmem:[#allocation2 + $0x20] sm:$0xff]  ;;  %v3254_v3 = vld [vmem:[#allocation2 + $0x38] sm:$0xff]  ;;  %v3256_v53 = vld [vmem:[#allocation2 + $0x70] sm:$0xff] }
 0x3c9   :  { %v3022_v58 = vmul.f32 %v2990_v47, %v2958_v30  ;;  %v3307_v27 = vpop.f32.mrf.mxu3 }
 0x3ca   :  { %v3024_v13 = vmul.f32 %v2992_v25, %v2960_v5  ;;  %3351 = vmatpush.bf16.msrb.mxu3 %v3143_v10  ;;  %v3308_v7 = vadd.f32 %v3307_v27, %v7498_v43 }
 0x3cb   :  { %v3054_v34 = vpack.c.bf16 %v3022_v58, %v3022_v58  ;;  %v3258_v58 = vld [vmem:[#allocation2 + $0x28] sm:$0xff] }
 0x3cc   :  { %v3056_v38 = vpack.c.bf16 %v3024_v13, %v3024_v13  ;;  %v3383_v21 = vadd.f32 %v3308_v7, %v3251_v20 }
 0x3cd   :  { %v3118_v19 = vunpack.c.l.b16 %v3054_v34 }
 0x3ce   :  { %v3120_v36 = vunpack.c.l.b16 %v3056_v38  ;;  %3399 = vst [vmem:[#allocation2 + $0x40] sm:$0xff] %v3383_v21 }
 0x3cf   :  { %v3141_v35 = vpack.c.b16 %v3118_v19, %v3117_v6 }
 0x3d0   :  { %v3142_v61 = vpack.c.b16 %v3120_v36, %v3119_v4 }
 0x3d1   :  { %v3309_v52 = vpop.f32.mrf.mxu3 }
 0x3d2   :  { %3352 = vmatpush.bf16.msrb.mxu3 %v3142_v61  ;;  %v3310_v56 = vadd.f32 %v3309_v52, %v7503_v46 }
 0x3d4   :  { %v3385_v28 = vadd.f32 %v3310_v56, %v3253_v12 }
 0x3d6   :  { %3353 = vmatpush.bf16.msrb.mxu3 %v3141_v35  ;;  %3401 = vst [vmem:[#allocation2 + $0x10] sm:$0xff] %v3385_v28 }
 0x3d9   :  { %4250 = vmatmul.msk.bf16.vlgmr.msrb.gmra.mxu3 %vm7311_vm11, %v8003_v55 }
 0x3da   :  { %v3312_v43 = vpop.f32.mrf.mxu3 }
 0x3db   :  { %v3313_v33 = vadd.f32 %v3312_v43, %v7508_v37 }
 0x3dd   :  { %v3387_v22 = vadd.f32 %v3313_v33, %v3255_v42 }
 0x3df   :  { %3403 = vst [vmem:[#allocation2 + $0x60] sm:$0xff] %v3387_v22 }
 0x3e2   :  { %v3314_v18 = vpop.f32.mrf.mxu3 }
 0x3e3   :  { %v3315_v23 = vadd.f32 %v3314_v18, %v7510_v0 }
 0x3e5   :  { %v3389_v46 = vadd.f32 %v3315_v23, %v3257_v62 }
 0x3e7   :  { %3405 = vst [vmem:[#allocation2 + $0x78] sm:$0xff] %v3389_v46 }
 0x3e9   :  { %4252 = vmatmul.msk.bf16.gmra.mxu3 %vm7327_vm1, %v8003_v55 }
 0x3ea   :  { %v3326_v40 = vpop.f32.mrf.mxu3 }
 0x3f2   :  { %v3328_v37 = vpop.f32.mrf.mxu3 }
 0x3f9   :  { %4254 = vmatmul.msk.bf16.gmra.mxu3 %vm7356_vm13, %v8003_v55 }
 0x3fa   :  { %v3331_v59 = vpop.f32.mrf.mxu3 }
 0x402   :  { %v3333_v17 = vpop.f32.mrf.mxu3 }
 0x409   :  { %4256 = vmatmul.msk.bf16.gmra.mxu3 %vm7375_vm10, %v8003_v55 }
 0x40a   :  { %v3336_v44 = vpop.f32.mrf.mxu3 }
 0x412   :  { %v3338_v0 = vpop.f32.mrf.mxu3 }
 0x41a   :  { %v3341_v11 = vpop.f32.mrf.mxu3 }
 0x422   :  { %v3343_v51 = vpop.f32.mrf.mxu3 }
 0x45c   :  { %v3355_v50 = vpop.f32.mrf.mxu3 }
 0x45d   :  { %v3356_v24 = vadd.f32 %v3355_v50, %v3326_v40 }
 0x45f   :  { %v3376_v15 = vadd.f32 %v3356_v24, %v3244_v49 }
 0x461   :  { %3392 = vst [vmem:[#allocation2] sm:$0xff] %v3376_v15 }
 0x464   :  { %v3357_v31 = vpop.f32.mrf.mxu3 }
 0x465   :  { %v3358_v9 = vadd.f32 %v3357_v31, %v3328_v37 }
 0x467   :  { %v3378_v30 = vadd.f32 %v3358_v9, %v3246_v32 }
 0x469   :  { %3394 = vst [vmem:[#allocation2 + $0x18] sm:$0xff] %v3378_v30 }
 0x46c   :  { %v3360_v55 = vpop.f32.mrf.mxu3 }
 0x46d   :  { %v3361_v29 = vadd.f32 %v3360_v55, %v3331_v59 }
 0x46f   :  { %v3380_v5 = vadd.f32 %v3361_v29, %v3248_v48 }
 0x471   :  { %3396 = vst [vmem:[#allocation2 + $0x68] sm:$0xff] %v3380_v5 }
 0x474   :  { %v3362_v45 = vpop.f32.mrf.mxu3 }
 0x475   :  { %v3363_v2 = vadd.f32 %v3362_v45, %v3333_v17 }
 0x477   :  { %v3382_v16 = vadd.f32 %v3363_v2, %v3250_v39 }
 0x479   :  { %3398 = vst [vmem:[#allocation2 + $0x48] sm:$0xff] %v3382_v16 }
 0x47c   :  { %v3365_v60 = vpop.f32.mrf.mxu3 }
 0x47d   :  { %v3366_v8 = vadd.f32 %v3365_v60, %v3336_v44 }
 0x47f   :  { %v3384_v14 = vadd.f32 %v3366_v8, %v3252_v1 }
 0x481   :  { %3400 = vst [vmem:[#allocation2 + $0x20] sm:$0xff] %v3384_v14 }
 0x484   :  { %v3367_v47 = vpop.f32.mrf.mxu3 }
 0x485   :  { %v3368_v25 = vadd.f32 %v3367_v47, %v3338_v0 }
 0x487   :  { %v3386_v54 = vadd.f32 %v3368_v25, %v3254_v3 }
 0x489   :  { %3402 = vst [vmem:[#allocation2 + $0x38] sm:$0xff] %v3386_v54 }
 0x48c   :  { %v3370_v63 = vpop.f32.mrf.mxu3 }
 0x48d   :  { %v3371_v57 = vadd.f32 %v3370_v63, %v3341_v11 }
 0x48f   :  { %v3388_v26 = vadd.f32 %v3371_v57, %v3256_v53 }
 0x491   :  { %3404 = vst [vmem:[#allocation2 + $0x70] sm:$0xff] %v3388_v26 }
 0x494   :  { %v3372_v13 = vpop.f32.mrf.mxu3 }
 0x495   :  { %v3373_v34 = vadd.f32 %v3372_v13, %v3343_v51 }
 0x497   :  { %v3390_v38 = vadd.f32 %v3373_v34, %v3258_v58 }
 0x499   :  { %3406 = vst [vmem:[#allocation2 + $0x28] sm:$0xff] %v3390_v38 }
 0x49a PF:  { %v4408_v10 = vld [vmem:[%s7822_s11 + $0x38] sm:$0xff]  ;;  %v4407_v4 = vld [vmem:[%s7822_s11 + $0x30] sm:$0xff]  ;;  %v4406_v20 = vld [vmem:[%s7822_s11 + $0x28] sm:$0xff] }
 0x49b   :  { %v4416_v41 = vld [vmem:[%s7822_s11 + $0x78] sm:$0xff]  ;;  %3574 = vmatpush.bf16.msra.mxu0 %v4408_v10  ;;  %4425 = vmatpush.bf16.msra.mxu3 %v4408_v10  ;;  %v4415_v36 = vld [vmem:[%s7822_s11 + $0x70] sm:$0xff]  ;;  %v4414_v27 = vld [vmem:[%s7822_s11 + $0x68] sm:$0xff] }
 0x49c   :  { %3603 = vmatpush.bf16.msra.mxu1 %v4416_v41  ;;  %v4405_v7 = vld [vmem:[%s7822_s11 + $0x20] sm:$0xff]  ;;  %v4404_v61 = vld [vmem:[%s7822_s11 + $0x18] sm:$0xff]  ;;  %v4403_v6 = vld [vmem:[%s7822_s11 + $0x10] sm:$0xff] }
 0x49d   :  { %v4413_v19 = vld [vmem:[%s7822_s11 + $0x60] sm:$0xff]  ;;  %v4412_v21 = vld [vmem:[%s7822_s11 + $0x58] sm:$0xff]  ;;  %v4411_v35 = vld [vmem:[%s7822_s11 + $0x50] sm:$0xff] }
 0x49e   :  { %v4402_v12 = vld [vmem:[%s7822_s11 + $0x8] sm:$0xff]  ;;  %v4401_v56 = vld [vmem:[%s7822_s11] sm:$0xff]  ;;  %v7592_v42 = vld [vmem:[%s7814_s3 + $0x10] sm:$0xff] }
 0x49f   :  { %3575 = vmatpush.bf16.msra.mxu0 %v4407_v4  ;;  %4426 = vmatpush.bf16.msra.mxu3 %v4407_v4  ;;  %v4410_v52 = vld [vmem:[%s7822_s11 + $0x48] sm:$0xff]  ;;  %v7587_v28 = vld [vmem:[%s7814_s3] sm:$0xff]  ;;  %v7602_v33 = vld [vmem:[%s7814_s3 + $0x30] sm:$0xff] }
 0x4a0   :  { %3604 = vmatpush.bf16.msra.mxu1 %v4415_v36  ;;  %v7597_v43 = vld [vmem:[%s7814_s3 + $0x20] sm:$0xff]  ;;  %v3426_v62 = vld [vmem:[#allocation2 + $0x30] sm:$0xff]  ;;  %v3427_v18 = vld [vmem:[#allocation2 + $0x58] sm:$0xff]  ;;  %v3434_v23 = vpack.c.bf16 %v7592_v42, %v7587_v28 }
 0x4a1   :  { %v4409_v22 = vld [vmem:[%s7822_s11 + $0x40] sm:$0xff]  ;;  %v3436_v46 = vpack.c.bf16 %v7602_v33, %v7597_v43  ;;  %v3435_v40 = vpack.c.bf16 %v3427_v18, %v3426_v62  ;;  %v7619_v59 = vld [vmem:[%s7814_s3 + $0x50] sm:$0xff]  ;;  %v3429_v44 = vld [vmem:[#allocation2 + $0x8] sm:$0xff] }
 0x4a2   :  { %v7614_v37 = vld [vmem:[%s7814_s3 + $0x40] sm:$0xff]  ;;  %v3428_v17 = vld [vmem:[#allocation2 + $0x50] sm:$0xff]  ;;  %v3433_v9 = vld [vmem:[#allocation2 + $0x78] sm:$0xff] }
 0x4a3   :  { %3576 = vmatpush.bf16.msra.mxu0 %v4406_v20  ;;  %4427 = vmatpush.bf16.msra.mxu3 %v4406_v20  ;;  %v3438_v0 = vpack.c.bf16 %v7619_v59, %v7614_v37  ;;  %v3437_v11 = vpack.c.bf16 %v3429_v44, %v3428_v17  ;;  %v7626_v51 = vld [vmem:[%s7814_s3 + $0x60] sm:$0xff]  ;;  %v7631_v49 = vld [vmem:[%s7814_s3 + $0x70] sm:$0xff]  ;;  %v4424_v48 = vld [vmem:[%s7824_s13 + $0x38] sm:$0xff] }
 0x4a4   :  { %3605 = vmatpush.bf16.msra.mxu1 %v4414_v27  ;;  %v3430_v50 = vld [vmem:[#allocation2 + $0x40] sm:$0xff]  ;;  %v3431_v24 = vld [vmem:[#allocation2 + $0x10] sm:$0xff]  ;;  %v3440_v15 = vpack.c.bf16 %v7631_v49, %v7626_v51  ;;  %3864 = vmatpush.bf16.msra.mxu2 %v4424_v48  ;;  %v4422_v29 = vld [vmem:[%s7824_s13 + $0x28] sm:$0xff] }
 0x4a5   :  { %v3439_v32 = vpack.c.bf16 %v3431_v24, %v3430_v50  ;;  %v3432_v31 = vld [vmem:[#allocation2 + $0x60] sm:$0xff]  ;;  %v4423_v55 = vld [vmem:[%s7824_s13 + $0x30] sm:$0xff]  ;;  %v4420_v45 = vld [vmem:[%s7824_s13 + $0x18] sm:$0xff] }
 0x4a6   :  { %v3441_v30 = vpack.c.bf16 %v3433_v9, %v3432_v31  ;;  %v4421_v5 = vld [vmem:[%s7824_s13 + $0x20] sm:$0xff]  ;;  %v4419_v60 = vld [vmem:[%s7824_s13 + $0x10] sm:$0xff]  ;;  %v4418_v47 = vld [vmem:[%s7824_s13 + $0x8] sm:$0xff] }
 0x4a7   :  { %3577 = vmatpush.bf16.msra.mxu0 %v4405_v7  ;;  %4428 = vmatpush.bf16.msra.mxu3 %v4405_v7  ;;  %v7650_v39 = vld [vmem:[%s7823_s12] ss:$0 sm:$0xff] }
 0x4a8   :  { %3606 = vmatpush.bf16.msra.mxu1 %v4413_v19  ;;  %3865 = vmatpush.bf16.msra.mxu2 %v4423_v55  ;;  %v4417_v63 = vld [vmem:[%s7824_s13] sm:$0xff] }
 0x4ab   :  { %3578 = vmatpush.bf16.msra.mxu0 %v4404_v61  ;;  %4429 = vmatpush.bf16.msra.mxu3 %v4404_v61 }
 0x4ac   :  { %3607 = vmatpush.bf16.msra.mxu1 %v4412_v21  ;;  %3866 = vmatpush.bf16.msra.mxu2 %v4422_v29 }
 0x4af   :  { %3579 = vmatpush.bf16.msra.mxu0 %v4403_v6  ;;  %4430 = vmatpush.bf16.msra.mxu3 %v4403_v6 }
 0x4b0   :  { %3608 = vmatpush.bf16.msra.mxu1 %v4411_v35  ;;  %3867 = vmatpush.bf16.msra.mxu2 %v4421_v5 }
 0x4b3   :  { %3580 = vmatpush.bf16.msra.mxu0 %v4402_v12  ;;  %4431 = vmatpush.bf16.msra.mxu3 %v4402_v12 }
 0x4b4   :  { %3609 = vmatpush.bf16.msra.mxu1 %v4410_v52  ;;  %3868 = vmatpush.bf16.msra.mxu2 %v4420_v45 }
 0x4b7   :  { %3581 = vmatpush.bf16.msra.mxu0 %v4401_v56  ;;  %4432 = vmatpush.bf16.msra.mxu3 %v4401_v56 }
 0x4b8   :  { %3610 = vmatpush.bf16.msra.mxu1 %v4409_v22  ;;  %3869 = vmatpush.bf16.msra.mxu2 %v4419_v60 }
 0x4ba   :  { %3582 = vmatmul.bf16.vlgmr.msra.gmra.mxu0 %v3434_v23  ;;  %3587 = vmatmul.bf16.vlgmr.msra.gmra.mxu3 %v3436_v46 }
 0x4bb   :  { %3611 = vmatmul.bf16.vlgmr.msra.gmra.mxu1 %v3435_v40 }
 0x4bc   :  { %3870 = vmatpush.bf16.msra.mxu2 %v4418_v47 }
 0x4c0   :  { %3871 = vmatpush.bf16.msra.mxu2 %v4417_v63 }
 0x4ca   :  { %3592 = vmatmul.bf16.gmra.mxu3 %v3438_v0 }
 0x4cb   :  { %3616 = vmatmul.bf16.gmra.mxu1 %v3437_v11 }
 0x4da   :  { %3597 = vmatmul.bf16.gmra.mxu3 %v3440_v15 }
 0x4db   :  { %3621 = vmatmul.bf16.gmra.mxu1 %v3439_v32 }
 0x4eb   :  { %3626 = vmatmul.bf16.gmra.mxu1 %v3441_v30 }
 0x537   :  { %v3583_v2 = vpop.f32.mrf.mxu0 }
 0x538   :  { %v3584_v16 = vadd.f32 %v7650_v39, %v3583_v2  ;;  %v3612_v1 = vpop.f32.mrf.mxu1 }
 0x53a   :  { %v7659_v8 = vadd.f32 %v3612_v1, %v3584_v16 }
 0x53c   :  { %v4321_v14 = vmul.f32 -1.442695, %v7659_v8 }
 0x53d   :  { %v3588_v3 = vpop.f32.mrf.mxu3 }
 0x53e   :  { %4830 = vpow2.f32 %v4321_v14  ;;  %v3589_v34 = vadd.f32 %v7650_v39, %v3588_v3 }
 0x53f   :  { %v3585_v25 = vpop.f32.mrf.mxu0 }
 0x540   :  { %v3586_v54 = vadd.f32 %v7650_v39, %v3585_v25  ;;  %v3614_v53 = vpop.f32.mrf.mxu1 }
 0x542   :  { %v7669_v57 = vadd.f32 %v3614_v53, %v3586_v54 }
 0x544   :  { %v4831_v26 = vpop.eup %4830  ;;  %v4322_v58 = vmul.f32 -1.442695, %v7669_v57 }
 0x545   :  { %v3656_v13 = vadd.f32 1.0, %v4831_v26  ;;  %v3590_v38 = vpop.f32.mrf.mxu3 }
 0x546   :  { %4832 = vpow2.f32 %v4322_v58  ;;  %v3591_v61 = vadd.f32 %v7650_v39, %v3590_v38 }
 0x547   :  { %4834 = vrcp.f32 %v3656_v13  ;;  %v3675_v40 = vand.u32 2147483648, %v3656_v13  ;;  %vm3669_vm7 = vweird.f32 %v3656_v13  ;;  %v3673_v17 = vand.u32 2147483647, %v3656_v13 }
 0x548   :  { %v3617_v10 = vpop.f32.mrf.mxu1 }
 0x549   :  { %v7673_v41 = vadd.f32 %v3617_v10, %v3589_v34  ;;  %v3676_v48 = vor.u32 1.1754944e-38, %v3675_v40  ;;  %vm3674_vm11 = vcmp.eq.f32.partialorder %v3673_v17, 8.507059e+37 }
 0x54b   :  { %v4323_v4 = vmul.f32 -1.442695, %v7673_v41 }
 0x54c   :  { %v4833_v36 = vpop.eup %4832 }
 0x54d   :  { %v4835_v20 = vpop.eup %4834  ;;  %v3657_v27 = vadd.f32 1.0, %v4833_v36  ;;  %4836 = vpow2.f32 %v4323_v4  ;;  %v3593_v19 = vpop.f32.mrf.mxu3 }
 0x54e   :  { %v3665_v7 = vmul.f32 %v4835_v20, %v3656_v13  ;;  %v3594_v18 = vadd.f32 %v7650_v39, %v3593_v19  ;;  %vm3670_vm2 = vweird.f32 %v4835_v20 }
 0x54f   :  { %4838 = vrcp.f32 %v3657_v27  ;;  %vm7684_vm8 = vmor %vm3669_vm7, %vm3670_vm2  ;;  %v3690_v24 = vand.u32 2147483648, %v3657_v27  ;;  %v3688_v9 = vand.u32 2147483647, %v3657_v27  ;;  %vm3684_vm1 = vweird.f32 %v3657_v27 }
 0x550   :  { %v3666_v21 = vsub.f32 1.0, %v3665_v7  ;;  %v3619_v6 = vpop.f32.mrf.mxu1 }
 0x551   :  { %v7677_v35 = vadd.f32 %v3619_v6, %v3591_v61  ;;  %v3691_v16 = vor.u32 1.1754944e-38, %v3690_v24  ;;  %vm3689_vm10 = vcmp.eq.f32.partialorder %v3688_v9, 8.507059e+37 }
 0x552   :  { %v3667_v12 = vmul.f32 %v4835_v20, %v3666_v21 }
 0x553   :  { %v4837_v52 = vpop.eup %4836  ;;  %v4324_v56 = vmul.f32 -1.442695, %v7677_v35 }
 0x554   :  { %v7680_v22 = vadd.f32 1.0, %v4837_v52  ;;  %v3668_v23 = vadd.f32 %v4835_v20, %v3667_v12 }
 0x555   :  { %v4839_v62 = vpop.eup %4838  ;;  %4840 = vpow2.f32 %v4324_v56  ;;  %v3595_v0 = vpop.f32.mrf.mxu3 }
 0x556   :  { %v3680_v46 = vmul.f32 %v4839_v62, %v3657_v27  ;;  %4842 = vrcp.f32 %v7680_v22  ;;  %v3672_v32 = vsel %vm7684_vm8, %v4835_v20, %v3668_v23  ;;  %vm3685_vm4 = vweird.f32 %v4839_v62 }
 0x557   :  { %v3677_v2 = vsel %vm3674_vm11, %v3676_v48, %v3672_v32  ;;  %vm3686_vm13 = vmor %vm3684_vm1, %vm3685_vm4  ;;  %v3596_v47 = vadd.f32 %v7650_v39, %v3595_v0  ;;  %vm3699_vm5 = vweird.f32 %v7680_v22  ;;  %v3703_v7 = vand.u32 2147483647, %v7680_v22 }
 0x558   :  { %v3681_v44 = vsub.f32 1.0, %v3680_v46  ;;  %v3622_v11 = vpop.f32.mrf.mxu1  ;;  %v3784_v25 = vmul.f32 %v3677_v2, %v7659_v8 }
 0x559   :  { %v7688_v15 = vadd.f32 %v3622_v11, %v3594_v18  ;;  %vm3704_vm6 = vcmp.eq.f32.partialorder %v3703_v7, 8.507059e+37 }
 0x55a   :  { %v3682_v31 = vmul.f32 %v4839_v62, %v3681_v44 }
 0x55b   :  { %v4841_v30 = vpop.eup %4840  ;;  %v4325_v55 = vmul.f32 -1.442695, %v7688_v15 }
 0x55c   :  { %v4843_v29 = vpop.eup %4842  ;;  %v3683_v5 = vadd.f32 %v4839_v62, %v3682_v31  ;;  %v3659_v45 = vadd.f32 1.0, %v4841_v30 }
 0x55d   :  { %v3695_v1 = vmul.f32 %v4843_v29, %v7680_v22  ;;  %4844 = vpow2.f32 %v4325_v55  ;;  %v3598_v58 = vpop.f32.mrf.mxu3  ;;  %vm3700_vm0 = vweird.f32 %v4843_v29 }
 0x55e   :  { %v3687_v60 = vsel %vm3686_vm13, %v4839_v62, %v3683_v5  ;;  %4846 = vrcp.f32 %v3659_v45  ;;  %v3599_v20 = vadd.f32 %v7650_v39, %v3598_v58  ;;  %v3718_v19 = vand.u32 2147483647, %v3659_v45  ;;  %vm7707_vm3 = vmor %vm3699_vm5, %vm3700_vm0 }
 0x55f   :  { %v3692_v14 = vsel %vm3689_vm10, %v3691_v16, %v3687_v60  ;;  %v3696_v3 = vsub.f32 1.0, %v3695_v1  ;;  %v3720_v61 = vand.u32 2147483648, %v3659_v45  ;;  %vm3714_vm9 = vweird.f32 %v3659_v45 }
 0x560   :  { %v3785_v54 = vmul.f32 %v3692_v14, %v7669_v57  ;;  %v3624_v53 = vpop.f32.mrf.mxu1  ;;  %v3705_v57 = vand.u32 2147483648, %v7680_v22  ;;  %vm3719_vm15 = vcmp.eq.f32.partialorder %v3718_v19, 8.507059e+37 }
 0x561   :  { %v7697_v63 = vadd.f32 %v3624_v53, %v3596_v47  ;;  %v3697_v26 = vmul.f32 %v4843_v29, %v3696_v3  ;;  %v3721_v40 = vor.u32 1.1754944e-38, %v3720_v61 }
 0x562   :  { %v3792_v13 = vpack.c.bf16 %v3785_v54, %v3784_v25  ;;  %v3706_v18 = vor.u32 1.1754944e-38, %v3705_v57 }
 0x563   :  { %v4845_v34 = vpop.eup %4844  ;;  %v4326_v38 = vmul.f32 -1.442695, %v7697_v63  ;;  %v3698_v8 = vadd.f32 %v4843_v29, %v3697_v26 }
 0x564   :  { %v4847_v10 = vpop.eup %4846  ;;  %v7700_v4 = vadd.f32 1.0, %v4845_v34  ;;  %3872 = vmatmul.bf16.vlgmr.msra.gmra.mxu2 %v3792_v13 }
 0x565   :  { %v3710_v36 = vmul.f32 %v4847_v10, %v3659_v45  ;;  %4848 = vpow2.f32 %v4326_v38  ;;  %vm3715_vm12 = vweird.f32 %v4847_v10  ;;  %v3702_v56 = vsel %vm7707_vm3, %v4843_v29, %v3698_v8  ;;  %v3600_v44 = vpop.f32.mrf.mxu3 }
 0x566   :  { %4850 = vrcp.f32 %v7700_v4  ;;  %vm3716_vm14 = vmor %vm3714_vm9, %vm3715_vm12  ;;  %v3707_v0 = vsel %vm3704_vm6, %v3706_v18, %v3702_v56  ;;  %v3601_v9 = vadd.f32 %v7650_v39, %v3600_v44  ;;  %v3735_v39 = vand.u32 2147483648, %v7700_v4 }
 0x567   :  { %v3711_v27 = vsub.f32 1.0, %v3710_v36  ;;  %v3786_v30 = vmul.f32 %v3707_v0, %v7673_v41  ;;  %vm3729_vm7 = vweird.f32 %v7700_v4  ;;  %v3733_v41 = vand.u32 2147483647, %v7700_v4 }
 0x568   :  { %v3627_v21 = vpop.f32.mrf.mxu1  ;;  %v3736_v26 = vor.u32 1.1754944e-38, %v3735_v39 }
 0x569   :  { %v3712_v12 = vmul.f32 %v4847_v10, %v3711_v27  ;;  %v7711_v52 = vadd.f32 %v3627_v21, %v3599_v20  ;;  %vm3734_vm1 = vcmp.eq.f32.partialorder %v3733_v41, 8.507059e+37  ;;  %v3910_v41 = vld [vmem:[#allocation2 + $0x18] sm:$0xff] }
 0x56b   :  { %v4849_v62 = vpop.eup %4848  ;;  %v3713_v23 = vadd.f32 %v4847_v10, %v3712_v12  ;;  %v4327_v22 = vmul.f32 -1.442695, %v7711_v52 }
 0x56c   :  { %v4851_v46 = vpop.eup %4850  ;;  %v3661_v17 = vadd.f32 1.0, %v4849_v62 }
 0x56d   :  { %v3717_v11 = vsel %vm3716_vm14, %v4847_v10, %v3713_v23  ;;  %v3725_v50 = vmul.f32 %v4851_v46, %v7700_v4  ;;  %4852 = vpow2.f32 %v4327_v22  ;;  %vm3730_vm2 = vweird.f32 %v4851_v46 }
 0x56e   :  { %v3722_v24 = vsel %vm3719_vm15, %v3721_v40, %v3717_v11  ;;  %4854 = vrcp.f32 %v3661_v17  ;;  %v3750_v3 = vand.u32 2147483648, %v3661_v17  ;;  %vm3731_vm8 = vmor %vm3729_vm7, %vm3730_vm2  ;;  %v3748_v25 = vand.u32 2147483647, %v3661_v17 }
 0x56f   :  { %v3787_v32 = vmul.f32 %v3722_v24, %v7677_v35  ;;  %v3726_v31 = vsub.f32 1.0, %v3725_v50  ;;  %vm3744_vm11 = vweird.f32 %v3661_v17 }
 0x570   :  { %v3629_v48 = vpop.f32.mrf.mxu1  ;;  %v3751_v34 = vor.u32 1.1754944e-38, %v3750_v3  ;;  %vm3749_vm10 = vcmp.eq.f32.partialorder %v3748_v25, 8.507059e+37  ;;  %v3911_v3 = vld [vmem:[#allocation2 + $0x68] sm:$0xff]  ;;  %v3913_v25 = vld [vmem:[#allocation2 + $0x20] sm:$0xff] }
 0x571   :  { %v7720_v55 = vadd.f32 %v3629_v48, %v3601_v9  ;;  %v3727_v29 = vmul.f32 %v4851_v46, %v3726_v31  ;;  %v3793_v5 = vpack.c.bf16 %v3787_v32, %v3786_v30  ;;  %v4829_v32 = vld [vmem:[%s7825_s14] ss:$0 sm:$0xff] }
 0x573   :  { %v4853_v45 = vpop.eup %4852  ;;  %v4328_v2 = vmul.f32 -1.442695, %v7720_v55  ;;  %v3728_v14 = vadd.f32 %v4851_v46, %v3727_v29 }
 0x574   :  { %v4855_v16 = vpop.eup %4854  ;;  %v3662_v1 = vadd.f32 1.0, %v4853_v45  ;;  %3877 = vmatmul.bf16.gmra.mxu2 %v3793_v5 }
 0x575   :  { %v3740_v60 = vmul.f32 %v4855_v16, %v3661_v17  ;;  %4856 = vpow2.f32 %v4328_v2  ;;  %vm3745_vm4 = vweird.f32 %v4855_v16  ;;  %v3732_v54 = vsel %vm3731_vm8, %v4851_v46, %v3728_v14  ;;  %v3421_v14 = vld [vmem:[%s7814_s3 + $0x58] sm:$0xff] }
 0x576   :  { %4858 = vrcp.f32 %v3662_v1  ;;  %vm3746_vm13 = vmor %vm3744_vm11, %vm3745_vm4  ;;  %v3737_v10 = vsel %vm3734_vm1, %v3736_v26, %v3732_v54  ;;  %v3765_v12 = vand.u32 2147483648, %v3662_v1  ;;  %vm3759_vm5 = vweird.f32 %v3662_v1  ;;  %v3914_v54 = vld [vmem:[#allocation2 + $0x38] sm:$0xff] }
 0x577   :  { %v3741_v35 = vsub.f32 1.0, %v3740_v60  ;;  %v3788_v27 = vmul.f32 %v3737_v10, %v7688_v15  ;;  %v3763_v62 = vand.u32 2147483647, %v3662_v1  ;;  %v3419_v60 = vld [vmem:[%s7814_s3 + $0x48] sm:$0xff]  ;;  %v3425_v10 = vld [vmem:[%s7814_s3 + $0x78] sm:$0xff] }
 0x578   :  { %v3766_v46 = vor.u32 1.1754944e-38, %v3765_v12 }
 0x579   :  { %v3742_v47 = vmul.f32 %v4855_v16, %v3741_v35  ;;  %vm3764_vm6 = vcmp.eq.f32.partialorder %v3763_v62, 8.507059e+37  ;;  %v3909_v35 = vld [vmem:[#allocation2] sm:$0xff] }
 0x57b   :  { %v4857_v53 = vpop.eup %4856  ;;  %v3743_v58 = vadd.f32 %v4855_v16, %v3742_v47  ;;  %v3912_v47 = vld [vmem:[#allocation2 + $0x48] sm:$0xff] }
 0x57c   :  { %v4859_v13 = vpop.eup %4858  ;;  %v3663_v38 = vadd.f32 1.0, %v4857_v53 }
 0x57d   :  { %v3747_v36 = vsel %vm3746_vm13, %v4855_v16, %v3743_v58  ;;  %v3755_v20 = vmul.f32 %v4859_v13, %v3662_v1  ;;  %vm3760_vm0 = vweird.f32 %v4859_v13  ;;  %v3411_v16 = vld [vmem:[%s7814_s3 + $0x8] sm:$0xff] }
 0x57e   :  { %v3752_v4 = vsel %vm3749_vm10, %v3751_v34, %v3747_v36  ;;  %4860 = vrcp.f32 %v3663_v38  ;;  %v3780_v18 = vand.u32 2147483648, %v3663_v38  ;;  %vm3761_vm3 = vmor %vm3759_vm5, %vm3760_vm0  ;;  %v3778_v22 = vand.u32 2147483647, %v3663_v38  ;;  %v3415_v1 = vld [vmem:[%s7814_s3 + $0x28] sm:$0xff] }
 0x57f   :  { %v3789_v8 = vmul.f32 %v3752_v4, %v7697_v63  ;;  %v3756_v57 = vsub.f32 1.0, %v3755_v20  ;;  %vm3774_vm9 = vweird.f32 %v3663_v38  ;;  %v3917_v53 = vadd.f32 %v3909_v35, %v3411_v16  ;;  %v3423_v34 = vld [vmem:[%s7814_s3 + $0x68] sm:$0xff] }
 0x580   :  { %v3781_v15 = vor.u32 1.1754944e-38, %v3780_v18  ;;  %vm3779_vm15 = vcmp.eq.f32.partialorder %v3778_v22, 8.507059e+37  ;;  %v3919_v58 = vadd.f32 %v3911_v3, %v3415_v1  ;;  %v3916_v20 = vld [vmem:[#allocation2 + $0x28] sm:$0xff]  ;;  %v3922_v4 = vadd.f32 %v3914_v54, %v3421_v14 }
 0x581   :  { %v3757_v7 = vmul.f32 %v4859_v13, %v3756_v57  ;;  %v3794_v19 = vpack.c.bf16 %v3789_v8, %v3788_v27  ;;  %3925 = vst [vmem:[%s7826_s15 + $0x8] sm:$0xff] %v3917_v53 }
 0x582   :  { %3927 = vst [vmem:[%s7826_s15 + $0x28] sm:$0xff] %v3919_v58 }
 0x583   :  { %v3758_v6 = vadd.f32 %v4859_v13, %v3757_v7  ;;  %v3924_v7 = vadd.f32 %v3916_v20, %v3425_v10  ;;  %3930 = vst [vmem:[%s7826_s15 + $0x58] sm:$0xff] %v3922_v4 }
 0x584   :  { %v4861_v61 = vpop.eup %4860  ;;  %3882 = vmatmul.bf16.gmra.mxu2 %v3794_v19 }
 0x585   :  { %v3770_v21 = vmul.f32 %v4861_v61, %v3663_v38  ;;  %vm3775_vm12 = vweird.f32 %v4861_v61  ;;  %v3762_v63 = vsel %vm3761_vm3, %v4859_v13, %v3758_v6  ;;  %v3915_v38 = vld [vmem:[#allocation2 + $0x70] sm:$0xff]  ;;  %3932 = vst [vmem:[%s7826_s15 + $0x78] sm:$0xff] %v3924_v7 }
 0x586   :  { %vm3776_vm14 = vmor %vm3774_vm9, %vm3775_vm12  ;;  %v3767_v17 = vsel %vm3764_vm6, %v3766_v46, %v3762_v63  ;;  %v3923_v57 = vadd.f32 %v3915_v38, %v3423_v34 }
 0x587   :  { %v3771_v56 = vsub.f32 1.0, %v3770_v21  ;;  %v3790_v50 = vmul.f32 %v3767_v17, %v7711_v52 }
 0x588   :  { %3931 = vst [vmem:[%s7826_s15 + $0x68] sm:$0xff] %v3923_v57 }
 0x589   :  { %v3772_v23 = vmul.f32 %v4861_v61, %v3771_v56 }
 0x58b   :  { %v3773_v40 = vadd.f32 %v4861_v61, %v3772_v23 }
 0x58d   :  { %v3777_v44 = vsel %vm3776_vm14, %v4861_v61, %v3773_v40 }
 0x58e   :  { %v3782_v0 = vsel %vm3779_vm15, %v3781_v15, %v3777_v44 }
 0x58f   :  { %v3791_v11 = vmul.f32 %v3782_v0, %v7720_v55 }
 0x591   :  { %v3795_v24 = vpack.c.bf16 %v3791_v11, %v3790_v50 }
 0x594   :  { %3887 = vmatmul.bf16.gmra.mxu2 %v3795_v24 }
 0x5e7   :  { %v3873_v31 = vpop.f32.mrf.mxu2 }
 0x5e8   :  { %v3874_v9 = vadd.f32 %v4829_v32, %v3873_v31 }
 0x5ea   :  { %v3893_v30 = vadd.f32 %v3874_v9, %v7587_v28 }
 0x5ec   :  { %3901 = vst [vmem:[%s7826_s15] sm:$0xff] %v3893_v30 }
 0x5ef   :  { %v3875_v48 = vpop.f32.mrf.mxu2 }
 0x5f0   :  { %v3876_v29 = vadd.f32 %v4829_v32, %v3875_v48 }
 0x5f2   :  { %v3894_v55 = vadd.f32 %v3876_v29, %v7592_v42  ;;  %v3413_v42 = vld [vmem:[%s7814_s3 + $0x18] sm:$0xff] }
 0x5f3   :  { %v3918_v26 = vadd.f32 %v3910_v41, %v3413_v42 }
 0x5f4   :  { %3902 = vst [vmem:[%s7826_s15 + $0x10] sm:$0xff] %v3894_v55 }
 0x5f5   :  { %3926 = vst [vmem:[%s7826_s15 + $0x18] sm:$0xff] %v3918_v26 }
 0x5f7   :  { %v3878_v52 = vpop.f32.mrf.mxu2 }
 0x5f8   :  { %v3879_v5 = vadd.f32 %v4829_v32, %v3878_v52 }
 0x5fa   :  { %v3895_v45 = vadd.f32 %v3879_v5, %v7597_v43  ;;  %v3417_v43 = vld [vmem:[%s7814_s3 + $0x38] sm:$0xff] }
 0x5fb   :  { %v3920_v13 = vadd.f32 %v3912_v47, %v3417_v43 }
 0x5fc   :  { %3903 = vst [vmem:[%s7826_s15 + $0x20] sm:$0xff] %v3895_v45 }
 0x5fd   :  { %3928 = vst [vmem:[%s7826_s15 + $0x38] sm:$0xff] %v3920_v13 }
 0x5ff   :  { %v3880_v28 = vpop.f32.mrf.mxu2 }
 0x600   :  { %v3881_v2 = vadd.f32 %v4829_v32, %v3880_v28 }
 0x602   :  { %v3896_v39 = vadd.f32 %v3881_v2, %v7602_v33  ;;  %v3921_v33 = vadd.f32 %v3913_v25, %v3419_v60 }
 0x604   :  { %3904 = vst [vmem:[%s7826_s15 + $0x30] sm:$0xff] %v3896_v39 }
 0x605   :  { %3929 = vst [vmem:[%s7826_s15 + $0x48] sm:$0xff] %v3921_v33 }
 0x607   :  { %v3883_v36 = vpop.f32.mrf.mxu2 }
 0x608   :  { %v3884_v8 = vadd.f32 %v4829_v32, %v3883_v36 }
 0x60a   :  { %v3897_v27 = vadd.f32 %v3884_v8, %v7614_v37 }
 0x60c   :  { %3905 = vst [vmem:[%s7826_s15 + $0x40] sm:$0xff] %v3897_v27 }
 0x60f   :  { %v3885_v37 = vpop.f32.mrf.mxu2 }
 0x610   :  { %v3886_v19 = vadd.f32 %v4829_v32, %v3885_v37 }
 0x612   :  { %v3898_v61 = vadd.f32 %v3886_v19, %v7619_v59 }
 0x614   :  { %3906 = vst [vmem:[%s7826_s15 + $0x50] sm:$0xff] %v3898_v61 }
 0x617   :  { %v3888_v21 = vpop.f32.mrf.mxu2 }
 0x618   :  { %v3889_v6 = vadd.f32 %v4829_v32, %v3888_v21 }
 0x61a   :  { %v3899_v12 = vadd.f32 %v3889_v6, %v7626_v51 }
 0x61c   :  { %3907 = vst [vmem:[%s7826_s15 + $0x60] sm:$0xff] %v3899_v12 }
 0x61f   :  { %v3890_v56 = vpop.f32.mrf.mxu2 }
 0x620   :  { %v3891_v62 = vadd.f32 %v4829_v32, %v3890_v56 }
 0x622   :  { %v3900_v18 = vadd.f32 %v3891_v62, %v7631_v49 }
 0x624   :  { %3908 = vst [vmem:[%s7826_s15 + $0x70] sm:$0xff] %v3900_v18 }

</bundles_post_ra>
